<compile_context>
chip_gen: v7x
topology: tpu7x:2x2x1
jax: 0.10.0
libtpu: 0.0.40
codegen_flags: <defaults>
</compile_context>

<pallas_src>
import functools
import numpy as np
import jax
import jax.numpy as jnp
from jax.experimental import pallas as pl
from jax.experimental.pallas import tpu as pltpu


# -----------------------------------------------------------------------------
# Fused Pallas kernel: entire SetTransformer forward for one batch tile.
# -----------------------------------------------------------------------------
def fused_set_transformer_kernel(x1_ref, x2_ref, i0_ref, i1_ref, s_ref,
                                 mw_ref, mb_ref, dw_ref, db_ref, out_ref,
                                 *, num_heads, dim_v):
    bt = x1_ref.shape[0]                       # batch-tile size
    dh = dim_v // num_heads
    # PyTorch NCES MAB scales by sqrt(dim_V) (full), not sqrt(dh). Keep it.
    scale = 1.0 / float(np.sqrt(dim_v))

    def mab(q_in, k_in, base):
        """Multihead Attention Block on a whole batch tile.

        q_in: (bt, nq, dim_v), k_in: (bt, nk, dim_v)
        Weights for this MAB live at mw_ref[base:base+4] (wq, wk, wv, wo).
        """
        nq, nk = q_in.shape[1], k_in.shape[1]
        # Batch-folded projections: fill the MXU M dimension with bt*n rows.
        q = jnp.dot(q_in.reshape(bt * nq, dim_v), mw_ref[base + 0],
                    preferred_element_type=jnp.float32) + mb_ref[base + 0]
        k = jnp.dot(k_in.reshape(bt * nk, dim_v), mw_ref[base + 1],
                    preferred_element_type=jnp.float32) + mb_ref[base + 1]
        v = jnp.dot(k_in.reshape(bt * nk, dim_v), mw_ref[base + 2],
                    preferred_element_type=jnp.float32) + mb_ref[base + 2]
        q3 = q.reshape(bt, nq, dim_v)
        k3 = k.reshape(bt, nk, dim_v)
        v3 = v.reshape(bt, nk, dim_v)

        # Stack heads onto the leading (batch) axis -- same trick as
        # torch.cat(X.split(dh, 2), 0) -- so a single batched dot_general
        # handles every (head, batch) pair at once.
        def split_heads(t):
            return jnp.concatenate(
                [t[:, :, h * dh:(h + 1) * dh] for h in range(num_heads)], axis=0)

        qh, kh, vh = split_heads(q3), split_heads(k3), split_heads(v3)  # (H*bt, n, dh)

        s = jnp.einsum("bqd,bkd->bqk", qh, kh,
                       preferred_element_type=jnp.float32) * scale       # (H*bt, nq, nk)
        s = s - jnp.max(s, axis=-1, keepdims=True)
        p = jnp.exp(s)
        # EUP reciprocal instead of a VALU divide.
        p = p * pl.reciprocal(jnp.sum(p, axis=-1, keepdims=True), approx=True)
        oh = qh + jnp.einsum("bqk,bkd->bqd", p, vh,
                             preferred_element_type=jnp.float32)          # (H*bt, nq, dh)

        # Re-merge heads onto the feature axis (inverse of split_heads).
        o3 = jnp.concatenate(
            [oh[h * bt:(h + 1) * bt] for h in range(num_heads)], axis=-1)  # (bt, nq, dim_v)
        o2 = o3.reshape(bt * nq, dim_v)
        ff = jnp.dot(o2, mw_ref[base + 3],
                     preferred_element_type=jnp.float32) + mb_ref[base + 3]
        o2 = o2 + jnp.maximum(ff, 0.0)            # O = O + relu(fc_o(O)), ln=False
        return o2.reshape(bt, nq, dim_v)

    def isab(x, inducing, base):
        i_b = jnp.broadcast_to(inducing[None], (bt,) + inducing.shape)  # (bt, m, D)
        h = mab(i_b, x, base)                    # MAB0(I, X)
        return mab(x, h, base + 4)               # MAB1(X, H)

    x1 = x1_ref[...]
    x2 = x2_ref[...]
    i0 = i0_ref[...]
    i1 = i1_ref[...]

    def enc(x):
        return isab(isab(x, i0, 0), i1, 8)       # two stacked ISABs

    e1 = enc(x1)
    e2 = enc(x2)
    xc = jnp.concatenate([e1, e2], axis=1)       # cat along the set dimension

    seeds = s_ref[...]
    s_b = jnp.broadcast_to(seeds[None], (bt,) + seeds.shape)   # (bt, num_seeds, D)
    pm = mab(s_b, xc, 16)                        # PMA
    n_seeds = pm.shape[1]

    # Decoder Linear; output width is pre-padded to a multiple of 128 so the
    # store is lane-dense (unmasked vst). Padding columns carry zero weights.
    dec = jnp.dot(pm.reshape(bt * n_seeds, dim_v), dw_ref[...],
                  preferred_element_type=jnp.float32) + db_ref[...]
    out_ref[...] = dec.reshape(bt, n_seeds, -1).astype(out_ref.dtype)


# -----------------------------------------------------------------------------
# Host-side wrapper
# -----------------------------------------------------------------------------
def _stack_mab_params(params, d_p):
    """Stack the 5 MABs' (wq, wk, wv, wo) / biases into (20, d_p, d_p)/(20, 1, d_p)."""
    order = [params["isab0"]["mab0"], params["isab0"]["mab1"],
             params["isab1"]["mab0"], params["isab1"]["mab1"],
             params["pma"]["mab"]]
    ws, bs = [], []
    for p in order:
        for nm in ("wq", "wk", "wv", "wo"):
            w = p[nm]
            if w.shape[0] < d_p:                 # zero-pad contracting dim (exact)
                w = jnp.pad(w, ((0, d_p - w.shape[0]), (0, 0)))
            ws.append(w)
        for nm in ("bq", "bk", "bv", "bo"):
            bs.append(p[nm])                     # each (1, d_p)
    return jnp.stack(ws, axis=0), jnp.stack(bs, axis=0)


def set_transformer_forward(params, cfg, x1, x2, block_b=None):
    B, N, d_in = x1.shape
    d_p = cfg["proj_dim"]
    n_seeds = cfg["num_seeds"]
    m = cfg["num_inds"]
    V, L = cfg["vocab_size"], cfg["max_len"]
    assert d_in <= d_p, "fused kernel zero-pads input features up to proj_dim"

    # Zero-pad raw input features up to proj_dim (matched by zero-padded weight
    # rows in _stack_mab_params) so every MAB sees a uniform feature width.
    if d_in < d_p:
        pad = d_p - d_in
        x1 = jnp.pad(x1, ((0, 0), (0, 0), (0, pad)))
        x2 = jnp.pad(x2, ((0, 0), (0, 0), (0, pad)))

    d_out = V * L
    d_out_pad = ((d_out + 127) // 128) * 128     # lane-dense store width

    # Batch tile: largest divisor of B up to 16 (Bt*N fills the MXU M dim as B
    # grows); one grid step per tile, megacore-parallel across tiles.
    if block_b is None:
        block_b = max(d for d in range(1, min(B, 16) + 1) if B % d == 0)
    grid = (B // block_b,)

    mab_w, mab_b = _stack_mab_params(params, d_p)
    i0 = params["isab0"]["I"][0]                 # (m, d_p)
    i1 = params["isab1"]["I"][0]
    seeds = params["pma"]["S"][0]                # (num_seeds, d_p)
    dec_w = jnp.pad(params["dec_w"], ((0, 0), (0, d_out_pad - d_out)))
    dec_b = jnp.pad(params["dec_b"], ((0, 0), (0, d_out_pad - d_out)))

    kernel = functools.partial(fused_set_transformer_kernel,
                               num_heads=cfg["num_heads"], dim_v=d_p)

    out = pl.pallas_call(
        kernel,
        out_shape=jax.ShapeDtypeStruct((B, n_seeds, d_out_pad), jnp.float32),
        grid=grid,
        in_specs=[
            pl.BlockSpec((block_b, N, d_p), lambda b: (b, 0, 0)),    # x1 tile
            pl.BlockSpec((block_b, N, d_p), lambda b: (b, 0, 0)),    # x2 tile
            pl.BlockSpec((m, d_p), lambda b: (0, 0)),                # I0 (resident)
            pl.BlockSpec((m, d_p), lambda b: (0, 0)),                # I1 (resident)
            pl.BlockSpec((n_seeds, d_p), lambda b: (0, 0)),          # S  (resident)
            pl.BlockSpec((20, d_p, d_p), lambda b: (0, 0, 0)),       # stacked MAB W
            pl.BlockSpec((20, 1, d_p), lambda b: (0, 0, 0)),         # stacked MAB b
            pl.BlockSpec((d_p, d_out_pad), lambda b: (0, 0)),        # decoder W (padded)
            pl.BlockSpec((1, d_out_pad), lambda b: (0, 0)),          # decoder b (padded)
        ],
        out_specs=pl.BlockSpec((block_b, n_seeds, d_out_pad), lambda b: (b, 0, 0)),
        compiler_params=pltpu.CompilerParams(
            dimension_semantics=("parallel",),   # batch tiles split across TCs
        ),
    )(x1, x2, i0, i1, seeds, mab_w, mab_b, dec_w, dec_b)

    logits = out[:, :, :d_out].reshape(B * n_seeds, V, L)
    token_ids = jnp.argmax(logits, axis=1)       # argmax over the vocab axis
    return token_ids, logits


# -----------------------------------------------------------------------------
# Deterministic parameter init (shapes follow the nn.Module __init__)
# -----------------------------------------------------------------------------
def init_linear(key, d_in, d_out):
    k1, k2 = jax.random.split(key)
    bound = 1.0 / np.sqrt(d_in)
    w = jax.random.uniform(k1, (d_in, d_out), jnp.float32, -bound, bound)
    b = jax.random.uniform(k2, (1, d_out), jnp.float32, -bound, bound)
    return w, b


def init_mab(key, dq, dk, dv):
    ks = jax.random.split(key, 4)
    wq, bq = init_linear(ks[0], dq, dv)
    wk, bk = init_linear(ks[1], dk, dv)
    wv, bv = init_linear(ks[2], dk, dv)
    wo, bo = init_linear(ks[3], dv, dv)
    return dict(wq=wq, bq=bq, wk=wk, bk=bk, wv=wv, bv=bv, wo=wo, bo=bo)


def xavier_uniform(key, shape):
    fan_in, fan_out = shape[-1], shape[-2]
    a = np.sqrt(6.0 / (fan_in + fan_out))
    return jax.random.uniform(key, shape, jnp.float32, -a, a)


def init_params(key, cfg):
    d_in, d_p = cfg["input_size"], cfg["proj_dim"]
    m, s = cfg["num_inds"], cfg["num_seeds"]
    ks = jax.random.split(key, 10)
    params = {
        "isab0": dict(I=xavier_uniform(ks[0], (1, m, d_p)),
                      mab0=init_mab(ks[1], d_p, d_in, d_p),
                      mab1=init_mab(ks[2], d_in, d_p, d_p)),
        "isab1": dict(I=xavier_uniform(ks[3], (1, m, d_p)),
                      mab0=init_mab(ks[4], d_p, d_p, d_p),
                      mab1=init_mab(ks[5], d_p, d_p, d_p)),
        "pma":   dict(S=xavier_uniform(ks[6], (1, s, d_p)),
                      mab=init_mab(ks[7], d_p, d_p, d_p)),
    }
    dec_w, dec_b = init_linear(ks[8], d_p, cfg["vocab_size"] * cfg["max_len"])
    params["dec_w"], params["dec_b"] = dec_w, dec_b
    return params


# -----------------------------------------------------------------------------
if __name__ == "__main__":
    # Synthetic vocabulary in place of the OWL knowledge-base signature.
    # TODO(synk): real model builds its vocab from an ontology file (KnowledgeBase /
    # DLSyntaxObjectRenderer); no Pallas/JAX equivalent, replaced with a fixed list.
    atomic_concepts = ["Person", "Place", "Thing"]
    roles = ["hasPart", "locatedIn"]
    vocab_list = sorted(atomic_concepts + roles +
                        ['⊔', '⊓', '∃', '∀', '¬', '⊤', '⊥', '.', ' ', '(', ')']) + ['PAD']
    inv_vocab = np.array(vocab_list, dtype="object")

    cfg = dict(
        input_size=32,   # kwargs.input_size
        proj_dim=32,     # kwargs.proj_dim
        num_heads=4,     # kwargs.num_heads
        num_inds=8,      # kwargs.num_inds
        num_seeds=1,     # kwargs.num_seeds
        max_len=16,      # kwargs.max_length
        ln=False,        # kwargs.ln (LayerNorm disabled in this configuration)
        vocab_size=len(vocab_list),
    )

    key = jax.random.PRNGKey(0)
    kp, k1, k2 = jax.random.split(key, 3)
    params = init_params(kp, cfg)

    B, N = 2, 8
    x1 = jax.random.normal(k1, (B, N, cfg["input_size"]), jnp.float32)
    x2 = jax.random.normal(k2, (B, N, cfg["input_size"]), jnp.float32)

    fwd = jax.jit(functools.partial(set_transformer_forward, params, cfg))
    token_ids, logits = fwd(x1, x2)
    jax.block_until_ready(logits)

    aligned_chars = inv_vocab[np.asarray(token_ids)]   # (B*num_seeds, max_len) strings

    assert logits.shape == (B * cfg["num_seeds"], cfg["vocab_size"], cfg["max_len"])
    assert aligned_chars.shape == (B * cfg["num_seeds"], cfg["max_len"])
    assert bool(jnp.all(jnp.isfinite(logits)))
    print("KERNEL_OK")
</pallas_src>

<mosaic_0001>
module attributes {stable_mosaic.version = 11 : i64} {
  func.func @fused_set_transformer_kernel(%arg0: i32, %arg1: memref<2x8x32xf32, #tpu.memory_space<vmem>>, %arg2: memref<2x8x32xf32, #tpu.memory_space<vmem>>, %arg3: memref<8x32xf32, #tpu.memory_space<vmem>>, %arg4: memref<8x32xf32, #tpu.memory_space<vmem>>, %arg5: memref<1x32xf32, #tpu.memory_space<vmem>>, %arg6: memref<20x32x32xf32, #tpu.memory_space<vmem>>, %arg7: memref<20x1x32xf32, #tpu.memory_space<vmem>>, %arg8: memref<32x384xf32, #tpu.memory_space<vmem>>, %arg9: memref<1x384xf32, #tpu.memory_space<vmem>>, %arg10: memref<2x1x384xf32, #tpu.memory_space<vmem>>) attributes {dimension_semantics = [#tpu.dimension_semantics<parallel>], iteration_bounds = array<i64: 1>, scalar_prefetch = 0 : i64, scratch_operands = 0 : i64, tpu.core_type = #tpu.core_type<tc>, window_params = [{transform_indices = @transform_0, window_bounds = array<i64: 2, 8, 32>}, {transform_indices = @transform_1, window_bounds = array<i64: 2, 8, 32>}, {pipeline_mode = #tpu.pipeline_mode<synchronous>, transform_indices = @transform_2, window_bounds = array<i64: 8, 32>}, {pipeline_mode = #tpu.pipeline_mode<synchronous>, transform_indices = @transform_3, window_bounds = array<i64: 8, 32>}, {pipeline_mode = #tpu.pipeline_mode<synchronous>, transform_indices = @transform_4, window_bounds = array<i64: 1, 32>}, {pipeline_mode = #tpu.pipeline_mode<synchronous>, transform_indices = @transform_5, window_bounds = array<i64: 20, 32, 32>}, {pipeline_mode = #tpu.pipeline_mode<synchronous>, transform_indices = @transform_6, window_bounds = array<i64: 20, 1, 32>}, {pipeline_mode = #tpu.pipeline_mode<synchronous>, transform_indices = @transform_7, window_bounds = array<i64: 32, 384>}, {pipeline_mode = #tpu.pipeline_mode<synchronous>, transform_indices = @transform_8, window_bounds = array<i64: 1, 384>}, {transform_indices = @transform_9, window_bounds = array<i64: 2, 1, 384>}]} {
    %c0 = arith.constant 0 : index
    %c0_0 = arith.constant 0 : index
    %c0_1 = arith.constant 0 : index
    %0 = vector.load %arg1[%c0, %c0_0, %c0_1] : memref<2x8x32xf32, #tpu.memory_space<vmem>>, vector<2x8x32xf32>
    %c0_2 = arith.constant 0 : index
    %c0_3 = arith.constant 0 : index
    %c0_4 = arith.constant 0 : index
    %1 = vector.load %arg2[%c0_2, %c0_3, %c0_4] : memref<2x8x32xf32, #tpu.memory_space<vmem>>, vector<2x8x32xf32>
    %c0_5 = arith.constant 0 : index
    %c0_6 = arith.constant 0 : index
    %2 = vector.load %arg3[%c0_5, %c0_6] : memref<8x32xf32, #tpu.memory_space<vmem>>, vector<8x32xf32>
    %c0_7 = arith.constant 0 : index
    %c0_8 = arith.constant 0 : index
    %3 = vector.load %arg4[%c0_7, %c0_8] : memref<8x32xf32, #tpu.memory_space<vmem>>, vector<8x32xf32>
    %4 = vector.shape_cast %2 : vector<8x32xf32> to vector<1x8x32xf32>
    %5 = vector.shape_cast %4 : vector<1x8x32xf32> to vector<1x8x32xf32>
    %6 = vector.broadcast %5 : vector<1x8x32xf32> to vector<2x8x32xf32>
    %7 = vector.shape_cast %6 : vector<2x8x32xf32> to vector<16x32xf32>
    %c0_9 = arith.constant 0 : index
    %c0_10 = arith.constant 0 : index
    %c0_11 = arith.constant 0 : index
    %8 = vector.load %arg6[%c0_9, %c0_10, %c0_11] : memref<20x32x32xf32, #tpu.memory_space<vmem>>, vector<1x32x32xf32>
    %9 = vector.shape_cast %8 : vector<1x32x32xf32> to vector<32x32xf32>
    %cst = arith.constant dense<0.000000e+00> : vector<16x32xf32>
    %10 = tpu.matmul %7, %9, %cst {dimension_numbers = #tpu.dot_dimension_numbers<[1], [0], [0], [1], [0, 0, 1, 1], [], []>} : vector<16x32xf32>, vector<32x32xf32>, vector<16x32xf32> -> vector<16x32xf32>
    %c0_12 = arith.constant 0 : index
    %c0_13 = arith.constant 0 : index
    %c0_14 = arith.constant 0 : index
    %11 = vector.load %arg7[%c0_12, %c0_13, %c0_14] : memref<20x1x32xf32, #tpu.memory_space<vmem>>, vector<1x1x32xf32>
    %12 = vector.shape_cast %11 : vector<1x1x32xf32> to vector<1x32xf32>
    %13 = vector.broadcast %12 : vector<1x32xf32> to vector<16x32xf32>
    %14 = arith.addf %10, %13 : vector<16x32xf32>
    %15 = vector.shape_cast %0 : vector<2x8x32xf32> to vector<16x32xf32>
    %c1 = arith.constant 1 : index
    %c0_15 = arith.constant 0 : index
    %c0_16 = arith.constant 0 : index
    %16 = vector.load %arg6[%c1, %c0_15, %c0_16] : memref<20x32x32xf32, #tpu.memory_space<vmem>>, vector<1x32x32xf32>
    %17 = vector.shape_cast %16 : vector<1x32x32xf32> to vector<32x32xf32>
    %cst_17 = arith.constant dense<0.000000e+00> : vector<16x32xf32>
    %18 = tpu.matmul %15, %17, %cst_17 {dimension_numbers = #tpu.dot_dimension_numbers<[1], [0], [0], [1], [0, 0, 1, 1], [], []>} : vector<16x32xf32>, vector<32x32xf32>, vector<16x32xf32> -> vector<16x32xf32>
    %c1_18 = arith.constant 1 : index
    %c0_19 = arith.constant 0 : index
    %c0_20 = arith.constant 0 : index
    %19 = vector.load %arg7[%c1_18, %c0_19, %c0_20] : memref<20x1x32xf32, #tpu.memory_space<vmem>>, vector<1x1x32xf32>
    %20 = vector.shape_cast %19 : vector<1x1x32xf32> to vector<1x32xf32>
    %21 = vector.broadcast %20 : vector<1x32xf32> to vector<16x32xf32>
    %22 = arith.addf %18, %21 : vector<16x32xf32>
    %23 = vector.shape_cast %0 : vector<2x8x32xf32> to vector<16x32xf32>
    %c2 = arith.constant 2 : index
    %c0_21 = arith.constant 0 : index
    %c0_22 = arith.constant 0 : index
    %24 = vector.load %arg6[%c2, %c0_21, %c0_22] : memref<20x32x32xf32, #tpu.memory_space<vmem>>, vector<1x32x32xf32>
    %25 = vector.shape_cast %24 : vector<1x32x32xf32> to vector<32x32xf32>
    %cst_23 = arith.constant dense<0.000000e+00> : vector<16x32xf32>
    %26 = tpu.matmul %23, %25, %cst_23 {dimension_numbers = #tpu.dot_dimension_numbers<[1], [0], [0], [1], [0, 0, 1, 1], [], []>} : vector<16x32xf32>, vector<32x32xf32>, vector<16x32xf32> -> vector<16x32xf32>
    %c2_24 = arith.constant 2 : index
    %c0_25 = arith.constant 0 : index
    %c0_26 = arith.constant 0 : index
    %27 = vector.load %arg7[%c2_24, %c0_25, %c0_26] : memref<20x1x32xf32, #tpu.memory_space<vmem>>, vector<1x1x32xf32>
    %28 = vector.shape_cast %27 : vector<1x1x32xf32> to vector<1x32xf32>
    %29 = vector.broadcast %28 : vector<1x32xf32> to vector<16x32xf32>
    %30 = arith.addf %26, %29 : vector<16x32xf32>
    %31 = vector.shape_cast %14 : vector<16x32xf32> to vector<2x8x32xf32>
    %32 = vector.shape_cast %22 : vector<16x32xf32> to vector<2x8x32xf32>
    %33 = vector.shape_cast %30 : vector<16x32xf32> to vector<2x8x32xf32>
    %34 = vector.extract_strided_slice %31 {offsets = [0, 0, 0], sizes = [2, 8, 8], strides = [1, 1, 1]} : vector<2x8x32xf32> to vector<2x8x8xf32>
    %35 = vector.extract_strided_slice %31 {offsets = [0, 0, 8], sizes = [2, 8, 8], strides = [1, 1, 1]} : vector<2x8x32xf32> to vector<2x8x8xf32>
    %36 = vector.extract_strided_slice %31 {offsets = [0, 0, 16], sizes = [2, 8, 8], strides = [1, 1, 1]} : vector<2x8x32xf32> to vector<2x8x8xf32>
    %37 = vector.extract_strided_slice %31 {offsets = [0, 0, 24], sizes = [2, 8, 8], strides = [1, 1, 1]} : vector<2x8x32xf32> to vector<2x8x8xf32>
    %38 = tpu.concatenate %34, %35, %36, %37 in 0 : vector<2x8x8xf32>, vector<2x8x8xf32>, vector<2x8x8xf32>, vector<2x8x8xf32> -> vector<8x8x8xf32>
    %39 = vector.extract_strided_slice %32 {offsets = [0, 0, 0], sizes = [2, 8, 8], strides = [1, 1, 1]} : vector<2x8x32xf32> to vector<2x8x8xf32>
    %40 = vector.extract_strided_slice %32 {offsets = [0, 0, 8], sizes = [2, 8, 8], strides = [1, 1, 1]} : vector<2x8x32xf32> to vector<2x8x8xf32>
    %41 = vector.extract_strided_slice %32 {offsets = [0, 0, 16], sizes = [2, 8, 8], strides = [1, 1, 1]} : vector<2x8x32xf32> to vector<2x8x8xf32>
    %42 = vector.extract_strided_slice %32 {offsets = [0, 0, 24], sizes = [2, 8, 8], strides = [1, 1, 1]} : vector<2x8x32xf32> to vector<2x8x8xf32>
    %43 = tpu.concatenate %39, %40, %41, %42 in 0 : vector<2x8x8xf32>, vector<2x8x8xf32>, vector<2x8x8xf32>, vector<2x8x8xf32> -> vector<8x8x8xf32>
    %44 = vector.extract_strided_slice %33 {offsets = [0, 0, 0], sizes = [2, 8, 8], strides = [1, 1, 1]} : vector<2x8x32xf32> to vector<2x8x8xf32>
    %45 = vector.extract_strided_slice %33 {offsets = [0, 0, 8], sizes = [2, 8, 8], strides = [1, 1, 1]} : vector<2x8x32xf32> to vector<2x8x8xf32>
    %46 = vector.extract_strided_slice %33 {offsets = [0, 0, 16], sizes = [2, 8, 8], strides = [1, 1, 1]} : vector<2x8x32xf32> to vector<2x8x8xf32>
    %47 = vector.extract_strided_slice %33 {offsets = [0, 0, 24], sizes = [2, 8, 8], strides = [1, 1, 1]} : vector<2x8x32xf32> to vector<2x8x8xf32>
    %48 = tpu.concatenate %44, %45, %46, %47 in 0 : vector<2x8x8xf32>, vector<2x8x8xf32>, vector<2x8x8xf32>, vector<2x8x8xf32> -> vector<8x8x8xf32>
    "tpu.trace_start"() <{level = 10 : i32, message = "bqd,bkd->bqk"}> : () -> ()
    %cst_27 = arith.constant dense<0.000000e+00> : vector<8x8x8xf32>
    %49 = tpu.matmul %38, %43, %cst_27 {dimension_numbers = #tpu.dot_dimension_numbers<[2], [2], [1], [1], [0, 0, 0, 1, 1, 1], [0], [0]>} : vector<8x8x8xf32>, vector<8x8x8xf32>, vector<8x8x8xf32> -> vector<8x8x8xf32>
    "tpu.trace_stop"() : () -> ()
    %cst_28 = arith.constant 0.176776692 : f32
    %50 = vector.broadcast %cst_28 : f32 to vector<8x8x8xf32>
    %51 = arith.mulf %49, %50 : vector<8x8x8xf32>
    %cst_29 = arith.constant dense<0xFF800000> : vector<8x8xf32>
    %52 = vector.multi_reduction <maximumf>, %51, %cst_29 [2] : vector<8x8x8xf32> to vector<8x8xf32>
    %53 = vector.shape_cast %52 : vector<8x8xf32> to vector<8x8x1xf32>
    %54 = vector.broadcast %53 : vector<8x8x1xf32> to vector<8x8x8xf32>
    %55 = arith.subf %51, %54 : vector<8x8x8xf32>
    %56 = math.exp %55 : vector<8x8x8xf32>
    %cst_30 = arith.constant dense<0.000000e+00> : vector<8x8xf32>
    %57 = vector.multi_reduction <add>, %56, %cst_30 [2] : vector<8x8x8xf32> to vector<8x8xf32>
    %58 = vector.shape_cast %57 : vector<8x8xf32> to vector<8x8x1xf32>
    %59 = tpu.reciprocal %58 {approx = true} : vector<8x8x1xf32> -> vector<8x8x1xf32>
    %60 = vector.broadcast %59 : vector<8x8x1xf32> to vector<8x8x8xf32>
    %61 = arith.mulf %56, %60 : vector<8x8x8xf32>
    "tpu.trace_start"() <{level = 10 : i32, message = "bqk,bkd->bqd"}> : () -> ()
    %cst_31 = arith.constant dense<0.000000e+00> : vector<8x8x8xf32>
    %62 = tpu.matmul %61, %48, %cst_31 {dimension_numbers = #tpu.dot_dimension_numbers<[2], [1], [1], [2], [0, 0, 0, 1, 1, 2], [0], [0]>} : vector<8x8x8xf32>, vector<8x8x8xf32>, vector<8x8x8xf32> -> vector<8x8x8xf32>
    "tpu.trace_stop"() : () -> ()
    %63 = arith.addf %38, %62 : vector<8x8x8xf32>
    %64 = vector.extract_strided_slice %63 {offsets = [0, 0, 0], sizes = [2, 8, 8], strides = [1, 1, 1]} : vector<8x8x8xf32> to vector<2x8x8xf32>
    %65 = vector.extract_strided_slice %63 {offsets = [2, 0, 0], sizes = [2, 8, 8], strides = [1, 1, 1]} : vector<8x8x8xf32> to vector<2x8x8xf32>
    %66 = vector.extract_strided_slice %63 {offsets = [4, 0, 0], sizes = [2, 8, 8], strides = [1, 1, 1]} : vector<8x8x8xf32> to vector<2x8x8xf32>
    %67 = vector.extract_strided_slice %63 {offsets = [6, 0, 0], sizes = [2, 8, 8], strides = [1, 1, 1]} : vector<8x8x8xf32> to vector<2x8x8xf32>
    %68 = tpu.concatenate %64, %65, %66, %67 in 2 : vector<2x8x8xf32>, vector<2x8x8xf32>, vector<2x8x8xf32>, vector<2x8x8xf32> -> vector<2x8x32xf32>
    %69 = vector.shape_cast %68 : vector<2x8x32xf32> to vector<16x32xf32>
    %c3 = arith.constant 3 : index
    %c0_32 = arith.constant 0 : index
    %c0_33 = arith.constant 0 : index
    %70 = vector.load %arg6[%c3, %c0_32, %c0_33] : memref<20x32x32xf32, #tpu.memory_space<vmem>>, vector<1x32x32xf32>
    %71 = vector.shape_cast %70 : vector<1x32x32xf32> to vector<32x32xf32>
    %cst_34 = arith.constant dense<0.000000e+00> : vector<16x32xf32>
    %72 = tpu.matmul %69, %71, %cst_34 {dimension_numbers = #tpu.dot_dimension_numbers<[1], [0], [0], [1], [0, 0, 1, 1], [], []>} : vector<16x32xf32>, vector<32x32xf32>, vector<16x32xf32> -> vector<16x32xf32>
    %c3_35 = arith.constant 3 : index
    %c0_36 = arith.constant 0 : index
    %c0_37 = arith.constant 0 : index
    %73 = vector.load %arg7[%c3_35, %c0_36, %c0_37] : memref<20x1x32xf32, #tpu.memory_space<vmem>>, vector<1x1x32xf32>
    %74 = vector.shape_cast %73 : vector<1x1x32xf32> to vector<1x32xf32>
    %75 = vector.broadcast %74 : vector<1x32xf32> to vector<16x32xf32>
    %76 = arith.addf %72, %75 : vector<16x32xf32>
    %cst_38 = arith.constant 0.000000e+00 : f32
    %77 = vector.broadcast %cst_38 : f32 to vector<16x32xf32>
    %78 = arith.maximumf %76, %77 : vector<16x32xf32>
    %79 = arith.addf %69, %78 : vector<16x32xf32>
    %80 = vector.shape_cast %79 : vector<16x32xf32> to vector<2x8x32xf32>
    %81 = vector.shape_cast %0 : vector<2x8x32xf32> to vector<16x32xf32>
    %c4 = arith.constant 4 : index
    %c0_39 = arith.constant 0 : index
    %c0_40 = arith.constant 0 : index
    %82 = vector.load %arg6[%c4, %c0_39, %c0_40] : memref<20x32x32xf32, #tpu.memory_space<vmem>>, vector<1x32x32xf32>
    %83 = vector.shape_cast %82 : vector<1x32x32xf32> to vector<32x32xf32>
    %cst_41 = arith.constant dense<0.000000e+00> : vector<16x32xf32>
    %84 = tpu.matmul %81, %83, %cst_41 {dimension_numbers = #tpu.dot_dimension_numbers<[1], [0], [0], [1], [0, 0, 1, 1], [], []>} : vector<16x32xf32>, vector<32x32xf32>, vector<16x32xf32> -> vector<16x32xf32>
    %c4_42 = arith.constant 4 : index
    %c0_43 = arith.constant 0 : index
    %c0_44 = arith.constant 0 : index
    %85 = vector.load %arg7[%c4_42, %c0_43, %c0_44] : memref<20x1x32xf32, #tpu.memory_space<vmem>>, vector<1x1x32xf32>
    %86 = vector.shape_cast %85 : vector<1x1x32xf32> to vector<1x32xf32>
    %87 = vector.broadcast %86 : vector<1x32xf32> to vector<16x32xf32>
    %88 = arith.addf %84, %87 : vector<16x32xf32>
    %89 = vector.shape_cast %80 : vector<2x8x32xf32> to vector<16x32xf32>
    %c5 = arith.constant 5 : index
    %c0_45 = arith.constant 0 : index
    %c0_46 = arith.constant 0 : index
    %90 = vector.load %arg6[%c5, %c0_45, %c0_46] : memref<20x32x32xf32, #tpu.memory_space<vmem>>, vector<1x32x32xf32>
    %91 = vector.shape_cast %90 : vector<1x32x32xf32> to vector<32x32xf32>
    %cst_47 = arith.constant dense<0.000000e+00> : vector<16x32xf32>
    %92 = tpu.matmul %89, %91, %cst_47 {dimension_numbers = #tpu.dot_dimension_numbers<[1], [0], [0], [1], [0, 0, 1, 1], [], []>} : vector<16x32xf32>, vector<32x32xf32>, vector<16x32xf32> -> vector<16x32xf32>
    %c5_48 = arith.constant 5 : index
    %c0_49 = arith.constant 0 : index
    %c0_50 = arith.constant 0 : index
    %93 = vector.load %arg7[%c5_48, %c0_49, %c0_50] : memref<20x1x32xf32, #tpu.memory_space<vmem>>, vector<1x1x32xf32>
    %94 = vector.shape_cast %93 : vector<1x1x32xf32> to vector<1x32xf32>
    %95 = vector.broadcast %94 : vector<1x32xf32> to vector<16x32xf32>
    %96 = arith.addf %92, %95 : vector<16x32xf32>
    %97 = vector.shape_cast %80 : vector<2x8x32xf32> to vector<16x32xf32>
    %c6 = arith.constant 6 : index
    %c0_51 = arith.constant 0 : index
    %c0_52 = arith.constant 0 : index
    %98 = vector.load %arg6[%c6, %c0_51, %c0_52] : memref<20x32x32xf32, #tpu.memory_space<vmem>>, vector<1x32x32xf32>
    %99 = vector.shape_cast %98 : vector<1x32x32xf32> to vector<32x32xf32>
    %cst_53 = arith.constant dense<0.000000e+00> : vector<16x32xf32>
    %100 = tpu.matmul %97, %99, %cst_53 {dimension_numbers = #tpu.dot_dimension_numbers<[1], [0], [0], [1], [0, 0, 1, 1], [], []>} : vector<16x32xf32>, vector<32x32xf32>, vector<16x32xf32> -> vector<16x32xf32>
    %c6_54 = arith.constant 6 : index
    %c0_55 = arith.constant 0 : index
    %c0_56 = arith.constant 0 : index
    %101 = vector.load %arg7[%c6_54, %c0_55, %c0_56] : memref<20x1x32xf32, #tpu.memory_space<vmem>>, vector<1x1x32xf32>
    %102 = vector.shape_cast %101 : vector<1x1x32xf32> to vector<1x32xf32>
    %103 = vector.broadcast %102 : vector<1x32xf32> to vector<16x32xf32>
    %104 = arith.addf %100, %103 : vector<16x32xf32>
    %105 = vector.shape_cast %88 : vector<16x32xf32> to vector<2x8x32xf32>
    %106 = vector.shape_cast %96 : vector<16x32xf32> to vector<2x8x32xf32>
    %107 = vector.shape_cast %104 : vector<16x32xf32> to vector<2x8x32xf32>
    %108 = vector.extract_strided_slice %105 {offsets = [0, 0, 0], sizes = [2, 8, 8], strides = [1, 1, 1]} : vector<2x8x32xf32> to vector<2x8x8xf32>
    %109 = vector.extract_strided_slice %105 {offsets = [0, 0, 8], sizes = [2, 8, 8], strides = [1, 1, 1]} : vector<2x8x32xf32> to vector<2x8x8xf32>
    %110 = vector.extract_strided_slice %105 {offsets = [0, 0, 16], sizes = [2, 8, 8], strides = [1, 1, 1]} : vector<2x8x32xf32> to vector<2x8x8xf32>
    %111 = vector.extract_strided_slice %105 {offsets = [0, 0, 24], sizes = [2, 8, 8], strides = [1, 1, 1]} : vector<2x8x32xf32> to vector<2x8x8xf32>
    %112 = tpu.concatenate %108, %109, %110, %111 in 0 : vector<2x8x8xf32>, vector<2x8x8xf32>, vector<2x8x8xf32>, vector<2x8x8xf32> -> vector<8x8x8xf32>
    %113 = vector.extract_strided_slice %106 {offsets = [0, 0, 0], sizes = [2, 8, 8], strides = [1, 1, 1]} : vector<2x8x32xf32> to vector<2x8x8xf32>
    %114 = vector.extract_strided_slice %106 {offsets = [0, 0, 8], sizes = [2, 8, 8], strides = [1, 1, 1]} : vector<2x8x32xf32> to vector<2x8x8xf32>
    %115 = vector.extract_strided_slice %106 {offsets = [0, 0, 16], sizes = [2, 8, 8], strides = [1, 1, 1]} : vector<2x8x32xf32> to vector<2x8x8xf32>
    %116 = vector.extract_strided_slice %106 {offsets = [0, 0, 24], sizes = [2, 8, 8], strides = [1, 1, 1]} : vector<2x8x32xf32> to vector<2x8x8xf32>
    %117 = tpu.concatenate %113, %114, %115, %116 in 0 : vector<2x8x8xf32>, vector<2x8x8xf32>, vector<2x8x8xf32>, vector<2x8x8xf32> -> vector<8x8x8xf32>
    %118 = vector.extract_strided_slice %107 {offsets = [0, 0, 0], sizes = [2, 8, 8], strides = [1, 1, 1]} : vector<2x8x32xf32> to vector<2x8x8xf32>
    %119 = vector.extract_strided_slice %107 {offsets = [0, 0, 8], sizes = [2, 8, 8], strides = [1, 1, 1]} : vector<2x8x32xf32> to vector<2x8x8xf32>
    %120 = vector.extract_strided_slice %107 {offsets = [0, 0, 16], sizes = [2, 8, 8], strides = [1, 1, 1]} : vector<2x8x32xf32> to vector<2x8x8xf32>
    %121 = vector.extract_strided_slice %107 {offsets = [0, 0, 24], sizes = [2, 8, 8], strides = [1, 1, 1]} : vector<2x8x32xf32> to vector<2x8x8xf32>
    %122 = tpu.concatenate %118, %119, %120, %121 in 0 : vector<2x8x8xf32>, vector<2x8x8xf32>, vector<2x8x8xf32>, vector<2x8x8xf32> -> vector<8x8x8xf32>
    "tpu.trace_start"() <{level = 10 : i32, message = "bqd,bkd->bqk"}> : () -> ()
    %cst_57 = arith.constant dense<0.000000e+00> : vector<8x8x8xf32>
    %123 = tpu.matmul %112, %117, %cst_57 {dimension_numbers = #tpu.dot_dimension_numbers<[2], [2], [1], [1], [0, 0, 0, 1, 1, 1], [0], [0]>} : vector<8x8x8xf32>, vector<8x8x8xf32>, vector<8x8x8xf32> -> vector<8x8x8xf32>
    "tpu.trace_stop"() : () -> ()
    %cst_58 = arith.constant 0.176776692 : f32
    %124 = vector.broadcast %cst_58 : f32 to vector<8x8x8xf32>
    %125 = arith.mulf %123, %124 : vector<8x8x8xf32>
    %cst_59 = arith.constant dense<0xFF800000> : vector<8x8xf32>
    %126 = vector.multi_reduction <maximumf>, %125, %cst_59 [2] : vector<8x8x8xf32> to vector<8x8xf32>
    %127 = vector.shape_cast %126 : vector<8x8xf32> to vector<8x8x1xf32>
    %128 = vector.broadcast %127 : vector<8x8x1xf32> to vector<8x8x8xf32>
    %129 = arith.subf %125, %128 : vector<8x8x8xf32>
    %130 = math.exp %129 : vector<8x8x8xf32>
    %cst_60 = arith.constant dense<0.000000e+00> : vector<8x8xf32>
    %131 = vector.multi_reduction <add>, %130, %cst_60 [2] : vector<8x8x8xf32> to vector<8x8xf32>
    %132 = vector.shape_cast %131 : vector<8x8xf32> to vector<8x8x1xf32>
    %133 = tpu.reciprocal %132 {approx = true} : vector<8x8x1xf32> -> vector<8x8x1xf32>
    %134 = vector.broadcast %133 : vector<8x8x1xf32> to vector<8x8x8xf32>
    %135 = arith.mulf %130, %134 : vector<8x8x8xf32>
    "tpu.trace_start"() <{level = 10 : i32, message = "bqk,bkd->bqd"}> : () -> ()
    %cst_61 = arith.constant dense<0.000000e+00> : vector<8x8x8xf32>
    %136 = tpu.matmul %135, %122, %cst_61 {dimension_numbers = #tpu.dot_dimension_numbers<[2], [1], [1], [2], [0, 0, 0, 1, 1, 2], [0], [0]>} : vector<8x8x8xf32>, vector<8x8x8xf32>, vector<8x8x8xf32> -> vector<8x8x8xf32>
    "tpu.trace_stop"() : () -> ()
    %137 = arith.addf %112, %136 : vector<8x8x8xf32>
    %138 = vector.extract_strided_slice %137 {offsets = [0, 0, 0], sizes = [2, 8, 8], strides = [1, 1, 1]} : vector<8x8x8xf32> to vector<2x8x8xf32>
    %139 = vector.extract_strided_slice %137 {offsets = [2, 0, 0], sizes = [2, 8, 8], strides = [1, 1, 1]} : vector<8x8x8xf32> to vector<2x8x8xf32>
    %140 = vector.extract_strided_slice %137 {offsets = [4, 0, 0], sizes = [2, 8, 8], strides = [1, 1, 1]} : vector<8x8x8xf32> to vector<2x8x8xf32>
    %141 = vector.extract_strided_slice %137 {offsets = [6, 0, 0], sizes = [2, 8, 8], strides = [1, 1, 1]} : vector<8x8x8xf32> to vector<2x8x8xf32>
    %142 = tpu.concatenate %138, %139, %140, %141 in 2 : vector<2x8x8xf32>, vector<2x8x8xf32>, vector<2x8x8xf32>, vector<2x8x8xf32> -> vector<2x8x32xf32>
    %143 = vector.shape_cast %142 : vector<2x8x32xf32> to vector<16x32xf32>
    %c7 = arith.constant 7 : index
    %c0_62 = arith.constant 0 : index
    %c0_63 = arith.constant 0 : index
    %144 = vector.load %arg6[%c7, %c0_62, %c0_63] : memref<20x32x32xf32, #tpu.memory_space<vmem>>, vector<1x32x32xf32>
    %145 = vector.shape_cast %144 : vector<1x32x32xf32> to vector<32x32xf32>
    %cst_64 = arith.constant dense<0.000000e+00> : vector<16x32xf32>
    %146 = tpu.matmul %143, %145, %cst_64 {dimension_numbers = #tpu.dot_dimension_numbers<[1], [0], [0], [1], [0, 0, 1, 1], [], []>} : vector<16x32xf32>, vector<32x32xf32>, vector<16x32xf32> -> vector<16x32xf32>
    %c7_65 = arith.constant 7 : index
    %c0_66 = arith.constant 0 : index
    %c0_67 = arith.constant 0 : index
    %147 = vector.load %arg7[%c7_65, %c0_66, %c0_67] : memref<20x1x32xf32, #tpu.memory_space<vmem>>, vector<1x1x32xf32>
    %148 = vector.shape_cast %147 : vector<1x1x32xf32> to vector<1x32xf32>
    %149 = vector.broadcast %148 : vector<1x32xf32> to vector<16x32xf32>
    %150 = arith.addf %146, %149 : vector<16x32xf32>
    %cst_68 = arith.constant 0.000000e+00 : f32
    %151 = vector.broadcast %cst_68 : f32 to vector<16x32xf32>
    %152 = arith.maximumf %150, %151 : vector<16x32xf32>
    %153 = arith.addf %143, %152 : vector<16x32xf32>
    %154 = vector.shape_cast %153 : vector<16x32xf32> to vector<2x8x32xf32>
    %155 = vector.shape_cast %3 : vector<8x32xf32> to vector<1x8x32xf32>
    %156 = vector.shape_cast %155 : vector<1x8x32xf32> to vector<1x8x32xf32>
    %157 = vector.broadcast %156 : vector<1x8x32xf32> to vector<2x8x32xf32>
    %158 = vector.shape_cast %157 : vector<2x8x32xf32> to vector<16x32xf32>
    %c8 = arith.constant 8 : index
    %c0_69 = arith.constant 0 : index
    %c0_70 = arith.constant 0 : index
    %159 = vector.load %arg6[%c8, %c0_69, %c0_70] : memref<20x32x32xf32, #tpu.memory_space<vmem>>, vector<1x32x32xf32>
    %160 = vector.shape_cast %159 : vector<1x32x32xf32> to vector<32x32xf32>
    %cst_71 = arith.constant dense<0.000000e+00> : vector<16x32xf32>
    %161 = tpu.matmul %158, %160, %cst_71 {dimension_numbers = #tpu.dot_dimension_numbers<[1], [0], [0], [1], [0, 0, 1, 1], [], []>} : vector<16x32xf32>, vector<32x32xf32>, vector<16x32xf32> -> vector<16x32xf32>
    %c8_72 = arith.constant 8 : index
    %c0_73 = arith.constant 0 : index
    %c0_74 = arith.constant 0 : index
    %162 = vector.load %arg7[%c8_72, %c0_73, %c0_74] : memref<20x1x32xf32, #tpu.memory_space<vmem>>, vector<1x1x32xf32>
    %163 = vector.shape_cast %162 : vector<1x1x32xf32> to vector<1x32xf32>
    %164 = vector.broadcast %163 : vector<1x32xf32> to vector<16x32xf32>
    %165 = arith.addf %161, %164 : vector<16x32xf32>
    %166 = vector.shape_cast %154 : vector<2x8x32xf32> to vector<16x32xf32>
    %c9 = arith.constant 9 : index
    %c0_75 = arith.constant 0 : index
    %c0_76 = arith.constant 0 : index
    %167 = vector.load %arg6[%c9, %c0_75, %c0_76] : memref<20x32x32xf32, #tpu.memory_space<vmem>>, vector<1x32x32xf32>
    %168 = vector.shape_cast %167 : vector<1x32x32xf32> to vector<32x32xf32>
    %cst_77 = arith.constant dense<0.000000e+00> : vector<16x32xf32>
    %169 = tpu.matmul %166, %168, %cst_77 {dimension_numbers = #tpu.dot_dimension_numbers<[1], [0], [0], [1], [0, 0, 1, 1], [], []>} : vector<16x32xf32>, vector<32x32xf32>, vector<16x32xf32> -> vector<16x32xf32>
    %c9_78 = arith.constant 9 : index
    %c0_79 = arith.constant 0 : index
    %c0_80 = arith.constant 0 : index
    %170 = vector.load %arg7[%c9_78, %c0_79, %c0_80] : memref<20x1x32xf32, #tpu.memory_space<vmem>>, vector<1x1x32xf32>
    %171 = vector.shape_cast %170 : vector<1x1x32xf32> to vector<1x32xf32>
    %172 = vector.broadcast %171 : vector<1x32xf32> to vector<16x32xf32>
    %173 = arith.addf %169, %172 : vector<16x32xf32>
    %174 = vector.shape_cast %154 : vector<2x8x32xf32> to vector<16x32xf32>
    %c10 = arith.constant 10 : index
    %c0_81 = arith.constant 0 : index
    %c0_82 = arith.constant 0 : index
    %175 = vector.load %arg6[%c10, %c0_81, %c0_82] : memref<20x32x32xf32, #tpu.memory_space<vmem>>, vector<1x32x32xf32>
    %176 = vector.shape_cast %175 : vector<1x32x32xf32> to vector<32x32xf32>
    %cst_83 = arith.constant dense<0.000000e+00> : vector<16x32xf32>
    %177 = tpu.matmul %174, %176, %cst_83 {dimension_numbers = #tpu.dot_dimension_numbers<[1], [0], [0], [1], [0, 0, 1, 1], [], []>} : vector<16x32xf32>, vector<32x32xf32>, vector<16x32xf32> -> vector<16x32xf32>
    %c10_84 = arith.constant 10 : index
    %c0_85 = arith.constant 0 : index
    %c0_86 = arith.constant 0 : index
    %178 = vector.load %arg7[%c10_84, %c0_85, %c0_86] : memref<20x1x32xf32, #tpu.memory_space<vmem>>, vector<1x1x32xf32>
    %179 = vector.shape_cast %178 : vector<1x1x32xf32> to vector<1x32xf32>
    %180 = vector.broadcast %179 : vector<1x32xf32> to vector<16x32xf32>
    %181 = arith.addf %177, %180 : vector<16x32xf32>
    %182 = vector.shape_cast %165 : vector<16x32xf32> to vector<2x8x32xf32>
    %183 = vector.shape_cast %173 : vector<16x32xf32> to vector<2x8x32xf32>
    %184 = vector.shape_cast %181 : vector<16x32xf32> to vector<2x8x32xf32>
    %185 = vector.extract_strided_slice %182 {offsets = [0, 0, 0], sizes = [2, 8, 8], strides = [1, 1, 1]} : vector<2x8x32xf32> to vector<2x8x8xf32>
    %186 = vector.extract_strided_slice %182 {offsets = [0, 0, 8], sizes = [2, 8, 8], strides = [1, 1, 1]} : vector<2x8x32xf32> to vector<2x8x8xf32>
    %187 = vector.extract_strided_slice %182 {offsets = [0, 0, 16], sizes = [2, 8, 8], strides = [1, 1, 1]} : vector<2x8x32xf32> to vector<2x8x8xf32>
    %188 = vector.extract_strided_slice %182 {offsets = [0, 0, 24], sizes = [2, 8, 8], strides = [1, 1, 1]} : vector<2x8x32xf32> to vector<2x8x8xf32>
    %189 = tpu.concatenate %185, %186, %187, %188 in 0 : vector<2x8x8xf32>, vector<2x8x8xf32>, vector<2x8x8xf32>, vector<2x8x8xf32> -> vector<8x8x8xf32>
    %190 = vector.extract_strided_slice %183 {offsets = [0, 0, 0], sizes = [2, 8, 8], strides = [1, 1, 1]} : vector<2x8x32xf32> to vector<2x8x8xf32>
    %191 = vector.extract_strided_slice %183 {offsets = [0, 0, 8], sizes = [2, 8, 8], strides = [1, 1, 1]} : vector<2x8x32xf32> to vector<2x8x8xf32>
    %192 = vector.extract_strided_slice %183 {offsets = [0, 0, 16], sizes = [2, 8, 8], strides = [1, 1, 1]} : vector<2x8x32xf32> to vector<2x8x8xf32>
    %193 = vector.extract_strided_slice %183 {offsets = [0, 0, 24], sizes = [2, 8, 8], strides = [1, 1, 1]} : vector<2x8x32xf32> to vector<2x8x8xf32>
    %194 = tpu.concatenate %190, %191, %192, %193 in 0 : vector<2x8x8xf32>, vector<2x8x8xf32>, vector<2x8x8xf32>, vector<2x8x8xf32> -> vector<8x8x8xf32>
    %195 = vector.extract_strided_slice %184 {offsets = [0, 0, 0], sizes = [2, 8, 8], strides = [1, 1, 1]} : vector<2x8x32xf32> to vector<2x8x8xf32>
    %196 = vector.extract_strided_slice %184 {offsets = [0, 0, 8], sizes = [2, 8, 8], strides = [1, 1, 1]} : vector<2x8x32xf32> to vector<2x8x8xf32>
    %197 = vector.extract_strided_slice %184 {offsets = [0, 0, 16], sizes = [2, 8, 8], strides = [1, 1, 1]} : vector<2x8x32xf32> to vector<2x8x8xf32>
    %198 = vector.extract_strided_slice %184 {offsets = [0, 0, 24], sizes = [2, 8, 8], strides = [1, 1, 1]} : vector<2x8x32xf32> to vector<2x8x8xf32>
    %199 = tpu.concatenate %195, %196, %197, %198 in 0 : vector<2x8x8xf32>, vector<2x8x8xf32>, vector<2x8x8xf32>, vector<2x8x8xf32> -> vector<8x8x8xf32>
    "tpu.trace_start"() <{level = 10 : i32, message = "bqd,bkd->bqk"}> : () -> ()
    %cst_87 = arith.constant dense<0.000000e+00> : vector<8x8x8xf32>
    %200 = tpu.matmul %189, %194, %cst_87 {dimension_numbers = #tpu.dot_dimension_numbers<[2], [2], [1], [1], [0, 0, 0, 1, 1, 1], [0], [0]>} : vector<8x8x8xf32>, vector<8x8x8xf32>, vector<8x8x8xf32> -> vector<8x8x8xf32>
    "tpu.trace_stop"() : () -> ()
    %cst_88 = arith.constant 0.176776692 : f32
    %201 = vector.broadcast %cst_88 : f32 to vector<8x8x8xf32>
    %202 = arith.mulf %200, %201 : vector<8x8x8xf32>
    %cst_89 = arith.constant dense<0xFF800000> : vector<8x8xf32>
    %203 = vector.multi_reduction <maximumf>, %202, %cst_89 [2] : vector<8x8x8xf32> to vector<8x8xf32>
    %204 = vector.shape_cast %203 : vector<8x8xf32> to vector<8x8x1xf32>
    %205 = vector.broadcast %204 : vector<8x8x1xf32> to vector<8x8x8xf32>
    %206 = arith.subf %202, %205 : vector<8x8x8xf32>
    %207 = math.exp %206 : vector<8x8x8xf32>
    %cst_90 = arith.constant dense<0.000000e+00> : vector<8x8xf32>
    %208 = vector.multi_reduction <add>, %207, %cst_90 [2] : vector<8x8x8xf32> to vector<8x8xf32>
    %209 = vector.shape_cast %208 : vector<8x8xf32> to vector<8x8x1xf32>
    %210 = tpu.reciprocal %209 {approx = true} : vector<8x8x1xf32> -> vector<8x8x1xf32>
    %211 = vector.broadcast %210 : vector<8x8x1xf32> to vector<8x8x8xf32>
    %212 = arith.mulf %207, %211 : vector<8x8x8xf32>
    "tpu.trace_start"() <{level = 10 : i32, message = "bqk,bkd->bqd"}> : () -> ()
    %cst_91 = arith.constant dense<0.000000e+00> : vector<8x8x8xf32>
    %213 = tpu.matmul %212, %199, %cst_91 {dimension_numbers = #tpu.dot_dimension_numbers<[2], [1], [1], [2], [0, 0, 0, 1, 1, 2], [0], [0]>} : vector<8x8x8xf32>, vector<8x8x8xf32>, vector<8x8x8xf32> -> vector<8x8x8xf32>
    "tpu.trace_stop"() : () -> ()
    %214 = arith.addf %189, %213 : vector<8x8x8xf32>
    %215 = vector.extract_strided_slice %214 {offsets = [0, 0, 0], sizes = [2, 8, 8], strides = [1, 1, 1]} : vector<8x8x8xf32> to vector<2x8x8xf32>
    %216 = vector.extract_strided_slice %214 {offsets = [2, 0, 0], sizes = [2, 8, 8], strides = [1, 1, 1]} : vector<8x8x8xf32> to vector<2x8x8xf32>
    %217 = vector.extract_strided_slice %214 {offsets = [4, 0, 0], sizes = [2, 8, 8], strides = [1, 1, 1]} : vector<8x8x8xf32> to vector<2x8x8xf32>
    %218 = vector.extract_strided_slice %214 {offsets = [6, 0, 0], sizes = [2, 8, 8], strides = [1, 1, 1]} : vector<8x8x8xf32> to vector<2x8x8xf32>
    %219 = tpu.concatenate %215, %216, %217, %218 in 2 : vector<2x8x8xf32>, vector<2x8x8xf32>, vector<2x8x8xf32>, vector<2x8x8xf32> -> vector<2x8x32xf32>
    %220 = vector.shape_cast %219 : vector<2x8x32xf32> to vector<16x32xf32>
    %c11 = arith.constant 11 : index
    %c0_92 = arith.constant 0 : index
    %c0_93 = arith.constant 0 : index
    %221 = vector.load %arg6[%c11, %c0_92, %c0_93] : memref<20x32x32xf32, #tpu.memory_space<vmem>>, vector<1x32x32xf32>
    %222 = vector.shape_cast %221 : vector<1x32x32xf32> to vector<32x32xf32>
    %cst_94 = arith.constant dense<0.000000e+00> : vector<16x32xf32>
    %223 = tpu.matmul %220, %222, %cst_94 {dimension_numbers = #tpu.dot_dimension_numbers<[1], [0], [0], [1], [0, 0, 1, 1], [], []>} : vector<16x32xf32>, vector<32x32xf32>, vector<16x32xf32> -> vector<16x32xf32>
    %c11_95 = arith.constant 11 : index
    %c0_96 = arith.constant 0 : index
    %c0_97 = arith.constant 0 : index
    %224 = vector.load %arg7[%c11_95, %c0_96, %c0_97] : memref<20x1x32xf32, #tpu.memory_space<vmem>>, vector<1x1x32xf32>
    %225 = vector.shape_cast %224 : vector<1x1x32xf32> to vector<1x32xf32>
    %226 = vector.broadcast %225 : vector<1x32xf32> to vector<16x32xf32>
    %227 = arith.addf %223, %226 : vector<16x32xf32>
    %cst_98 = arith.constant 0.000000e+00 : f32
    %228 = vector.broadcast %cst_98 : f32 to vector<16x32xf32>
    %229 = arith.maximumf %227, %228 : vector<16x32xf32>
    %230 = arith.addf %220, %229 : vector<16x32xf32>
    %231 = vector.shape_cast %230 : vector<16x32xf32> to vector<2x8x32xf32>
    %232 = vector.shape_cast %154 : vector<2x8x32xf32> to vector<16x32xf32>
    %c12 = arith.constant 12 : index
    %c0_99 = arith.constant 0 : index
    %c0_100 = arith.constant 0 : index
    %233 = vector.load %arg6[%c12, %c0_99, %c0_100] : memref<20x32x32xf32, #tpu.memory_space<vmem>>, vector<1x32x32xf32>
    %234 = vector.shape_cast %233 : vector<1x32x32xf32> to vector<32x32xf32>
    %cst_101 = arith.constant dense<0.000000e+00> : vector<16x32xf32>
    %235 = tpu.matmul %232, %234, %cst_101 {dimension_numbers = #tpu.dot_dimension_numbers<[1], [0], [0], [1], [0, 0, 1, 1], [], []>} : vector<16x32xf32>, vector<32x32xf32>, vector<16x32xf32> -> vector<16x32xf32>
    %c12_102 = arith.constant 12 : index
    %c0_103 = arith.constant 0 : index
    %c0_104 = arith.constant 0 : index
    %236 = vector.load %arg7[%c12_102, %c0_103, %c0_104] : memref<20x1x32xf32, #tpu.memory_space<vmem>>, vector<1x1x32xf32>
    %237 = vector.shape_cast %236 : vector<1x1x32xf32> to vector<1x32xf32>
    %238 = vector.broadcast %237 : vector<1x32xf32> to vector<16x32xf32>
    %239 = arith.addf %235, %238 : vector<16x32xf32>
    %240 = vector.shape_cast %231 : vector<2x8x32xf32> to vector<16x32xf32>
    %c13 = arith.constant 13 : index
    %c0_105 = arith.constant 0 : index
    %c0_106 = arith.constant 0 : index
    %241 = vector.load %arg6[%c13, %c0_105, %c0_106] : memref<20x32x32xf32, #tpu.memory_space<vmem>>, vector<1x32x32xf32>
    %242 = vector.shape_cast %241 : vector<1x32x32xf32> to vector<32x32xf32>
    %cst_107 = arith.constant dense<0.000000e+00> : vector<16x32xf32>
    %243 = tpu.matmul %240, %242, %cst_107 {dimension_numbers = #tpu.dot_dimension_numbers<[1], [0], [0], [1], [0, 0, 1, 1], [], []>} : vector<16x32xf32>, vector<32x32xf32>, vector<16x32xf32> -> vector<16x32xf32>
    %c13_108 = arith.constant 13 : index
    %c0_109 = arith.constant 0 : index
    %c0_110 = arith.constant 0 : index
    %244 = vector.load %arg7[%c13_108, %c0_109, %c0_110] : memref<20x1x32xf32, #tpu.memory_space<vmem>>, vector<1x1x32xf32>
    %245 = vector.shape_cast %244 : vector<1x1x32xf32> to vector<1x32xf32>
    %246 = vector.broadcast %245 : vector<1x32xf32> to vector<16x32xf32>
    %247 = arith.addf %243, %246 : vector<16x32xf32>
    %248 = vector.shape_cast %231 : vector<2x8x32xf32> to vector<16x32xf32>
    %c14 = arith.constant 14 : index
    %c0_111 = arith.constant 0 : index
    %c0_112 = arith.constant 0 : index
    %249 = vector.load %arg6[%c14, %c0_111, %c0_112] : memref<20x32x32xf32, #tpu.memory_space<vmem>>, vector<1x32x32xf32>
    %250 = vector.shape_cast %249 : vector<1x32x32xf32> to vector<32x32xf32>
    %cst_113 = arith.constant dense<0.000000e+00> : vector<16x32xf32>
    %251 = tpu.matmul %248, %250, %cst_113 {dimension_numbers = #tpu.dot_dimension_numbers<[1], [0], [0], [1], [0, 0, 1, 1], [], []>} : vector<16x32xf32>, vector<32x32xf32>, vector<16x32xf32> -> vector<16x32xf32>
    %c14_114 = arith.constant 14 : index
    %c0_115 = arith.constant 0 : index
    %c0_116 = arith.constant 0 : index
    %252 = vector.load %arg7[%c14_114, %c0_115, %c0_116] : memref<20x1x32xf32, #tpu.memory_space<vmem>>, vector<1x1x32xf32>
    %253 = vector.shape_cast %252 : vector<1x1x32xf32> to vector<1x32xf32>
    %254 = vector.broadcast %253 : vector<1x32xf32> to vector<16x32xf32>
    %255 = arith.addf %251, %254 : vector<16x32xf32>
    %256 = vector.shape_cast %239 : vector<16x32xf32> to vector<2x8x32xf32>
    %257 = vector.shape_cast %247 : vector<16x32xf32> to vector<2x8x32xf32>
    %258 = vector.shape_cast %255 : vector<16x32xf32> to vector<2x8x32xf32>
    %259 = vector.extract_strided_slice %256 {offsets = [0, 0, 0], sizes = [2, 8, 8], strides = [1, 1, 1]} : vector<2x8x32xf32> to vector<2x8x8xf32>
    %260 = vector.extract_strided_slice %256 {offsets = [0, 0, 8], sizes = [2, 8, 8], strides = [1, 1, 1]} : vector<2x8x32xf32> to vector<2x8x8xf32>
    %261 = vector.extract_strided_slice %256 {offsets = [0, 0, 16], sizes = [2, 8, 8], strides = [1, 1, 1]} : vector<2x8x32xf32> to vector<2x8x8xf32>
    %262 = vector.extract_strided_slice %256 {offsets = [0, 0, 24], sizes = [2, 8, 8], strides = [1, 1, 1]} : vector<2x8x32xf32> to vector<2x8x8xf32>
    %263 = tpu.concatenate %259, %260, %261, %262 in 0 : vector<2x8x8xf32>, vector<2x8x8xf32>, vector<2x8x8xf32>, vector<2x8x8xf32> -> vector<8x8x8xf32>
    %264 = vector.extract_strided_slice %257 {offsets = [0, 0, 0], sizes = [2, 8, 8], strides = [1, 1, 1]} : vector<2x8x32xf32> to vector<2x8x8xf32>
    %265 = vector.extract_strided_slice %257 {offsets = [0, 0, 8], sizes = [2, 8, 8], strides = [1, 1, 1]} : vector<2x8x32xf32> to vector<2x8x8xf32>
    %266 = vector.extract_strided_slice %257 {offsets = [0, 0, 16], sizes = [2, 8, 8], strides = [1, 1, 1]} : vector<2x8x32xf32> to vector<2x8x8xf32>
    %267 = vector.extract_strided_slice %257 {offsets = [0, 0, 24], sizes = [2, 8, 8], strides = [1, 1, 1]} : vector<2x8x32xf32> to vector<2x8x8xf32>
    %268 = tpu.concatenate %264, %265, %266, %267 in 0 : vector<2x8x8xf32>, vector<2x8x8xf32>, vector<2x8x8xf32>, vector<2x8x8xf32> -> vector<8x8x8xf32>
    %269 = vector.extract_strided_slice %258 {offsets = [0, 0, 0], sizes = [2, 8, 8], strides = [1, 1, 1]} : vector<2x8x32xf32> to vector<2x8x8xf32>
    %270 = vector.extract_strided_slice %258 {offsets = [0, 0, 8], sizes = [2, 8, 8], strides = [1, 1, 1]} : vector<2x8x32xf32> to vector<2x8x8xf32>
    %271 = vector.extract_strided_slice %258 {offsets = [0, 0, 16], sizes = [2, 8, 8], strides = [1, 1, 1]} : vector<2x8x32xf32> to vector<2x8x8xf32>
    %272 = vector.extract_strided_slice %258 {offsets = [0, 0, 24], sizes = [2, 8, 8], strides = [1, 1, 1]} : vector<2x8x32xf32> to vector<2x8x8xf32>
    %273 = tpu.concatenate %269, %270, %271, %272 in 0 : vector<2x8x8xf32>, vector<2x8x8xf32>, vector<2x8x8xf32>, vector<2x8x8xf32> -> vector<8x8x8xf32>
    "tpu.trace_start"() <{level = 10 : i32, message = "bqd,bkd->bqk"}> : () -> ()
    %cst_117 = arith.constant dense<0.000000e+00> : vector<8x8x8xf32>
    %274 = tpu.matmul %263, %268, %cst_117 {dimension_numbers = #tpu.dot_dimension_numbers<[2], [2], [1], [1], [0, 0, 0, 1, 1, 1], [0], [0]>} : vector<8x8x8xf32>, vector<8x8x8xf32>, vector<8x8x8xf32> -> vector<8x8x8xf32>
    "tpu.trace_stop"() : () -> ()
    %cst_118 = arith.constant 0.176776692 : f32
    %275 = vector.broadcast %cst_118 : f32 to vector<8x8x8xf32>
    %276 = arith.mulf %274, %275 : vector<8x8x8xf32>
    %cst_119 = arith.constant dense<0xFF800000> : vector<8x8xf32>
    %277 = vector.multi_reduction <maximumf>, %276, %cst_119 [2] : vector<8x8x8xf32> to vector<8x8xf32>
    %278 = vector.shape_cast %277 : vector<8x8xf32> to vector<8x8x1xf32>
    %279 = vector.broadcast %278 : vector<8x8x1xf32> to vector<8x8x8xf32>
    %280 = arith.subf %276, %279 : vector<8x8x8xf32>
    %281 = math.exp %280 : vector<8x8x8xf32>
    %cst_120 = arith.constant dense<0.000000e+00> : vector<8x8xf32>
    %282 = vector.multi_reduction <add>, %281, %cst_120 [2] : vector<8x8x8xf32> to vector<8x8xf32>
    %283 = vector.shape_cast %282 : vector<8x8xf32> to vector<8x8x1xf32>
    %284 = tpu.reciprocal %283 {approx = true} : vector<8x8x1xf32> -> vector<8x8x1xf32>
    %285 = vector.broadcast %284 : vector<8x8x1xf32> to vector<8x8x8xf32>
    %286 = arith.mulf %281, %285 : vector<8x8x8xf32>
    "tpu.trace_start"() <{level = 10 : i32, message = "bqk,bkd->bqd"}> : () -> ()
    %cst_121 = arith.constant dense<0.000000e+00> : vector<8x8x8xf32>
    %287 = tpu.matmul %286, %273, %cst_121 {dimension_numbers = #tpu.dot_dimension_numbers<[2], [1], [1], [2], [0, 0, 0, 1, 1, 2], [0], [0]>} : vector<8x8x8xf32>, vector<8x8x8xf32>, vector<8x8x8xf32> -> vector<8x8x8xf32>
    "tpu.trace_stop"() : () -> ()
    %288 = arith.addf %263, %287 : vector<8x8x8xf32>
    %289 = vector.extract_strided_slice %288 {offsets = [0, 0, 0], sizes = [2, 8, 8], strides = [1, 1, 1]} : vector<8x8x8xf32> to vector<2x8x8xf32>
    %290 = vector.extract_strided_slice %288 {offsets = [2, 0, 0], sizes = [2, 8, 8], strides = [1, 1, 1]} : vector<8x8x8xf32> to vector<2x8x8xf32>
    %291 = vector.extract_strided_slice %288 {offsets = [4, 0, 0], sizes = [2, 8, 8], strides = [1, 1, 1]} : vector<8x8x8xf32> to vector<2x8x8xf32>
    %292 = vector.extract_strided_slice %288 {offsets = [6, 0, 0], sizes = [2, 8, 8], strides = [1, 1, 1]} : vector<8x8x8xf32> to vector<2x8x8xf32>
    %293 = tpu.concatenate %289, %290, %291, %292 in 2 : vector<2x8x8xf32>, vector<2x8x8xf32>, vector<2x8x8xf32>, vector<2x8x8xf32> -> vector<2x8x32xf32>
    %294 = vector.shape_cast %293 : vector<2x8x32xf32> to vector<16x32xf32>
    %c15 = arith.constant 15 : index
    %c0_122 = arith.constant 0 : index
    %c0_123 = arith.constant 0 : index
    %295 = vector.load %arg6[%c15, %c0_122, %c0_123] : memref<20x32x32xf32, #tpu.memory_space<vmem>>, vector<1x32x32xf32>
    %296 = vector.shape_cast %295 : vector<1x32x32xf32> to vector<32x32xf32>
    %cst_124 = arith.constant dense<0.000000e+00> : vector<16x32xf32>
    %297 = tpu.matmul %294, %296, %cst_124 {dimension_numbers = #tpu.dot_dimension_numbers<[1], [0], [0], [1], [0, 0, 1, 1], [], []>} : vector<16x32xf32>, vector<32x32xf32>, vector<16x32xf32> -> vector<16x32xf32>
    %c15_125 = arith.constant 15 : index
    %c0_126 = arith.constant 0 : index
    %c0_127 = arith.constant 0 : index
    %298 = vector.load %arg7[%c15_125, %c0_126, %c0_127] : memref<20x1x32xf32, #tpu.memory_space<vmem>>, vector<1x1x32xf32>
    %299 = vector.shape_cast %298 : vector<1x1x32xf32> to vector<1x32xf32>
    %300 = vector.broadcast %299 : vector<1x32xf32> to vector<16x32xf32>
    %301 = arith.addf %297, %300 : vector<16x32xf32>
    %cst_128 = arith.constant 0.000000e+00 : f32
    %302 = vector.broadcast %cst_128 : f32 to vector<16x32xf32>
    %303 = arith.maximumf %301, %302 : vector<16x32xf32>
    %304 = arith.addf %294, %303 : vector<16x32xf32>
    %305 = vector.shape_cast %304 : vector<16x32xf32> to vector<2x8x32xf32>
    %306 = vector.shape_cast %2 : vector<8x32xf32> to vector<1x8x32xf32>
    %307 = vector.shape_cast %306 : vector<1x8x32xf32> to vector<1x8x32xf32>
    %308 = vector.broadcast %307 : vector<1x8x32xf32> to vector<2x8x32xf32>
    %309 = vector.shape_cast %308 : vector<2x8x32xf32> to vector<16x32xf32>
    %c0_129 = arith.constant 0 : index
    %c0_130 = arith.constant 0 : index
    %c0_131 = arith.constant 0 : index
    %310 = vector.load %arg6[%c0_129, %c0_130, %c0_131] : memref<20x32x32xf32, #tpu.memory_space<vmem>>, vector<1x32x32xf32>
    %311 = vector.shape_cast %310 : vector<1x32x32xf32> to vector<32x32xf32>
    %cst_132 = arith.constant dense<0.000000e+00> : vector<16x32xf32>
    %312 = tpu.matmul %309, %311, %cst_132 {dimension_numbers = #tpu.dot_dimension_numbers<[1], [0], [0], [1], [0, 0, 1, 1], [], []>} : vector<16x32xf32>, vector<32x32xf32>, vector<16x32xf32> -> vector<16x32xf32>
    %c0_133 = arith.constant 0 : index
    %c0_134 = arith.constant 0 : index
    %c0_135 = arith.constant 0 : index
    %313 = vector.load %arg7[%c0_133, %c0_134, %c0_135] : memref<20x1x32xf32, #tpu.memory_space<vmem>>, vector<1x1x32xf32>
    %314 = vector.shape_cast %313 : vector<1x1x32xf32> to vector<1x32xf32>
    %315 = vector.broadcast %314 : vector<1x32xf32> to vector<16x32xf32>
    %316 = arith.addf %312, %315 : vector<16x32xf32>
    %317 = vector.shape_cast %1 : vector<2x8x32xf32> to vector<16x32xf32>
    %c1_136 = arith.constant 1 : index
    %c0_137 = arith.constant 0 : index
    %c0_138 = arith.constant 0 : index
    %318 = vector.load %arg6[%c1_136, %c0_137, %c0_138] : memref<20x32x32xf32, #tpu.memory_space<vmem>>, vector<1x32x32xf32>
    %319 = vector.shape_cast %318 : vector<1x32x32xf32> to vector<32x32xf32>
    %cst_139 = arith.constant dense<0.000000e+00> : vector<16x32xf32>
    %320 = tpu.matmul %317, %319, %cst_139 {dimension_numbers = #tpu.dot_dimension_numbers<[1], [0], [0], [1], [0, 0, 1, 1], [], []>} : vector<16x32xf32>, vector<32x32xf32>, vector<16x32xf32> -> vector<16x32xf32>
    %c1_140 = arith.constant 1 : index
    %c0_141 = arith.constant 0 : index
    %c0_142 = arith.constant 0 : index
    %321 = vector.load %arg7[%c1_140, %c0_141, %c0_142] : memref<20x1x32xf32, #tpu.memory_space<vmem>>, vector<1x1x32xf32>
    %322 = vector.shape_cast %321 : vector<1x1x32xf32> to vector<1x32xf32>
    %323 = vector.broadcast %322 : vector<1x32xf32> to vector<16x32xf32>
    %324 = arith.addf %320, %323 : vector<16x32xf32>
    %325 = vector.shape_cast %1 : vector<2x8x32xf32> to vector<16x32xf32>
    %c2_143 = arith.constant 2 : index
    %c0_144 = arith.constant 0 : index
    %c0_145 = arith.constant 0 : index
    %326 = vector.load %arg6[%c2_143, %c0_144, %c0_145] : memref<20x32x32xf32, #tpu.memory_space<vmem>>, vector<1x32x32xf32>
    %327 = vector.shape_cast %326 : vector<1x32x32xf32> to vector<32x32xf32>
    %cst_146 = arith.constant dense<0.000000e+00> : vector<16x32xf32>
    %328 = tpu.matmul %325, %327, %cst_146 {dimension_numbers = #tpu.dot_dimension_numbers<[1], [0], [0], [1], [0, 0, 1, 1], [], []>} : vector<16x32xf32>, vector<32x32xf32>, vector<16x32xf32> -> vector<16x32xf32>
    %c2_147 = arith.constant 2 : index
    %c0_148 = arith.constant 0 : index
    %c0_149 = arith.constant 0 : index
    %329 = vector.load %arg7[%c2_147, %c0_148, %c0_149] : memref<20x1x32xf32, #tpu.memory_space<vmem>>, vector<1x1x32xf32>
    %330 = vector.shape_cast %329 : vector<1x1x32xf32> to vector<1x32xf32>
    %331 = vector.broadcast %330 : vector<1x32xf32> to vector<16x32xf32>
    %332 = arith.addf %328, %331 : vector<16x32xf32>
    %333 = vector.shape_cast %316 : vector<16x32xf32> to vector<2x8x32xf32>
    %334 = vector.shape_cast %324 : vector<16x32xf32> to vector<2x8x32xf32>
    %335 = vector.shape_cast %332 : vector<16x32xf32> to vector<2x8x32xf32>
    %336 = vector.extract_strided_slice %333 {offsets = [0, 0, 0], sizes = [2, 8, 8], strides = [1, 1, 1]} : vector<2x8x32xf32> to vector<2x8x8xf32>
    %337 = vector.extract_strided_slice %333 {offsets = [0, 0, 8], sizes = [2, 8, 8], strides = [1, 1, 1]} : vector<2x8x32xf32> to vector<2x8x8xf32>
    %338 = vector.extract_strided_slice %333 {offsets = [0, 0, 16], sizes = [2, 8, 8], strides = [1, 1, 1]} : vector<2x8x32xf32> to vector<2x8x8xf32>
    %339 = vector.extract_strided_slice %333 {offsets = [0, 0, 24], sizes = [2, 8, 8], strides = [1, 1, 1]} : vector<2x8x32xf32> to vector<2x8x8xf32>
    %340 = tpu.concatenate %336, %337, %338, %339 in 0 : vector<2x8x8xf32>, vector<2x8x8xf32>, vector<2x8x8xf32>, vector<2x8x8xf32> -> vector<8x8x8xf32>
    %341 = vector.extract_strided_slice %334 {offsets = [0, 0, 0], sizes = [2, 8, 8], strides = [1, 1, 1]} : vector<2x8x32xf32> to vector<2x8x8xf32>
    %342 = vector.extract_strided_slice %334 {offsets = [0, 0, 8], sizes = [2, 8, 8], strides = [1, 1, 1]} : vector<2x8x32xf32> to vector<2x8x8xf32>
    %343 = vector.extract_strided_slice %334 {offsets = [0, 0, 16], sizes = [2, 8, 8], strides = [1, 1, 1]} : vector<2x8x32xf32> to vector<2x8x8xf32>
    %344 = vector.extract_strided_slice %334 {offsets = [0, 0, 24], sizes = [2, 8, 8], strides = [1, 1, 1]} : vector<2x8x32xf32> to vector<2x8x8xf32>
    %345 = tpu.concatenate %341, %342, %343, %344 in 0 : vector<2x8x8xf32>, vector<2x8x8xf32>, vector<2x8x8xf32>, vector<2x8x8xf32> -> vector<8x8x8xf32>
    %346 = vector.extract_strided_slice %335 {offsets = [0, 0, 0], sizes = [2, 8, 8], strides = [1, 1, 1]} : vector<2x8x32xf32> to vector<2x8x8xf32>
    %347 = vector.extract_strided_slice %335 {offsets = [0, 0, 8], sizes = [2, 8, 8], strides = [1, 1, 1]} : vector<2x8x32xf32> to vector<2x8x8xf32>
    %348 = vector.extract_strided_slice %335 {offsets = [0, 0, 16], sizes = [2, 8, 8], strides = [1, 1, 1]} : vector<2x8x32xf32> to vector<2x8x8xf32>
    %349 = vector.extract_strided_slice %335 {offsets = [0, 0, 24], sizes = [2, 8, 8], strides = [1, 1, 1]} : vector<2x8x32xf32> to vector<2x8x8xf32>
    %350 = tpu.concatenate %346, %347, %348, %349 in 0 : vector<2x8x8xf32>, vector<2x8x8xf32>, vector<2x8x8xf32>, vector<2x8x8xf32> -> vector<8x8x8xf32>
    "tpu.trace_start"() <{level = 10 : i32, message = "bqd,bkd->bqk"}> : () -> ()
    %cst_150 = arith.constant dense<0.000000e+00> : vector<8x8x8xf32>
    %351 = tpu.matmul %340, %345, %cst_150 {dimension_numbers = #tpu.dot_dimension_numbers<[2], [2], [1], [1], [0, 0, 0, 1, 1, 1], [0], [0]>} : vector<8x8x8xf32>, vector<8x8x8xf32>, vector<8x8x8xf32> -> vector<8x8x8xf32>
    "tpu.trace_stop"() : () -> ()
    %cst_151 = arith.constant 0.176776692 : f32
    %352 = vector.broadcast %cst_151 : f32 to vector<8x8x8xf32>
    %353 = arith.mulf %351, %352 : vector<8x8x8xf32>
    %cst_152 = arith.constant dense<0xFF800000> : vector<8x8xf32>
    %354 = vector.multi_reduction <maximumf>, %353, %cst_152 [2] : vector<8x8x8xf32> to vector<8x8xf32>
    %355 = vector.shape_cast %354 : vector<8x8xf32> to vector<8x8x1xf32>
    %356 = vector.broadcast %355 : vector<8x8x1xf32> to vector<8x8x8xf32>
    %357 = arith.subf %353, %356 : vector<8x8x8xf32>
    %358 = math.exp %357 : vector<8x8x8xf32>
    %cst_153 = arith.constant dense<0.000000e+00> : vector<8x8xf32>
    %359 = vector.multi_reduction <add>, %358, %cst_153 [2] : vector<8x8x8xf32> to vector<8x8xf32>
    %360 = vector.shape_cast %359 : vector<8x8xf32> to vector<8x8x1xf32>
    %361 = tpu.reciprocal %360 {approx = true} : vector<8x8x1xf32> -> vector<8x8x1xf32>
    %362 = vector.broadcast %361 : vector<8x8x1xf32> to vector<8x8x8xf32>
    %363 = arith.mulf %358, %362 : vector<8x8x8xf32>
    "tpu.trace_start"() <{level = 10 : i32, message = "bqk,bkd->bqd"}> : () -> ()
    %cst_154 = arith.constant dense<0.000000e+00> : vector<8x8x8xf32>
    %364 = tpu.matmul %363, %350, %cst_154 {dimension_numbers = #tpu.dot_dimension_numbers<[2], [1], [1], [2], [0, 0, 0, 1, 1, 2], [0], [0]>} : vector<8x8x8xf32>, vector<8x8x8xf32>, vector<8x8x8xf32> -> vector<8x8x8xf32>
    "tpu.trace_stop"() : () -> ()
    %365 = arith.addf %340, %364 : vector<8x8x8xf32>
    %366 = vector.extract_strided_slice %365 {offsets = [0, 0, 0], sizes = [2, 8, 8], strides = [1, 1, 1]} : vector<8x8x8xf32> to vector<2x8x8xf32>
    %367 = vector.extract_strided_slice %365 {offsets = [2, 0, 0], sizes = [2, 8, 8], strides = [1, 1, 1]} : vector<8x8x8xf32> to vector<2x8x8xf32>
    %368 = vector.extract_strided_slice %365 {offsets = [4, 0, 0], sizes = [2, 8, 8], strides = [1, 1, 1]} : vector<8x8x8xf32> to vector<2x8x8xf32>
    %369 = vector.extract_strided_slice %365 {offsets = [6, 0, 0], sizes = [2, 8, 8], strides = [1, 1, 1]} : vector<8x8x8xf32> to vector<2x8x8xf32>
    %370 = tpu.concatenate %366, %367, %368, %369 in 2 : vector<2x8x8xf32>, vector<2x8x8xf32>, vector<2x8x8xf32>, vector<2x8x8xf32> -> vector<2x8x32xf32>
    %371 = vector.shape_cast %370 : vector<2x8x32xf32> to vector<16x32xf32>
    %c3_155 = arith.constant 3 : index
    %c0_156 = arith.constant 0 : index
    %c0_157 = arith.constant 0 : index
    %372 = vector.load %arg6[%c3_155, %c0_156, %c0_157] : memref<20x32x32xf32, #tpu.memory_space<vmem>>, vector<1x32x32xf32>
    %373 = vector.shape_cast %372 : vector<1x32x32xf32> to vector<32x32xf32>
    %cst_158 = arith.constant dense<0.000000e+00> : vector<16x32xf32>
    %374 = tpu.matmul %371, %373, %cst_158 {dimension_numbers = #tpu.dot_dimension_numbers<[1], [0], [0], [1], [0, 0, 1, 1], [], []>} : vector<16x32xf32>, vector<32x32xf32>, vector<16x32xf32> -> vector<16x32xf32>
    %c3_159 = arith.constant 3 : index
    %c0_160 = arith.constant 0 : index
    %c0_161 = arith.constant 0 : index
    %375 = vector.load %arg7[%c3_159, %c0_160, %c0_161] : memref<20x1x32xf32, #tpu.memory_space<vmem>>, vector<1x1x32xf32>
    %376 = vector.shape_cast %375 : vector<1x1x32xf32> to vector<1x32xf32>
    %377 = vector.broadcast %376 : vector<1x32xf32> to vector<16x32xf32>
    %378 = arith.addf %374, %377 : vector<16x32xf32>
    %cst_162 = arith.constant 0.000000e+00 : f32
    %379 = vector.broadcast %cst_162 : f32 to vector<16x32xf32>
    %380 = arith.maximumf %378, %379 : vector<16x32xf32>
    %381 = arith.addf %371, %380 : vector<16x32xf32>
    %382 = vector.shape_cast %381 : vector<16x32xf32> to vector<2x8x32xf32>
    %383 = vector.shape_cast %1 : vector<2x8x32xf32> to vector<16x32xf32>
    %c4_163 = arith.constant 4 : index
    %c0_164 = arith.constant 0 : index
    %c0_165 = arith.constant 0 : index
    %384 = vector.load %arg6[%c4_163, %c0_164, %c0_165] : memref<20x32x32xf32, #tpu.memory_space<vmem>>, vector<1x32x32xf32>
    %385 = vector.shape_cast %384 : vector<1x32x32xf32> to vector<32x32xf32>
    %cst_166 = arith.constant dense<0.000000e+00> : vector<16x32xf32>
    %386 = tpu.matmul %383, %385, %cst_166 {dimension_numbers = #tpu.dot_dimension_numbers<[1], [0], [0], [1], [0, 0, 1, 1], [], []>} : vector<16x32xf32>, vector<32x32xf32>, vector<16x32xf32> -> vector<16x32xf32>
    %c4_167 = arith.constant 4 : index
    %c0_168 = arith.constant 0 : index
    %c0_169 = arith.constant 0 : index
    %387 = vector.load %arg7[%c4_167, %c0_168, %c0_169] : memref<20x1x32xf32, #tpu.memory_space<vmem>>, vector<1x1x32xf32>
    %388 = vector.shape_cast %387 : vector<1x1x32xf32> to vector<1x32xf32>
    %389 = vector.broadcast %388 : vector<1x32xf32> to vector<16x32xf32>
    %390 = arith.addf %386, %389 : vector<16x32xf32>
    %391 = vector.shape_cast %382 : vector<2x8x32xf32> to vector<16x32xf32>
    %c5_170 = arith.constant 5 : index
    %c0_171 = arith.constant 0 : index
    %c0_172 = arith.constant 0 : index
    %392 = vector.load %arg6[%c5_170, %c0_171, %c0_172] : memref<20x32x32xf32, #tpu.memory_space<vmem>>, vector<1x32x32xf32>
    %393 = vector.shape_cast %392 : vector<1x32x32xf32> to vector<32x32xf32>
    %cst_173 = arith.constant dense<0.000000e+00> : vector<16x32xf32>
    %394 = tpu.matmul %391, %393, %cst_173 {dimension_numbers = #tpu.dot_dimension_numbers<[1], [0], [0], [1], [0, 0, 1, 1], [], []>} : vector<16x32xf32>, vector<32x32xf32>, vector<16x32xf32> -> vector<16x32xf32>
    %c5_174 = arith.constant 5 : index
    %c0_175 = arith.constant 0 : index
    %c0_176 = arith.constant 0 : index
    %395 = vector.load %arg7[%c5_174, %c0_175, %c0_176] : memref<20x1x32xf32, #tpu.memory_space<vmem>>, vector<1x1x32xf32>
    %396 = vector.shape_cast %395 : vector<1x1x32xf32> to vector<1x32xf32>
    %397 = vector.broadcast %396 : vector<1x32xf32> to vector<16x32xf32>
    %398 = arith.addf %394, %397 : vector<16x32xf32>
    %399 = vector.shape_cast %382 : vector<2x8x32xf32> to vector<16x32xf32>
    %c6_177 = arith.constant 6 : index
    %c0_178 = arith.constant 0 : index
    %c0_179 = arith.constant 0 : index
    %400 = vector.load %arg6[%c6_177, %c0_178, %c0_179] : memref<20x32x32xf32, #tpu.memory_space<vmem>>, vector<1x32x32xf32>
    %401 = vector.shape_cast %400 : vector<1x32x32xf32> to vector<32x32xf32>
    %cst_180 = arith.constant dense<0.000000e+00> : vector<16x32xf32>
    %402 = tpu.matmul %399, %401, %cst_180 {dimension_numbers = #tpu.dot_dimension_numbers<[1], [0], [0], [1], [0, 0, 1, 1], [], []>} : vector<16x32xf32>, vector<32x32xf32>, vector<16x32xf32> -> vector<16x32xf32>
    %c6_181 = arith.constant 6 : index
    %c0_182 = arith.constant 0 : index
    %c0_183 = arith.constant 0 : index
    %403 = vector.load %arg7[%c6_181, %c0_182, %c0_183] : memref<20x1x32xf32, #tpu.memory_space<vmem>>, vector<1x1x32xf32>
    %404 = vector.shape_cast %403 : vector<1x1x32xf32> to vector<1x32xf32>
    %405 = vector.broadcast %404 : vector<1x32xf32> to vector<16x32xf32>
    %406 = arith.addf %402, %405 : vector<16x32xf32>
    %407 = vector.shape_cast %390 : vector<16x32xf32> to vector<2x8x32xf32>
    %408 = vector.shape_cast %398 : vector<16x32xf32> to vector<2x8x32xf32>
    %409 = vector.shape_cast %406 : vector<16x32xf32> to vector<2x8x32xf32>
    %410 = vector.extract_strided_slice %407 {offsets = [0, 0, 0], sizes = [2, 8, 8], strides = [1, 1, 1]} : vector<2x8x32xf32> to vector<2x8x8xf32>
    %411 = vector.extract_strided_slice %407 {offsets = [0, 0, 8], sizes = [2, 8, 8], strides = [1, 1, 1]} : vector<2x8x32xf32> to vector<2x8x8xf32>
    %412 = vector.extract_strided_slice %407 {offsets = [0, 0, 16], sizes = [2, 8, 8], strides = [1, 1, 1]} : vector<2x8x32xf32> to vector<2x8x8xf32>
    %413 = vector.extract_strided_slice %407 {offsets = [0, 0, 24], sizes = [2, 8, 8], strides = [1, 1, 1]} : vector<2x8x32xf32> to vector<2x8x8xf32>
    %414 = tpu.concatenate %410, %411, %412, %413 in 0 : vector<2x8x8xf32>, vector<2x8x8xf32>, vector<2x8x8xf32>, vector<2x8x8xf32> -> vector<8x8x8xf32>
    %415 = vector.extract_strided_slice %408 {offsets = [0, 0, 0], sizes = [2, 8, 8], strides = [1, 1, 1]} : vector<2x8x32xf32> to vector<2x8x8xf32>
    %416 = vector.extract_strided_slice %408 {offsets = [0, 0, 8], sizes = [2, 8, 8], strides = [1, 1, 1]} : vector<2x8x32xf32> to vector<2x8x8xf32>
    %417 = vector.extract_strided_slice %408 {offsets = [0, 0, 16], sizes = [2, 8, 8], strides = [1, 1, 1]} : vector<2x8x32xf32> to vector<2x8x8xf32>
    %418 = vector.extract_strided_slice %408 {offsets = [0, 0, 24], sizes = [2, 8, 8], strides = [1, 1, 1]} : vector<2x8x32xf32> to vector<2x8x8xf32>
    %419 = tpu.concatenate %415, %416, %417, %418 in 0 : vector<2x8x8xf32>, vector<2x8x8xf32>, vector<2x8x8xf32>, vector<2x8x8xf32> -> vector<8x8x8xf32>
    %420 = vector.extract_strided_slice %409 {offsets = [0, 0, 0], sizes = [2, 8, 8], strides = [1, 1, 1]} : vector<2x8x32xf32> to vector<2x8x8xf32>
    %421 = vector.extract_strided_slice %409 {offsets = [0, 0, 8], sizes = [2, 8, 8], strides = [1, 1, 1]} : vector<2x8x32xf32> to vector<2x8x8xf32>
    %422 = vector.extract_strided_slice %409 {offsets = [0, 0, 16], sizes = [2, 8, 8], strides = [1, 1, 1]} : vector<2x8x32xf32> to vector<2x8x8xf32>
    %423 = vector.extract_strided_slice %409 {offsets = [0, 0, 24], sizes = [2, 8, 8], strides = [1, 1, 1]} : vector<2x8x32xf32> to vector<2x8x8xf32>
    %424 = tpu.concatenate %420, %421, %422, %423 in 0 : vector<2x8x8xf32>, vector<2x8x8xf32>, vector<2x8x8xf32>, vector<2x8x8xf32> -> vector<8x8x8xf32>
    "tpu.trace_start"() <{level = 10 : i32, message = "bqd,bkd->bqk"}> : () -> ()
    %cst_184 = arith.constant dense<0.000000e+00> : vector<8x8x8xf32>
    %425 = tpu.matmul %414, %419, %cst_184 {dimension_numbers = #tpu.dot_dimension_numbers<[2], [2], [1], [1], [0, 0, 0, 1, 1, 1], [0], [0]>} : vector<8x8x8xf32>, vector<8x8x8xf32>, vector<8x8x8xf32> -> vector<8x8x8xf32>
    "tpu.trace_stop"() : () -> ()
    %cst_185 = arith.constant 0.176776692 : f32
    %426 = vector.broadcast %cst_185 : f32 to vector<8x8x8xf32>
    %427 = arith.mulf %425, %426 : vector<8x8x8xf32>
    %cst_186 = arith.constant dense<0xFF800000> : vector<8x8xf32>
    %428 = vector.multi_reduction <maximumf>, %427, %cst_186 [2] : vector<8x8x8xf32> to vector<8x8xf32>
    %429 = vector.shape_cast %428 : vector<8x8xf32> to vector<8x8x1xf32>
    %430 = vector.broadcast %429 : vector<8x8x1xf32> to vector<8x8x8xf32>
    %431 = arith.subf %427, %430 : vector<8x8x8xf32>
    %432 = math.exp %431 : vector<8x8x8xf32>
    %cst_187 = arith.constant dense<0.000000e+00> : vector<8x8xf32>
    %433 = vector.multi_reduction <add>, %432, %cst_187 [2] : vector<8x8x8xf32> to vector<8x8xf32>
    %434 = vector.shape_cast %433 : vector<8x8xf32> to vector<8x8x1xf32>
    %435 = tpu.reciprocal %434 {approx = true} : vector<8x8x1xf32> -> vector<8x8x1xf32>
    %436 = vector.broadcast %435 : vector<8x8x1xf32> to vector<8x8x8xf32>
    %437 = arith.mulf %432, %436 : vector<8x8x8xf32>
    "tpu.trace_start"() <{level = 10 : i32, message = "bqk,bkd->bqd"}> : () -> ()
    %cst_188 = arith.constant dense<0.000000e+00> : vector<8x8x8xf32>
    %438 = tpu.matmul %437, %424, %cst_188 {dimension_numbers = #tpu.dot_dimension_numbers<[2], [1], [1], [2], [0, 0, 0, 1, 1, 2], [0], [0]>} : vector<8x8x8xf32>, vector<8x8x8xf32>, vector<8x8x8xf32> -> vector<8x8x8xf32>
    "tpu.trace_stop"() : () -> ()
    %439 = arith.addf %414, %438 : vector<8x8x8xf32>
    %440 = vector.extract_strided_slice %439 {offsets = [0, 0, 0], sizes = [2, 8, 8], strides = [1, 1, 1]} : vector<8x8x8xf32> to vector<2x8x8xf32>
    %441 = vector.extract_strided_slice %439 {offsets = [2, 0, 0], sizes = [2, 8, 8], strides = [1, 1, 1]} : vector<8x8x8xf32> to vector<2x8x8xf32>
    %442 = vector.extract_strided_slice %439 {offsets = [4, 0, 0], sizes = [2, 8, 8], strides = [1, 1, 1]} : vector<8x8x8xf32> to vector<2x8x8xf32>
    %443 = vector.extract_strided_slice %439 {offsets = [6, 0, 0], sizes = [2, 8, 8], strides = [1, 1, 1]} : vector<8x8x8xf32> to vector<2x8x8xf32>
    %444 = tpu.concatenate %440, %441, %442, %443 in 2 : vector<2x8x8xf32>, vector<2x8x8xf32>, vector<2x8x8xf32>, vector<2x8x8xf32> -> vector<2x8x32xf32>
    %445 = vector.shape_cast %444 : vector<2x8x32xf32> to vector<16x32xf32>
    %c7_189 = arith.constant 7 : index
    %c0_190 = arith.constant 0 : index
    %c0_191 = arith.constant 0 : index
    %446 = vector.load %arg6[%c7_189, %c0_190, %c0_191] : memref<20x32x32xf32, #tpu.memory_space<vmem>>, vector<1x32x32xf32>
    %447 = vector.shape_cast %446 : vector<1x32x32xf32> to vector<32x32xf32>
    %cst_192 = arith.constant dense<0.000000e+00> : vector<16x32xf32>
    %448 = tpu.matmul %445, %447, %cst_192 {dimension_numbers = #tpu.dot_dimension_numbers<[1], [0], [0], [1], [0, 0, 1, 1], [], []>} : vector<16x32xf32>, vector<32x32xf32>, vector<16x32xf32> -> vector<16x32xf32>
    %c7_193 = arith.constant 7 : index
    %c0_194 = arith.constant 0 : index
    %c0_195 = arith.constant 0 : index
    %449 = vector.load %arg7[%c7_193, %c0_194, %c0_195] : memref<20x1x32xf32, #tpu.memory_space<vmem>>, vector<1x1x32xf32>
    %450 = vector.shape_cast %449 : vector<1x1x32xf32> to vector<1x32xf32>
    %451 = vector.broadcast %450 : vector<1x32xf32> to vector<16x32xf32>
    %452 = arith.addf %448, %451 : vector<16x32xf32>
    %cst_196 = arith.constant 0.000000e+00 : f32
    %453 = vector.broadcast %cst_196 : f32 to vector<16x32xf32>
    %454 = arith.maximumf %452, %453 : vector<16x32xf32>
    %455 = arith.addf %445, %454 : vector<16x32xf32>
    %456 = vector.shape_cast %455 : vector<16x32xf32> to vector<2x8x32xf32>
    %457 = vector.shape_cast %3 : vector<8x32xf32> to vector<1x8x32xf32>
    %458 = vector.shape_cast %457 : vector<1x8x32xf32> to vector<1x8x32xf32>
    %459 = vector.broadcast %458 : vector<1x8x32xf32> to vector<2x8x32xf32>
    %460 = vector.shape_cast %459 : vector<2x8x32xf32> to vector<16x32xf32>
    %c8_197 = arith.constant 8 : index
    %c0_198 = arith.constant 0 : index
    %c0_199 = arith.constant 0 : index
    %461 = vector.load %arg6[%c8_197, %c0_198, %c0_199] : memref<20x32x32xf32, #tpu.memory_space<vmem>>, vector<1x32x32xf32>
    %462 = vector.shape_cast %461 : vector<1x32x32xf32> to vector<32x32xf32>
    %cst_200 = arith.constant dense<0.000000e+00> : vector<16x32xf32>
    %463 = tpu.matmul %460, %462, %cst_200 {dimension_numbers = #tpu.dot_dimension_numbers<[1], [0], [0], [1], [0, 0, 1, 1], [], []>} : vector<16x32xf32>, vector<32x32xf32>, vector<16x32xf32> -> vector<16x32xf32>
    %c8_201 = arith.constant 8 : index
    %c0_202 = arith.constant 0 : index
    %c0_203 = arith.constant 0 : index
    %464 = vector.load %arg7[%c8_201, %c0_202, %c0_203] : memref<20x1x32xf32, #tpu.memory_space<vmem>>, vector<1x1x32xf32>
    %465 = vector.shape_cast %464 : vector<1x1x32xf32> to vector<1x32xf32>
    %466 = vector.broadcast %465 : vector<1x32xf32> to vector<16x32xf32>
    %467 = arith.addf %463, %466 : vector<16x32xf32>
    %468 = vector.shape_cast %456 : vector<2x8x32xf32> to vector<16x32xf32>
    %c9_204 = arith.constant 9 : index
    %c0_205 = arith.constant 0 : index
    %c0_206 = arith.constant 0 : index
    %469 = vector.load %arg6[%c9_204, %c0_205, %c0_206] : memref<20x32x32xf32, #tpu.memory_space<vmem>>, vector<1x32x32xf32>
    %470 = vector.shape_cast %469 : vector<1x32x32xf32> to vector<32x32xf32>
    %cst_207 = arith.constant dense<0.000000e+00> : vector<16x32xf32>
    %471 = tpu.matmul %468, %470, %cst_207 {dimension_numbers = #tpu.dot_dimension_numbers<[1], [0], [0], [1], [0, 0, 1, 1], [], []>} : vector<16x32xf32>, vector<32x32xf32>, vector<16x32xf32> -> vector<16x32xf32>
    %c9_208 = arith.constant 9 : index
    %c0_209 = arith.constant 0 : index
    %c0_210 = arith.constant 0 : index
    %472 = vector.load %arg7[%c9_208, %c0_209, %c0_210] : memref<20x1x32xf32, #tpu.memory_space<vmem>>, vector<1x1x32xf32>
    %473 = vector.shape_cast %472 : vector<1x1x32xf32> to vector<1x32xf32>
    %474 = vector.broadcast %473 : vector<1x32xf32> to vector<16x32xf32>
    %475 = arith.addf %471, %474 : vector<16x32xf32>
    %476 = vector.shape_cast %456 : vector<2x8x32xf32> to vector<16x32xf32>
    %c10_211 = arith.constant 10 : index
    %c0_212 = arith.constant 0 : index
    %c0_213 = arith.constant 0 : index
    %477 = vector.load %arg6[%c10_211, %c0_212, %c0_213] : memref<20x32x32xf32, #tpu.memory_space<vmem>>, vector<1x32x32xf32>
    %478 = vector.shape_cast %477 : vector<1x32x32xf32> to vector<32x32xf32>
    %cst_214 = arith.constant dense<0.000000e+00> : vector<16x32xf32>
    %479 = tpu.matmul %476, %478, %cst_214 {dimension_numbers = #tpu.dot_dimension_numbers<[1], [0], [0], [1], [0, 0, 1, 1], [], []>} : vector<16x32xf32>, vector<32x32xf32>, vector<16x32xf32> -> vector<16x32xf32>
    %c10_215 = arith.constant 10 : index
    %c0_216 = arith.constant 0 : index
    %c0_217 = arith.constant 0 : index
    %480 = vector.load %arg7[%c10_215, %c0_216, %c0_217] : memref<20x1x32xf32, #tpu.memory_space<vmem>>, vector<1x1x32xf32>
    %481 = vector.shape_cast %480 : vector<1x1x32xf32> to vector<1x32xf32>
    %482 = vector.broadcast %481 : vector<1x32xf32> to vector<16x32xf32>
    %483 = arith.addf %479, %482 : vector<16x32xf32>
    %484 = vector.shape_cast %467 : vector<16x32xf32> to vector<2x8x32xf32>
    %485 = vector.shape_cast %475 : vector<16x32xf32> to vector<2x8x32xf32>
    %486 = vector.shape_cast %483 : vector<16x32xf32> to vector<2x8x32xf32>
    %487 = vector.extract_strided_slice %484 {offsets = [0, 0, 0], sizes = [2, 8, 8], strides = [1, 1, 1]} : vector<2x8x32xf32> to vector<2x8x8xf32>
    %488 = vector.extract_strided_slice %484 {offsets = [0, 0, 8], sizes = [2, 8, 8], strides = [1, 1, 1]} : vector<2x8x32xf32> to vector<2x8x8xf32>
    %489 = vector.extract_strided_slice %484 {offsets = [0, 0, 16], sizes = [2, 8, 8], strides = [1, 1, 1]} : vector<2x8x32xf32> to vector<2x8x8xf32>
    %490 = vector.extract_strided_slice %484 {offsets = [0, 0, 24], sizes = [2, 8, 8], strides = [1, 1, 1]} : vector<2x8x32xf32> to vector<2x8x8xf32>
    %491 = tpu.concatenate %487, %488, %489, %490 in 0 : vector<2x8x8xf32>, vector<2x8x8xf32>, vector<2x8x8xf32>, vector<2x8x8xf32> -> vector<8x8x8xf32>
    %492 = vector.extract_strided_slice %485 {offsets = [0, 0, 0], sizes = [2, 8, 8], strides = [1, 1, 1]} : vector<2x8x32xf32> to vector<2x8x8xf32>
    %493 = vector.extract_strided_slice %485 {offsets = [0, 0, 8], sizes = [2, 8, 8], strides = [1, 1, 1]} : vector<2x8x32xf32> to vector<2x8x8xf32>
    %494 = vector.extract_strided_slice %485 {offsets = [0, 0, 16], sizes = [2, 8, 8], strides = [1, 1, 1]} : vector<2x8x32xf32> to vector<2x8x8xf32>
    %495 = vector.extract_strided_slice %485 {offsets = [0, 0, 24], sizes = [2, 8, 8], strides = [1, 1, 1]} : vector<2x8x32xf32> to vector<2x8x8xf32>
    %496 = tpu.concatenate %492, %493, %494, %495 in 0 : vector<2x8x8xf32>, vector<2x8x8xf32>, vector<2x8x8xf32>, vector<2x8x8xf32> -> vector<8x8x8xf32>
    %497 = vector.extract_strided_slice %486 {offsets = [0, 0, 0], sizes = [2, 8, 8], strides = [1, 1, 1]} : vector<2x8x32xf32> to vector<2x8x8xf32>
    %498 = vector.extract_strided_slice %486 {offsets = [0, 0, 8], sizes = [2, 8, 8], strides = [1, 1, 1]} : vector<2x8x32xf32> to vector<2x8x8xf32>
    %499 = vector.extract_strided_slice %486 {offsets = [0, 0, 16], sizes = [2, 8, 8], strides = [1, 1, 1]} : vector<2x8x32xf32> to vector<2x8x8xf32>
    %500 = vector.extract_strided_slice %486 {offsets = [0, 0, 24], sizes = [2, 8, 8], strides = [1, 1, 1]} : vector<2x8x32xf32> to vector<2x8x8xf32>
    %501 = tpu.concatenate %497, %498, %499, %500 in 0 : vector<2x8x8xf32>, vector<2x8x8xf32>, vector<2x8x8xf32>, vector<2x8x8xf32> -> vector<8x8x8xf32>
    "tpu.trace_start"() <{level = 10 : i32, message = "bqd,bkd->bqk"}> : () -> ()
    %cst_218 = arith.constant dense<0.000000e+00> : vector<8x8x8xf32>
    %502 = tpu.matmul %491, %496, %cst_218 {dimension_numbers = #tpu.dot_dimension_numbers<[2], [2], [1], [1], [0, 0, 0, 1, 1, 1], [0], [0]>} : vector<8x8x8xf32>, vector<8x8x8xf32>, vector<8x8x8xf32> -> vector<8x8x8xf32>
    "tpu.trace_stop"() : () -> ()
    %cst_219 = arith.constant 0.176776692 : f32
    %503 = vector.broadcast %cst_219 : f32 to vector<8x8x8xf32>
    %504 = arith.mulf %502, %503 : vector<8x8x8xf32>
    %cst_220 = arith.constant dense<0xFF800000> : vector<8x8xf32>
    %505 = vector.multi_reduction <maximumf>, %504, %cst_220 [2] : vector<8x8x8xf32> to vector<8x8xf32>
    %506 = vector.shape_cast %505 : vector<8x8xf32> to vector<8x8x1xf32>
    %507 = vector.broadcast %506 : vector<8x8x1xf32> to vector<8x8x8xf32>
    %508 = arith.subf %504, %507 : vector<8x8x8xf32>
    %509 = math.exp %508 : vector<8x8x8xf32>
    %cst_221 = arith.constant dense<0.000000e+00> : vector<8x8xf32>
    %510 = vector.multi_reduction <add>, %509, %cst_221 [2] : vector<8x8x8xf32> to vector<8x8xf32>
    %511 = vector.shape_cast %510 : vector<8x8xf32> to vector<8x8x1xf32>
    %512 = tpu.reciprocal %511 {approx = true} : vector<8x8x1xf32> -> vector<8x8x1xf32>
    %513 = vector.broadcast %512 : vector<8x8x1xf32> to vector<8x8x8xf32>
    %514 = arith.mulf %509, %513 : vector<8x8x8xf32>
    "tpu.trace_start"() <{level = 10 : i32, message = "bqk,bkd->bqd"}> : () -> ()
    %cst_222 = arith.constant dense<0.000000e+00> : vector<8x8x8xf32>
    %515 = tpu.matmul %514, %501, %cst_222 {dimension_numbers = #tpu.dot_dimension_numbers<[2], [1], [1], [2], [0, 0, 0, 1, 1, 2], [0], [0]>} : vector<8x8x8xf32>, vector<8x8x8xf32>, vector<8x8x8xf32> -> vector<8x8x8xf32>
    "tpu.trace_stop"() : () -> ()
    %516 = arith.addf %491, %515 : vector<8x8x8xf32>
    %517 = vector.extract_strided_slice %516 {offsets = [0, 0, 0], sizes = [2, 8, 8], strides = [1, 1, 1]} : vector<8x8x8xf32> to vector<2x8x8xf32>
    %518 = vector.extract_strided_slice %516 {offsets = [2, 0, 0], sizes = [2, 8, 8], strides = [1, 1, 1]} : vector<8x8x8xf32> to vector<2x8x8xf32>
    %519 = vector.extract_strided_slice %516 {offsets = [4, 0, 0], sizes = [2, 8, 8], strides = [1, 1, 1]} : vector<8x8x8xf32> to vector<2x8x8xf32>
    %520 = vector.extract_strided_slice %516 {offsets = [6, 0, 0], sizes = [2, 8, 8], strides = [1, 1, 1]} : vector<8x8x8xf32> to vector<2x8x8xf32>
    %521 = tpu.concatenate %517, %518, %519, %520 in 2 : vector<2x8x8xf32>, vector<2x8x8xf32>, vector<2x8x8xf32>, vector<2x8x8xf32> -> vector<2x8x32xf32>
    %522 = vector.shape_cast %521 : vector<2x8x32xf32> to vector<16x32xf32>
    %c11_223 = arith.constant 11 : index
    %c0_224 = arith.constant 0 : index
    %c0_225 = arith.constant 0 : index
    %523 = vector.load %arg6[%c11_223, %c0_224, %c0_225] : memref<20x32x32xf32, #tpu.memory_space<vmem>>, vector<1x32x32xf32>
    %524 = vector.shape_cast %523 : vector<1x32x32xf32> to vector<32x32xf32>
    %cst_226 = arith.constant dense<0.000000e+00> : vector<16x32xf32>
    %525 = tpu.matmul %522, %524, %cst_226 {dimension_numbers = #tpu.dot_dimension_numbers<[1], [0], [0], [1], [0, 0, 1, 1], [], []>} : vector<16x32xf32>, vector<32x32xf32>, vector<16x32xf32> -> vector<16x32xf32>
    %c11_227 = arith.constant 11 : index
    %c0_228 = arith.constant 0 : index
    %c0_229 = arith.constant 0 : index
    %526 = vector.load %arg7[%c11_227, %c0_228, %c0_229] : memref<20x1x32xf32, #tpu.memory_space<vmem>>, vector<1x1x32xf32>
    %527 = vector.shape_cast %526 : vector<1x1x32xf32> to vector<1x32xf32>
    %528 = vector.broadcast %527 : vector<1x32xf32> to vector<16x32xf32>
    %529 = arith.addf %525, %528 : vector<16x32xf32>
    %cst_230 = arith.constant 0.000000e+00 : f32
    %530 = vector.broadcast %cst_230 : f32 to vector<16x32xf32>
    %531 = arith.maximumf %529, %530 : vector<16x32xf32>
    %532 = arith.addf %522, %531 : vector<16x32xf32>
    %533 = vector.shape_cast %532 : vector<16x32xf32> to vector<2x8x32xf32>
    %534 = vector.shape_cast %456 : vector<2x8x32xf32> to vector<16x32xf32>
    %c12_231 = arith.constant 12 : index
    %c0_232 = arith.constant 0 : index
    %c0_233 = arith.constant 0 : index
    %535 = vector.load %arg6[%c12_231, %c0_232, %c0_233] : memref<20x32x32xf32, #tpu.memory_space<vmem>>, vector<1x32x32xf32>
    %536 = vector.shape_cast %535 : vector<1x32x32xf32> to vector<32x32xf32>
    %cst_234 = arith.constant dense<0.000000e+00> : vector<16x32xf32>
    %537 = tpu.matmul %534, %536, %cst_234 {dimension_numbers = #tpu.dot_dimension_numbers<[1], [0], [0], [1], [0, 0, 1, 1], [], []>} : vector<16x32xf32>, vector<32x32xf32>, vector<16x32xf32> -> vector<16x32xf32>
    %c12_235 = arith.constant 12 : index
    %c0_236 = arith.constant 0 : index
    %c0_237 = arith.constant 0 : index
    %538 = vector.load %arg7[%c12_235, %c0_236, %c0_237] : memref<20x1x32xf32, #tpu.memory_space<vmem>>, vector<1x1x32xf32>
    %539 = vector.shape_cast %538 : vector<1x1x32xf32> to vector<1x32xf32>
    %540 = vector.broadcast %539 : vector<1x32xf32> to vector<16x32xf32>
    %541 = arith.addf %537, %540 : vector<16x32xf32>
    %542 = vector.shape_cast %533 : vector<2x8x32xf32> to vector<16x32xf32>
    %c13_238 = arith.constant 13 : index
    %c0_239 = arith.constant 0 : index
    %c0_240 = arith.constant 0 : index
    %543 = vector.load %arg6[%c13_238, %c0_239, %c0_240] : memref<20x32x32xf32, #tpu.memory_space<vmem>>, vector<1x32x32xf32>
    %544 = vector.shape_cast %543 : vector<1x32x32xf32> to vector<32x32xf32>
    %cst_241 = arith.constant dense<0.000000e+00> : vector<16x32xf32>
    %545 = tpu.matmul %542, %544, %cst_241 {dimension_numbers = #tpu.dot_dimension_numbers<[1], [0], [0], [1], [0, 0, 1, 1], [], []>} : vector<16x32xf32>, vector<32x32xf32>, vector<16x32xf32> -> vector<16x32xf32>
    %c13_242 = arith.constant 13 : index
    %c0_243 = arith.constant 0 : index
    %c0_244 = arith.constant 0 : index
    %546 = vector.load %arg7[%c13_242, %c0_243, %c0_244] : memref<20x1x32xf32, #tpu.memory_space<vmem>>, vector<1x1x32xf32>
    %547 = vector.shape_cast %546 : vector<1x1x32xf32> to vector<1x32xf32>
    %548 = vector.broadcast %547 : vector<1x32xf32> to vector<16x32xf32>
    %549 = arith.addf %545, %548 : vector<16x32xf32>
    %550 = vector.shape_cast %533 : vector<2x8x32xf32> to vector<16x32xf32>
    %c14_245 = arith.constant 14 : index
    %c0_246 = arith.constant 0 : index
    %c0_247 = arith.constant 0 : index
    %551 = vector.load %arg6[%c14_245, %c0_246, %c0_247] : memref<20x32x32xf32, #tpu.memory_space<vmem>>, vector<1x32x32xf32>
    %552 = vector.shape_cast %551 : vector<1x32x32xf32> to vector<32x32xf32>
    %cst_248 = arith.constant dense<0.000000e+00> : vector<16x32xf32>
    %553 = tpu.matmul %550, %552, %cst_248 {dimension_numbers = #tpu.dot_dimension_numbers<[1], [0], [0], [1], [0, 0, 1, 1], [], []>} : vector<16x32xf32>, vector<32x32xf32>, vector<16x32xf32> -> vector<16x32xf32>
    %c14_249 = arith.constant 14 : index
    %c0_250 = arith.constant 0 : index
    %c0_251 = arith.constant 0 : index
    %554 = vector.load %arg7[%c14_249, %c0_250, %c0_251] : memref<20x1x32xf32, #tpu.memory_space<vmem>>, vector<1x1x32xf32>
    %555 = vector.shape_cast %554 : vector<1x1x32xf32> to vector<1x32xf32>
    %556 = vector.broadcast %555 : vector<1x32xf32> to vector<16x32xf32>
    %557 = arith.addf %553, %556 : vector<16x32xf32>
    %558 = vector.shape_cast %541 : vector<16x32xf32> to vector<2x8x32xf32>
    %559 = vector.shape_cast %549 : vector<16x32xf32> to vector<2x8x32xf32>
    %560 = vector.shape_cast %557 : vector<16x32xf32> to vector<2x8x32xf32>
    %561 = vector.extract_strided_slice %558 {offsets = [0, 0, 0], sizes = [2, 8, 8], strides = [1, 1, 1]} : vector<2x8x32xf32> to vector<2x8x8xf32>
    %562 = vector.extract_strided_slice %558 {offsets = [0, 0, 8], sizes = [2, 8, 8], strides = [1, 1, 1]} : vector<2x8x32xf32> to vector<2x8x8xf32>
    %563 = vector.extract_strided_slice %558 {offsets = [0, 0, 16], sizes = [2, 8, 8], strides = [1, 1, 1]} : vector<2x8x32xf32> to vector<2x8x8xf32>
    %564 = vector.extract_strided_slice %558 {offsets = [0, 0, 24], sizes = [2, 8, 8], strides = [1, 1, 1]} : vector<2x8x32xf32> to vector<2x8x8xf32>
    %565 = tpu.concatenate %561, %562, %563, %564 in 0 : vector<2x8x8xf32>, vector<2x8x8xf32>, vector<2x8x8xf32>, vector<2x8x8xf32> -> vector<8x8x8xf32>
    %566 = vector.extract_strided_slice %559 {offsets = [0, 0, 0], sizes = [2, 8, 8], strides = [1, 1, 1]} : vector<2x8x32xf32> to vector<2x8x8xf32>
    %567 = vector.extract_strided_slice %559 {offsets = [0, 0, 8], sizes = [2, 8, 8], strides = [1, 1, 1]} : vector<2x8x32xf32> to vector<2x8x8xf32>
    %568 = vector.extract_strided_slice %559 {offsets = [0, 0, 16], sizes = [2, 8, 8], strides = [1, 1, 1]} : vector<2x8x32xf32> to vector<2x8x8xf32>
    %569 = vector.extract_strided_slice %559 {offsets = [0, 0, 24], sizes = [2, 8, 8], strides = [1, 1, 1]} : vector<2x8x32xf32> to vector<2x8x8xf32>
    %570 = tpu.concatenate %566, %567, %568, %569 in 0 : vector<2x8x8xf32>, vector<2x8x8xf32>, vector<2x8x8xf32>, vector<2x8x8xf32> -> vector<8x8x8xf32>
    %571 = vector.extract_strided_slice %560 {offsets = [0, 0, 0], sizes = [2, 8, 8], strides = [1, 1, 1]} : vector<2x8x32xf32> to vector<2x8x8xf32>
    %572 = vector.extract_strided_slice %560 {offsets = [0, 0, 8], sizes = [2, 8, 8], strides = [1, 1, 1]} : vector<2x8x32xf32> to vector<2x8x8xf32>
    %573 = vector.extract_strided_slice %560 {offsets = [0, 0, 16], sizes = [2, 8, 8], strides = [1, 1, 1]} : vector<2x8x32xf32> to vector<2x8x8xf32>
    %574 = vector.extract_strided_slice %560 {offsets = [0, 0, 24], sizes = [2, 8, 8], strides = [1, 1, 1]} : vector<2x8x32xf32> to vector<2x8x8xf32>
    %575 = tpu.concatenate %571, %572, %573, %574 in 0 : vector<2x8x8xf32>, vector<2x8x8xf32>, vector<2x8x8xf32>, vector<2x8x8xf32> -> vector<8x8x8xf32>
    "tpu.trace_start"() <{level = 10 : i32, message = "bqd,bkd->bqk"}> : () -> ()
    %cst_252 = arith.constant dense<0.000000e+00> : vector<8x8x8xf32>
    %576 = tpu.matmul %565, %570, %cst_252 {dimension_numbers = #tpu.dot_dimension_numbers<[2], [2], [1], [1], [0, 0, 0, 1, 1, 1], [0], [0]>} : vector<8x8x8xf32>, vector<8x8x8xf32>, vector<8x8x8xf32> -> vector<8x8x8xf32>
    "tpu.trace_stop"() : () -> ()
    %cst_253 = arith.constant 0.176776692 : f32
    %577 = vector.broadcast %cst_253 : f32 to vector<8x8x8xf32>
    %578 = arith.mulf %576, %577 : vector<8x8x8xf32>
    %cst_254 = arith.constant dense<0xFF800000> : vector<8x8xf32>
    %579 = vector.multi_reduction <maximumf>, %578, %cst_254 [2] : vector<8x8x8xf32> to vector<8x8xf32>
    %580 = vector.shape_cast %579 : vector<8x8xf32> to vector<8x8x1xf32>
    %581 = vector.broadcast %580 : vector<8x8x1xf32> to vector<8x8x8xf32>
    %582 = arith.subf %578, %581 : vector<8x8x8xf32>
    %583 = math.exp %582 : vector<8x8x8xf32>
    %cst_255 = arith.constant dense<0.000000e+00> : vector<8x8xf32>
    %584 = vector.multi_reduction <add>, %583, %cst_255 [2] : vector<8x8x8xf32> to vector<8x8xf32>
    %585 = vector.shape_cast %584 : vector<8x8xf32> to vector<8x8x1xf32>
    %586 = tpu.reciprocal %585 {approx = true} : vector<8x8x1xf32> -> vector<8x8x1xf32>
    %587 = vector.broadcast %586 : vector<8x8x1xf32> to vector<8x8x8xf32>
    %588 = arith.mulf %583, %587 : vector<8x8x8xf32>
    "tpu.trace_start"() <{level = 10 : i32, message = "bqk,bkd->bqd"}> : () -> ()
    %cst_256 = arith.constant dense<0.000000e+00> : vector<8x8x8xf32>
    %589 = tpu.matmul %588, %575, %cst_256 {dimension_numbers = #tpu.dot_dimension_numbers<[2], [1], [1], [2], [0, 0, 0, 1, 1, 2], [0], [0]>} : vector<8x8x8xf32>, vector<8x8x8xf32>, vector<8x8x8xf32> -> vector<8x8x8xf32>
    "tpu.trace_stop"() : () -> ()
    %590 = arith.addf %565, %589 : vector<8x8x8xf32>
    %591 = vector.extract_strided_slice %590 {offsets = [0, 0, 0], sizes = [2, 8, 8], strides = [1, 1, 1]} : vector<8x8x8xf32> to vector<2x8x8xf32>
    %592 = vector.extract_strided_slice %590 {offsets = [2, 0, 0], sizes = [2, 8, 8], strides = [1, 1, 1]} : vector<8x8x8xf32> to vector<2x8x8xf32>
    %593 = vector.extract_strided_slice %590 {offsets = [4, 0, 0], sizes = [2, 8, 8], strides = [1, 1, 1]} : vector<8x8x8xf32> to vector<2x8x8xf32>
    %594 = vector.extract_strided_slice %590 {offsets = [6, 0, 0], sizes = [2, 8, 8], strides = [1, 1, 1]} : vector<8x8x8xf32> to vector<2x8x8xf32>
    %595 = tpu.concatenate %591, %592, %593, %594 in 2 : vector<2x8x8xf32>, vector<2x8x8xf32>, vector<2x8x8xf32>, vector<2x8x8xf32> -> vector<2x8x32xf32>
    %596 = vector.shape_cast %595 : vector<2x8x32xf32> to vector<16x32xf32>
    %c15_257 = arith.constant 15 : index
    %c0_258 = arith.constant 0 : index
    %c0_259 = arith.constant 0 : index
    %597 = vector.load %arg6[%c15_257, %c0_258, %c0_259] : memref<20x32x32xf32, #tpu.memory_space<vmem>>, vector<1x32x32xf32>
    %598 = vector.shape_cast %597 : vector<1x32x32xf32> to vector<32x32xf32>
    %cst_260 = arith.constant dense<0.000000e+00> : vector<16x32xf32>
    %599 = tpu.matmul %596, %598, %cst_260 {dimension_numbers = #tpu.dot_dimension_numbers<[1], [0], [0], [1], [0, 0, 1, 1], [], []>} : vector<16x32xf32>, vector<32x32xf32>, vector<16x32xf32> -> vector<16x32xf32>
    %c15_261 = arith.constant 15 : index
    %c0_262 = arith.constant 0 : index
    %c0_263 = arith.constant 0 : index
    %600 = vector.load %arg7[%c15_261, %c0_262, %c0_263] : memref<20x1x32xf32, #tpu.memory_space<vmem>>, vector<1x1x32xf32>
    %601 = vector.shape_cast %600 : vector<1x1x32xf32> to vector<1x32xf32>
    %602 = vector.broadcast %601 : vector<1x32xf32> to vector<16x32xf32>
    %603 = arith.addf %599, %602 : vector<16x32xf32>
    %cst_264 = arith.constant 0.000000e+00 : f32
    %604 = vector.broadcast %cst_264 : f32 to vector<16x32xf32>
    %605 = arith.maximumf %603, %604 : vector<16x32xf32>
    %606 = arith.addf %596, %605 : vector<16x32xf32>
    %607 = vector.shape_cast %606 : vector<16x32xf32> to vector<2x8x32xf32>
    %608 = tpu.concatenate %305, %607 in 1 : vector<2x8x32xf32>, vector<2x8x32xf32> -> vector<2x16x32xf32>
    %c0_265 = arith.constant 0 : index
    %c0_266 = arith.constant 0 : index
    %609 = vector.load %arg5[%c0_265, %c0_266] : memref<1x32xf32, #tpu.memory_space<vmem>>, vector<1x32xf32>
    %610 = vector.shape_cast %609 : vector<1x32xf32> to vector<1x1x32xf32>
    %611 = vector.shape_cast %610 : vector<1x1x32xf32> to vector<1x1x32xf32>
    %612 = vector.broadcast %611 : vector<1x1x32xf32> to vector<2x1x32xf32>
    %613 = vector.shape_cast %612 : vector<2x1x32xf32> to vector<2x32xf32>
    %c16 = arith.constant 16 : index
    %c0_267 = arith.constant 0 : index
    %c0_268 = arith.constant 0 : index
    %614 = vector.load %arg6[%c16, %c0_267, %c0_268] : memref<20x32x32xf32, #tpu.memory_space<vmem>>, vector<1x32x32xf32>
    %615 = vector.shape_cast %614 : vector<1x32x32xf32> to vector<32x32xf32>
    %cst_269 = arith.constant dense<0.000000e+00> : vector<2x32xf32>
    %616 = tpu.matmul %613, %615, %cst_269 {dimension_numbers = #tpu.dot_dimension_numbers<[1], [0], [0], [1], [0, 0, 1, 1], [], []>} : vector<2x32xf32>, vector<32x32xf32>, vector<2x32xf32> -> vector<2x32xf32>
    %c16_270 = arith.constant 16 : index
    %c0_271 = arith.constant 0 : index
    %c0_272 = arith.constant 0 : index
    %617 = vector.load %arg7[%c16_270, %c0_271, %c0_272] : memref<20x1x32xf32, #tpu.memory_space<vmem>>, vector<1x1x32xf32>
    %618 = vector.shape_cast %617 : vector<1x1x32xf32> to vector<1x32xf32>
    %619 = vector.broadcast %618 : vector<1x32xf32> to vector<2x32xf32>
    %620 = arith.addf %616, %619 : vector<2x32xf32>
    %621 = vector.shape_cast %608 : vector<2x16x32xf32> to vector<32x32xf32>
    %c17 = arith.constant 17 : index
    %c0_273 = arith.constant 0 : index
    %c0_274 = arith.constant 0 : index
    %622 = vector.load %arg6[%c17, %c0_273, %c0_274] : memref<20x32x32xf32, #tpu.memory_space<vmem>>, vector<1x32x32xf32>
    %623 = vector.shape_cast %622 : vector<1x32x32xf32> to vector<32x32xf32>
    %cst_275 = arith.constant dense<0.000000e+00> : vector<32x32xf32>
    %624 = tpu.matmul %621, %623, %cst_275 {dimension_numbers = #tpu.dot_dimension_numbers<[1], [0], [0], [1], [0, 0, 1, 1], [], []>} : vector<32x32xf32>, vector<32x32xf32>, vector<32x32xf32> -> vector<32x32xf32>
    %c17_276 = arith.constant 17 : index
    %c0_277 = arith.constant 0 : index
    %c0_278 = arith.constant 0 : index
    %625 = vector.load %arg7[%c17_276, %c0_277, %c0_278] : memref<20x1x32xf32, #tpu.memory_space<vmem>>, vector<1x1x32xf32>
    %626 = vector.shape_cast %625 : vector<1x1x32xf32> to vector<1x32xf32>
    %627 = vector.broadcast %626 : vector<1x32xf32> to vector<32x32xf32>
    %628 = arith.addf %624, %627 : vector<32x32xf32>
    %629 = vector.shape_cast %608 : vector<2x16x32xf32> to vector<32x32xf32>
    %c18 = arith.constant 18 : index
    %c0_279 = arith.constant 0 : index
    %c0_280 = arith.constant 0 : index
    %630 = vector.load %arg6[%c18, %c0_279, %c0_280] : memref<20x32x32xf32, #tpu.memory_space<vmem>>, vector<1x32x32xf32>
    %631 = vector.shape_cast %630 : vector<1x32x32xf32> to vector<32x32xf32>
    %cst_281 = arith.constant dense<0.000000e+00> : vector<32x32xf32>
    %632 = tpu.matmul %629, %631, %cst_281 {dimension_numbers = #tpu.dot_dimension_numbers<[1], [0], [0], [1], [0, 0, 1, 1], [], []>} : vector<32x32xf32>, vector<32x32xf32>, vector<32x32xf32> -> vector<32x32xf32>
    %c18_282 = arith.constant 18 : index
    %c0_283 = arith.constant 0 : index
    %c0_284 = arith.constant 0 : index
    %633 = vector.load %arg7[%c18_282, %c0_283, %c0_284] : memref<20x1x32xf32, #tpu.memory_space<vmem>>, vector<1x1x32xf32>
    %634 = vector.shape_cast %633 : vector<1x1x32xf32> to vector<1x32xf32>
    %635 = vector.broadcast %634 : vector<1x32xf32> to vector<32x32xf32>
    %636 = arith.addf %632, %635 : vector<32x32xf32>
    %637 = vector.shape_cast %620 : vector<2x32xf32> to vector<2x1x32xf32>
    %638 = vector.shape_cast %628 : vector<32x32xf32> to vector<2x16x32xf32>
    %639 = vector.shape_cast %636 : vector<32x32xf32> to vector<2x16x32xf32>
    %640 = vector.extract_strided_slice %637 {offsets = [0, 0, 0], sizes = [2, 1, 8], strides = [1, 1, 1]} : vector<2x1x32xf32> to vector<2x1x8xf32>
    %641 = vector.extract_strided_slice %637 {offsets = [0, 0, 8], sizes = [2, 1, 8], strides = [1, 1, 1]} : vector<2x1x32xf32> to vector<2x1x8xf32>
    %642 = vector.extract_strided_slice %637 {offsets = [0, 0, 16], sizes = [2, 1, 8], strides = [1, 1, 1]} : vector<2x1x32xf32> to vector<2x1x8xf32>
    %643 = vector.extract_strided_slice %637 {offsets = [0, 0, 24], sizes = [2, 1, 8], strides = [1, 1, 1]} : vector<2x1x32xf32> to vector<2x1x8xf32>
    %644 = tpu.concatenate %640, %641, %642, %643 in 0 : vector<2x1x8xf32>, vector<2x1x8xf32>, vector<2x1x8xf32>, vector<2x1x8xf32> -> vector<8x1x8xf32>
    %645 = vector.extract_strided_slice %638 {offsets = [0, 0, 0], sizes = [2, 16, 8], strides = [1, 1, 1]} : vector<2x16x32xf32> to vector<2x16x8xf32>
    %646 = vector.extract_strided_slice %638 {offsets = [0, 0, 8], sizes = [2, 16, 8], strides = [1, 1, 1]} : vector<2x16x32xf32> to vector<2x16x8xf32>
    %647 = vector.extract_strided_slice %638 {offsets = [0, 0, 16], sizes = [2, 16, 8], strides = [1, 1, 1]} : vector<2x16x32xf32> to vector<2x16x8xf32>
    %648 = vector.extract_strided_slice %638 {offsets = [0, 0, 24], sizes = [2, 16, 8], strides = [1, 1, 1]} : vector<2x16x32xf32> to vector<2x16x8xf32>
    %649 = tpu.concatenate %645, %646, %647, %648 in 0 : vector<2x16x8xf32>, vector<2x16x8xf32>, vector<2x16x8xf32>, vector<2x16x8xf32> -> vector<8x16x8xf32>
    %650 = vector.extract_strided_slice %639 {offsets = [0, 0, 0], sizes = [2, 16, 8], strides = [1, 1, 1]} : vector<2x16x32xf32> to vector<2x16x8xf32>
    %651 = vector.extract_strided_slice %639 {offsets = [0, 0, 8], sizes = [2, 16, 8], strides = [1, 1, 1]} : vector<2x16x32xf32> to vector<2x16x8xf32>
    %652 = vector.extract_strided_slice %639 {offsets = [0, 0, 16], sizes = [2, 16, 8], strides = [1, 1, 1]} : vector<2x16x32xf32> to vector<2x16x8xf32>
    %653 = vector.extract_strided_slice %639 {offsets = [0, 0, 24], sizes = [2, 16, 8], strides = [1, 1, 1]} : vector<2x16x32xf32> to vector<2x16x8xf32>
    %654 = tpu.concatenate %650, %651, %652, %653 in 0 : vector<2x16x8xf32>, vector<2x16x8xf32>, vector<2x16x8xf32>, vector<2x16x8xf32> -> vector<8x16x8xf32>
    "tpu.trace_start"() <{level = 10 : i32, message = "bqd,bkd->bqk"}> : () -> ()
    %cst_285 = arith.constant dense<0.000000e+00> : vector<8x1x16xf32>
    %655 = tpu.matmul %644, %649, %cst_285 {dimension_numbers = #tpu.dot_dimension_numbers<[2], [2], [1], [1], [0, 0, 0, 1, 1, 1], [0], [0]>} : vector<8x1x8xf32>, vector<8x16x8xf32>, vector<8x1x16xf32> -> vector<8x1x16xf32>
    "tpu.trace_stop"() : () -> ()
    %cst_286 = arith.constant 0.176776692 : f32
    %656 = vector.broadcast %cst_286 : f32 to vector<8x1x16xf32>
    %657 = arith.mulf %655, %656 : vector<8x1x16xf32>
    %cst_287 = arith.constant dense<0xFF800000> : vector<8x1xf32>
    %658 = vector.multi_reduction <maximumf>, %657, %cst_287 [2] : vector<8x1x16xf32> to vector<8x1xf32>
    %659 = vector.shape_cast %658 : vector<8x1xf32> to vector<8x1x1xf32>
    %660 = vector.broadcast %659 : vector<8x1x1xf32> to vector<8x1x16xf32>
    %661 = arith.subf %657, %660 : vector<8x1x16xf32>
    %662 = math.exp %661 : vector<8x1x16xf32>
    %cst_288 = arith.constant dense<0.000000e+00> : vector<8x1xf32>
    %663 = vector.multi_reduction <add>, %662, %cst_288 [2] : vector<8x1x16xf32> to vector<8x1xf32>
    %664 = vector.shape_cast %663 : vector<8x1xf32> to vector<8x1x1xf32>
    %665 = tpu.reciprocal %664 {approx = true} : vector<8x1x1xf32> -> vector<8x1x1xf32>
    %666 = vector.broadcast %665 : vector<8x1x1xf32> to vector<8x1x16xf32>
    %667 = arith.mulf %662, %666 : vector<8x1x16xf32>
    "tpu.trace_start"() <{level = 10 : i32, message = "bqk,bkd->bqd"}> : () -> ()
    %cst_289 = arith.constant dense<0.000000e+00> : vector<8x1x8xf32>
    %668 = tpu.matmul %667, %654, %cst_289 {dimension_numbers = #tpu.dot_dimension_numbers<[2], [1], [1], [2], [0, 0, 0, 1, 1, 2], [0], [0]>} : vector<8x1x16xf32>, vector<8x16x8xf32>, vector<8x1x8xf32> -> vector<8x1x8xf32>
    "tpu.trace_stop"() : () -> ()
    %669 = arith.addf %644, %668 : vector<8x1x8xf32>
    %670 = vector.extract_strided_slice %669 {offsets = [0, 0, 0], sizes = [2, 1, 8], strides = [1, 1, 1]} : vector<8x1x8xf32> to vector<2x1x8xf32>
    %671 = vector.extract_strided_slice %669 {offsets = [2, 0, 0], sizes = [2, 1, 8], strides = [1, 1, 1]} : vector<8x1x8xf32> to vector<2x1x8xf32>
    %672 = vector.extract_strided_slice %669 {offsets = [4, 0, 0], sizes = [2, 1, 8], strides = [1, 1, 1]} : vector<8x1x8xf32> to vector<2x1x8xf32>
    %673 = vector.extract_strided_slice %669 {offsets = [6, 0, 0], sizes = [2, 1, 8], strides = [1, 1, 1]} : vector<8x1x8xf32> to vector<2x1x8xf32>
    %674 = tpu.concatenate %670, %671, %672, %673 in 2 : vector<2x1x8xf32>, vector<2x1x8xf32>, vector<2x1x8xf32>, vector<2x1x8xf32> -> vector<2x1x32xf32>
    %675 = vector.shape_cast %674 : vector<2x1x32xf32> to vector<2x32xf32>
    %c19 = arith.constant 19 : index
    %c0_290 = arith.constant 0 : index
    %c0_291 = arith.constant 0 : index
    %676 = vector.load %arg6[%c19, %c0_290, %c0_291] : memref<20x32x32xf32, #tpu.memory_space<vmem>>, vector<1x32x32xf32>
    %677 = vector.shape_cast %676 : vector<1x32x32xf32> to vector<32x32xf32>
    %cst_292 = arith.constant dense<0.000000e+00> : vector<2x32xf32>
    %678 = tpu.matmul %675, %677, %cst_292 {dimension_numbers = #tpu.dot_dimension_numbers<[1], [0], [0], [1], [0, 0, 1, 1], [], []>} : vector<2x32xf32>, vector<32x32xf32>, vector<2x32xf32> -> vector<2x32xf32>
    %c19_293 = arith.constant 19 : index
    %c0_294 = arith.constant 0 : index
    %c0_295 = arith.constant 0 : index
    %679 = vector.load %arg7[%c19_293, %c0_294, %c0_295] : memref<20x1x32xf32, #tpu.memory_space<vmem>>, vector<1x1x32xf32>
    %680 = vector.shape_cast %679 : vector<1x1x32xf32> to vector<1x32xf32>
    %681 = vector.broadcast %680 : vector<1x32xf32> to vector<2x32xf32>
    %682 = arith.addf %678, %681 : vector<2x32xf32>
    %cst_296 = arith.constant 0.000000e+00 : f32
    %683 = vector.broadcast %cst_296 : f32 to vector<2x32xf32>
    %684 = arith.maximumf %682, %683 : vector<2x32xf32>
    %685 = arith.addf %675, %684 : vector<2x32xf32>
    %686 = vector.shape_cast %685 : vector<2x32xf32> to vector<2x1x32xf32>
    %687 = vector.shape_cast %686 : vector<2x1x32xf32> to vector<2x32xf32>
    %c0_297 = arith.constant 0 : index
    %c0_298 = arith.constant 0 : index
    %688 = vector.load %arg8[%c0_297, %c0_298] : memref<32x384xf32, #tpu.memory_space<vmem>>, vector<32x384xf32>
    %cst_299 = arith.constant dense<0.000000e+00> : vector<2x384xf32>
    %689 = tpu.matmul %687, %688, %cst_299 {dimension_numbers = #tpu.dot_dimension_numbers<[1], [0], [0], [1], [0, 0, 1, 1], [], []>} : vector<2x32xf32>, vector<32x384xf32>, vector<2x384xf32> -> vector<2x384xf32>
    %c0_300 = arith.constant 0 : index
    %c0_301 = arith.constant 0 : index
    %690 = vector.load %arg9[%c0_300, %c0_301] : memref<1x384xf32, #tpu.memory_space<vmem>>, vector<1x384xf32>
    %691 = vector.broadcast %690 : vector<1x384xf32> to vector<2x384xf32>
    %692 = arith.addf %689, %691 : vector<2x384xf32>
    %693 = vector.shape_cast %692 : vector<2x384xf32> to vector<2x1x384xf32>
    %c0_302 = arith.constant 0 : index
    %c0_303 = arith.constant 0 : index
    %c0_304 = arith.constant 0 : index
    %694 = vector.load %arg10[%c0_302, %c0_303, %c0_304] : memref<2x1x384xf32, #tpu.memory_space<vmem>>, vector<2x1x384xf32>
    tpu.vector_store %arg10[%c0_302, %c0_303, %c0_304], %693 {strides = array<i32>} : memref<2x1x384xf32, #tpu.memory_space<vmem>>, vector<2x1x384xf32>,
    return
  }
  func.func @transform_0(%arg0: i32) -> (i32, i32, i32) {
    %c0_i32 = arith.constant 0 : i32
    %c0_i32_0 = arith.constant 0 : i32
    %c0_i32_1 = arith.constant 0 : i32
    return %arg0, %c0_i32, %c0_i32_0 : i32, i32, i32
  }
  func.func @transform_1(%arg0: i32) -> (i32, i32, i32) {
    %c0_i32 = arith.constant 0 : i32
    %c0_i32_0 = arith.constant 0 : i32
    %c0_i32_1 = arith.constant 0 : i32
    return %arg0, %c0_i32, %c0_i32_0 : i32, i32, i32
  }
  func.func @transform_2(%arg0: i32) -> (i32, i32) {
    %c0_i32 = arith.constant 0 : i32
    %c0_i32_0 = arith.constant 0 : i32
    %c0_i32_1 = arith.constant 0 : i32
    return %c0_i32, %c0_i32_0 : i32, i32
  }
  func.func @transform_3(%arg0: i32) -> (i32, i32) {
    %c0_i32 = arith.constant 0 : i32
    %c0_i32_0 = arith.constant 0 : i32
    %c0_i32_1 = arith.constant 0 : i32
    return %c0_i32, %c0_i32_0 : i32, i32
  }
  func.func @transform_4(%arg0: i32) -> (i32, i32) {
    %c0_i32 = arith.constant 0 : i32
    %c0_i32_0 = arith.constant 0 : i32
    %c0_i32_1 = arith.constant 0 : i32
    return %c0_i32, %c0_i32_0 : i32, i32
  }
  func.func @transform_5(%arg0: i32) -> (i32, i32, i32) {
    %c0_i32 = arith.constant 0 : i32
    %c0_i32_0 = arith.constant 0 : i32
    %c0_i32_1 = arith.constant 0 : i32
    %c0_i32_2 = arith.constant 0 : i32
    return %c0_i32, %c0_i32_0, %c0_i32_1 : i32, i32, i32
  }
  func.func @transform_6(%arg0: i32) -> (i32, i32, i32) {
    %c0_i32 = arith.constant 0 : i32
    %c0_i32_0 = arith.constant 0 : i32
    %c0_i32_1 = arith.constant 0 : i32
    %c0_i32_2 = arith.constant 0 : i32
    return %c0_i32, %c0_i32_0, %c0_i32_1 : i32, i32, i32
  }
  func.func @transform_7(%arg0: i32) -> (i32, i32) {
    %c0_i32 = arith.constant 0 : i32
    %c0_i32_0 = arith.constant 0 : i32
    %c0_i32_1 = arith.constant 0 : i32
    return %c0_i32, %c0_i32_0 : i32, i32
  }
  func.func @transform_8(%arg0: i32) -> (i32, i32) {
    %c0_i32 = arith.constant 0 : i32
    %c0_i32_0 = arith.constant 0 : i32
    %c0_i32_1 = arith.constant 0 : i32
    return %c0_i32, %c0_i32_0 : i32, i32
  }
  func.func @transform_9(%arg0: i32) -> (i32, i32, i32) {
    %c0_i32 = arith.constant 0 : i32
    %c0_i32_0 = arith.constant 0 : i32
    %c0_i32_1 = arith.constant 0 : i32
    return %arg0, %c0_i32, %c0_i32_0 : i32, i32, i32
  }
}

</mosaic_0001>

<bundles_post_ra>
// kernel: set_transformer_forward.1
= control target key start
LH: loop header
LB: loop body
LE: loop exit
PB: predicated region body
PF: predicated region fallthrough
CT: control target
= control target key end

     0   :  { %14 = vsyncpa [#allocation3], 0  ;;  %s20945_s0 = inlined_call_operand.hbm [shape: f32[2,8,32], index: 0, kind: input, shape index: {}]   ;;  %s20946_s1 = inlined_call_operand.hbm [shape: f32[2,8,32], index: 1, kind: input, shape index: {}]   ;;  %s20947_s2 = inlined_call_operand.vmem [shape: f32[8,32], index: 2, kind: input, shape index: {}]   ;;  %s20948_s3 = inlined_call_operand.vmem [shape: f32[8,32], index: 3, kind: input, shape index: {}]   ;;  %s20949_s4 = inlined_call_operand.vmem [shape: f32[1,32], index: 4, kind: input, shape index: {}]   ;;  %s20950_s5 = inlined_call_operand.hbm [shape: f32[20,32,32], index: 5, kind: input, shape index: {}]   ;;  %s20951_s6 = inlined_call_operand.hbm [shape: f32[20,1,32], index: 6, kind: input, shape index: {}]   ;;  %s20952_s7 = inlined_call_operand.hbm [shape: f32[32,384], index: 7, kind: input, shape index: {}]   ;;  %s20953_s8 = inlined_call_operand.hbm [shape: f32[1,384], index: 8, kind: input, shape index: {}]   ;;  %s20954_s9 = inlined_call_operand.vmem [shape: f32[2,1,384], index: 9, kind: output, shape index: {}]  }
   0x1   :  { %15 = vsyncpa [#allocation5], 0 }
   0x2   :  { %16 = vsyncpa [#allocation8], 0 }
   0x3   :  { %17 = vsyncpa [#allocation11], 0  ;;  %s18938_s30 = smov [#allocation4]   ;;  %s18939_s11 = smov [#allocation7]  }
   0x4   :  { %s35_s10 = sshll.u32 %s18938_s30, 4  ;;  %s65_s12 = sshll.u32 %s18939_s11, 4  ;;  %s36_s10 = int_to_ptr.vmem [resolvable:$true] %s35_s10  ;;  %s19007_s12 = int_to_ptr.vmem [resolvable:$true] %s65_s12 }
   0x5   :  { %s18798_s15 = scalar_lea.hbm %s20946_s1, 256 }
   0x6   :  { %p18799_p0 = scmp.ne.s32.totalorder %s20946_s1, %s18798_s15  ;;  %p18802_p1 = scmp.lt.u32.totalorder %s18798_s15, %s20946_s1 }
   0x8   :  { %p18804_p2 = pnand %p18802_p1, %p18799_p0 }
   0xa   :  { %18807 = shalt.err (!%p18804_p2)
}
   0xb   :  { %s18808_s20 = scalar_lea.vmem %s36_s10, 256  ;;  %p18813_p4 = scmp.lt.s32.totalorder %s36_s10, %s36_s10 }
   0xc   :  { %p18809_p3 = scmp.ne.s32.totalorder %s36_s10, %s18808_s20  ;;  %p18814_p5 = scmp.lt.s32.totalorder %s18808_s20, %s18808_s20 }
   0xe   :  { %p18815_p6 = por %p18814_p5, %p18813_p4 }
  0x10   :  { %p18816_p7 = pnand %p18815_p6, %p18809_p3 }
  0x12   :  { %18819 = shalt.err (!%p18816_p7)
}
  0x13   :  { %s18940_s21 = smov 128   ;;  %s18941_s22 = smov 8  }
  0x14   :  { %41 = dma.hbm_to_vmem [thread:$0]  %s20946_s1, 256, %s36_s10, [#allocation5], %s18940_s21, %s18940_s21, %s18941_s22  }
  0x15   :  { %s18820_s27 = scalar_lea.hbm %s20951_s6, 320 }
  0x16   :  { %p18821_p8 = scmp.ne.s32.totalorder %s20951_s6, %s18820_s27  ;;  %p18824_p9 = scmp.lt.u32.totalorder %s18820_s27, %s20951_s6 }
  0x18   :  { %p18826_p10 = pnand %p18824_p9, %p18821_p8 }
  0x1a   :  { %18829 = shalt.err (!%p18826_p10)
}
  0x1b   :  { %s18830_s13 = scalar_lea.vmem %s19007_s12, 320  ;;  %p18835_p12 = scmp.lt.s32.totalorder %s19007_s12, %s19007_s12 }
  0x1c   :  { %p18831_p11 = scmp.ne.s32.totalorder %s19007_s12, %s18830_s13  ;;  %p18836_p13 = scmp.lt.s32.totalorder %s18830_s13, %s18830_s13 }
  0x1e   :  { %p18837_p0 = por %p18836_p13, %p18835_p12 }
  0x20   :  { %p18838_p1 = pnand %p18837_p0, %p18831_p11 }
  0x22   :  { %18841 = shalt.err (!%p18838_p1)
}
  0x23   :  { %s18942_s1 = smov 16   ;;  %s18943_s10 = smov 1  }
  0x24   :  { %71 = dma.hbm_to_vmem [thread:$0]  %s20951_s6, 320, %s19007_s12, [#allocation8], %s18942_s1, %s18942_s1, %s18943_s10  }
  0x25   :  { %s18944_s16 = smov [#allocation2]   ;;  %s18945_s18 = smov [#allocation6]  }
  0x26   :  { %s23_s17 = sshll.u32 %s18944_s16, 4  ;;  %s53_s19 = sshll.u32 %s18945_s18, 4  ;;  %s24_s17 = int_to_ptr.vmem [resolvable:$true] %s23_s17  ;;  %s19043_s19 = int_to_ptr.vmem [resolvable:$true] %s53_s19 }
  0x27   :  { %s18842_s24 = scalar_lea.hbm %s20945_s0, 256 }
  0x28   :  { %p18843_p2 = scmp.ne.s32.totalorder %s20945_s0, %s18842_s24  ;;  %p18846_p3 = scmp.lt.u32.totalorder %s18842_s24, %s20945_s0 }
  0x2a   :  { %p18848_p4 = pnand %p18846_p3, %p18843_p2 }
  0x2c   :  { %18851 = shalt.err (!%p18848_p4)
}
  0x2d   :  { %s18852_s6 = scalar_lea.vmem %s24_s17, 256  ;;  %p18857_p6 = scmp.lt.s32.totalorder %s24_s17, %s24_s17 }
  0x2e   :  { %p18853_p5 = scmp.ne.s32.totalorder %s24_s17, %s18852_s6  ;;  %p18858_p7 = scmp.lt.s32.totalorder %s18852_s6, %s18852_s6 }
  0x30   :  { %p18859_p8 = por %p18858_p7, %p18857_p6 }
  0x32   :  { %p18860_p9 = pnand %p18859_p8, %p18853_p5 }
  0x34   :  { %18863 = shalt.err (!%p18860_p9)
}
  0x35   :  { %29 = dma.hbm_to_vmem [thread:$0]  %s20945_s0, 256, %s24_s17, [#allocation3], %s18940_s21, %s18940_s21, %s18941_s22  }
  0x36   :  { %s18864_s13 = scalar_lea.hbm %s20950_s5, 10240 }
  0x37   :  { %p18865_p10 = scmp.ne.s32.totalorder %s20950_s5, %s18864_s13  ;;  %p18868_p11 = scmp.lt.u32.totalorder %s18864_s13, %s20950_s5 }
  0x39   :  { %p18870_p12 = pnand %p18868_p11, %p18865_p10 }
  0x3b   :  { %18873 = shalt.err (!%p18870_p12)
}
  0x3c   :  { %s18874_s18 = scalar_lea.vmem %s19043_s19, 10240  ;;  %p18879_p0 = scmp.lt.s32.totalorder %s19043_s19, %s19043_s19 }
  0x3d   :  { %p18875_p13 = scmp.ne.s32.totalorder %s19043_s19, %s18874_s18  ;;  %p18880_p1 = scmp.lt.s32.totalorder %s18874_s18, %s18874_s18 }
  0x3f   :  { %p18881_p2 = por %p18880_p1, %p18879_p0 }
  0x41   :  { %p18882_p3 = pnand %p18881_p2, %p18875_p13 }
  0x43   :  { %18885 = shalt.err (!%p18882_p3)
}
  0x44   :  { %59 = dma.hbm_to_vmem [thread:$0]  %s20950_s5, 10240, %s19043_s19, [#allocation5], %s18940_s21, %s18940_s21, %s18941_s22  }
  0x45   :  { %s18946_s20 = smov [#allocation9]   ;;  %s18886_s26 = scalar_lea.hbm %s20952_s7, 1536 }
  0x46   :  { %s77_s23 = sshll.u32 %s18946_s20, 4  ;;  %p18887_p4 = scmp.ne.s32.totalorder %s20952_s7, %s18886_s26  ;;  %s78_s23 = int_to_ptr.vmem [resolvable:$true] %s77_s23 }
  0x47   :  { %p18890_p5 = scmp.lt.u32.totalorder %s18886_s26, %s20952_s7 }
  0x49   :  { %p18892_p6 = pnand %p18890_p5, %p18887_p4 }
  0x4b   :  { %18895 = shalt.err (!%p18892_p6)
}
  0x4c   :  { %s18896_s29 = scalar_lea.vmem %s78_s23, 1536  ;;  %p18901_p8 = scmp.lt.s32.totalorder %s78_s23, %s78_s23 }
  0x4d   :  { %p18897_p7 = scmp.ne.s32.totalorder %s78_s23, %s18896_s29  ;;  %p18902_p9 = scmp.lt.s32.totalorder %s18896_s29, %s18896_s29 }
  0x4f   :  { %p18903_p10 = por %p18902_p9, %p18901_p8 }
  0x51   :  { %p18904_p11 = pnand %p18903_p10, %p18897_p7 }
  0x53   :  { %18907 = shalt.err (!%p18904_p11)
}
  0x54   :  { %s18947_s5 = smov 384   ;;  %s18948_s21 = smov 24  }
  0x55   :  { %83 = dma.hbm_to_vmem [thread:$0]  %s20952_s7, 1536, %s78_s23, [#allocation8], %s18947_s5, %s18947_s5, %s18948_s21  }
  0x56   :  { %s18949_s11 = smov [#allocation10]   ;;  %s18908_s15 = scalar_lea.hbm %s20953_s8, 48 }
  0x57   :  { %s90_s13 = sshll.u32 %s18949_s11, 4  ;;  %p18909_p12 = scmp.ne.s32.totalorder %s20953_s8, %s18908_s15  ;;  %s91_s13 = int_to_ptr.vmem [resolvable:$true] %s90_s13 }
  0x58   :  { %p18912_p13 = scmp.lt.u32.totalorder %s18908_s15, %s20953_s8 }
  0x5a   :  { %p18914_p0 = pnand %p18912_p13, %p18909_p12 }
  0x5c   :  { %18917 = shalt.err (!%p18914_p0)
}
  0x5d   :  { %s18918_s20 = scalar_lea.vmem %s91_s13, 48  ;;  %s18922_s7 = scalar_lea.vmem %s91_s13, 64 }
  0x5e   :  { %p18919_p1 = scmp.ne.s32.totalorder %s91_s13, %s18918_s20  ;;  %p18923_p2 = scmp.lt.s32.totalorder %s91_s13, %s91_s13 }
  0x5f   :  { %p18924_p3 = scmp.lt.s32.totalorder %s18922_s7, %s18918_s20 }
  0x61   :  { %p18925_p4 = por %p18924_p3, %p18923_p2 }
  0x63   :  { %p18926_p5 = pnand %p18925_p4, %p18919_p1 }
  0x65   :  { %18929 = shalt.err (!%p18926_p5)
}
  0x66   :  { %93 = dma.hbm_to_vmem [thread:$0]  %s20953_s8, 48, %s91_s13, [#allocation11]  }
  0x67   :  { %18930 = dma.done.wait [#allocation3], 256  }
  0x68   :  { %18931 = vsyncadd [#allocation3], 4294967040 }
  0x69   :  { %18932 = dma.done.wait [#allocation5], 10496  }
  0x6a   :  { %18933 = vsyncadd [#allocation5], 4294956800 }
  0x6b   :  { %18934 = dma.done.wait [#allocation8], 1856  }
  0x6c   :  { %18935 = vsyncadd [#allocation8], 4294965440 }
  0x6d   :  { %18936 = dma.done.wait [#allocation11], 48  }
  0x6e   :  { %18937 = vsyncadd [#allocation11], 4294967248  ;;  %v209_v0 = vld [vmem:[#allocation6 + $0x20] sm:$0xff]  ;;  %v210_v1 = vld [vmem:[#allocation6 + $0x28] sm:$0xff]  ;;  %vm129_vm0 = vcmask 261120   ;;  %v18950_v15 = vmov 0.0  }
  0x6f   :  { %v118_v2 = vld [vmem:[#allocation6] sm:$0xff]  ;;  %v18081_v3 = vpack.c.bf16 %v210_v1, %v209_v0  ;;  %v119_v4 = vld [vmem:[#allocation6 + $0x8] sm:$0xff]  ;;  %v211_v5 = vld [vmem:[#allocation6 + $0x30] sm:$0xff]  ;;  %vm18951_vm1 = vmmov 0   ;;  %vm444_vm2 = vcmask 64512   ;;  %s18952_s26 = smov 120  }
  0x70   :  { %v212_v6 = vld [vmem:[#allocation6 + $0x38] sm:$0xff]  ;;  %v18073_v7 = vpack.c.bf16 %v119_v4, %v118_v2  ;;  %v120_v9 = vld [vmem:[#allocation6 + $0x10] sm:$0xff]  ;;  %v19105_v11 = vld [vmem:[#allocation2] sm:$0xff]  ;;  %s18953_s27 = smov 112   ;;  %s18954_s28 = smov 104   ;;  %vm1751_vm3 = vcmask 130048  }
  0x71   :  { %v18085_v8 = vpack.c.bf16 %v212_v6, %v211_v5  ;;  %v121_v10 = vld [vmem:[#allocation6 + $0x18] sm:$0xff]  ;;  %18082 = vmatprep.subr.bf16.mxu1 %v18081_v3  ;;  %16927 = vmatprep.mubr.msk.f32.mxu1 %vm129_vm0, %v19105_v11  ;;  %v116_v13 = vld [vmem:[%s20947_s2] sm:$0xff]  ;;  %v19113_v14 = vld [vmem:[#allocation2 + $0x8] sm:$0xff]  ;;  %vm1754_vm4 = vcmask 195584   ;;  %vm14987_vm6 = vcmask 122880   ;;  %vm15738_vm7 = vcmask 1041409  }
  0x72   :  { %v18077_v12 = vpack.c.bf16 %v121_v10, %v120_v9  ;;  %18084 = vmatpush3.bf16.msra.mxu1 %v18081_v3  ;;  %18074 = vmatprep.subr.bf16.mxu0 %v18073_v7  ;;  %v303_v16 = vld [vmem:[#allocation6 + $0x40] sm:$0xff]  ;;  %v304_v17 = vld [vmem:[#allocation6 + $0x48] sm:$0xff]  ;;  %v305_v18 = vld [vmem:[#allocation6 + $0x50] sm:$0xff] }
  0x73   :  { %18076 = vmatpush3.bf16.msra.mxu0 %v18073_v7  ;;  %18086 = vmatprep.subr.bf16.mxu1 %v18085_v8  ;;  %v18089_v19 = vpack.c.bf16 %v304_v17, %v303_v16  ;;  %v306_v20 = vld [vmem:[#allocation6 + $0x58] sm:$0xff]  ;;  %v16048_v22 = vld [vmem:[#allocation7 + $0x1] ss:$0 sm:$0xff]  ;;  %v16045_v24 = vld [vmem:[#allocation7] ss:$0 sm:$0xff] }
  0x74   :  { %18078 = vmatprep.subr.bf16.mxu0 %v18077_v12  ;;  %16916 = vmatprep.mubr.msk.f32.mxu0 %vm129_vm0, %v116_v13  ;;  %v18093_v21 = vpack.c.bf16 %v306_v20, %v305_v18  ;;  %v16051_v45 = vld [vmem:[#allocation7 + $0x2] ss:$0 sm:$0xff]  ;;  %vm20688_vm5 = vmpackc.low %vm444_vm2, %vm444_vm2 }
  0x76   :  { %18088 = vmatpush3.bf16.msra.mxu1 %v18085_v8 }
  0x77   :  { %18080 = vmatpush3.bf16.msra.mxu0 %v18077_v12  ;;  %16941 = vmatprep.subr.mxu1 %v18950_v15 }
  0x78   :  { %18090 = vmatprep.subr.bf16.mxu0 %v18089_v19 }
  0x79   :  { %16928 = vmatmul.mubr.msk.f32.vlgmr.msra.gmra.mrb[0].mxu1 %vm129_vm0, %v19113_v14 }
  0x7a   :  { %16917 = vmatmul.mubr.msk.f32.vlgmr.msra.gmra.mrb[0].mxu0 %vm129_vm0, %v116_v13  ;;  %16943 = vmatprep.mubr.msk.f32.mxu1 %vm18951_vm1, %v18950_v15 }
  0x7b   :  { %16938 = vmatprep.mubr.msk.f32.mxu0 %vm129_vm0, %v19105_v11  ;;  %18092 = vmatpush3.bf16.msra.mxu0 %v18089_v19 }
  0x7c   :  { %18094 = vmatprep.subr.bf16.mxu0 %v18093_v21 }
  0x7f   :  { %18096 = vmatpush3.bf16.msra.mxu0 %v18093_v21 }
  0x80   :  { %16961 = vmatprep.subr.mxu0 %v18950_v15 }
  0x82   :  { %16939 = vmatmul.mubr.msk.f32.vlgmr.msra.gmra.mrb[2].mxu0 %vm129_vm0, %v19113_v14 }
  0x83   :  { %16963 = vmatprep.mubr.msk.f32.mxu0 %vm18951_vm1, %v18950_v15 }
 0x14c   :  { %v16929_v23 = vpop.f32.mrb[0].mxu1 }
 0x14d   :  { %v299_v25 = vadd.f32 %v16929_v23, %v16048_v22  ;;  %v293_v26 = vpop.f32.mrb[1].mxu1  ;;  %v16918_v27 = vpop.f32.mrb[0].mxu0 }
 0x14e   :  { %v294_v28 = vadd.f32 %v16048_v22, %v293_v26  ;;  %v199_v29 = vpop.f32.mrb[1].mxu0  ;;  %v19128_v30 = vadd.f32 %v16918_v27, %v16045_v24 }
 0x14f   :  { %414 = vrot.lane.b32.xlu1 %v299_v25, %s18952_s26  ;;  %v19131_v31 = vadd.f32 %v16045_v24, %v199_v29 }
 0x150   :  { %412 = vrot.lane.b32.xlu0 %v294_v28, %s18952_s26  ;;  %16942 = vmatpush3.xpose.msk.msra.mxu1 %vm444_vm2, %v294_v28 }
 0x151   :  { %16946 = vmatprep.subr.mxu1 %v18950_v15 }
 0x153   :  { %394 = vrot.lane.b32.xlu1 %v19128_v30, %s18952_s26  ;;  %16944 = vmatmul.mubr.msk.f32.vlgmr.msra.gmra.mrb[2].mxu1 %vm444_vm2, %v19131_v31 }
 0x154   :  { %392 = vrot.lane.b32.xlu0 %v19131_v31, %s18952_s26  ;;  %16947 = vmatpush3.xpose.msk.msra.mxu1 %vm444_vm2, %v299_v25 }
 0x155   :  { %16948 = vmatprep.mubr.msk.f32.mxu1 %vm18951_vm1, %v18950_v15  ;;  %16951 = vmatprep.subr.mxu1 %v18950_v15  ;;  %v16940_v44 = vpop.f32.mrb[2].mxu0 }
 0x156   :  { %v19210_v46 = vadd.f32 %v16940_v44, %v16051_v45  ;;  %v381_v47 = vpop.f32.mrb[3].mxu0 }
 0x157   :  { %418 = vrot.lane.b32.xlu1 %v299_v25, %s18953_s27  ;;  %16949 = vmatmul.mubr.msk.f32.vlgmr.msra.gmra.mrb[4].mxu1 %vm444_vm2, %v19128_v30  ;;  %v19212_v48 = vadd.f32 %v16051_v45, %v381_v47 }
 0x158   :  { %416 = vrot.lane.b32.xlu0 %v294_v28, %s18953_s27  ;;  %16953 = vmatprep.mubr.msk.f32.mxu1 %vm18951_vm1, %v18950_v15 }
 0x15b   :  { %400 = vrot.lane.b32.xlu1 %v19128_v30, %s18953_s27 }
 0x15c   :  { %398 = vrot.lane.b32.xlu0 %v19131_v31, %s18953_s27 }
 0x15f   :  { %422 = vrot.lane.b32.xlu1 %v299_v25, %s18954_s28 }
 0x160   :  { %420 = vrot.lane.b32.xlu0 %v294_v28, %s18954_s28 }
 0x163   :  { %406 = vrot.lane.b32.xlu1 %v19128_v30, %s18954_s28 }
 0x164   :  { %404 = vrot.lane.b32.xlu0 %v19131_v31, %s18954_s28 }
 0x1c1   :  { %v415_v32 = vpop.permute.xlu1 %414 }
 0x1c2   :  { %v413_v33 = vpop.permute.xlu0 %412 }
 0x1c3   :  { %16952 = vmatpush3.xpose.msk.msra.mxu1 %vm444_vm2, %v413_v33 }
 0x1c4   :  { %16956 = vmatprep.subr.mxu1 %v18950_v15 }
 0x1c5   :  { %v19164_v34 = vpop.permute.xlu1 %394 }
 0x1c6   :  { %v19166_v35 = vpop.permute.xlu0 %392 }
 0x1c7   :  { %16954 = vmatmul.mubr.msk.f32.vlgmr.msra.gmra.mrb[6].mxu1 %vm444_vm2, %v19166_v35 }
 0x1c8   :  { %16957 = vmatpush3.xpose.msk.msra.mxu1 %vm444_vm2, %v415_v32  ;;  %16958 = vmatprep.mubr.msk.f32.mxu1 %vm18951_vm1, %v18950_v15 }
 0x1c9   :  { %v419_v36 = vpop.permute.xlu1 %418  ;;  %16966 = vmatprep.subr.mxu1 %v18950_v15 }
 0x1ca   :  { %v417_v37 = vpop.permute.xlu0 %416 }
 0x1cb   :  { %16959 = vmatmul.mubr.msk.f32.vlgmr.msra.gmra.mrb[8].mxu1 %vm444_vm2, %v19164_v34  ;;  %16962 = vmatpush3.xpose.msk.msra.mxu0 %vm444_vm2, %v417_v37 }
 0x1cc   :  { %16967 = vmatpush3.xpose.msk.msra.mxu1 %vm444_vm2, %v419_v36  ;;  %16968 = vmatprep.mubr.msk.f32.mxu1 %vm18951_vm1, %v18950_v15 }
 0x1cd   :  { %v19180_v38 = vpop.permute.xlu1 %400  ;;  %16976 = vmatprep.subr.mxu1 %v18950_v15  ;;  %16971 = vmatprep.subr.mxu0 %v18950_v15 }
 0x1ce   :  { %v19184_v39 = vpop.permute.xlu0 %398 }
 0x1cf   :  { %16964 = vmatmul.mubr.msk.f32.vlgmr.msra.gmra.mrb[4].mxu0 %vm444_vm2, %v19184_v39  ;;  %16969 = vmatmul.mubr.msk.f32.vlgmr.msra.gmra.mrb[10].mxu1 %vm444_vm2, %v19180_v38 }
 0x1d0   :  { %16978 = vmatprep.mubr.msk.f32.mxu1 %vm18951_vm1, %v18950_v15  ;;  %16973 = vmatprep.mubr.msk.f32.mxu0 %vm18951_vm1, %v18950_v15 }
 0x1d1   :  { %v423_v40 = vpop.permute.xlu1 %422 }
 0x1d2   :  { %v421_v41 = vpop.permute.xlu0 %420  ;;  %16977 = vmatpush3.xpose.msk.msra.mxu1 %vm444_vm2, %v423_v40 }
 0x1d3   :  { %16972 = vmatpush3.xpose.msk.msra.mxu0 %vm444_vm2, %v421_v41  ;;  %16986 = vmatprep.subr.mxu1 %v18950_v15 }
 0x1d4   :  { %16981 = vmatprep.subr.mxu0 %v18950_v15 }
 0x1d5   :  { %v19198_v42 = vpop.permute.xlu1 %406 }
 0x1d6   :  { %v19200_v43 = vpop.permute.xlu0 %404  ;;  %16979 = vmatmul.mubr.msk.f32.vlgmr.msra.gmra.mrb[12].mxu1 %vm444_vm2, %v19198_v42 }
 0x1d7   :  { %16974 = vmatmul.mubr.msk.f32.vlgmr.msra.gmra.mrb[6].mxu0 %vm444_vm2, %v19200_v43  ;;  %16988 = vmatprep.mubr.msk.f32.mxu1 %vm18951_vm1, %v18950_v15 }
 0x1d8   :  { %16983 = vmatprep.mubr.msk.f32.mxu0 %vm18951_vm1, %v18950_v15  ;;  %16987 = vmatpush3.msra.mxu1 %v19210_v46 }
 0x1d9   :  { %16982 = vmatpush3.msra.mxu0 %v19212_v48  ;;  %16996 = vmatprep.subr.mxu1 %v18950_v15 }
 0x1da   :  { %16991 = vmatprep.subr.mxu0 %v18950_v15 }
 0x226   :  { %v515_v49 = vpop.f32.mrb[2].mxu1 }
 0x227   :  { %v1037_v50 = vmul.f32 0.17677669, %v515_v49  ;;  %v16945_v51 = vpop.f32.mrb[3].mxu1 }
 0x229   :  { %v1045_v52 = vsel %vm444_vm2, %v1037_v50, -inf }
 0x22a   :  { %1046 = vmax.xlane.f32.xlu0 %v1045_v52  ;;  %v589_v53 = vpop.f32.mrb[4].mxu1 }
 0x22b   :  { %v1038_v54 = vmul.f32 0.17677669, %v589_v53  ;;  %v16950_v55 = vpop.f32.mrb[5].mxu1 }
 0x22d   :  { %v1048_v56 = vsel %vm444_vm2, %v1038_v54, -inf }
 0x22e   :  { %1049 = vmax.xlane.f32.xlu1 %v1048_v56 }
 0x29a   :  { %v663_v57 = vpop.f32.mrb[6].mxu1 }
 0x29b   :  { %v1039_v58 = vmul.f32 0.17677669, %v663_v57  ;;  %v16955_v59 = vpop.f32.mrb[7].mxu1 }
 0x29d   :  { %v1051_v60 = vsel %vm444_vm2, %v1039_v58, -inf }
 0x29e   :  { %1052 = vmax.xlane.f32.xlu0 %v1051_v60  ;;  %v737_v61 = vpop.f32.mrb[8].mxu1 }
 0x29f   :  { %v1040_v62 = vmul.f32 0.17677669, %v737_v61  ;;  %v16960_v63 = vpop.f32.mrb[9].mxu1 }
 0x2a1   :  { %v1054_v0 = vsel %vm444_vm2, %v1040_v62, -inf }
 0x2a2   :  { %v811_v1 = vpop.f32.mrb[4].mxu0  ;;  %1055 = vmax.xlane.f32.xlu0 %v1054_v0  ;;  %v885_v2 = vpop.f32.mrb[10].mxu1 }
 0x2a3   :  { %v1041_v3 = vmul.f32 0.17677669, %v811_v1  ;;  %v1042_v4 = vmul.f32 0.17677669, %v885_v2  ;;  %v16965_v5 = vpop.f32.mrb[5].mxu0  ;;  %v16970_v6 = vpop.f32.mrb[11].mxu1 }
 0x2a5   :  { %v1057_v7 = vsel %vm444_vm2, %v1041_v3, -inf  ;;  %v1060_v8 = vsel %vm444_vm2, %v1042_v4, -inf }
 0x2a6   :  { %1058 = vmax.xlane.f32.xlu1 %v1057_v7  ;;  %1061 = vmax.xlane.f32.xlu0 %v1060_v8 }
 0x2a9   :  { %v1033_v9 = vpop.f32.mrb[12].mxu1 }
 0x2aa   :  { %v1044_v10 = vmul.f32 0.17677669, %v1033_v9  ;;  %v959_v12 = vpop.f32.mrb[6].mxu0  ;;  %v16980_v13 = vpop.f32.mrb[13].mxu1 }
 0x2ab   :  { %v1043_v16 = vmul.f32 0.17677669, %v959_v12  ;;  %v16975_v17 = vpop.f32.mrb[7].mxu0 }
 0x2ac   :  { %v1066_v18 = vsel %vm444_vm2, %v1044_v10, -inf }
 0x2ad   :  { %1067 = vmax.xlane.f32.xlu0 %v1066_v18  ;;  %v1063_v19 = vsel %vm444_vm2, %v1043_v16, -inf }
 0x2ae   :  { %1064 = vmax.xlane.f32.xlu1 %v1063_v19 }
 0x2b7   :  { %v1047_v23 = vpop.xlane.xlu0 %1046 }
 0x2b8   :  { %v1069_v24 = vsub.f32 %v1037_v50, %v1047_v23 }
 0x2ba   :  { %v1077_v25 = vmul.f32 1.442695, %v1069_v24 }
 0x2bb   :  { %v1050_v20 = vpop.xlane.xlu1 %1049 }
 0x2bc   :  { %v1070_v21 = vsub.f32 %v1038_v54, %v1050_v20 }
 0x2be   :  { %v1079_v22 = vmul.f32 1.442695, %v1070_v21 }
 0x2bf   :  { %426 = vrot.lane.b32.xlu1 %v19212_v48, %s18952_s26 }
 0x2c0   :  { %18507 = vpow2.f32 %v1079_v22 }
 0x2c1   :  { %18509 = vpow2.f32 %v1077_v25 }
 0x2c3   :  { %432 = vrot.lane.b32.xlu1 %v19212_v48, %s18953_s27  ;;  %428 = vrot.lane.b32.xlu0 %v19210_v46, %s18952_s26 }
 0x2c7   :  { %434 = vrot.lane.b32.xlu1 %v19210_v46, %s18953_s27 }
 0x2ca   :  { %v18508_v26 = vpop.eup %18507 }
 0x2cb   :  { %v1096_v27 = vsel %vm444_vm2, %v18508_v26, 0.0  ;;  %v18510_v28 = vpop.eup %18509 }
 0x2cc   :  { %v1093_v29 = vsel %vm444_vm2, %v18510_v28, 0.0 }
 0x2e2   :  { %1097 = vadd.xlane.f32.xlu0 %v1096_v27 }
 0x2eb   :  { %1094 = vadd.xlane.f32.xlu1 %v1093_v29 }
 0x32b   :  { %v1053_v32 = vpop.xlane.xlu0 %1052 }
 0x32c   :  { %v1071_v33 = vsub.f32 %v1039_v58, %v1053_v32 }
 0x32e   :  { %v1081_v36 = vmul.f32 1.442695, %v1071_v33 }
 0x32f   :  { %v1056_v37 = vpop.xlane.xlu0 %1055 }
 0x330   :  { %18511 = vpow2.f32 %v1081_v36  ;;  %v1072_v40 = vsub.f32 %v1040_v62, %v1056_v37 }
 0x332   :  { %v1083_v41 = vmul.f32 1.442695, %v1072_v40 }
 0x333   :  { %v1059_v44 = vpop.xlane.xlu1 %1058  ;;  %v1062_v45 = vpop.xlane.xlu0 %1061 }
 0x334   :  { %18513 = vpow2.f32 %v1083_v41  ;;  %v1073_v47 = vsub.f32 %v1041_v3, %v1059_v44  ;;  %v1074_v49 = vsub.f32 %v1042_v4, %v1062_v45 }
 0x336   :  { %v1085_v50 = vmul.f32 1.442695, %v1073_v47  ;;  %v1087_v51 = vmul.f32 1.442695, %v1074_v49 }
 0x338   :  { %18515 = vpow2.f32 %v1085_v50 }
 0x339   :  { %18517 = vpow2.f32 %v1087_v51  ;;  %v1758_v51 = vld [vmem:[#allocation6 + $0x60] sm:$0xff] }
 0x33a   :  { %v18512_v52 = vpop.eup %18511  ;;  %v1068_v53 = vpop.xlane.xlu0 %1067 }
 0x33b   :  { %v1076_v54 = vsub.f32 %v1044_v10, %v1068_v53  ;;  %v1065_v55 = vpop.xlane.xlu1 %1064  ;;  %v1099_v56 = vsel %vm444_vm2, %v18512_v52, 0.0  ;;  %v1760_v53 = vld [vmem:[#allocation6 + $0x70] sm:$0xff] }
 0x33c   :  { %v1075_v57 = vsub.f32 %v1043_v16, %v1065_v55  ;;  %1100 = vadd.xlane.f32.xlu1 %v1099_v56  ;;  %v1761_v56 = vld [vmem:[#allocation6 + $0x78] sm:$0xff] }
 0x33d   :  { %v1091_v58 = vmul.f32 1.442695, %v1076_v54 }
 0x33e   :  { %v18514_v59 = vpop.eup %18513  ;;  %v1089_v60 = vmul.f32 1.442695, %v1075_v57  ;;  %v429_v7 = vpop.permute.xlu0 %428 }
 0x33f   :  { %18519 = vpow2.f32 %v1091_v58  ;;  %v1102_v61 = vsel %vm444_vm2, %v18514_v59, 0.0  ;;  %v427_v6 = vpop.permute.xlu1 %426 }
 0x340   :  { %18521 = vpow2.f32 %v1089_v60  ;;  %1103 = vadd.xlane.f32.xlu0 %v1102_v61 }
 0x342   :  { %v18516_v62 = vpop.eup %18515 }
 0x343   :  { %v18518_v63 = vpop.eup %18517  ;;  %v1105_v0 = vsel %vm444_vm2, %v18516_v62, 0.0  ;;  %v433_v8 = vpop.permute.xlu1 %432 }
 0x344   :  { %1106 = vadd.xlane.f32.xlu1 %v1105_v0  ;;  %v1108_v1 = vsel %vm444_vm2, %v18518_v63, 0.0  ;;  %v1857_v0 = vld [vmem:[#allocation6 + $0x88] sm:$0xff] }
 0x345   :  { %1109 = vadd.xlane.f32.xlu0 %v1108_v1  ;;  %v1858_v1 = vld [vmem:[#allocation6 + $0x90] sm:$0xff] }
 0x347   :  { %v435_v10 = vpop.permute.xlu1 %434 }
 0x349   :  { %v19240_v2 = vpop.eup %18519 }
 0x34a   :  { %v19242_v3 = vpop.eup %18521  ;;  %v1114_v4 = vsel %vm444_vm2, %v19240_v2, 0.0 }
 0x34b   :  { %1115 = vadd.xlane.f32.xlu0 %v1114_v4  ;;  %v1111_v5 = vsel %vm444_vm2, %v19242_v3, 0.0 }
 0x34c   :  { %1112 = vadd.xlane.f32.xlu1 %v1111_v5  ;;  %v1859_v5 = vld [vmem:[#allocation6 + $0x98] sm:$0xff] }
 0x35d   :  { %440 = vrot.lane.b32.xlu1 %v19210_v46, %s18954_s28 }
 0x361   :  { %438 = vrot.lane.b32.xlu0 %v19212_v48, %s18954_s28 }
 0x36f   :  { %v1098_v9 = vpop.xlane.xlu0 %1097 }
 0x370   :  { %18523 = vrcp.f32 %v1098_v9 }
 0x378   :  { %v1095_v12 = vpop.xlane.xlu1 %1094 }
 0x379   :  { %18525 = vrcp.f32 %v1095_v12 }
 0x37a   :  { %v18524_v13 = vpop.eup %18523 }
 0x37b   :  { %v1126_v16 = vmul.f32 %v18524_v13, %v18508_v26 }
 0x37d   :  { %16989 = vmatmul.mubr.msk.f32.vlgmr.msra.gmra.mrb[14].mxu1 %vm444_vm2, %v1126_v16 }
 0x37e   :  { %16997 = vmatpush3.msra.mxu1 %v429_v7  ;;  %16998 = vmatprep.mubr.msk.f32.mxu1 %vm18951_vm1, %v18950_v15 }
 0x37f   :  { %17006 = vmatprep.subr.mxu1 %v18950_v15 }
 0x383   :  { %v18526_v46 = vpop.eup %18525 }
 0x384   :  { %v1125_v48 = vmul.f32 %v18526_v46, %v18510_v28 }
 0x386   :  { %16984 = vmatmul.mubr.msk.f32.vlgmr.msra.gmra.mrb[8].mxu0 %vm444_vm2, %v1125_v48 }
 0x387   :  { %16992 = vmatpush3.msra.mxu0 %v427_v6  ;;  %16993 = vmatprep.mubr.msk.f32.mxu0 %vm18951_vm1, %v18950_v15 }
 0x388   :  { %17001 = vmatprep.subr.mxu0 %v18950_v15 }
 0x3c9   :  { %v1101_v17 = vpop.xlane.xlu1 %1100 }
 0x3ca   :  { %18527 = vrcp.f32 %v1101_v17 }
 0x3cd   :  { %v1104_v18 = vpop.xlane.xlu0 %1103 }
 0x3ce   :  { %18529 = vrcp.f32 %v1104_v18 }
 0x3d1   :  { %v1107_v19 = vpop.xlane.xlu1 %1106 }
 0x3d2   :  { %18531 = vrcp.f32 %v1107_v19  ;;  %v1110_v20 = vpop.xlane.xlu0 %1109 }
 0x3d3   :  { %18533 = vrcp.f32 %v1110_v20 }
 0x3d4   :  { %v18528_v21 = vpop.eup %18527 }
 0x3d5   :  { %v1127_v22 = vmul.f32 %v18528_v21, %v18512_v52  ;;  %v1759_v52 = vld [vmem:[#allocation6 + $0x68] sm:$0xff] }
 0x3d6   :  { %v18097_v55 = vpack.c.bf16 %v1759_v52, %v1758_v51 }
 0x3d7   :  { %16994 = vmatmul.mubr.msk.f32.vlgmr.msra.gmra.mrb[10].mxu0 %vm444_vm2, %v1127_v22 }
 0x3d8   :  { %v18530_v23 = vpop.eup %18529  ;;  %17002 = vmatpush3.msra.mxu0 %v433_v8  ;;  %v1116_v24 = vpop.xlane.xlu0 %1115  ;;  %17003 = vmatprep.mubr.msk.f32.mxu0 %vm18951_vm1, %v18950_v15  ;;  %v18109_v8 = vpack.c.bf16 %v1859_v5, %v1858_v1 }
 0x3d9   :  { %18535 = vrcp.f32 %v1116_v24  ;;  %v1113_v25 = vpop.xlane.xlu1 %1112  ;;  %v1128_v26 = vmul.f32 %v18530_v23, %v18514_v59  ;;  %17011 = vmatprep.subr.mxu0 %v18950_v15  ;;  %v18101_v59 = vpack.c.bf16 %v1761_v56, %v1760_v53 }
 0x3da   :  { %18537 = vrcp.f32 %v1113_v25  ;;  %v2038_v25 = vld [vmem:[#allocation6 + $0xc0] sm:$0xff] }
 0x3db   :  { %16999 = vmatmul.mubr.msk.f32.vlgmr.msra.gmra.mrb[16].mxu1 %vm444_vm2, %v1128_v26  ;;  %v2039_v26 = vld [vmem:[#allocation6 + $0xc8] sm:$0xff] }
 0x3dc   :  { %v18532_v27 = vpop.eup %18531  ;;  %17007 = vmatpush3.msra.mxu1 %v435_v10  ;;  %17008 = vmatprep.mubr.msk.f32.mxu1 %vm18951_vm1, %v18950_v15  ;;  %v439_v36 = vpop.permute.xlu0 %438 }
 0x3dd   :  { %v18534_v28 = vpop.eup %18533  ;;  %17016 = vmatprep.subr.mxu1 %v18950_v15  ;;  %v1129_v29 = vmul.f32 %v18532_v27, %v18516_v62  ;;  %v441_v32 = vpop.permute.xlu1 %440  ;;  %v18121_v27 = vpack.c.bf16 %v2039_v26, %v2038_v25 }
 0x3de   :  { %v1130_v33 = vmul.f32 %v18534_v28, %v18518_v63  ;;  %v1856_v63 = vld [vmem:[#allocation6 + $0x80] sm:$0xff]  ;;  %v1946_v28 = vld [vmem:[#allocation6 + $0xb0] sm:$0xff] }
 0x3df   :  { %17004 = vmatmul.mubr.msk.f32.vlgmr.msra.gmra.mrb[12].mxu0 %vm444_vm2, %v1129_v29  ;;  %v18105_v4 = vpack.c.bf16 %v1857_v0, %v1856_v63  ;;  %v1947_v29 = vld [vmem:[#allocation6 + $0xb8] sm:$0xff] }
 0x3e0   :  { %17009 = vmatmul.mubr.msk.f32.vlgmr.msra.gmra.mrb[18].mxu1 %vm444_vm2, %v1130_v33  ;;  %17012 = vmatpush3.msra.mxu0 %v439_v36  ;;  %v18117_v33 = vpack.c.bf16 %v1947_v29, %v1946_v28  ;;  %v2041_v36 = vld [vmem:[#allocation6 + $0xd8] sm:$0xff] }
 0x3e1   :  { %17017 = vmatpush3.msra.mxu1 %v441_v32  ;;  %17018 = vmatprep.mubr.msk.f32.mxu1 %vm18951_vm1, %v18950_v15  ;;  %v2040_v32 = vld [vmem:[#allocation6 + $0xd0] sm:$0xff] }
 0x3e2   :  { %17013 = vmatprep.mubr.msk.f32.mxu0 %vm18951_vm1, %v18950_v15  ;;  %18098 = vmatprep.subr.bf16.mxu0 %v18097_v55 }
 0x3e3   :  { %v18536_v37 = vpop.eup %18535  ;;  %18106 = vmatprep.subr.bf16.mxu1 %v18105_v4 }
 0x3e4   :  { %v18538_v40 = vpop.eup %18537  ;;  %v1132_v41 = vmul.f32 %v18536_v37, %v19240_v2  ;;  %v18125_v37 = vpack.c.bf16 %v2041_v36, %v2040_v32 }
 0x3e5   :  { %v1131_v44 = vmul.f32 %v18538_v40, %v19242_v3  ;;  %v16081_v40 = vld [vmem:[#allocation7 + $0x4] ss:$0 sm:$0xff] }
 0x3e6   :  { %17019 = vmatmul.mubr.msk.f32.vlgmr.msra.gmra.mrb[20].mxu1 %vm444_vm2, %v1132_v41 }
 0x3e7   :  { %17014 = vmatmul.mubr.msk.f32.vlgmr.msra.gmra.mrb[14].mxu0 %vm444_vm2, %v1131_v44  ;;  %17040 = vmatprep.mubr.msk.f32.mxu1 %vm129_vm0, %v19105_v11 }
 0x3e8   :  { %18100 = vmatpush3.bf16.msra.mxu0 %v18097_v55  ;;  %18108 = vmatpush3.bf16.msra.mxu1 %v18105_v4 }
 0x3e9   :  { %18102 = vmatprep.subr.bf16.mxu0 %v18101_v59  ;;  %18110 = vmatprep.subr.bf16.mxu1 %v18109_v8 }
 0x3ec   :  { %18104 = vmatpush3.bf16.msra.mxu0 %v18101_v59  ;;  %18112 = vmatpush3.bf16.msra.mxu1 %v18109_v8  ;;  %v16087_v8 = vld [vmem:[#allocation7 + $0x6] ss:$0 sm:$0xff] }
 0x3ed   :  { %18122 = vmatprep.subr.bf16.mxu1 %v18121_v27 }
 0x3ef   :  { %17041 = vmatmul.mubr.msk.f32.vlgmr.msra.gmra.mrb[22].mxu1 %vm129_vm0, %v19113_v14 }
 0x3f0   :  { %18124 = vmatpush3.bf16.msra.mxu1 %v18121_v27 }
 0x3f1   :  { %18126 = vmatprep.subr.bf16.mxu1 %v18125_v37 }
 0x3f4   :  { %18128 = vmatpush3.bf16.msra.mxu1 %v18125_v37 }
 0x3f5   :  { %17070 = vmatprep.subr.mxu1 %v18950_v15 }
 0x450   :  { %v1275_v45 = vpop.f32.mrb[14].mxu1 }
 0x451   :  { %v16990_v47 = vpop.f32.mrb[15].mxu1 }
 0x459   :  { %v1202_v49 = vpop.f32.mrb[8].mxu0 }
 0x45a   :  { %v16985_v50 = vpop.f32.mrb[9].mxu0  ;;  %v1717_v17 = vadd.f32 %v1202_v49, %v19131_v31  ;;  %v1945_v31 = vld [vmem:[#allocation6 + $0xa8] sm:$0xff]  ;;  %v16078_v49 = vld [vmem:[#allocation7 + $0x3] ss:$0 sm:$0xff] }
 0x4aa   :  { %v1348_v54 = vpop.f32.mrb[10].mxu0 }
 0x4ab   :  { %v1719_v57 = vadd.f32 %v1348_v54, %v19166_v35  ;;  %v16995_v58 = vpop.f32.mrb[11].mxu0 }
 0x4ac   :  { %v16084_v58 = vld [vmem:[#allocation7 + $0x5] ss:$0 sm:$0xff] }
 0x4ad   :  { %1727 = vrot.lane.b32.xlu0 %v1719_v57, %s18941_s22 }
 0x4ae   :  { %v1421_v60 = vpop.f32.mrb[16].mxu1 }
 0x4af   :  { %v1720_v11 = vadd.f32 %v1421_v60, %v19164_v34  ;;  %v17000_v61 = vpop.f32.mrb[17].mxu1 }
 0x4b1   :  { %1729 = vrot.lane.b32.xlu1 %v1720_v11, %s18941_s22 }
 0x4b2   :  { %v1494_v62 = vpop.f32.mrb[12].mxu0 }
 0x4b3   :  { %v1721_v35 = vadd.f32 %v1494_v62, %v19184_v39  ;;  %v1567_v2 = vpop.f32.mrb[18].mxu1  ;;  %v17005_v3 = vpop.f32.mrb[13].mxu0 }
 0x4b4   :  { %v1722_v6 = vadd.f32 %v1567_v2, %v19180_v38  ;;  %v17010_v7 = vpop.f32.mrb[19].mxu1 }
 0x4b5   :  { %1735 = vrot.lane.b32.xlu0 %v1721_v35, %s18942_s1 }
 0x4b6   :  { %1737 = vrot.lane.b32.xlu1 %v1722_v6, %s18942_s1 }
 0x4b9   :  { %v1713_v34 = vpop.f32.mrb[20].mxu1 }
 0x4ba   :  { %v1724_v9 = vadd.f32 %v1713_v34, %v19198_v42  ;;  %v1640_v10 = vpop.f32.mrb[14].mxu0  ;;  %v17020_v39 = vpop.f32.mrb[21].mxu1  ;;  %v1718_v42 = vadd.f32 %v1275_v45, %v19128_v30  ;;  %v1944_v30 = vld [vmem:[#allocation6 + $0xa0] sm:$0xff] }
 0x4bb   :  { %v1723_v12 = vadd.f32 %v1640_v10, %v19200_v43  ;;  %v17015_v13 = vpop.f32.mrb[15].mxu0  ;;  %v18113_v24 = vpack.c.bf16 %v1945_v31, %v1944_v30 }
 0x4bc   :  { %1745 = vrot.lane.b32.xlu1 %v1724_v9, %s18948_s21 }
 0x4bd   :  { %1743 = vrot.lane.b32.xlu0 %v1723_v12, %s18948_s21  ;;  %18114 = vmatprep.subr.bf16.mxu0 %v18113_v24 }
 0x4c2   :  { %v17042_v41 = vpop.f32.mrb[22].mxu1 }
 0x4c3   :  { %v19306_v44 = vadd.f32 %v17042_v41, %v16081_v40  ;;  %v1934_v45 = vpop.f32.mrb[23].mxu1 }
 0x4c4   :  { %v19308_v47 = vadd.f32 %v16081_v40, %v1934_v45 }
 0x4c5   :  { %2129 = vrot.lane.b32.xlu1 %v19306_v44, %s18952_s26 }
 0x4c6   :  { %2127 = vrot.lane.b32.xlu0 %v19308_v47, %s18952_s26 }
 0x4c9   :  { %2135 = vrot.lane.b32.xlu1 %v19306_v44, %s18953_s27 }
 0x4ca   :  { %2133 = vrot.lane.b32.xlu0 %v19308_v47, %s18953_s27 }
 0x51f   :  { %v1728_v16 = vpop.permute.xlu0 %1727 }
 0x520   :  { %v1749_v43 = vsel %vm444_vm2, %v1717_v17, %v1728_v16 }
 0x523   :  { %v1730_v38 = vpop.permute.xlu1 %1729 }
 0x524   :  { %v1750_v19 = vsel %vm444_vm2, %v1718_v42, %v1730_v38 }
 0x527   :  { %v1736_v48 = vpop.permute.xlu0 %1735 }
 0x528   :  { %v1738_v46 = vpop.permute.xlu1 %1737  ;;  %v1752_v20 = vsel %vm1751_vm3, %v1749_v43, %v1736_v48 }
 0x529   :  { %v1753_v14 = vsel %vm1751_vm3, %v1750_v19, %v1738_v46 }
 0x52e   :  { %v1746_v18 = vpop.permute.xlu1 %1745 }
 0x52f   :  { %v1744_v21 = vpop.permute.xlu0 %1743  ;;  %v1756_v23 = vsel %vm1754_vm4, %v1753_v14, %v1746_v18 }
 0x530   :  { %v1755_v22 = vsel %vm1754_vm4, %v1752_v20, %v1744_v21 }
 0x531   :  { %17029 = vmatprep.mubr.msk.f32.mxu0 %vm129_vm0, %v1755_v22 }
 0x532   :  { %17030 = vmatmul.mubr.msk.f32.vlgmr.msra.gmra.mrb[16].mxu0 %vm129_vm0, %v1756_v23 }
 0x533   :  { %18116 = vmatpush3.bf16.msra.mxu0 %v18113_v24 }
 0x534   :  { %18118 = vmatprep.subr.bf16.mxu0 %v18117_v33 }
 0x537   :  { %18120 = vmatpush3.bf16.msra.mxu0 %v18117_v33  ;;  %v19348_v0 = vpop.permute.xlu1 %2129 }
 0x538   :  { %17065 = vmatprep.subr.mxu0 %v18950_v15  ;;  %v19350_v1 = vpop.permute.xlu0 %2127 }
 0x53b   :  { %v19352_v35 = vpop.permute.xlu1 %2135 }
 0x53c   :  { %v19354_v2 = vpop.permute.xlu0 %2133 }
 0x605   :  { %v17031_v50 = vpop.f32.mrb[16].mxu0 }
 0x606   :  { %v1848_v51 = vadd.f32 %v17031_v50, %v16078_v49  ;;  %v1842_v52 = vpop.f32.mrb[17].mxu0 }
 0x607   :  { %v1843_v53 = vadd.f32 %v16078_v49, %v1842_v52 }
 0x608   :  { %v1852_v54 = vmax.f32 %v1848_v51, 0.0 }
 0x609   :  { %v1851_v55 = vmax.f32 %v1843_v53, 0.0 }
 0x60a   :  { %v1854_v57 = vadd.f32 %v1852_v54, %v1756_v23 }
 0x60b   :  { %v1853_v56 = vadd.f32 %v1851_v55, %v1755_v22 }
 0x60d   :  { %17051 = vmatprep.mubr.msk.f32.mxu0 %vm129_vm0, %v1853_v56  ;;  %17062 = vmatprep.mubr.msk.f32.mxu1 %vm129_vm0, %v1853_v56 }
 0x60e   :  { %17052 = vmatmul.mubr.msk.f32.vlgmr.msra.gmra.mrb[18].mxu0 %vm129_vm0, %v1854_v57  ;;  %17063 = vmatmul.mubr.msk.f32.vlgmr.msra.gmra.mrb[24].mxu1 %vm129_vm0, %v1854_v57 }
 0x60f   :  { %17072 = vmatprep.mubr.msk.f32.mxu1 %vm18951_vm1, %v18950_v15  ;;  %17067 = vmatprep.mubr.msk.f32.mxu0 %vm18951_vm1, %v18950_v15 }
 0x6e1   :  { %v17053_v59 = vpop.f32.mrb[18].mxu0  ;;  %v17064_v60 = vpop.f32.mrb[24].mxu1 }
 0x6e2   :  { %v2034_v11 = vadd.f32 %v17053_v59, %v16084_v58  ;;  %v2028_v61 = vpop.f32.mrb[19].mxu0  ;;  %v2116_v62 = vpop.f32.mrb[25].mxu1  ;;  %v19383_v9 = vadd.f32 %v17064_v60, %v16087_v8 }
 0x6e3   :  { %v2029_v63 = vadd.f32 %v16084_v58, %v2028_v61  ;;  %v19388_v39 = vadd.f32 %v16087_v8, %v2116_v62 }
 0x6e4   :  { %17071 = vmatpush3.xpose.msk.msra.mxu1 %vm444_vm2, %v2034_v11  ;;  %2149 = vrot.lane.b32.xlu1 %v2034_v11, %s18952_s26 }
 0x6e5   :  { %17066 = vmatpush3.xpose.msk.msra.mxu0 %vm444_vm2, %v2029_v63  ;;  %2147 = vrot.lane.b32.xlu0 %v2029_v63, %s18952_s26 }
 0x6e6   :  { %17080 = vmatprep.subr.mxu1 %v18950_v15  ;;  %17075 = vmatprep.subr.mxu0 %v18950_v15 }
 0x6e7   :  { %17073 = vmatmul.mubr.msk.f32.vlgmr.msra.gmra.mrb[26].mxu1 %vm444_vm2, %v19306_v44 }
 0x6e8   :  { %2153 = vrot.lane.b32.xlu1 %v2034_v11, %s18953_s27  ;;  %17068 = vmatmul.mubr.msk.f32.vlgmr.msra.gmra.mrb[20].mxu0 %vm444_vm2, %v19308_v47 }
 0x6e9   :  { %2151 = vrot.lane.b32.xlu0 %v2029_v63, %s18953_s27  ;;  %17082 = vmatprep.mubr.msk.f32.mxu1 %vm18951_vm1, %v18950_v15 }
 0x6ea   :  { %17077 = vmatprep.mubr.msk.f32.mxu0 %vm18951_vm1, %v18950_v15 }
 0x6ec   :  { %2157 = vrot.lane.b32.xlu1 %v2034_v11, %s18954_s28 }
 0x6ed   :  { %2155 = vrot.lane.b32.xlu0 %v2029_v63, %s18954_s28 }
 0x6f0   :  { %2141 = vrot.lane.b32.xlu1 %v19306_v44, %s18954_s28 }
 0x6f1   :  { %2139 = vrot.lane.b32.xlu0 %v19308_v47, %s18954_s28 }
 0x756   :  { %v2150_v3 = vpop.permute.xlu1 %2149 }
 0x757   :  { %17081 = vmatpush3.xpose.msk.msra.mxu1 %vm444_vm2, %v2150_v3  ;;  %v2148_v4 = vpop.permute.xlu0 %2147 }
 0x758   :  { %17076 = vmatpush3.xpose.msk.msra.mxu0 %vm444_vm2, %v2148_v4  ;;  %17090 = vmatprep.subr.mxu1 %v18950_v15 }
 0x759   :  { %17085 = vmatprep.subr.mxu0 %v18950_v15 }
 0x75a   :  { %v2154_v5 = vpop.permute.xlu1 %2153  ;;  %17083 = vmatmul.mubr.msk.f32.vlgmr.msra.gmra.mrb[28].mxu1 %vm444_vm2, %v19348_v0 }
 0x75b   :  { %17091 = vmatpush3.xpose.msk.msra.mxu1 %vm444_vm2, %v2154_v5  ;;  %v2152_v6 = vpop.permute.xlu0 %2151  ;;  %17078 = vmatmul.mubr.msk.f32.vlgmr.msra.gmra.mrb[22].mxu0 %vm444_vm2, %v19350_v1 }
 0x75c   :  { %17086 = vmatpush3.xpose.msk.msra.mxu0 %vm444_vm2, %v2152_v6  ;;  %17092 = vmatprep.mubr.msk.f32.mxu1 %vm18951_vm1, %v18950_v15 }
 0x75d   :  { %17087 = vmatprep.mubr.msk.f32.mxu0 %vm18951_vm1, %v18950_v15  ;;  %17100 = vmatprep.subr.mxu1 %v18950_v15 }
 0x75e   :  { %v2158_v7 = vpop.permute.xlu1 %2157  ;;  %17093 = vmatmul.mubr.msk.f32.vlgmr.msra.gmra.mrb[30].mxu1 %vm444_vm2, %v19352_v35  ;;  %17095 = vmatprep.subr.mxu0 %v18950_v15 }
 0x75f   :  { %17101 = vmatpush3.xpose.msk.msra.mxu1 %vm444_vm2, %v2158_v7  ;;  %v2156_v34 = vpop.permute.xlu0 %2155  ;;  %17088 = vmatmul.mubr.msk.f32.vlgmr.msra.gmra.mrb[24].mxu0 %vm444_vm2, %v19354_v2 }
 0x760   :  { %17096 = vmatpush3.xpose.msk.msra.mxu0 %vm444_vm2, %v2156_v34  ;;  %17102 = vmatprep.mubr.msk.f32.mxu1 %vm18951_vm1, %v18950_v15 }
 0x761   :  { %17110 = vmatprep.subr.mxu1 %v18950_v15  ;;  %17097 = vmatprep.mubr.msk.f32.mxu0 %vm18951_vm1, %v18950_v15 }
 0x762   :  { %v19385_v10 = vpop.permute.xlu1 %2141  ;;  %17105 = vmatprep.subr.mxu0 %v18950_v15 }
 0x763   :  { %17103 = vmatmul.mubr.msk.f32.vlgmr.msra.gmra.mrb[32].mxu1 %vm444_vm2, %v19385_v10  ;;  %v19392_v12 = vpop.permute.xlu0 %2139 }
 0x764   :  { %17111 = vmatpush3.msra.mxu1 %v19383_v9  ;;  %17098 = vmatmul.mubr.msk.f32.vlgmr.msra.gmra.mrb[26].mxu0 %vm444_vm2, %v19392_v12 }
 0x765   :  { %17106 = vmatpush3.msra.mxu0 %v19388_v39  ;;  %17112 = vmatprep.mubr.msk.f32.mxu1 %vm18951_vm1, %v18950_v15 }
 0x766   :  { %17120 = vmatprep.subr.mxu1 %v18950_v15  ;;  %17107 = vmatprep.mubr.msk.f32.mxu0 %vm18951_vm1, %v18950_v15 }
 0x767   :  { %17115 = vmatprep.subr.mxu0 %v18950_v15 }
 0x7ba   :  { %v2323_v13 = vpop.f32.mrb[26].mxu1 }
 0x7bb   :  { %v2772_v38 = vmul.f32 0.17677669, %v2323_v13  ;;  %v2249_v16 = vpop.f32.mrb[20].mxu0  ;;  %v17074_v46 = vpop.f32.mrb[27].mxu1 }
 0x7bc   :  { %v2771_v48 = vmul.f32 0.17677669, %v2249_v16  ;;  %v17069_v17 = vpop.f32.mrb[21].mxu0 }
 0x7bd   :  { %v2782_v42 = vsel %vm444_vm2, %v2772_v38, -inf }
 0x7be   :  { %2783 = vmax.xlane.f32.xlu1 %v2782_v42  ;;  %v2779_v43 = vsel %vm444_vm2, %v2771_v48, -inf }
 0x7bf   :  { %2780 = vmax.xlane.f32.xlu0 %v2779_v43 }
 0x82d   :  { %v2471_v18 = vpop.f32.mrb[28].mxu1 }
 0x82e   :  { %v2397_v19 = vpop.f32.mrb[22].mxu0  ;;  %v17084_v20 = vpop.f32.mrb[29].mxu1  ;;  %v2774_v22 = vmul.f32 0.17677669, %v2471_v18 }
 0x82f   :  { %v2773_v21 = vmul.f32 0.17677669, %v2397_v19  ;;  %v17079_v14 = vpop.f32.mrb[23].mxu0 }
 0x830   :  { %v2788_v28 = vsel %vm444_vm2, %v2774_v22, -inf }
 0x831   :  { %v2619_v23 = vpop.f32.mrb[30].mxu1  ;;  %v2785_v30 = vsel %vm444_vm2, %v2773_v21, -inf }
 0x832   :  { %v17094_v31 = vpop.f32.mrb[31].mxu1  ;;  %2786 = vmax.xlane.f32.xlu0 %v2785_v30  ;;  %v2545_v24 = vpop.f32.mrb[24].mxu0  ;;  %v2776_v27 = vmul.f32 0.17677669, %v2619_v23 }
 0x833   :  { %v2775_v25 = vmul.f32 0.17677669, %v2545_v24  ;;  %v17089_v26 = vpop.f32.mrb[25].mxu0 }
 0x834   :  { %v2794_v45 = vsel %vm444_vm2, %v2776_v27, -inf }
 0x835   :  { %v2791_v29 = vsel %vm444_vm2, %v2775_v25, -inf }
 0x836   :  { %v2767_v32 = vpop.f32.mrb[32].mxu1  ;;  %2789 = vmax.xlane.f32.xlu0 %v2788_v28  ;;  %2792 = vmax.xlane.f32.xlu1 %v2791_v29 }
 0x837   :  { %v2693_v33 = vpop.f32.mrb[26].mxu0  ;;  %v17104_v36 = vpop.f32.mrb[33].mxu1  ;;  %v2778_v41 = vmul.f32 0.17677669, %v2767_v32 }
 0x838   :  { %v2777_v37 = vmul.f32 0.17677669, %v2693_v33  ;;  %v17099_v40 = vpop.f32.mrb[27].mxu0 }
 0x839   :  { %v2800_v50 = vsel %vm444_vm2, %v2778_v41, -inf }
 0x83a   :  { %2795 = vmax.xlane.f32.xlu0 %v2794_v45  ;;  %v2797_v49 = vsel %vm444_vm2, %v2777_v37, -inf }
 0x83b   :  { %2798 = vmax.xlane.f32.xlu1 %v2797_v49 }
 0x83e   :  { %2801 = vmax.xlane.f32.xlu0 %v2800_v50 }
 0x84b   :  { %v2784_v51 = vpop.xlane.xlu1 %2783 }
 0x84c   :  { %2161 = vrot.lane.b32.xlu1 %v19388_v39, %s18952_s26  ;;  %v2804_v52 = vsub.f32 %v2772_v38, %v2784_v51  ;;  %v2781_v53 = vpop.xlane.xlu0 %2780 }
 0x84d   :  { %v2803_v55 = vsub.f32 %v2771_v48, %v2781_v53 }
 0x84e   :  { %v2813_v54 = vmul.f32 1.442695, %v2804_v52 }
 0x84f   :  { %v2811_v56 = vmul.f32 1.442695, %v2803_v55 }
 0x850   :  { %2167 = vrot.lane.b32.xlu1 %v19388_v39, %s18953_s27  ;;  %18539 = vpow2.f32 %v2813_v54 }
 0x851   :  { %18541 = vpow2.f32 %v2811_v56 }
 0x854   :  { %2163 = vrot.lane.b32.xlu0 %v19383_v9, %s18952_s26  ;;  %2169 = vrot.lane.b32.xlu1 %v19383_v9, %s18953_s27 }
 0x85a   :  { %v18540_v57 = vpop.eup %18539 }
 0x85b   :  { %v2830_v58 = vsel %vm444_vm2, %v18540_v57, 0.0  ;;  %v18542_v59 = vpop.eup %18541 }
 0x85c   :  { %v2827_v60 = vsel %vm444_vm2, %v18542_v59, 0.0 }
 0x873   :  { %2831 = vadd.xlane.f32.xlu0 %v2830_v58 }
 0x878   :  { %2828 = vadd.xlane.f32.xlu1 %v2827_v60 }
 0x8bf   :  { %v2787_v11 = vpop.xlane.xlu0 %2786 }
 0x8c0   :  { %v2805_v61 = vsub.f32 %v2773_v21, %v2787_v11 }
 0x8c2   :  { %v2815_v62 = vmul.f32 1.442695, %v2805_v61 }
 0x8c3   :  { %v2790_v63 = vpop.xlane.xlu0 %2789  ;;  %v2793_v3 = vpop.xlane.xlu1 %2792 }
 0x8c4   :  { %18543 = vpow2.f32 %v2815_v62  ;;  %v2806_v4 = vsub.f32 %v2774_v22, %v2790_v63  ;;  %v2807_v5 = vsub.f32 %v2775_v25, %v2793_v3 }
 0x8c6   :  { %v2817_v6 = vmul.f32 1.442695, %v2806_v4  ;;  %v2819_v7 = vmul.f32 1.442695, %v2807_v5 }
 0x8c7   :  { %v2796_v8 = vpop.xlane.xlu0 %2795 }
 0x8c8   :  { %18545 = vpow2.f32 %v2817_v6  ;;  %v2808_v34 = vsub.f32 %v2776_v27, %v2796_v8  ;;  %v2799_v13 = vpop.xlane.xlu1 %2798  ;;  %v3490_v8 = vld [vmem:[#allocation6 + $0xe0] sm:$0xff] }
 0x8c9   :  { %18547 = vpow2.f32 %v2819_v7  ;;  %v2809_v38 = vsub.f32 %v2777_v37, %v2799_v13 }
 0x8ca   :  { %v2821_v16 = vmul.f32 1.442695, %v2808_v34  ;;  %v3491_v34 = vld [vmem:[#allocation6 + $0xe8] sm:$0xff] }
 0x8cb   :  { %v2823_v46 = vmul.f32 1.442695, %v2809_v38  ;;  %v2802_v48 = vpop.xlane.xlu0 %2801  ;;  %v18129_v13 = vpack.c.bf16 %v3491_v34, %v3490_v8  ;;  %v3492_v38 = vld [vmem:[#allocation6 + $0xf0] sm:$0xff] }
 0x8cc   :  { %18549 = vpow2.f32 %v2821_v16  ;;  %v2810_v17 = vsub.f32 %v2778_v41, %v2802_v48  ;;  %v2162_v26 = vpop.permute.xlu1 %2161  ;;  %v3493_v16 = vld [vmem:[#allocation6 + $0xf8] sm:$0xff] }
 0x8cd   :  { %18551 = vpow2.f32 %v2823_v46  ;;  %v18133_v46 = vpack.c.bf16 %v3493_v16, %v3492_v38 }
 0x8ce   :  { %v18544_v42 = vpop.eup %18543  ;;  %v2825_v43 = vmul.f32 1.442695, %v2810_v17 }
 0x8cf   :  { %v2833_v18 = vsel %vm444_vm2, %v18544_v42, 0.0  ;;  %v2164_v28 = vpop.permute.xlu0 %2163 }
 0x8d0   :  { %18553 = vpow2.f32 %v2825_v43  ;;  %2834 = vadd.xlane.f32.xlu1 %v2833_v18  ;;  %v2168_v27 = vpop.permute.xlu1 %2167  ;;  %v3588_v43 = vld [vmem:[#allocation6 + $0x100] sm:$0xff]  ;;  %v3589_v18 = vld [vmem:[#allocation6 + $0x108] sm:$0xff] }
 0x8d2   :  { %v18546_v19 = vpop.eup %18545 }
 0x8d3   :  { %v18548_v20 = vpop.eup %18547  ;;  %v2836_v21 = vsel %vm444_vm2, %v18546_v19, 0.0 }
 0x8d4   :  { %2837 = vadd.xlane.f32.xlu0 %v2836_v21  ;;  %v2839_v14 = vsel %vm444_vm2, %v18548_v20, 0.0  ;;  %v2170_v32 = vpop.permute.xlu1 %2169  ;;  %v18137_v21 = vpack.c.bf16 %v3589_v18, %v3588_v43 }
 0x8d5   :  { %2840 = vadd.xlane.f32.xlu1 %v2839_v14  ;;  %v3591_v14 = vld [vmem:[#allocation6 + $0x118] sm:$0xff] }
 0x8d6   :  { %v18550_v22 = vpop.eup %18549 }
 0x8d7   :  { %v19425_v23 = vpop.eup %18551  ;;  %v2842_v30 = vsel %vm444_vm2, %v18550_v22, 0.0 }
 0x8d8   :  { %2843 = vadd.xlane.f32.xlu0 %v2842_v30  ;;  %v2845_v31 = vsel %vm444_vm2, %v19425_v23, 0.0 }
 0x8d9   :  { %2846 = vadd.xlane.f32.xlu1 %v2845_v31 }
 0x8da   :  { %v19430_v24 = vpop.eup %18553 }
 0x8db   :  { %v2848_v25 = vsel %vm444_vm2, %v19430_v24, 0.0 }
 0x8dc   :  { %2849 = vadd.xlane.f32.xlu0 %v2848_v25 }
 0x8ea   :  { %2175 = vrot.lane.b32.xlu1 %v19383_v9, %s18954_s28 }
 0x8f2   :  { %2173 = vrot.lane.b32.xlu0 %v19388_v39, %s18954_s28 }
 0x900   :  { %v2832_v29 = vpop.xlane.xlu0 %2831 }
 0x901   :  { %18555 = vrcp.f32 %v2832_v29 }
 0x905   :  { %v2829_v33 = vpop.xlane.xlu1 %2828 }
 0x906   :  { %18557 = vrcp.f32 %v2829_v33 }
 0x90b   :  { %v18556_v36 = vpop.eup %18555 }
 0x90c   :  { %v2860_v37 = vmul.f32 %v18556_v36, %v18540_v57 }
 0x90e   :  { %17113 = vmatmul.mubr.msk.f32.vlgmr.msra.gmra.mrb[34].mxu1 %vm444_vm2, %v2860_v37 }
 0x90f   :  { %17121 = vmatpush3.msra.mxu1 %v2164_v28  ;;  %17122 = vmatprep.mubr.msk.f32.mxu1 %vm18951_vm1, %v18950_v15 }
 0x910   :  { %v18558_v9 = vpop.eup %18557  ;;  %17130 = vmatprep.subr.mxu1 %v18950_v15 }
 0x911   :  { %v2859_v39 = vmul.f32 %v18558_v9, %v18542_v59 }
 0x913   :  { %17108 = vmatmul.mubr.msk.f32.vlgmr.msra.gmra.mrb[28].mxu0 %vm444_vm2, %v2859_v39 }
 0x914   :  { %17116 = vmatpush3.msra.mxu0 %v2162_v26  ;;  %17117 = vmatprep.mubr.msk.f32.mxu0 %vm18951_vm1, %v18950_v15 }
 0x915   :  { %17125 = vmatprep.subr.mxu0 %v18950_v15 }
 0x95d   :  { %v2835_v40 = vpop.xlane.xlu1 %2834 }
 0x95e   :  { %18559 = vrcp.f32 %v2835_v40 }
 0x961   :  { %v2838_v41 = vpop.xlane.xlu0 %2837 }
 0x962   :  { %18561 = vrcp.f32 %v2838_v41  ;;  %v2841_v45 = vpop.xlane.xlu1 %2840 }
 0x963   :  { %18563 = vrcp.f32 %v2841_v45 }
 0x965   :  { %v2844_v49 = vpop.xlane.xlu0 %2843 }
 0x966   :  { %18565 = vrcp.f32 %v2844_v49  ;;  %v2847_v50 = vpop.xlane.xlu1 %2846 }
 0x967   :  { %18567 = vrcp.f32 %v2847_v50 }
 0x968   :  { %v18560_v51 = vpop.eup %18559 }
 0x969   :  { %v2850_v52 = vpop.xlane.xlu0 %2849  ;;  %v2861_v53 = vmul.f32 %v18560_v51, %v18544_v42 }
 0x96a   :  { %18569 = vrcp.f32 %v2850_v52  ;;  %v2176_v62 = vpop.permute.xlu1 %2175 }
 0x96b   :  { %17118 = vmatmul.mubr.msk.f32.vlgmr.msra.gmra.mrb[30].mxu0 %vm444_vm2, %v2861_v53 }
 0x96c   :  { %v18562_v54 = vpop.eup %18561  ;;  %17126 = vmatpush3.msra.mxu0 %v2168_v27  ;;  %17127 = vmatprep.mubr.msk.f32.mxu0 %vm18951_vm1, %v18950_v15 }
 0x96d   :  { %v18564_v55 = vpop.eup %18563  ;;  %17135 = vmatprep.subr.mxu0 %v18950_v15  ;;  %v2862_v56 = vmul.f32 %v18562_v54, %v18546_v19  ;;  %v2174_v57 = vpop.permute.xlu0 %2173  ;;  %v3590_v19 = vld [vmem:[#allocation6 + $0x110] sm:$0xff]  ;;  %v3680_v54 = vld [vmem:[#allocation6 + $0x128] sm:$0xff] }
 0x96e   :  { %v2863_v58 = vmul.f32 %v18564_v55, %v18548_v20 }
 0x96f   :  { %17123 = vmatmul.mubr.msk.f32.vlgmr.msra.gmra.mrb[36].mxu1 %vm444_vm2, %v2862_v56  ;;  %v3774_v56 = vld [vmem:[#allocation6 + $0x148] sm:$0xff] }
 0x970   :  { %v18566_v59 = vpop.eup %18565  ;;  %17128 = vmatmul.mubr.msk.f32.vlgmr.msra.gmra.mrb[32].mxu0 %vm444_vm2, %v2863_v58  ;;  %17131 = vmatpush3.msra.mxu1 %v2170_v32  ;;  %v3681_v58 = vld [vmem:[#allocation6 + $0x130] sm:$0xff] }
 0x971   :  { %v18568_v60 = vpop.eup %18567  ;;  %17136 = vmatpush3.msra.mxu0 %v2174_v57  ;;  %17132 = vmatprep.mubr.msk.f32.mxu1 %vm18951_vm1, %v18950_v15  ;;  %v2864_v11 = vmul.f32 %v18566_v59, %v18550_v22  ;;  %v117_v22 = vld [vmem:[%s20948_s3] sm:$0xff]  ;;  %v3682_v59 = vld [vmem:[#allocation6 + $0x138] sm:$0xff] }
 0x972   :  { %17140 = vmatprep.subr.mxu1 %v18950_v15  ;;  %17137 = vmatprep.mubr.msk.f32.mxu0 %vm18951_vm1, %v18950_v15  ;;  %v2865_v61 = vmul.f32 %v18568_v60, %v19425_v23  ;;  %v3775_v60 = vld [vmem:[#allocation6 + $0x150] sm:$0xff] }
 0x973   :  { %17133 = vmatmul.mubr.msk.f32.vlgmr.msra.gmra.mrb[38].mxu1 %vm444_vm2, %v2864_v11  ;;  %18130 = vmatprep.subr.bf16.mxu0 %v18129_v13  ;;  %v18149_v11 = vpack.c.bf16 %v3682_v59, %v3681_v58 }
 0x974   :  { %v18570_v63 = vpop.eup %18569  ;;  %17141 = vmatpush3.msra.mxu1 %v2176_v62  ;;  %17138 = vmatmul.mubr.msk.f32.vlgmr.msra.gmra.mrb[34].mxu0 %vm444_vm2, %v2865_v61  ;;  %v3776_v61 = vld [vmem:[#allocation6 + $0x158] sm:$0xff] }
 0x975   :  { %17142 = vmatprep.mubr.msk.f32.mxu1 %vm18951_vm1, %v18950_v15  ;;  %v2866_v3 = vmul.f32 %v18570_v63, %v19430_v24  ;;  %18132 = vmatpush3.bf16.msra.mxu0 %v18129_v13  ;;  %v18157_v62 = vpack.c.bf16 %v3776_v61, %v3775_v60  ;;  %v16117_v63 = vld [vmem:[#allocation7 + $0x8] ss:$0 sm:$0xff] }
 0x976   :  { %18134 = vmatprep.subr.bf16.mxu0 %v18133_v46  ;;  %18138 = vmatprep.subr.bf16.mxu1 %v18137_v21 }
 0x977   :  { %17143 = vmatmul.mubr.msk.f32.vlgmr.msra.gmra.mrb[40].mxu1 %vm444_vm2, %v2866_v3 }
 0x978   :  { %17164 = vmatprep.mubr.msk.f32.mxu1 %vm129_vm0, %v117_v22  ;;  %18140 = vmatpush3.bf16.msra.mxu1 %v18137_v21 }
 0x979   :  { %18136 = vmatpush3.bf16.msra.mxu0 %v18133_v46 }
 0x9e1   :  { %v3009_v4 = vpop.f32.mrb[34].mxu1 }
 0x9e2   :  { %v17114_v5 = vpop.f32.mrb[35].mxu1  ;;  %v3452_v41 = vadd.f32 %v3009_v4, %v19306_v44  ;;  %v3773_v44 = vld [vmem:[#allocation6 + $0x140] sm:$0xff] }
 0x9e3   :  { %v18153_v57 = vpack.c.bf16 %v3774_v56, %v3773_v44 }
 0x9e6   :  { %v2936_v6 = vpop.f32.mrb[28].mxu0 }
 0x9e7   :  { %v17109_v7 = vpop.f32.mrb[29].mxu0  ;;  %v3451_v39 = vadd.f32 %v2936_v6, %v19308_v47  ;;  %v3679_v47 = vld [vmem:[#allocation6 + $0x120] sm:$0xff] }
 0x9e8   :  { %v18145_v55 = vpack.c.bf16 %v3680_v54, %v3679_v47  ;;  %v16114_v7 = vld [vmem:[#allocation7 + $0x7] ss:$0 sm:$0xff] }
 0x9ea   :  { %18146 = vmatprep.subr.bf16.mxu0 %v18145_v55 }
 0xa3e   :  { %v3082_v48 = vpop.f32.mrb[30].mxu0 }
 0xa3f   :  { %v3453_v17 = vadd.f32 %v3082_v48, %v19350_v1  ;;  %v17119_v42 = vpop.f32.mrb[31].mxu0  ;;  %v18141_v1 = vpack.c.bf16 %v3591_v14, %v3590_v19 }
 0xa40   :  { %v16120_v42 = vld [vmem:[#allocation7 + $0x9] ss:$0 sm:$0xff] }
 0xa41   :  { %3461 = vrot.lane.b32.xlu0 %v3453_v17, %s18941_s22  ;;  %18142 = vmatprep.subr.bf16.mxu1 %v18141_v1 }
 0xa42   :  { %v3155_v20 = vpop.f32.mrb[36].mxu1  ;;  %18144 = vmatpush3.bf16.msra.mxu1 %v18141_v1 }
 0xa43   :  { %v3454_v23 = vadd.f32 %v3155_v20, %v19348_v0  ;;  %v3228_v30 = vpop.f32.mrb[32].mxu0  ;;  %v17124_v31 = vpop.f32.mrb[37].mxu1  ;;  %18154 = vmatprep.subr.bf16.mxu1 %v18153_v57 }
 0xa44   :  { %v3455_v24 = vadd.f32 %v3228_v30, %v19354_v2  ;;  %v17129_v25 = vpop.f32.mrb[33].mxu0 }
 0xa45   :  { %3463 = vrot.lane.b32.xlu1 %v3454_v23, %s18941_s22  ;;  %17165 = vmatmul.mubr.msk.f32.vlgmr.msra.gmra.mrb[42].mxu1 %vm129_vm0, %v117_v22 }
 0xa46   :  { %3469 = vrot.lane.b32.xlu0 %v3455_v24, %s18942_s1  ;;  %v3301_v26 = vpop.f32.mrb[38].mxu1  ;;  %18156 = vmatpush3.bf16.msra.mxu1 %v18153_v57 }
 0xa47   :  { %v3456_v27 = vadd.f32 %v3301_v26, %v19352_v35  ;;  %v17134_v28 = vpop.f32.mrb[39].mxu1  ;;  %v3374_v0 = vpop.f32.mrb[34].mxu0  ;;  %18158 = vmatprep.subr.bf16.mxu1 %v18157_v62 }
 0xa48   :  { %v3457_v29 = vadd.f32 %v3374_v0, %v19392_v12  ;;  %v17139_v32 = vpop.f32.mrb[35].mxu0  ;;  %v16123_v28 = vld [vmem:[#allocation7 + $0xa] ss:$0 sm:$0xff] }
 0xa49   :  { %3471 = vrot.lane.b32.xlu1 %v3456_v27, %s18942_s1 }
 0xa4a   :  { %v3447_v2 = vpop.f32.mrb[40].mxu1  ;;  %3477 = vrot.lane.b32.xlu0 %v3457_v29, %s18948_s21  ;;  %18160 = vmatpush3.bf16.msra.mxu1 %v18157_v62 }
 0xa4b   :  { %v3458_v33 = vadd.f32 %v3447_v2, %v19385_v10  ;;  %v17144_v36 = vpop.f32.mrb[41].mxu1  ;;  %17194 = vmatprep.subr.mxu1 %v18950_v15 }
 0xa4d   :  { %3479 = vrot.lane.b32.xlu1 %v3458_v33, %s18948_s21 }
 0xab3   :  { %v3462_v37 = vpop.permute.xlu0 %3461 }
 0xab4   :  { %v3483_v12 = vsel %vm444_vm2, %v3451_v39, %v3462_v37 }
 0xab7   :  { %v3464_v35 = vpop.permute.xlu1 %3463 }
 0xab8   :  { %v3470_v9 = vpop.permute.xlu0 %3469  ;;  %v3484_v50 = vsel %vm444_vm2, %v3452_v41, %v3464_v35 }
 0xab9   :  { %v3485_v45 = vsel %vm1751_vm3, %v3483_v12, %v3470_v9 }
 0xabb   :  { %v3472_v40 = vpop.permute.xlu1 %3471 }
 0xabc   :  { %v3478_v49 = vpop.permute.xlu0 %3477  ;;  %v3486_v51 = vsel %vm1751_vm3, %v3484_v50, %v3472_v40 }
 0xabd   :  { %v3487_v10 = vsel %vm1754_vm4, %v3485_v45, %v3478_v49 }
 0xabe   :  { %17153 = vmatprep.mubr.msk.f32.mxu0 %vm129_vm0, %v3487_v10 }
 0xabf   :  { %v3480_v52 = vpop.permute.xlu1 %3479 }
 0xac0   :  { %v3488_v53 = vsel %vm1754_vm4, %v3486_v51, %v3480_v52 }
 0xac1   :  { %17154 = vmatmul.mubr.msk.f32.vlgmr.msra.gmra.mrb[36].mxu0 %vm129_vm0, %v3488_v53 }
 0xac2   :  { %18148 = vmatpush3.bf16.msra.mxu0 %v18145_v55 }
 0xac3   :  { %18150 = vmatprep.subr.bf16.mxu0 %v18149_v11 }
 0xac6   :  { %18152 = vmatpush3.bf16.msra.mxu0 %v18149_v11 }
 0xac7   :  { %17189 = vmatprep.subr.mxu0 %v18950_v15 }
 0xb18   :  { %v17166_v3 = vpop.f32.mrb[42].mxu1 }
 0xb19   :  { %v19493_v4 = vadd.f32 %v17166_v3, %v16117_v63  ;;  %v3669_v5 = vpop.f32.mrb[43].mxu1 }
 0xb1a   :  { %v19495_v6 = vadd.f32 %v16117_v63, %v3669_v5 }
 0xb1b   :  { %3864 = vrot.lane.b32.xlu1 %v19493_v4, %s18952_s26 }
 0xb1c   :  { %3862 = vrot.lane.b32.xlu0 %v19495_v6, %s18952_s26 }
 0xb1f   :  { %3870 = vrot.lane.b32.xlu1 %v19493_v4, %s18953_s27 }
 0xb20   :  { %3868 = vrot.lane.b32.xlu0 %v19495_v6, %s18953_s27 }
 0xb8d   :  { %v19543_v22 = vpop.permute.xlu1 %3864 }
 0xb8e   :  { %v19545_v23 = vpop.permute.xlu0 %3862 }
 0xb91   :  { %v19547_v30 = vpop.permute.xlu1 %3870 }
 0xb92   :  { %v19549_v31 = vpop.permute.xlu0 %3868 }
 0xb94   :  { %v17155_v8 = vpop.f32.mrb[36].mxu0 }
 0xb95   :  { %v3580_v34 = vadd.f32 %v17155_v8, %v16114_v7  ;;  %v3574_v13 = vpop.f32.mrb[37].mxu0 }
 0xb96   :  { %v3575_v38 = vadd.f32 %v16114_v7, %v3574_v13 }
 0xb97   :  { %v3584_v16 = vmax.f32 %v3580_v34, 0.0 }
 0xb98   :  { %v3583_v46 = vmax.f32 %v3575_v38, 0.0 }
 0xb99   :  { %v19507_v17 = vadd.f32 %v3584_v16, %v3488_v53 }
 0xb9a   :  { %v19505_v48 = vadd.f32 %v3583_v46, %v3487_v10 }
 0xb9c   :  { %17175 = vmatprep.mubr.msk.f32.mxu0 %vm129_vm0, %v19505_v48  ;;  %17186 = vmatprep.mubr.msk.f32.mxu1 %vm129_vm0, %v19505_v48 }
 0xb9d   :  { %17176 = vmatmul.mubr.msk.f32.vlgmr.msra.gmra.mrb[38].mxu0 %vm129_vm0, %v19507_v17  ;;  %17187 = vmatmul.mubr.msk.f32.vlgmr.msra.gmra.mrb[44].mxu1 %vm129_vm0, %v19507_v17 }
 0xb9e   :  { %17196 = vmatprep.mubr.msk.f32.mxu1 %vm18951_vm1, %v18950_v15  ;;  %17191 = vmatprep.mubr.msk.f32.mxu0 %vm18951_vm1, %v18950_v15 }
 0xc70   :  { %v17177_v43 = vpop.f32.mrb[38].mxu0  ;;  %v17188_v18 = vpop.f32.mrb[44].mxu1 }
 0xc71   :  { %v3769_v19 = vadd.f32 %v17177_v43, %v16120_v42  ;;  %v3763_v20 = vpop.f32.mrb[39].mxu0  ;;  %v3851_v21 = vpop.f32.mrb[45].mxu1  ;;  %v19578_v29 = vadd.f32 %v17188_v18, %v16123_v28 }
 0xc72   :  { %v3764_v14 = vadd.f32 %v16120_v42, %v3763_v20  ;;  %v19583_v2 = vadd.f32 %v16123_v28, %v3851_v21 }
 0xc73   :  { %3884 = vrot.lane.b32.xlu1 %v3769_v19, %s18952_s26  ;;  %17195 = vmatpush3.xpose.msk.msra.mxu1 %vm444_vm2, %v3769_v19 }
 0xc74   :  { %3882 = vrot.lane.b32.xlu0 %v3764_v14, %s18952_s26  ;;  %17190 = vmatpush3.xpose.msk.msra.mxu0 %vm444_vm2, %v3764_v14 }
 0xc75   :  { %17204 = vmatprep.subr.mxu1 %v18950_v15  ;;  %17199 = vmatprep.subr.mxu0 %v18950_v15 }
 0xc76   :  { %17197 = vmatmul.mubr.msk.f32.vlgmr.msra.gmra.mrb[46].mxu1 %vm444_vm2, %v19493_v4 }
 0xc77   :  { %3888 = vrot.lane.b32.xlu1 %v3769_v19, %s18953_s27  ;;  %17192 = vmatmul.mubr.msk.f32.vlgmr.msra.gmra.mrb[40].mxu0 %vm444_vm2, %v19495_v6 }
 0xc78   :  { %3886 = vrot.lane.b32.xlu0 %v3764_v14, %s18953_s27  ;;  %17206 = vmatprep.mubr.msk.f32.mxu1 %vm18951_vm1, %v18950_v15 }
 0xc79   :  { %17201 = vmatprep.mubr.msk.f32.mxu0 %vm18951_vm1, %v18950_v15 }
 0xc7b   :  { %3892 = vrot.lane.b32.xlu1 %v3769_v19, %s18954_s28 }
 0xc7c   :  { %3890 = vrot.lane.b32.xlu0 %v3764_v14, %s18954_s28 }
 0xc7f   :  { %3876 = vrot.lane.b32.xlu1 %v19493_v4, %s18954_s28 }
 0xc80   :  { %3874 = vrot.lane.b32.xlu0 %v19495_v6, %s18954_s28 }
 0xce5   :  { %v3885_v1 = vpop.permute.xlu1 %3884 }
 0xce6   :  { %17205 = vmatpush3.xpose.msk.msra.mxu1 %vm444_vm2, %v3885_v1  ;;  %v3883_v24 = vpop.permute.xlu0 %3882 }
 0xce7   :  { %17200 = vmatpush3.xpose.msk.msra.mxu0 %vm444_vm2, %v3883_v24  ;;  %17214 = vmatprep.subr.mxu1 %v18950_v15 }
 0xce8   :  { %17209 = vmatprep.subr.mxu0 %v18950_v15 }
 0xce9   :  { %v3889_v25 = vpop.permute.xlu1 %3888  ;;  %17207 = vmatmul.mubr.msk.f32.vlgmr.msra.gmra.mrb[48].mxu1 %vm444_vm2, %v19543_v22 }
 0xcea   :  { %17215 = vmatpush3.xpose.msk.msra.mxu1 %vm444_vm2, %v3889_v25  ;;  %v3887_v26 = vpop.permute.xlu0 %3886  ;;  %17202 = vmatmul.mubr.msk.f32.vlgmr.msra.gmra.mrb[42].mxu0 %vm444_vm2, %v19545_v23 }
 0xceb   :  { %17210 = vmatpush3.xpose.msk.msra.mxu0 %vm444_vm2, %v3887_v26  ;;  %17216 = vmatprep.mubr.msk.f32.mxu1 %vm18951_vm1, %v18950_v15 }
 0xcec   :  { %17211 = vmatprep.mubr.msk.f32.mxu0 %vm18951_vm1, %v18950_v15  ;;  %17224 = vmatprep.subr.mxu1 %v18950_v15 }
 0xced   :  { %v3893_v27 = vpop.permute.xlu1 %3892  ;;  %17217 = vmatmul.mubr.msk.f32.vlgmr.msra.gmra.mrb[50].mxu1 %vm444_vm2, %v19547_v30  ;;  %17219 = vmatprep.subr.mxu0 %v18950_v15 }
 0xcee   :  { %17225 = vmatpush3.xpose.msk.msra.mxu1 %vm444_vm2, %v3893_v27  ;;  %v3891_v0 = vpop.permute.xlu0 %3890  ;;  %17212 = vmatmul.mubr.msk.f32.vlgmr.msra.gmra.mrb[44].mxu0 %vm444_vm2, %v19549_v31 }
 0xcef   :  { %17220 = vmatpush3.xpose.msk.msra.mxu0 %vm444_vm2, %v3891_v0  ;;  %17226 = vmatprep.mubr.msk.f32.mxu1 %vm18951_vm1, %v18950_v15 }
 0xcf0   :  { %17234 = vmatprep.subr.mxu1 %v18950_v15  ;;  %17221 = vmatprep.mubr.msk.f32.mxu0 %vm18951_vm1, %v18950_v15 }
 0xcf1   :  { %v19580_v32 = vpop.permute.xlu1 %3876  ;;  %17229 = vmatprep.subr.mxu0 %v18950_v15 }
 0xcf2   :  { %17227 = vmatmul.mubr.msk.f32.vlgmr.msra.gmra.mrb[52].mxu1 %vm444_vm2, %v19580_v32  ;;  %v19587_v33 = vpop.permute.xlu0 %3874 }
 0xcf3   :  { %17235 = vmatpush3.msra.mxu1 %v19578_v29  ;;  %17222 = vmatmul.mubr.msk.f32.vlgmr.msra.gmra.mrb[46].mxu0 %vm444_vm2, %v19587_v33 }
 0xcf4   :  { %17230 = vmatpush3.msra.mxu0 %v19583_v2  ;;  %17236 = vmatprep.mubr.msk.f32.mxu1 %vm18951_vm1, %v18950_v15 }
 0xcf5   :  { %17244 = vmatprep.subr.mxu1 %v18950_v15  ;;  %17231 = vmatprep.mubr.msk.f32.mxu0 %vm18951_vm1, %v18950_v15 }
 0xcf6   :  { %17239 = vmatprep.subr.mxu0 %v18950_v15 }
 0xd49   :  { %v4058_v36 = vpop.f32.mrb[46].mxu1 }
 0xd4a   :  { %v4507_v37 = vmul.f32 0.17677669, %v4058_v36  ;;  %v3984_v35 = vpop.f32.mrb[40].mxu0  ;;  %v17198_v9 = vpop.f32.mrb[47].mxu1 }
 0xd4b   :  { %v4506_v39 = vmul.f32 0.17677669, %v3984_v35  ;;  %v17193_v12 = vpop.f32.mrb[41].mxu0 }
 0xd4c   :  { %v4517_v40 = vsel %vm444_vm2, %v4507_v37, -inf }
 0xd4d   :  { %4518 = vmax.xlane.f32.xlu1 %v4517_v40  ;;  %v4514_v41 = vsel %vm444_vm2, %v4506_v39, -inf }
 0xd4e   :  { %4515 = vmax.xlane.f32.xlu0 %v4514_v41 }
 0xdbc   :  { %v4206_v45 = vpop.f32.mrb[48].mxu1 }
 0xdbd   :  { %v4132_v49 = vpop.f32.mrb[42].mxu0  ;;  %v17208_v10 = vpop.f32.mrb[49].mxu1  ;;  %v4509_v52 = vmul.f32 0.17677669, %v4206_v45 }
 0xdbe   :  { %v4508_v50 = vmul.f32 0.17677669, %v4132_v49  ;;  %v17203_v51 = vpop.f32.mrb[43].mxu0 }
 0xdbf   :  { %v4523_v58 = vsel %vm444_vm2, %v4509_v52, -inf }
 0xdc0   :  { %v4354_v53 = vpop.f32.mrb[50].mxu1  ;;  %v4520_v47 = vsel %vm444_vm2, %v4508_v50, -inf }
 0xdc1   :  { %v17218_v54 = vpop.f32.mrb[51].mxu1  ;;  %4521 = vmax.xlane.f32.xlu0 %v4520_v47  ;;  %v4280_v55 = vpop.f32.mrb[44].mxu0  ;;  %v4511_v57 = vmul.f32 0.17677669, %v4354_v53 }
 0xdc2   :  { %v4510_v44 = vmul.f32 0.17677669, %v4280_v55  ;;  %v17213_v56 = vpop.f32.mrb[45].mxu0 }
 0xdc3   :  { %v4529_v5 = vsel %vm444_vm2, %v4511_v57, -inf }
 0xdc4   :  { %v4526_v59 = vsel %vm444_vm2, %v4510_v44, -inf }
 0xdc5   :  { %v4502_v60 = vpop.f32.mrb[52].mxu1  ;;  %4524 = vmax.xlane.f32.xlu0 %v4523_v58  ;;  %4527 = vmax.xlane.f32.xlu1 %v4526_v59 }
 0xdc6   :  { %v4428_v11 = vpop.f32.mrb[46].mxu0  ;;  %v17228_v61 = vpop.f32.mrb[53].mxu1  ;;  %v4513_v3 = vmul.f32 0.17677669, %v4502_v60 }
 0xdc7   :  { %v4512_v62 = vmul.f32 0.17677669, %v4428_v11  ;;  %v17223_v63 = vpop.f32.mrb[47].mxu0 }
 0xdc8   :  { %v4535_v8 = vsel %vm444_vm2, %v4513_v3, -inf }
 0xdc9   :  { %4530 = vmax.xlane.f32.xlu0 %v4529_v5  ;;  %v4532_v7 = vsel %vm444_vm2, %v4512_v62, -inf }
 0xdca   :  { %4533 = vmax.xlane.f32.xlu1 %v4532_v7 }
 0xdcd   :  { %4536 = vmax.xlane.f32.xlu0 %v4535_v8 }
 0xdda   :  { %v4519_v34 = vpop.xlane.xlu1 %4518 }
 0xddb   :  { %3896 = vrot.lane.b32.xlu1 %v19583_v2, %s18952_s26  ;;  %v4539_v13 = vsub.f32 %v4507_v37, %v4519_v34  ;;  %v4516_v38 = vpop.xlane.xlu0 %4515 }
 0xddc   :  { %v4538_v46 = vsub.f32 %v4506_v39, %v4516_v38 }
 0xddd   :  { %v4548_v16 = vmul.f32 1.442695, %v4539_v13 }
 0xdde   :  { %v4546_v42 = vmul.f32 1.442695, %v4538_v46 }
 0xddf   :  { %3902 = vrot.lane.b32.xlu1 %v19583_v2, %s18953_s27  ;;  %18571 = vpow2.f32 %v4548_v16 }
 0xde0   :  { %18573 = vpow2.f32 %v4546_v42 }
 0xde3   :  { %3898 = vrot.lane.b32.xlu0 %v19578_v29, %s18952_s26  ;;  %3904 = vrot.lane.b32.xlu1 %v19578_v29, %s18953_s27 }
 0xde9   :  { %v18572_v43 = vpop.eup %18571 }
 0xdea   :  { %v4565_v18 = vsel %vm444_vm2, %v18572_v43, 0.0  ;;  %v18574_v19 = vpop.eup %18573 }
 0xdeb   :  { %v4562_v20 = vsel %vm444_vm2, %v18574_v19, 0.0 }
 0xe02   :  { %4566 = vadd.xlane.f32.xlu0 %v4565_v18 }
 0xe07   :  { %4563 = vadd.xlane.f32.xlu1 %v4562_v20 }
 0xe4e   :  { %v4522_v21 = vpop.xlane.xlu0 %4521 }
 0xe4f   :  { %v4540_v14 = vsub.f32 %v4508_v50, %v4522_v21  ;;  %v5323_v21 = vld [vmem:[#allocation6 + $0x180] sm:$0xff] }
 0xe51   :  { %v4550_v1 = vmul.f32 1.442695, %v4540_v14  ;;  %v5324_v14 = vld [vmem:[#allocation6 + $0x188] sm:$0xff] }
 0xe52   :  { %v4525_v24 = vpop.xlane.xlu0 %4524  ;;  %v4528_v25 = vpop.xlane.xlu1 %4527 }
 0xe53   :  { %18575 = vpow2.f32 %v4550_v1  ;;  %v4541_v26 = vsub.f32 %v4509_v52, %v4525_v24  ;;  %v4542_v27 = vsub.f32 %v4510_v44, %v4528_v25 }
 0xe55   :  { %v4552_v28 = vmul.f32 1.442695, %v4541_v26  ;;  %v4554_v0 = vmul.f32 1.442695, %v4542_v27  ;;  %v18169_v26 = vpack.c.bf16 %v5324_v14, %v5323_v21  ;;  %v5506_v14 = vld [vmem:[#allocation6 + $0x1c8] sm:$0xff] }
 0xe56   :  { %v4531_v36 = vpop.xlane.xlu0 %4530 }
 0xe57   :  { %18577 = vpow2.f32 %v4552_v28  ;;  %v4543_v37 = vsub.f32 %v4511_v57, %v4531_v36  ;;  %v4534_v35 = vpop.xlane.xlu1 %4533  ;;  %v5325_v28 = vld [vmem:[#allocation6 + $0x190] sm:$0xff] }
 0xe58   :  { %18579 = vpow2.f32 %v4554_v0  ;;  %v4544_v9 = vsub.f32 %v4512_v62, %v4534_v35  ;;  %v5326_v0 = vld [vmem:[#allocation6 + $0x198] sm:$0xff] }
 0xe59   :  { %v4556_v39 = vmul.f32 1.442695, %v4543_v37 }
 0xe5a   :  { %v4558_v12 = vmul.f32 1.442695, %v4544_v9  ;;  %v4537_v40 = vpop.xlane.xlu0 %4536  ;;  %v18173_v9 = vpack.c.bf16 %v5326_v0, %v5325_v28  ;;  %v5508_v28 = vld [vmem:[#allocation6 + $0x1d8] sm:$0xff] }
 0xe5b   :  { %18581 = vpow2.f32 %v4556_v39  ;;  %v4545_v41 = vsub.f32 %v4513_v3, %v4537_v40  ;;  %v3897_v58 = vpop.permute.xlu1 %3896 }
 0xe5c   :  { %18583 = vpow2.f32 %v4558_v12 }
 0xe5d   :  { %v18576_v45 = vpop.eup %18575  ;;  %v4560_v49 = vmul.f32 1.442695, %v4545_v41 }
 0xe5e   :  { %v4568_v10 = vsel %vm444_vm2, %v18576_v45, 0.0  ;;  %v3899_v60 = vpop.permute.xlu0 %3898 }
 0xe5f   :  { %18585 = vpow2.f32 %v4560_v49  ;;  %4569 = vadd.xlane.f32.xlu1 %v4568_v10  ;;  %v3903_v59 = vpop.permute.xlu1 %3902  ;;  %v5226_v49 = vld [vmem:[#allocation6 + $0x168] sm:$0xff] }
 0xe61   :  { %v18578_v50 = vpop.eup %18577 }
 0xe62   :  { %v18580_v51 = vpop.eup %18579  ;;  %v4571_v52 = vsel %vm444_vm2, %v18578_v50, 0.0 }
 0xe63   :  { %4572 = vadd.xlane.f32.xlu0 %v4571_v52  ;;  %v4574_v53 = vsel %vm444_vm2, %v18580_v51, 0.0  ;;  %v3905_v61 = vpop.permute.xlu1 %3904 }
 0xe64   :  { %4575 = vadd.xlane.f32.xlu1 %v4574_v53 }
 0xe65   :  { %v19620_v47 = vpop.eup %18581 }
 0xe66   :  { %v19622_v54 = vpop.eup %18583  ;;  %v4577_v55 = vsel %vm444_vm2, %v19620_v47, 0.0 }
 0xe67   :  { %4578 = vadd.xlane.f32.xlu0 %v4577_v55  ;;  %v4580_v44 = vsel %vm444_vm2, %v19622_v54, 0.0 }
 0xe68   :  { %4581 = vadd.xlane.f32.xlu1 %v4580_v44 }
 0xe69   :  { %v19628_v56 = vpop.eup %18585 }
 0xe6a   :  { %v4583_v57 = vsel %vm444_vm2, %v19628_v56, 0.0 }
 0xe6b   :  { %4584 = vadd.xlane.f32.xlu0 %v4583_v57 }
 0xe79   :  { %3910 = vrot.lane.b32.xlu1 %v19578_v29, %s18954_s28 }
 0xe81   :  { %3908 = vrot.lane.b32.xlu0 %v19583_v2, %s18954_s28 }
 0xe8f   :  { %v4567_v11 = vpop.xlane.xlu0 %4566 }
 0xe90   :  { %18587 = vrcp.f32 %v4567_v11 }
 0xe94   :  { %v4564_v62 = vpop.xlane.xlu1 %4563 }
 0xe95   :  { %18589 = vrcp.f32 %v4564_v62 }
 0xe9a   :  { %v18588_v63 = vpop.eup %18587 }
 0xe9b   :  { %v4595_v3 = vmul.f32 %v18588_v63, %v18572_v43  ;;  %v16153_v63 = vld [vmem:[#allocation7 + $0xc] ss:$0 sm:$0xff] }
 0xe9d   :  { %17237 = vmatmul.mubr.msk.f32.vlgmr.msra.gmra.mrb[54].mxu1 %vm444_vm2, %v4595_v3 }
 0xe9e   :  { %17245 = vmatpush3.msra.mxu1 %v3899_v60  ;;  %17246 = vmatprep.mubr.msk.f32.mxu1 %vm18951_vm1, %v18950_v15 }
 0xe9f   :  { %v18590_v29 = vpop.eup %18589  ;;  %17254 = vmatprep.subr.mxu1 %v18950_v15 }
 0xea0   :  { %v4594_v2 = vmul.f32 %v18590_v29, %v18574_v19 }
 0xea2   :  { %17232 = vmatmul.mubr.msk.f32.vlgmr.msra.gmra.mrb[48].mxu0 %vm444_vm2, %v4594_v2 }
 0xea3   :  { %17240 = vmatpush3.msra.mxu0 %v3897_v58  ;;  %17241 = vmatprep.mubr.msk.f32.mxu0 %vm18951_vm1, %v18950_v15 }
 0xea4   :  { %17249 = vmatprep.subr.mxu0 %v18950_v15 }
 0xeec   :  { %v4570_v5 = vpop.xlane.xlu1 %4569 }
 0xeed   :  { %18591 = vrcp.f32 %v4570_v5 }
 0xef0   :  { %v4573_v7 = vpop.xlane.xlu0 %4572 }
 0xef1   :  { %18593 = vrcp.f32 %v4573_v7  ;;  %v4576_v8 = vpop.xlane.xlu1 %4575 }
 0xef2   :  { %18595 = vrcp.f32 %v4576_v8 }
 0xef4   :  { %v4579_v34 = vpop.xlane.xlu0 %4578 }
 0xef5   :  { %18597 = vrcp.f32 %v4579_v34  ;;  %v4582_v13 = vpop.xlane.xlu1 %4581 }
 0xef6   :  { %18599 = vrcp.f32 %v4582_v13 }
 0xef7   :  { %v18592_v38 = vpop.eup %18591 }
 0xef8   :  { %v4585_v16 = vpop.xlane.xlu0 %4584  ;;  %v4596_v46 = vmul.f32 %v18592_v38, %v18576_v45  ;;  %v5225_v45 = vld [vmem:[#allocation6 + $0x160] sm:$0xff] }
 0xef9   :  { %18601 = vrcp.f32 %v4585_v16  ;;  %v3911_v36 = vpop.permute.xlu1 %3910  ;;  %v18161_v10 = vpack.c.bf16 %v5226_v49, %v5225_v45  ;;  %v16156_v49 = vld [vmem:[#allocation7 + $0xd] ss:$0 sm:$0xff] }
 0xefa   :  { %17242 = vmatmul.mubr.msk.f32.vlgmr.msra.gmra.mrb[50].mxu0 %vm444_vm2, %v4596_v46 }
 0xefb   :  { %v18594_v42 = vpop.eup %18593  ;;  %17250 = vmatpush3.msra.mxu0 %v3903_v59  ;;  %17251 = vmatprep.mubr.msk.f32.mxu0 %vm18951_vm1, %v18950_v15 }
 0xefc   :  { %v18596_v43 = vpop.eup %18595  ;;  %17259 = vmatprep.subr.mxu0 %v18950_v15  ;;  %v4597_v18 = vmul.f32 %v18594_v42, %v18578_v50  ;;  %v3909_v19 = vpop.permute.xlu0 %3908  ;;  %v5227_v50 = vld [vmem:[#allocation6 + $0x170] sm:$0xff] }
 0xefd   :  { %v4598_v20 = vmul.f32 %v18596_v43, %v18580_v51  ;;  %v5228_v51 = vld [vmem:[#allocation6 + $0x178] sm:$0xff] }
 0xefe   :  { %17247 = vmatmul.mubr.msk.f32.vlgmr.msra.gmra.mrb[56].mxu1 %vm444_vm2, %v4597_v18  ;;  %v18165_v52 = vpack.c.bf16 %v5228_v51, %v5227_v50 }
 0xeff   :  { %v18598_v1 = vpop.eup %18597  ;;  %17252 = vmatmul.mubr.msk.f32.vlgmr.msra.gmra.mrb[52].mxu0 %vm444_vm2, %v4598_v20  ;;  %17255 = vmatpush3.msra.mxu1 %v3905_v61  ;;  %v5412_v20 = vld [vmem:[#allocation6 + $0x1a8] sm:$0xff] }
 0xf00   :  { %v18600_v24 = vpop.eup %18599  ;;  %17260 = vmatpush3.msra.mxu0 %v3909_v19  ;;  %17256 = vmatprep.mubr.msk.f32.mxu1 %vm18951_vm1, %v18950_v15  ;;  %v4599_v25 = vmul.f32 %v18598_v1, %v19620_v47 }
 0xf01   :  { %17264 = vmatprep.subr.mxu1 %v18950_v15  ;;  %17261 = vmatprep.mubr.msk.f32.mxu0 %vm18951_vm1, %v18950_v15  ;;  %v4600_v27 = vmul.f32 %v18600_v24, %v19622_v54  ;;  %v5413_v24 = vld [vmem:[#allocation6 + $0x1b0] sm:$0xff] }
 0xf02   :  { %17257 = vmatmul.mubr.msk.f32.vlgmr.msra.gmra.mrb[58].mxu1 %vm444_vm2, %v4599_v25  ;;  %18162 = vmatprep.subr.bf16.mxu0 %v18161_v10  ;;  %v5414_v25 = vld [vmem:[#allocation6 + $0x1b8] sm:$0xff] }
 0xf03   :  { %v18602_v37 = vpop.eup %18601  ;;  %17265 = vmatpush3.msra.mxu1 %v3911_v36  ;;  %17262 = vmatmul.mubr.msk.f32.vlgmr.msra.gmra.mrb[54].mxu0 %vm444_vm2, %v4600_v27  ;;  %v18181_v27 = vpack.c.bf16 %v5414_v25, %v5413_v24  ;;  %v16150_v36 = vld [vmem:[#allocation7 + $0xb] ss:$0 sm:$0xff] }
 0xf04   :  { %17266 = vmatprep.mubr.msk.f32.mxu1 %vm18951_vm1, %v18950_v15  ;;  %18170 = vmatprep.subr.bf16.mxu1 %v18169_v26  ;;  %v4601_v35 = vmul.f32 %v18602_v37, %v19628_v56 }
 0xf05   :  { %18164 = vmatpush3.bf16.msra.mxu0 %v18161_v10 }
 0xf06   :  { %17267 = vmatmul.mubr.msk.f32.vlgmr.msra.gmra.mrb[60].mxu1 %vm444_vm2, %v4601_v35  ;;  %18166 = vmatprep.subr.bf16.mxu0 %v18165_v52 }
 0xf07   :  { %18172 = vmatpush3.bf16.msra.mxu1 %v18169_v26  ;;  %17288 = vmatprep.mubr.msk.f32.mxu1 %vm129_vm0, %v19505_v48  ;;  %v5507_v26 = vld [vmem:[#allocation6 + $0x1d0] sm:$0xff] }
 0xf08   :  { %18174 = vmatprep.subr.bf16.mxu1 %v18173_v9  ;;  %v18189_v0 = vpack.c.bf16 %v5508_v28, %v5507_v26 }
 0xf09   :  { %18168 = vmatpush3.bf16.msra.mxu0 %v18165_v52 }
 0xf0b   :  { %18176 = vmatpush3.bf16.msra.mxu1 %v18173_v9 }
 0xf0e   :  { %17289 = vmatmul.mubr.msk.f32.vlgmr.msra.gmra.mrb[62].mxu1 %vm129_vm0, %v19507_v17 }
 0xf70   :  { %v4744_v39 = vpop.f32.mrb[54].mxu1 }
 0xf71   :  { %v17238_v12 = vpop.f32.mrb[55].mxu1  ;;  %v5187_v13 = vadd.f32 %v4744_v39, %v19493_v4  ;;  %v5505_v4 = vld [vmem:[#allocation6 + $0x1c0] sm:$0xff] }
 0xf72   :  { %v18185_v1 = vpack.c.bf16 %v5506_v14, %v5505_v4 }
 0xf74   :  { %18186 = vmatprep.subr.bf16.mxu1 %v18185_v1 }
 0xf75   :  { %v4671_v40 = vpop.f32.mrb[48].mxu0  ;;  %18188 = vmatpush3.bf16.msra.mxu1 %v18185_v1 }
 0xf76   :  { %v17233_v41 = vpop.f32.mrb[49].mxu0  ;;  %v5186_v7 = vadd.f32 %v4671_v40, %v19495_v6  ;;  %v5411_v6 = vld [vmem:[#allocation6 + $0x1a0] sm:$0xff]  ;;  %18190 = vmatprep.subr.bf16.mxu1 %v18189_v0 }
 0xf77   :  { %v18177_v21 = vpack.c.bf16 %v5412_v20, %v5411_v6 }
 0xf79   :  { %18178 = vmatprep.subr.bf16.mxu0 %v18177_v21  ;;  %18192 = vmatpush3.bf16.msra.mxu1 %v18189_v0 }
 0xf7a   :  { %17318 = vmatprep.subr.mxu1 %v18950_v15 }
 0xfcd   :  { %v4817_v53 = vpop.f32.mrb[50].mxu0 }
 0xfce   :  { %v5188_v48 = vadd.f32 %v4817_v53, %v19545_v23  ;;  %v17243_v47 = vpop.f32.mrb[51].mxu0 }
 0xfd0   :  { %5196 = vrot.lane.b32.xlu0 %v5188_v48, %s18941_s22 }
 0xfd1   :  { %v4890_v17 = vpop.f32.mrb[56].mxu1 }
 0xfd2   :  { %v5189_v54 = vadd.f32 %v4890_v17, %v19543_v22  ;;  %v4963_v55 = vpop.f32.mrb[52].mxu0  ;;  %v17248_v44 = vpop.f32.mrb[57].mxu1 }
 0xfd3   :  { %v5190_v56 = vadd.f32 %v4963_v55, %v19549_v31  ;;  %v17253_v57 = vpop.f32.mrb[53].mxu0 }
 0xfd4   :  { %5198 = vrot.lane.b32.xlu1 %v5189_v54, %s18941_s22 }
 0xfd5   :  { %5204 = vrot.lane.b32.xlu0 %v5190_v56, %s18942_s1  ;;  %v5036_v58 = vpop.f32.mrb[58].mxu1 }
 0xfd6   :  { %v5191_v23 = vadd.f32 %v5036_v58, %v19547_v30  ;;  %v17258_v59 = vpop.f32.mrb[59].mxu1  ;;  %v5109_v60 = vpop.f32.mrb[54].mxu0 }
 0xfd7   :  { %v5192_v11 = vadd.f32 %v5109_v60, %v19587_v33  ;;  %v17263_v61 = vpop.f32.mrb[55].mxu0  ;;  %v16159_v59 = vld [vmem:[#allocation7 + $0xe] ss:$0 sm:$0xff] }
 0xfd8   :  { %5206 = vrot.lane.b32.xlu1 %v5191_v23, %s18942_s1 }
 0xfd9   :  { %v5182_v22 = vpop.f32.mrb[60].mxu1  ;;  %5212 = vrot.lane.b32.xlu0 %v5192_v11, %s18948_s21 }
 0xfda   :  { %v5193_v31 = vadd.f32 %v5182_v22, %v19580_v32  ;;  %v17268_v62 = vpop.f32.mrb[61].mxu1 }
 0xfdc   :  { %5214 = vrot.lane.b32.xlu1 %v5193_v31, %s18948_s21 }
 0xfe1   :  { %v17290_v3 = vpop.f32.mrb[62].mxu1 }
 0xfe2   :  { %v19679_v29 = vadd.f32 %v17290_v3, %v16153_v63  ;;  %v5401_v30 = vpop.f32.mrb[63].mxu1 }
 0xfe3   :  { %v19681_v2 = vadd.f32 %v16153_v63, %v5401_v30 }
 0xfe4   :  { %5596 = vrot.lane.b32.xlu1 %v19679_v29, %s18952_s26 }
 0xfe5   :  { %5594 = vrot.lane.b32.xlu0 %v19681_v2, %s18952_s26 }
 0xfe8   :  { %5602 = vrot.lane.b32.xlu1 %v19679_v29, %s18953_s27 }
 0xfe9   :  { %5600 = vrot.lane.b32.xlu0 %v19681_v2, %s18953_s27 }
0x1042   :  { %v5197_v32 = vpop.permute.xlu0 %5196 }
0x1043   :  { %v5218_v8 = vsel %vm444_vm2, %v5186_v7, %v5197_v32 }
0x1046   :  { %v5199_v33 = vpop.permute.xlu1 %5198 }
0x1047   :  { %v5205_v5 = vpop.permute.xlu0 %5204  ;;  %v5219_v42 = vsel %vm444_vm2, %v5187_v13, %v5199_v33 }
0x1048   :  { %v5220_v38 = vsel %vm1751_vm3, %v5218_v8, %v5205_v5 }
0x104a   :  { %v5207_v34 = vpop.permute.xlu1 %5206 }
0x104b   :  { %v5213_v16 = vpop.permute.xlu0 %5212  ;;  %v5221_v43 = vsel %vm1751_vm3, %v5219_v42, %v5207_v34 }
0x104c   :  { %v5222_v46 = vsel %vm1754_vm4, %v5220_v38, %v5213_v16 }
0x104d   :  { %17277 = vmatprep.mubr.msk.f32.mxu0 %vm129_vm0, %v5222_v46 }
0x104e   :  { %v5215_v18 = vpop.permute.xlu1 %5214 }
0x104f   :  { %v5223_v19 = vsel %vm1754_vm4, %v5221_v43, %v5215_v18 }
0x1050   :  { %17278 = vmatmul.mubr.msk.f32.vlgmr.msra.gmra.mrb[56].mxu0 %vm129_vm0, %v5223_v19 }
0x1051   :  { %18180 = vmatpush3.bf16.msra.mxu0 %v18177_v21 }
0x1052   :  { %18182 = vmatprep.subr.bf16.mxu0 %v18181_v27 }
0x1055   :  { %18184 = vmatpush3.bf16.msra.mxu0 %v18181_v27 }
0x1056   :  { %17313 = vmatprep.subr.mxu0 %v18950_v15  ;;  %v19733_v47 = vpop.permute.xlu1 %5596 }
0x1057   :  { %v19735_v17 = vpop.permute.xlu0 %5594 }
0x105a   :  { %v19737_v54 = vpop.permute.xlu1 %5602 }
0x105b   :  { %v19739_v55 = vpop.permute.xlu0 %5600 }
0x1123   :  { %v17279_v37 = vpop.f32.mrb[56].mxu0 }
0x1124   :  { %v5315_v35 = vadd.f32 %v17279_v37, %v16150_v36  ;;  %v5309_v9 = vpop.f32.mrb[57].mxu0 }
0x1125   :  { %v5310_v39 = vadd.f32 %v16150_v36, %v5309_v9 }
0x1126   :  { %v5319_v12 = vmax.f32 %v5315_v35, 0.0 }
0x1127   :  { %v5318_v40 = vmax.f32 %v5310_v39, 0.0 }
0x1128   :  { %v5321_v45 = vadd.f32 %v5319_v12, %v5223_v19 }
0x1129   :  { %v5320_v41 = vadd.f32 %v5318_v40, %v5222_v46 }
0x112b   :  { %17299 = vmatprep.mubr.msk.f32.mxu0 %vm129_vm0, %v5320_v41  ;;  %17310 = vmatprep.mubr.msk.f32.mxu1 %vm129_vm0, %v5320_v41 }
0x112c   :  { %17300 = vmatmul.mubr.msk.f32.vlgmr.msra.gmra.mrb[58].mxu0 %vm129_vm0, %v5321_v45  ;;  %17311 = vmatmul.mubr.msk.f32.vlgmr.msra.gmra.mrb[64].mxu1 %vm129_vm0, %v5321_v45 }
0x112d   :  { %17320 = vmatprep.mubr.msk.f32.mxu1 %vm18951_vm1, %v18950_v15  ;;  %17315 = vmatprep.mubr.msk.f32.mxu0 %vm18951_vm1, %v18950_v15 }
0x11ff   :  { %v17301_v10 = vpop.f32.mrb[58].mxu0  ;;  %v17312_v50 = vpop.f32.mrb[64].mxu1 }
0x1200   :  { %v5501_v51 = vadd.f32 %v17301_v10, %v16156_v49  ;;  %v5495_v52 = vpop.f32.mrb[59].mxu0  ;;  %v5583_v53 = vpop.f32.mrb[65].mxu1  ;;  %v19768_v11 = vadd.f32 %v17312_v50, %v16159_v59 }
0x1201   :  { %v5496_v48 = vadd.f32 %v16156_v49, %v5495_v52  ;;  %v19773_v22 = vadd.f32 %v16159_v59, %v5583_v53 }
0x1202   :  { %5616 = vrot.lane.b32.xlu1 %v5501_v51, %s18952_s26  ;;  %17319 = vmatpush3.xpose.msk.msra.mxu1 %vm444_vm2, %v5501_v51 }
0x1203   :  { %5614 = vrot.lane.b32.xlu0 %v5496_v48, %s18952_s26  ;;  %17314 = vmatpush3.xpose.msk.msra.mxu0 %vm444_vm2, %v5496_v48 }
0x1204   :  { %17328 = vmatprep.subr.mxu1 %v18950_v15  ;;  %17323 = vmatprep.subr.mxu0 %v18950_v15 }
0x1205   :  { %17321 = vmatmul.mubr.msk.f32.vlgmr.msra.gmra.mrb[66].mxu1 %vm444_vm2, %v19679_v29 }
0x1206   :  { %5620 = vrot.lane.b32.xlu1 %v5501_v51, %s18953_s27  ;;  %17316 = vmatmul.mubr.msk.f32.vlgmr.msra.gmra.mrb[60].mxu0 %vm444_vm2, %v19681_v2 }
0x1207   :  { %5618 = vrot.lane.b32.xlu0 %v5496_v48, %s18953_s27  ;;  %17330 = vmatprep.mubr.msk.f32.mxu1 %vm18951_vm1, %v18950_v15 }
0x1208   :  { %17325 = vmatprep.mubr.msk.f32.mxu0 %vm18951_vm1, %v18950_v15 }
0x120a   :  { %5624 = vrot.lane.b32.xlu1 %v5501_v51, %s18954_s28 }
0x120b   :  { %5622 = vrot.lane.b32.xlu0 %v5496_v48, %s18954_s28 }
0x120e   :  { %5608 = vrot.lane.b32.xlu1 %v19679_v29, %s18954_s28 }
0x120f   :  { %5606 = vrot.lane.b32.xlu0 %v19681_v2, %s18954_s28 }
0x1274   :  { %v5617_v44 = vpop.permute.xlu1 %5616 }
0x1275   :  { %17329 = vmatpush3.xpose.msk.msra.mxu1 %vm444_vm2, %v5617_v44  ;;  %v5615_v56 = vpop.permute.xlu0 %5614 }
0x1276   :  { %17324 = vmatpush3.xpose.msk.msra.mxu0 %vm444_vm2, %v5615_v56  ;;  %17338 = vmatprep.subr.mxu1 %v18950_v15 }
0x1277   :  { %17333 = vmatprep.subr.mxu0 %v18950_v15 }
0x1278   :  { %v5621_v57 = vpop.permute.xlu1 %5620  ;;  %17331 = vmatmul.mubr.msk.f32.vlgmr.msra.gmra.mrb[68].mxu1 %vm444_vm2, %v19733_v47 }
0x1279   :  { %17339 = vmatpush3.xpose.msk.msra.mxu1 %vm444_vm2, %v5621_v57  ;;  %v5619_v58 = vpop.permute.xlu0 %5618  ;;  %17326 = vmatmul.mubr.msk.f32.vlgmr.msra.gmra.mrb[62].mxu0 %vm444_vm2, %v19735_v17 }
0x127a   :  { %17334 = vmatpush3.xpose.msk.msra.mxu0 %vm444_vm2, %v5619_v58  ;;  %17340 = vmatprep.mubr.msk.f32.mxu1 %vm18951_vm1, %v18950_v15 }
0x127b   :  { %17335 = vmatprep.mubr.msk.f32.mxu0 %vm18951_vm1, %v18950_v15  ;;  %17348 = vmatprep.subr.mxu1 %v18950_v15 }
0x127c   :  { %v5625_v23 = vpop.permute.xlu1 %5624  ;;  %17341 = vmatmul.mubr.msk.f32.vlgmr.msra.gmra.mrb[70].mxu1 %vm444_vm2, %v19737_v54  ;;  %17343 = vmatprep.subr.mxu0 %v18950_v15 }
0x127d   :  { %17349 = vmatpush3.xpose.msk.msra.mxu1 %vm444_vm2, %v5625_v23  ;;  %v5623_v60 = vpop.permute.xlu0 %5622  ;;  %17336 = vmatmul.mubr.msk.f32.vlgmr.msra.gmra.mrb[64].mxu0 %vm444_vm2, %v19739_v55 }
0x127e   :  { %17344 = vmatpush3.xpose.msk.msra.mxu0 %vm444_vm2, %v5623_v60  ;;  %17350 = vmatprep.mubr.msk.f32.mxu1 %vm18951_vm1, %v18950_v15 }
0x127f   :  { %17358 = vmatprep.subr.mxu1 %v18950_v15  ;;  %17345 = vmatprep.mubr.msk.f32.mxu0 %vm18951_vm1, %v18950_v15 }
0x1280   :  { %v19770_v61 = vpop.permute.xlu1 %5608  ;;  %17353 = vmatprep.subr.mxu0 %v18950_v15 }
0x1281   :  { %17351 = vmatmul.mubr.msk.f32.vlgmr.msra.gmra.mrb[72].mxu1 %vm444_vm2, %v19770_v61  ;;  %v19777_v31 = vpop.permute.xlu0 %5606 }
0x1282   :  { %17359 = vmatpush3.msra.mxu1 %v19768_v11  ;;  %17346 = vmatmul.mubr.msk.f32.vlgmr.msra.gmra.mrb[66].mxu0 %vm444_vm2, %v19777_v31 }
0x1283   :  { %17354 = vmatpush3.msra.mxu0 %v19773_v22  ;;  %17360 = vmatprep.mubr.msk.f32.mxu1 %vm18951_vm1, %v18950_v15 }
0x1284   :  { %17368 = vmatprep.subr.mxu1 %v18950_v15  ;;  %17355 = vmatprep.mubr.msk.f32.mxu0 %vm18951_vm1, %v18950_v15 }
0x1285   :  { %17363 = vmatprep.subr.mxu0 %v18950_v15 }
0x12d8   :  { %v5790_v62 = vpop.f32.mrb[66].mxu1 }
0x12d9   :  { %v6239_v63 = vmul.f32 0.17677669, %v5790_v62  ;;  %v5716_v3 = vpop.f32.mrb[60].mxu0  ;;  %v17322_v30 = vpop.f32.mrb[67].mxu1 }
0x12da   :  { %v6238_v32 = vmul.f32 0.17677669, %v5716_v3  ;;  %v17317_v33 = vpop.f32.mrb[61].mxu0 }
0x12db   :  { %v6249_v5 = vsel %vm444_vm2, %v6239_v63, -inf }
0x12dc   :  { %6250 = vmax.xlane.f32.xlu1 %v6249_v5  ;;  %v6246_v7 = vsel %vm444_vm2, %v6238_v32, -inf }
0x12dd   :  { %6247 = vmax.xlane.f32.xlu0 %v6246_v7 }
0x134b   :  { %v5938_v8 = vpop.f32.mrb[68].mxu1 }
0x134c   :  { %v5864_v34 = vpop.f32.mrb[62].mxu0  ;;  %v17332_v13 = vpop.f32.mrb[69].mxu1  ;;  %v6241_v46 = vmul.f32 0.17677669, %v5938_v8 }
0x134d   :  { %v6240_v38 = vmul.f32 0.17677669, %v5864_v34  ;;  %v17327_v16 = vpop.f32.mrb[63].mxu0 }
0x134e   :  { %v6255_v4 = vsel %vm444_vm2, %v6241_v46, -inf }
0x134f   :  { %v6086_v42 = vpop.f32.mrb[70].mxu1  ;;  %v6252_v43 = vsel %vm444_vm2, %v6240_v38, -inf }
0x1350   :  { %v17342_v18 = vpop.f32.mrb[71].mxu1  ;;  %6253 = vmax.xlane.f32.xlu0 %v6252_v43  ;;  %v6012_v19 = vpop.f32.mrb[64].mxu0  ;;  %v6243_v21 = vmul.f32 0.17677669, %v6086_v42 }
0x1351   :  { %v6242_v6 = vmul.f32 0.17677669, %v6012_v19  ;;  %v17337_v20 = vpop.f32.mrb[65].mxu0 }
0x1352   :  { %v6261_v0 = vsel %vm444_vm2, %v6243_v21, -inf }
0x1353   :  { %v6258_v14 = vsel %vm444_vm2, %v6242_v6, -inf }
0x1354   :  { %v6234_v1 = vpop.f32.mrb[72].mxu1  ;;  %6256 = vmax.xlane.f32.xlu0 %v6255_v4  ;;  %6259 = vmax.xlane.f32.xlu1 %v6258_v14 }
0x1355   :  { %v6160_v24 = vpop.f32.mrb[66].mxu0  ;;  %v17352_v25 = vpop.f32.mrb[73].mxu1  ;;  %v6245_v28 = vmul.f32 0.17677669, %v6234_v1 }
0x1356   :  { %v6244_v26 = vmul.f32 0.17677669, %v6160_v24  ;;  %v17347_v27 = vpop.f32.mrb[67].mxu0 }
0x1357   :  { %v6267_v37 = vsel %vm444_vm2, %v6245_v28, -inf }
0x1358   :  { %6262 = vmax.xlane.f32.xlu0 %v6261_v0  ;;  %v6264_v36 = vsel %vm444_vm2, %v6244_v26, -inf }
0x1359   :  { %6265 = vmax.xlane.f32.xlu1 %v6264_v36 }
0x135c   :  { %6268 = vmax.xlane.f32.xlu0 %v6267_v37 }
0x1369   :  { %v6251_v35 = vpop.xlane.xlu1 %6250 }
0x136a   :  { %5628 = vrot.lane.b32.xlu1 %v19773_v22, %s18952_s26  ;;  %v6271_v9 = vsub.f32 %v6239_v63, %v6251_v35  ;;  %v6248_v39 = vpop.xlane.xlu0 %6247 }
0x136b   :  { %v6270_v40 = vsub.f32 %v6238_v32, %v6248_v39 }
0x136c   :  { %v6280_v12 = vmul.f32 1.442695, %v6271_v9 }
0x136d   :  { %v6278_v41 = vmul.f32 1.442695, %v6270_v40 }
0x136e   :  { %5634 = vrot.lane.b32.xlu1 %v19773_v22, %s18953_s27  ;;  %18603 = vpow2.f32 %v6280_v12 }
0x136f   :  { %18605 = vpow2.f32 %v6278_v41 }
0x1372   :  { %5630 = vrot.lane.b32.xlu0 %v19768_v11, %s18952_s26  ;;  %5636 = vrot.lane.b32.xlu1 %v19768_v11, %s18953_s27 }
0x1378   :  { %v18604_v45 = vpop.eup %18603 }
0x1379   :  { %v6297_v49 = vsel %vm444_vm2, %v18604_v45, 0.0  ;;  %v18606_v10 = vpop.eup %18605 }
0x137a   :  { %v6294_v50 = vsel %vm444_vm2, %v18606_v10, 0.0 }
0x1391   :  { %6298 = vadd.xlane.f32.xlu0 %v6297_v49 }
0x1396   :  { %6295 = vadd.xlane.f32.xlu1 %v6294_v50 }
0x13dd   :  { %v6254_v51 = vpop.xlane.xlu0 %6253 }
0x13de   :  { %v6272_v52 = vsub.f32 %v6240_v38, %v6254_v51 }
0x13e0   :  { %v6282_v53 = vmul.f32 1.442695, %v6272_v52 }
0x13e1   :  { %v6257_v48 = vpop.xlane.xlu0 %6256  ;;  %v6260_v44 = vpop.xlane.xlu1 %6259 }
0x13e2   :  { %18607 = vpow2.f32 %v6282_v53  ;;  %v6273_v56 = vsub.f32 %v6241_v46, %v6257_v48  ;;  %v6274_v57 = vsub.f32 %v6242_v6, %v6260_v44 }
0x13e4   :  { %v6284_v58 = vmul.f32 1.442695, %v6273_v56  ;;  %v6286_v23 = vmul.f32 1.442695, %v6274_v57  ;;  %v18795_v56 = vld [vmem:[%s20947_s2] sm:$0xff]  ;;  %v7054_v57 = vld [vmem:[#allocation6] sm:$0xff] }
0x13e5   :  { %v6263_v59 = vpop.xlane.xlu0 %6262 }
0x13e6   :  { %18609 = vpow2.f32 %v6284_v58  ;;  %v6275_v60 = vsub.f32 %v6243_v21, %v6263_v59  ;;  %v6266_v62 = vpop.xlane.xlu1 %6265  ;;  %v7055_v58 = vld [vmem:[#allocation6 + $0x8] sm:$0xff] }
0x13e7   :  { %18611 = vpow2.f32 %v6286_v23  ;;  %v6276_v63 = vsub.f32 %v6244_v26, %v6266_v62  ;;  %v18201_v23 = vpack.c.bf16 %v7055_v58, %v7054_v57  ;;  %v7234_v58 = vld [vmem:[#allocation6 + $0x50] sm:$0xff] }
0x13e8   :  { %v6288_v3 = vmul.f32 1.442695, %v6275_v60 }
0x13e9   :  { %v6290_v30 = vmul.f32 1.442695, %v6276_v63  ;;  %v6269_v32 = vpop.xlane.xlu0 %6268 }
0x13ea   :  { %18613 = vpow2.f32 %v6288_v3  ;;  %v6277_v33 = vsub.f32 %v6245_v28, %v6269_v32  ;;  %v5629_v20 = vpop.permute.xlu1 %5628  ;;  %v7056_v3 = vld [vmem:[#allocation6 + $0x10] sm:$0xff] }
0x13eb   :  { %18615 = vpow2.f32 %v6290_v30  ;;  %v7057_v30 = vld [vmem:[#allocation6 + $0x18] sm:$0xff] }
0x13ec   :  { %v18608_v5 = vpop.eup %18607  ;;  %v6292_v7 = vmul.f32 1.442695, %v6277_v33  ;;  %v18205_v32 = vpack.c.bf16 %v7057_v30, %v7056_v3  ;;  %v6957_v33 = vld [vmem:[#allocation6 + $0x1e0] sm:$0xff] }
0x13ed   :  { %v6300_v8 = vsel %vm444_vm2, %v18608_v5, 0.0  ;;  %v5631_v4 = vpop.permute.xlu0 %5630  ;;  %v16192_v30 = vld [vmem:[#allocation7 + $0x1] ss:$0 sm:$0xff] }
0x13ee   :  { %18617 = vpow2.f32 %v6292_v7  ;;  %6301 = vadd.xlane.f32.xlu1 %v6300_v8  ;;  %v5635_v21 = vpop.permute.xlu1 %5634  ;;  %v6959_v8 = vld [vmem:[#allocation6 + $0x1f0] sm:$0xff] }
0x13f0   :  { %v18610_v34 = vpop.eup %18609 }
0x13f1   :  { %v18612_v13 = vpop.eup %18611  ;;  %v6303_v38 = vsel %vm444_vm2, %v18610_v34, 0.0 }
0x13f2   :  { %6304 = vadd.xlane.f32.xlu0 %v6303_v38  ;;  %v6306_v16 = vsel %vm444_vm2, %v18612_v13, 0.0  ;;  %v5637_v1 = vpop.permute.xlu1 %5636 }
0x13f3   :  { %6307 = vadd.xlane.f32.xlu1 %v6306_v16 }
0x13f4   :  { %v18614_v46 = vpop.eup %18613 }
0x13f5   :  { %v19810_v42 = vpop.eup %18615  ;;  %v6309_v43 = vsel %vm444_vm2, %v18614_v46, 0.0 }
0x13f6   :  { %6310 = vadd.xlane.f32.xlu0 %v6309_v43  ;;  %v6312_v18 = vsel %vm444_vm2, %v19810_v42, 0.0  ;;  %v7141_v43 = vld [vmem:[#allocation6 + $0x28] sm:$0xff] }
0x13f7   :  { %6313 = vadd.xlane.f32.xlu1 %v6312_v18 }
0x13f8   :  { %v19815_v19 = vpop.eup %18617 }
0x13f9   :  { %v6315_v6 = vsel %vm444_vm2, %v19815_v19, 0.0 }
0x13fa   :  { %6316 = vadd.xlane.f32.xlu0 %v6315_v6 }
0x1408   :  { %5642 = vrot.lane.b32.xlu1 %v19768_v11, %s18954_s28 }
0x1410   :  { %5640 = vrot.lane.b32.xlu0 %v19773_v22, %s18954_s28 }
0x141e   :  { %v6299_v14 = vpop.xlane.xlu0 %6298 }
0x141f   :  { %18619 = vrcp.f32 %v6299_v14 }
0x1423   :  { %v6296_v24 = vpop.xlane.xlu1 %6295 }
0x1424   :  { %18621 = vrcp.f32 %v6296_v24 }
0x1429   :  { %v18620_v25 = vpop.eup %18619 }
0x142a   :  { %v6327_v26 = vmul.f32 %v18620_v25, %v18604_v45 }
0x142c   :  { %17361 = vmatmul.mubr.msk.f32.vlgmr.msra.gmra.mrb[74].mxu1 %vm444_vm2, %v6327_v26 }
0x142d   :  { %17369 = vmatpush3.msra.mxu1 %v5631_v4  ;;  %17370 = vmatprep.mubr.msk.f32.mxu1 %vm18951_vm1, %v18950_v15 }
0x142e   :  { %v18622_v11 = vpop.eup %18621  ;;  %17378 = vmatprep.subr.mxu1 %v18950_v15 }
0x142f   :  { %v6326_v22 = vmul.f32 %v18622_v11, %v18606_v10 }
0x1431   :  { %17356 = vmatmul.mubr.msk.f32.vlgmr.msra.gmra.mrb[68].mxu0 %vm444_vm2, %v6326_v22 }
0x1432   :  { %17364 = vmatpush3.msra.mxu0 %v5629_v20  ;;  %17365 = vmatprep.mubr.msk.f32.mxu0 %vm18951_vm1, %v18950_v15 }
0x1433   :  { %17373 = vmatprep.subr.mxu0 %v18950_v15 }
0x147b   :  { %v6302_v27 = vpop.xlane.xlu1 %6301 }
0x147c   :  { %18623 = vrcp.f32 %v6302_v27 }
0x147f   :  { %v6305_v28 = vpop.xlane.xlu0 %6304 }
0x1480   :  { %18625 = vrcp.f32 %v6305_v28  ;;  %v6308_v0 = vpop.xlane.xlu1 %6307  ;;  %v7232_v28 = vld [vmem:[#allocation6 + $0x40] sm:$0xff] }
0x1481   :  { %18627 = vrcp.f32 %v6308_v0 }
0x1483   :  { %v6311_v36 = vpop.xlane.xlu0 %6310 }
0x1484   :  { %18629 = vrcp.f32 %v6311_v36  ;;  %v6314_v37 = vpop.xlane.xlu1 %6313 }
0x1485   :  { %18631 = vrcp.f32 %v6314_v37 }
0x1486   :  { %v18624_v35 = vpop.eup %18623 }
0x1487   :  { %v6317_v9 = vpop.xlane.xlu0 %6316  ;;  %v6328_v39 = vmul.f32 %v18624_v35, %v18608_v5  ;;  %v6958_v5 = vld [vmem:[#allocation6 + $0x1e8] sm:$0xff] }
0x1488   :  { %18633 = vrcp.f32 %v6317_v9  ;;  %v5643_v53 = vpop.permute.xlu1 %5642  ;;  %v18193_v7 = vpack.c.bf16 %v6958_v5, %v6957_v33 }
0x1489   :  { %17366 = vmatmul.mubr.msk.f32.vlgmr.msra.gmra.mrb[70].mxu0 %vm444_vm2, %v6328_v39 }
0x148a   :  { %v18626_v12 = vpop.eup %18625  ;;  %17374 = vmatpush3.msra.mxu0 %v5635_v21  ;;  %17375 = vmatprep.mubr.msk.f32.mxu0 %vm18951_vm1, %v18950_v15 }
0x148b   :  { %v18628_v40 = vpop.eup %18627  ;;  %17383 = vmatprep.subr.mxu0 %v18950_v15  ;;  %v6329_v41 = vmul.f32 %v18626_v12, %v18610_v34  ;;  %v5641_v45 = vpop.permute.xlu0 %5640  ;;  %v6960_v34 = vld [vmem:[#allocation6 + $0x1f8] sm:$0xff] }
0x148c   :  { %v6330_v49 = vmul.f32 %v18628_v40, %v18612_v13  ;;  %v18197_v13 = vpack.c.bf16 %v6960_v34, %v6959_v8 }
0x148d   :  { %17371 = vmatmul.mubr.msk.f32.vlgmr.msra.gmra.mrb[76].mxu1 %vm444_vm2, %v6329_v41  ;;  %v7142_v41 = vld [vmem:[#allocation6 + $0x30] sm:$0xff] }
0x148e   :  { %v18630_v10 = vpop.eup %18629  ;;  %17376 = vmatmul.mubr.msk.f32.vlgmr.msra.gmra.mrb[72].mxu0 %vm444_vm2, %v6330_v49  ;;  %17379 = vmatpush3.msra.mxu1 %v5637_v1  ;;  %v19860_v1 = vld [vmem:[#allocation4] sm:$0xff] }
0x148f   :  { %v18632_v50 = vpop.eup %18631  ;;  %17384 = vmatpush3.msra.mxu0 %v5641_v45  ;;  %17380 = vmatprep.mubr.msk.f32.mxu1 %vm18951_vm1, %v18950_v15  ;;  %v6331_v51 = vmul.f32 %v18630_v10, %v18614_v46  ;;  %v7143_v45 = vld [vmem:[#allocation6 + $0x38] sm:$0xff] }
0x1490   :  { %17388 = vmatprep.subr.mxu1 %v18950_v15  ;;  %17385 = vmatprep.mubr.msk.f32.mxu0 %vm18951_vm1, %v18950_v15  ;;  %v6332_v52 = vmul.f32 %v18632_v50, %v19810_v42  ;;  %v7140_v42 = vld [vmem:[#allocation6 + $0x20] sm:$0xff] }
0x1491   :  { %17381 = vmatmul.mubr.msk.f32.vlgmr.msra.gmra.mrb[78].mxu1 %vm444_vm2, %v6331_v51  ;;  %18194 = vmatprep.subr.bf16.mxu0 %v18193_v7  ;;  %v18209_v18 = vpack.c.bf16 %v7141_v43, %v7140_v42  ;;  %v18213_v51 = vpack.c.bf16 %v7143_v45, %v7142_v41 }
0x1492   :  { %v18634_v48 = vpop.eup %18633  ;;  %17389 = vmatpush3.msra.mxu1 %v5643_v53  ;;  %17386 = vmatmul.mubr.msk.f32.vlgmr.msra.gmra.mrb[74].mxu0 %vm444_vm2, %v6332_v52  ;;  %v16189_v53 = vld [vmem:[#allocation7] ss:$0 sm:$0xff] }
0x1493   :  { %17390 = vmatprep.mubr.msk.f32.mxu1 %vm18951_vm1, %v18950_v15  ;;  %v6333_v44 = vmul.f32 %v18634_v48, %v19815_v19  ;;  %18202 = vmatprep.subr.bf16.mxu1 %v18201_v23 }
0x1494   :  { %18196 = vmatpush3.bf16.msra.mxu0 %v18193_v7 }
0x1495   :  { %17391 = vmatmul.mubr.msk.f32.vlgmr.msra.gmra.mrb[80].mxu1 %vm444_vm2, %v6333_v44  ;;  %18198 = vmatprep.subr.bf16.mxu0 %v18197_v13 }
0x1496   :  { %17412 = vmatprep.mubr.msk.f32.mxu1 %vm129_vm0, %v18795_v56  ;;  %18204 = vmatpush3.bf16.msra.mxu1 %v18201_v23  ;;  %v7235_v23 = vld [vmem:[#allocation6 + $0x58] sm:$0xff] }
0x1497   :  { %18206 = vmatprep.subr.bf16.mxu1 %v18205_v32 }
0x1498   :  { %18200 = vmatpush3.bf16.msra.mxu0 %v18197_v13 }
0x1499   :  { %18210 = vmatprep.subr.bf16.mxu0 %v18209_v18 }
0x149a   :  { %18208 = vmatpush3.bf16.msra.mxu1 %v18205_v32 }
0x149d   :  { %17413 = vmatmul.mubr.msk.f32.vlgmr.msra.gmra.mrb[82].mxu1 %vm129_vm0, %v18795_v56 }
0x149e   :  { %17434 = vmatprep.mubr.msk.f32.mxu1 %vm129_vm0, %v19860_v1 }
0x14ff   :  { %v6476_v59 = vpop.f32.mrb[74].mxu1 }
0x1500   :  { %v17362_v60 = vpop.f32.mrb[75].mxu1  ;;  %v6919_v12 = vadd.f32 %v6476_v59, %v19679_v29  ;;  %v19888_v29 = vld [vmem:[#allocation4 + $0x8] sm:$0xff]  ;;  %v18221_v59 = vpack.c.bf16 %v7235_v23, %v7234_v58 }
0x1501   :  { %v16186_v60 = vld [vmem:[#allocation7 + $0xf] ss:$0 sm:$0xff] }
0x1504   :  { %v6403_v62 = vpop.f32.mrb[68].mxu0 }
0x1505   :  { %v17357_v63 = vpop.f32.mrb[69].mxu0 }
0x155c   :  { %v6549_v38 = vpop.f32.mrb[70].mxu0 }
0x155d   :  { %v6920_v16 = vadd.f32 %v6549_v38, %v19735_v17  ;;  %v17367_v46 = vpop.f32.mrb[71].mxu0 }
0x155f   :  { %6928 = vrot.lane.b32.xlu0 %v6920_v16, %s18941_s22 }
0x1560   :  { %v6622_v19 = vpop.f32.mrb[76].mxu1 }
0x1561   :  { %v6921_v6 = vadd.f32 %v6622_v19, %v19733_v47  ;;  %v6695_v20 = vpop.f32.mrb[72].mxu0  ;;  %v17372_v21 = vpop.f32.mrb[77].mxu1 }
0x1562   :  { %v6922_v4 = vadd.f32 %v6695_v20, %v19739_v55  ;;  %v17377_v14 = vpop.f32.mrb[73].mxu0 }
0x1563   :  { %6930 = vrot.lane.b32.xlu1 %v6921_v6, %s18941_s22  ;;  %v16195_v6 = vld [vmem:[#allocation7 + $0x2] ss:$0 sm:$0xff] }
0x1564   :  { %6936 = vrot.lane.b32.xlu0 %v6922_v4, %s18942_s1  ;;  %v6768_v17 = vpop.f32.mrb[78].mxu1 }
0x1565   :  { %v6923_v24 = vadd.f32 %v6768_v17, %v19737_v54  ;;  %v17382_v25 = vpop.f32.mrb[79].mxu1  ;;  %v6841_v26 = vpop.f32.mrb[74].mxu0  ;;  %v7233_v54 = vld [vmem:[#allocation6 + $0x48] sm:$0xff] }
0x1566   :  { %v6924_v47 = vadd.f32 %v6841_v26, %v19777_v31  ;;  %v17387_v11 = vpop.f32.mrb[75].mxu0  ;;  %v18217_v0 = vpack.c.bf16 %v7233_v54, %v7232_v28  ;;  %v6918_v31 = vadd.f32 %v6403_v62, %v19681_v2 }
0x1567   :  { %6938 = vrot.lane.b32.xlu1 %v6923_v24, %s18942_s1 }
0x1568   :  { %v6914_v55 = vpop.f32.mrb[80].mxu1  ;;  %6944 = vrot.lane.b32.xlu0 %v6924_v47, %s18948_s21  ;;  %18218 = vmatprep.subr.bf16.mxu1 %v18217_v0 }
0x1569   :  { %v6925_v22 = vadd.f32 %v6914_v55, %v19770_v61  ;;  %v17392_v27 = vpop.f32.mrb[81].mxu1  ;;  %18220 = vmatpush3.bf16.msra.mxu1 %v18217_v0 }
0x156a   :  { %18222 = vmatprep.subr.bf16.mxu1 %v18221_v59 }
0x156b   :  { %6946 = vrot.lane.b32.xlu1 %v6925_v22, %s18948_s21 }
0x156d   :  { %18224 = vmatpush3.bf16.msra.mxu1 %v18221_v59 }
0x156e   :  { %17442 = vmatprep.subr.mxu1 %v18950_v15 }
0x1570   :  { %v17414_v48 = vpop.f32.mrb[82].mxu1  ;;  %17435 = vmatmul.mubr.msk.f32.vlgmr.msra.gmra.mrb[84].mxu1 %vm129_vm0, %v19888_v29 }
0x1571   :  { %v19895_v44 = vadd.f32 %v17414_v48, %v16189_v53  ;;  %v7131_v56 = vpop.f32.mrb[83].mxu1  ;;  %17444 = vmatprep.mubr.msk.f32.mxu1 %vm18951_vm1, %v18950_v15 }
0x1572   :  { %v19897_v57 = vadd.f32 %v16189_v53, %v7131_v56 }
0x1573   :  { %7322 = vrot.lane.b32.xlu1 %v19895_v44, %s18952_s26 }
0x1574   :  { %7320 = vrot.lane.b32.xlu0 %v19897_v57, %s18952_s26 }
0x1577   :  { %7328 = vrot.lane.b32.xlu1 %v19895_v44, %s18953_s27 }
0x1578   :  { %7326 = vrot.lane.b32.xlu0 %v19897_v57, %s18953_s27 }
0x15d1   :  { %v6929_v36 = vpop.permute.xlu0 %6928 }
0x15d2   :  { %v6950_v9 = vsel %vm444_vm2, %v6918_v31, %v6929_v36 }
0x15d5   :  { %v6931_v37 = vpop.permute.xlu1 %6930 }
0x15d6   :  { %v6937_v35 = vpop.permute.xlu0 %6936  ;;  %v6951_v10 = vsel %vm444_vm2, %v6919_v12, %v6931_v37 }
0x15d7   :  { %v6952_v61 = vsel %vm1751_vm3, %v6950_v9, %v6937_v35 }
0x15d9   :  { %v6939_v39 = vpop.permute.xlu1 %6938 }
0x15da   :  { %v6945_v40 = vpop.permute.xlu0 %6944  ;;  %v6953_v2 = vsel %vm1751_vm3, %v6951_v10, %v6939_v39 }
0x15db   :  { %v19875_v49 = vsel %vm1754_vm4, %v6952_v61, %v6945_v40 }
0x15dc   :  { %17401 = vmatprep.mubr.msk.f32.mxu0 %vm129_vm0, %v19875_v49 }
0x15dd   :  { %v6947_v50 = vpop.permute.xlu1 %6946 }
0x15de   :  { %v19882_v52 = vsel %vm1754_vm4, %v6953_v2, %v6947_v50 }
0x15df   :  { %17402 = vmatmul.mubr.msk.f32.vlgmr.msra.gmra.mrb[76].mxu0 %vm129_vm0, %v19882_v52 }
0x15e0   :  { %18212 = vmatpush3.bf16.msra.mxu0 %v18209_v18  ;;  %17423 = vmatprep.mubr.msk.f32.mxu0 %vm129_vm0, %v19860_v1 }
0x15e1   :  { %18214 = vmatprep.subr.bf16.mxu0 %v18213_v51 }
0x15e4   :  { %18216 = vmatpush3.bf16.msra.mxu0 %v18213_v51 }
0x15e5   :  { %17437 = vmatprep.subr.mxu0 %v18950_v15  ;;  %v19938_v13 = vpop.permute.xlu1 %7322 }
0x15e6   :  { %v19940_v38 = vpop.permute.xlu0 %7320 }
0x15e7   :  { %17424 = vmatmul.mubr.msk.f32.vlgmr.msra.gmra.mrb[78].mxu0 %vm129_vm0, %v19888_v29 }
0x15e8   :  { %17439 = vmatprep.mubr.msk.f32.mxu0 %vm18951_vm1, %v18950_v15 }
0x15e9   :  { %v19942_v16 = vpop.permute.xlu1 %7328 }
0x15ea   :  { %v19944_v46 = vpop.permute.xlu0 %7326 }
0x1643   :  { %v17436_v8 = vpop.f32.mrb[84].mxu1 }
0x1644   :  { %v7309_v34 = vpop.f32.mrb[85].mxu1  ;;  %v19970_v4 = vadd.f32 %v17436_v8, %v16195_v6 }
0x1645   :  { %v19974_v14 = vadd.f32 %v16195_v6, %v7309_v34 }
0x16b2   :  { %v17403_v62 = vpop.f32.mrb[76].mxu0 }
0x16b3   :  { %v19912_v63 = vadd.f32 %v17403_v62, %v16186_v60  ;;  %v19914_v3 = vpop.f32.mrb[77].mxu0 }
0x16ba   :  { %v17425_v32 = vpop.f32.mrb[78].mxu0 }
0x16bb   :  { %v7229_v33 = vadd.f32 %v17425_v32, %v16192_v30  ;;  %v7223_v5 = vpop.f32.mrb[79].mxu0 }
0x16bc   :  { %v7224_v7 = vadd.f32 %v16192_v30, %v7223_v5 }
0x16bd   :  { %7342 = vrot.lane.b32.xlu1 %v7229_v33, %s18952_s26  ;;  %17443 = vmatpush3.xpose.msk.msra.mxu1 %vm444_vm2, %v7229_v33 }
0x16be   :  { %7340 = vrot.lane.b32.xlu0 %v7224_v7, %s18952_s26  ;;  %17438 = vmatpush3.xpose.msk.msra.mxu0 %vm444_vm2, %v7224_v7 }
0x16bf   :  { %17452 = vmatprep.subr.mxu1 %v18950_v15  ;;  %17447 = vmatprep.subr.mxu0 %v18950_v15 }
0x16c0   :  { %17445 = vmatmul.mubr.msk.f32.vlgmr.msra.gmra.mrb[86].mxu1 %vm444_vm2, %v19895_v44 }
0x16c1   :  { %7346 = vrot.lane.b32.xlu1 %v7229_v33, %s18953_s27  ;;  %17440 = vmatmul.mubr.msk.f32.vlgmr.msra.gmra.mrb[80].mxu0 %vm444_vm2, %v19897_v57 }
0x16c2   :  { %7344 = vrot.lane.b32.xlu0 %v7224_v7, %s18953_s27  ;;  %17454 = vmatprep.mubr.msk.f32.mxu1 %vm18951_vm1, %v18950_v15 }
0x16c3   :  { %17449 = vmatprep.mubr.msk.f32.mxu0 %vm18951_vm1, %v18950_v15 }
0x16c5   :  { %7350 = vrot.lane.b32.xlu1 %v7229_v33, %s18954_s28 }
0x16c6   :  { %7348 = vrot.lane.b32.xlu0 %v7224_v7, %s18954_s28 }
0x16c9   :  { %7334 = vrot.lane.b32.xlu1 %v19895_v44, %s18954_s28 }
0x16ca   :  { %7332 = vrot.lane.b32.xlu0 %v19897_v57, %s18954_s28 }
0x172f   :  { %v7343_v42 = vpop.permute.xlu1 %7342 }
0x1730   :  { %17453 = vmatpush3.xpose.msk.msra.mxu1 %vm444_vm2, %v7343_v42  ;;  %v7341_v43 = vpop.permute.xlu0 %7340 }
0x1731   :  { %17448 = vmatpush3.xpose.msk.msra.mxu0 %vm444_vm2, %v7341_v43  ;;  %17462 = vmatprep.subr.mxu1 %v18950_v15 }
0x1732   :  { %17457 = vmatprep.subr.mxu0 %v18950_v15 }
0x1733   :  { %v7347_v18 = vpop.permute.xlu1 %7346  ;;  %17455 = vmatmul.mubr.msk.f32.vlgmr.msra.gmra.mrb[88].mxu1 %vm444_vm2, %v19938_v13 }
0x1734   :  { %17463 = vmatpush3.xpose.msk.msra.mxu1 %vm444_vm2, %v7347_v18  ;;  %v7345_v19 = vpop.permute.xlu0 %7344  ;;  %17450 = vmatmul.mubr.msk.f32.vlgmr.msra.gmra.mrb[82].mxu0 %vm444_vm2, %v19940_v38 }
0x1735   :  { %17458 = vmatpush3.xpose.msk.msra.mxu0 %vm444_vm2, %v7345_v19  ;;  %17464 = vmatprep.mubr.msk.f32.mxu1 %vm18951_vm1, %v18950_v15 }
0x1736   :  { %17459 = vmatprep.mubr.msk.f32.mxu0 %vm18951_vm1, %v18950_v15  ;;  %17472 = vmatprep.subr.mxu1 %v18950_v15 }
0x1737   :  { %v7351_v20 = vpop.permute.xlu1 %7350  ;;  %17465 = vmatmul.mubr.msk.f32.vlgmr.msra.gmra.mrb[90].mxu1 %vm444_vm2, %v19942_v16  ;;  %17467 = vmatprep.subr.mxu0 %v18950_v15 }
0x1738   :  { %17473 = vmatpush3.xpose.msk.msra.mxu1 %vm444_vm2, %v7351_v20  ;;  %v7349_v21 = vpop.permute.xlu0 %7348  ;;  %17460 = vmatmul.mubr.msk.f32.vlgmr.msra.gmra.mrb[84].mxu0 %vm444_vm2, %v19944_v46 }
0x1739   :  { %17468 = vmatpush3.xpose.msk.msra.mxu0 %vm444_vm2, %v7349_v21  ;;  %17474 = vmatprep.mubr.msk.f32.mxu1 %vm18951_vm1, %v18950_v15 }
0x173a   :  { %17469 = vmatprep.mubr.msk.f32.mxu0 %vm18951_vm1, %v18950_v15  ;;  %17477 = vmatprep.subr.mxu0 %v18950_v15 }
0x173b   :  { %v19977_v17 = vpop.permute.xlu1 %7334  ;;  %17482 = vmatprep.subr.mxu1 %v18950_v15 }
0x173c   :  { %17475 = vmatmul.mubr.msk.f32.vlgmr.msra.gmra.mrb[92].mxu1 %vm444_vm2, %v19977_v17  ;;  %v19982_v24 = vpop.permute.xlu0 %7332 }
0x173d   :  { %17470 = vmatmul.mubr.msk.f32.vlgmr.msra.gmra.mrb[86].mxu0 %vm444_vm2, %v19982_v24  ;;  %17483 = vmatpush3.msra.mxu1 %v19970_v4 }
0x173e   :  { %17478 = vmatpush3.msra.mxu0 %v19974_v14  ;;  %17484 = vmatprep.mubr.msk.f32.mxu1 %vm18951_vm1, %v18950_v15 }
0x173f   :  { %17492 = vmatprep.subr.mxu1 %v18950_v15  ;;  %17479 = vmatprep.mubr.msk.f32.mxu0 %vm18951_vm1, %v18950_v15 }
0x1740   :  { %17487 = vmatprep.subr.mxu0 %v18950_v15 }
0x1793   :  { %v7516_v25 = vpop.f32.mrb[86].mxu1 }
0x1794   :  { %v7965_v26 = vmul.f32 0.17677669, %v7516_v25  ;;  %v7442_v47 = vpop.f32.mrb[80].mxu0  ;;  %v17446_v11 = vpop.f32.mrb[87].mxu1 }
0x1795   :  { %v7964_v55 = vmul.f32 0.17677669, %v7442_v47  ;;  %v17441_v22 = vpop.f32.mrb[81].mxu0 }
0x1796   :  { %v7975_v27 = vsel %vm444_vm2, %v7965_v26, -inf }
0x1797   :  { %7976 = vmax.xlane.f32.xlu1 %v7975_v27  ;;  %v7972_v28 = vsel %vm444_vm2, %v7964_v55, -inf }
0x1798   :  { %7973 = vmax.xlane.f32.xlu0 %v7972_v28 }
0x1806   :  { %v7664_v54 = vpop.f32.mrb[88].mxu1 }
0x1807   :  { %v7590_v0 = vpop.f32.mrb[82].mxu0  ;;  %v17456_v36 = vpop.f32.mrb[89].mxu1  ;;  %v7967_v31 = vmul.f32 0.17677669, %v7664_v54 }
0x1808   :  { %v7966_v37 = vmul.f32 0.17677669, %v7590_v0  ;;  %v17451_v35 = vpop.f32.mrb[83].mxu0 }
0x1809   :  { %v7981_v10 = vsel %vm444_vm2, %v7967_v31, -inf }
0x180a   :  { %v7812_v9 = vpop.f32.mrb[90].mxu1  ;;  %v7978_v39 = vsel %vm444_vm2, %v7966_v37, -inf }
0x180b   :  { %v17466_v12 = vpop.f32.mrb[91].mxu1  ;;  %7979 = vmax.xlane.f32.xlu0 %v7978_v39  ;;  %v7738_v61 = vpop.f32.mrb[84].mxu0  ;;  %v7969_v45 = vmul.f32 0.17677669, %v7812_v9 }
0x180c   :  { %v7968_v40 = vmul.f32 0.17677669, %v7738_v61  ;;  %v17461_v41 = vpop.f32.mrb[85].mxu0 }
0x180d   :  { %v7987_v23 = vsel %vm444_vm2, %v7969_v45, -inf }
0x180e   :  { %v7984_v2 = vsel %vm444_vm2, %v7968_v40, -inf }
0x180f   :  { %v7960_v50 = vpop.f32.mrb[92].mxu1  ;;  %7982 = vmax.xlane.f32.xlu0 %v7981_v10  ;;  %7985 = vmax.xlane.f32.xlu1 %v7984_v2 }
0x1810   :  { %v7886_v51 = vpop.f32.mrb[86].mxu0  ;;  %v17476_v53 = vpop.f32.mrb[93].mxu1  ;;  %v7971_v58 = vmul.f32 0.17677669, %v7960_v50 }
0x1811   :  { %v7970_v48 = vmul.f32 0.17677669, %v7886_v51  ;;  %v17471_v56 = vpop.f32.mrb[87].mxu0 }
0x1812   :  { %v7993_v60 = vsel %vm444_vm2, %v7971_v58, -inf }
0x1813   :  { %7988 = vmax.xlane.f32.xlu0 %v7987_v23  ;;  %v7990_v59 = vsel %vm444_vm2, %v7970_v48, -inf }
0x1814   :  { %7991 = vmax.xlane.f32.xlu1 %v7990_v59 }
0x1817   :  { %7994 = vmax.xlane.f32.xlu0 %v7993_v60 }
0x1824   :  { %v7977_v62 = vpop.xlane.xlu1 %7976 }
0x1825   :  { %7354 = vrot.lane.b32.xlu1 %v19974_v14, %s18952_s26  ;;  %v7997_v30 = vsub.f32 %v7965_v26, %v7977_v62  ;;  %v7974_v32 = vpop.xlane.xlu0 %7973 }
0x1826   :  { %v7996_v5 = vsub.f32 %v7964_v55, %v7974_v32 }
0x1827   :  { %v8006_v33 = vmul.f32 1.442695, %v7997_v30 }
0x1828   :  { %v8004_v7 = vmul.f32 1.442695, %v7996_v5 }
0x1829   :  { %7360 = vrot.lane.b32.xlu1 %v19974_v14, %s18953_s27  ;;  %18635 = vpow2.f32 %v8006_v33 }
0x182a   :  { %18637 = vpow2.f32 %v8004_v7 }
0x182d   :  { %7356 = vrot.lane.b32.xlu0 %v19970_v4, %s18952_s26  ;;  %7362 = vrot.lane.b32.xlu1 %v19970_v4, %s18953_s27 }
0x1833   :  { %v18636_v8 = vpop.eup %18635 }
0x1834   :  { %v8023_v34 = vsel %vm444_vm2, %v18636_v8, 0.0  ;;  %v18638_v42 = vpop.eup %18637 }
0x1835   :  { %v8020_v43 = vsel %vm444_vm2, %v18638_v42, 0.0 }
0x184c   :  { %8024 = vadd.xlane.f32.xlu0 %v8023_v34 }
0x1851   :  { %8021 = vadd.xlane.f32.xlu1 %v8020_v43 }
0x1898   :  { %v7980_v18 = vpop.xlane.xlu0 %7979 }
0x1899   :  { %v7998_v19 = vsub.f32 %v7966_v37, %v7980_v18 }
0x189b   :  { %v8008_v6 = vmul.f32 1.442695, %v7998_v19 }
0x189c   :  { %v7983_v20 = vpop.xlane.xlu0 %7982  ;;  %v7986_v21 = vpop.xlane.xlu1 %7985 }
0x189d   :  { %18639 = vpow2.f32 %v8008_v6  ;;  %v7999_v25 = vsub.f32 %v7967_v31, %v7983_v20  ;;  %v8000_v26 = vsub.f32 %v7968_v40, %v7986_v21 }
0x189f   :  { %v8010_v47 = vmul.f32 1.442695, %v7999_v25  ;;  %v8012_v11 = vmul.f32 1.442695, %v8000_v26 }
0x18a0   :  { %v7989_v55 = vpop.xlane.xlu0 %7988 }
0x18a1   :  { %18641 = vpow2.f32 %v8010_v47  ;;  %v8001_v22 = vsub.f32 %v7969_v45, %v7989_v55  ;;  %v7992_v27 = vpop.xlane.xlu1 %7991 }
0x18a2   :  { %18643 = vpow2.f32 %v8012_v11  ;;  %v8002_v28 = vsub.f32 %v7970_v48, %v7992_v27 }
0x18a3   :  { %v8014_v54 = vmul.f32 1.442695, %v8001_v22 }
0x18a4   :  { %v8016_v0 = vmul.f32 1.442695, %v8002_v28  ;;  %v7995_v36 = vpop.xlane.xlu0 %7994 }
0x18a5   :  { %18645 = vpow2.f32 %v8014_v54  ;;  %v8003_v35 = vsub.f32 %v7971_v58, %v7995_v36  ;;  %v7355_v53 = vpop.permute.xlu1 %7354  ;;  %v8682_v36 = vld [vmem:[#allocation6 + $0x60] sm:$0xff] }
0x18a6   :  { %18647 = vpow2.f32 %v8016_v0 }
0x18a7   :  { %v18640_v37 = vpop.eup %18639  ;;  %v8018_v9 = vmul.f32 1.442695, %v8003_v35  ;;  %v8683_v35 = vld [vmem:[#allocation6 + $0x68] sm:$0xff] }
0x18a8   :  { %v8026_v39 = vsel %vm444_vm2, %v18640_v37, 0.0  ;;  %v7357_v56 = vpop.permute.xlu0 %7356 }
0x18a9   :  { %18649 = vpow2.f32 %v8018_v9  ;;  %8027 = vadd.xlane.f32.xlu1 %v8026_v39  ;;  %v7361_v48 = vpop.permute.xlu1 %7360  ;;  %v8684_v9 = vld [vmem:[#allocation6 + $0x70] sm:$0xff]  ;;  %v8685_v39 = vld [vmem:[#allocation6 + $0x78] sm:$0xff] }
0x18ab   :  { %v18642_v31 = vpop.eup %18641 }
0x18ac   :  { %v18644_v12 = vpop.eup %18643  ;;  %v8029_v61 = vsel %vm444_vm2, %v18642_v31, 0.0 }
0x18ad   :  { %8030 = vadd.xlane.f32.xlu0 %v8029_v61  ;;  %v8032_v40 = vsel %vm444_vm2, %v18644_v12, 0.0  ;;  %v7363_v23 = vpop.permute.xlu1 %7362 }
0x18ae   :  { %8033 = vadd.xlane.f32.xlu1 %v8032_v40 }
0x18af   :  { %v18646_v41 = vpop.eup %18645 }
0x18b0   :  { %v20015_v45 = vpop.eup %18647  ;;  %v8035_v10 = vsel %vm444_vm2, %v18646_v41, 0.0 }
0x18b1   :  { %8036 = vadd.xlane.f32.xlu0 %v8035_v10  ;;  %v8038_v2 = vsel %vm444_vm2, %v20015_v45, 0.0 }
0x18b2   :  { %8039 = vadd.xlane.f32.xlu1 %v8038_v2 }
0x18b3   :  { %v20020_v50 = vpop.eup %18649 }
0x18b4   :  { %v8041_v51 = vsel %vm444_vm2, %v20020_v50, 0.0 }
0x18b5   :  { %8042 = vadd.xlane.f32.xlu0 %v8041_v51 }
0x18c3   :  { %7368 = vrot.lane.b32.xlu1 %v19970_v4, %s18954_s28 }
0x18cb   :  { %7366 = vrot.lane.b32.xlu0 %v19974_v14, %s18954_s28 }
0x18d9   :  { %v8025_v58 = vpop.xlane.xlu0 %8024 }
0x18da   :  { %18651 = vrcp.f32 %v8025_v58 }
0x18de   :  { %v8022_v59 = vpop.xlane.xlu1 %8021 }
0x18df   :  { %18653 = vrcp.f32 %v8022_v59 }
0x18e4   :  { %v18652_v60 = vpop.eup %18651 }
0x18e5   :  { %v8053_v62 = vmul.f32 %v18652_v60, %v18636_v8 }
0x18e7   :  { %17485 = vmatmul.mubr.msk.f32.vlgmr.msra.gmra.mrb[94].mxu1 %vm444_vm2, %v8053_v62 }
0x18e8   :  { %17493 = vmatpush3.msra.mxu1 %v7357_v56  ;;  %17494 = vmatprep.mubr.msk.f32.mxu1 %vm18951_vm1, %v18950_v15 }
0x18e9   :  { %v18654_v4 = vpop.eup %18653  ;;  %17502 = vmatprep.subr.mxu1 %v18950_v15 }
0x18ea   :  { %v8052_v14 = vmul.f32 %v18654_v4, %v18638_v42 }
0x18ec   :  { %17480 = vmatmul.mubr.msk.f32.vlgmr.msra.gmra.mrb[88].mxu0 %vm444_vm2, %v8052_v14 }
0x18ed   :  { %17488 = vmatpush3.msra.mxu0 %v7355_v53  ;;  %17489 = vmatprep.mubr.msk.f32.mxu0 %vm18951_vm1, %v18950_v15 }
0x18ee   :  { %17497 = vmatprep.subr.mxu0 %v18950_v15 }
0x1936   :  { %v8028_v30 = vpop.xlane.xlu1 %8027 }
0x1937   :  { %18655 = vrcp.f32 %v8028_v30 }
0x193a   :  { %v8031_v32 = vpop.xlane.xlu0 %8030 }
0x193b   :  { %18657 = vrcp.f32 %v8031_v32  ;;  %v8034_v33 = vpop.xlane.xlu1 %8033 }
0x193c   :  { %18659 = vrcp.f32 %v8034_v33 }
0x193e   :  { %v8037_v5 = vpop.xlane.xlu0 %8036 }
0x193f   :  { %18661 = vrcp.f32 %v8037_v5  ;;  %v8040_v7 = vpop.xlane.xlu1 %8039 }
0x1940   :  { %18663 = vrcp.f32 %v8040_v7 }
0x1941   :  { %v18656_v8 = vpop.eup %18655 }
0x1942   :  { %v8043_v34 = vpop.xlane.xlu0 %8042  ;;  %v8054_v42 = vmul.f32 %v18656_v8, %v18640_v37  ;;  %v18225_v37 = vpack.c.bf16 %v8683_v35, %v8682_v36 }
0x1943   :  { %18665 = vrcp.f32 %v8043_v34  ;;  %v7369_v11 = vpop.permute.xlu1 %7368 }
0x1944   :  { %17490 = vmatmul.mubr.msk.f32.vlgmr.msra.gmra.mrb[90].mxu0 %vm444_vm2, %v8054_v42 }
0x1945   :  { %v18658_v43 = vpop.eup %18657  ;;  %17498 = vmatpush3.msra.mxu0 %v7361_v48  ;;  %17499 = vmatprep.mubr.msk.f32.mxu0 %vm18951_vm1, %v18950_v15 }
0x1946   :  { %v18660_v18 = vpop.eup %18659  ;;  %17507 = vmatprep.subr.mxu0 %v18950_v15  ;;  %v8055_v19 = vmul.f32 %v18658_v43, %v18642_v31  ;;  %v7367_v6 = vpop.permute.xlu0 %7366  ;;  %v18229_v31 = vpack.c.bf16 %v8685_v39, %v8684_v9 }
0x1947   :  { %v8056_v20 = vmul.f32 %v18660_v18, %v18644_v12 }
0x1948   :  { %17495 = vmatmul.mubr.msk.f32.vlgmr.msra.gmra.mrb[96].mxu1 %vm444_vm2, %v8055_v19 }
0x1949   :  { %v18662_v21 = vpop.eup %18661  ;;  %17500 = vmatmul.mubr.msk.f32.vlgmr.msra.gmra.mrb[92].mxu0 %vm444_vm2, %v8056_v20  ;;  %17503 = vmatpush3.msra.mxu1 %v7363_v23 }
0x194a   :  { %v18664_v25 = vpop.eup %18663  ;;  %17508 = vmatpush3.msra.mxu0 %v7367_v6  ;;  %17504 = vmatprep.mubr.msk.f32.mxu1 %vm18951_vm1, %v18950_v15  ;;  %v8057_v26 = vmul.f32 %v18662_v21, %v18646_v41  ;;  %v8779_v41 = vld [vmem:[#allocation6 + $0x88] sm:$0xff] }
0x194b   :  { %17512 = vmatprep.subr.mxu1 %v18950_v15  ;;  %17509 = vmatprep.mubr.msk.f32.mxu0 %vm18951_vm1, %v18950_v15  ;;  %v8058_v47 = vmul.f32 %v18664_v25, %v20015_v45  ;;  %v8780_v45 = vld [vmem:[#allocation6 + $0x90] sm:$0xff]  ;;  %v8865_v6 = vld [vmem:[#allocation6 + $0xa8] sm:$0xff] }
0x194c   :  { %17505 = vmatmul.mubr.msk.f32.vlgmr.msra.gmra.mrb[98].mxu1 %vm444_vm2, %v8057_v26  ;;  %18226 = vmatprep.subr.bf16.mxu0 %v18225_v37  ;;  %v8957_v21 = vld [vmem:[#allocation6 + $0xc8] sm:$0xff]  ;;  %v8866_v26 = vld [vmem:[#allocation6 + $0xb0] sm:$0xff] }
0x194d   :  { %v18666_v55 = vpop.eup %18665  ;;  %17513 = vmatpush3.msra.mxu1 %v7369_v11  ;;  %17510 = vmatmul.mubr.msk.f32.vlgmr.msra.gmra.mrb[94].mxu0 %vm444_vm2, %v8058_v47  ;;  %v8867_v47 = vld [vmem:[#allocation6 + $0xb8] sm:$0xff]  ;;  %v8958_v11 = vld [vmem:[#allocation6 + $0xd0] sm:$0xff] }
0x194e   :  { %17514 = vmatprep.mubr.msk.f32.mxu1 %vm18951_vm1, %v18950_v15  ;;  %v8059_v22 = vmul.f32 %v18666_v55, %v20020_v50  ;;  %18228 = vmatpush3.bf16.msra.mxu0 %v18225_v37  ;;  %v8781_v50 = vld [vmem:[#allocation6 + $0x98] sm:$0xff]  ;;  %v18245_v55 = vpack.c.bf16 %v8867_v47, %v8866_v26  ;;  %v16222_v37 = vld [vmem:[#allocation7 + $0x3] ss:$0 sm:$0xff] }
0x194f   :  { %18230 = vmatprep.subr.bf16.mxu0 %v18229_v31  ;;  %v18237_v56 = vpack.c.bf16 %v8781_v50, %v8780_v45  ;;  %v16228_v45 = vld [vmem:[#allocation7 + $0x5] ss:$0 sm:$0xff] }
0x1950   :  { %17515 = vmatmul.mubr.msk.f32.vlgmr.msra.gmra.mrb[100].mxu1 %vm444_vm2, %v8059_v22  ;;  %v8959_v22 = vld [vmem:[#allocation6 + $0xd8] sm:$0xff] }
0x1951   :  { %17536 = vmatprep.mubr.msk.f32.mxu1 %vm129_vm0, %v19860_v1  ;;  %v8778_v1 = vld [vmem:[#allocation6 + $0x80] sm:$0xff] }
0x1952   :  { %18232 = vmatpush3.bf16.msra.mxu0 %v18229_v31  ;;  %v18233_v2 = vpack.c.bf16 %v8779_v41, %v8778_v1 }
0x1954   :  { %18234 = vmatprep.subr.bf16.mxu1 %v18233_v2 }
0x1955   :  { %18236 = vmatpush3.bf16.msra.mxu1 %v18233_v2 }
0x1956   :  { %18238 = vmatprep.subr.bf16.mxu1 %v18237_v56 }
0x1959   :  { %18240 = vmatpush3.bf16.msra.mxu1 %v18237_v56 }
0x195c   :  { %17537 = vmatmul.mubr.msk.f32.vlgmr.msra.gmra.mrb[102].mxu1 %vm129_vm0, %v19888_v29 }
0x19ba   :  { %v8202_v27 = vpop.f32.mrb[94].mxu1 }
0x19bb   :  { %v17486_v28 = vpop.f32.mrb[95].mxu1  ;;  %v8645_v8 = vadd.f32 %v8202_v27, %v19895_v44  ;;  %v8956_v44 = vld [vmem:[#allocation6 + $0xc0] sm:$0xff]  ;;  %v18253_v27 = vpack.c.bf16 %v8959_v22, %v8958_v11 }
0x19bc   :  { %v18249_v25 = vpack.c.bf16 %v8957_v21, %v8956_v44  ;;  %v16225_v28 = vld [vmem:[#allocation7 + $0x4] ss:$0 sm:$0xff] }
0x19be   :  { %18250 = vmatprep.subr.bf16.mxu1 %v18249_v25 }
0x19bf   :  { %v8129_v54 = vpop.f32.mrb[88].mxu0  ;;  %18252 = vmatpush3.bf16.msra.mxu1 %v18249_v25 }
0x19c0   :  { %v17481_v0 = vpop.f32.mrb[89].mxu0  ;;  %18254 = vmatprep.subr.bf16.mxu1 %v18253_v27 }
0x19c3   :  { %18256 = vmatpush3.bf16.msra.mxu1 %v18253_v27 }
0x19c4   :  { %17566 = vmatprep.subr.mxu1 %v18950_v15 }
0x1a17   :  { %v8275_v12 = vpop.f32.mrb[90].mxu0 }
0x1a18   :  { %v8646_v61 = vadd.f32 %v8275_v12, %v19940_v38  ;;  %v17491_v40 = vpop.f32.mrb[91].mxu0 }
0x1a1a   :  { %8654 = vrot.lane.b32.xlu0 %v8646_v61, %s18941_s22 }
0x1a1b   :  { %v8348_v10 = vpop.f32.mrb[96].mxu1 }
0x1a1c   :  { %v8647_v51 = vadd.f32 %v8348_v10, %v19938_v13  ;;  %v8421_v53 = vpop.f32.mrb[92].mxu0  ;;  %v17496_v48 = vpop.f32.mrb[97].mxu1 }
0x1a1d   :  { %v8648_v58 = vadd.f32 %v8421_v53, %v19944_v46  ;;  %v17501_v23 = vpop.f32.mrb[93].mxu0 }
0x1a1e   :  { %8656 = vrot.lane.b32.xlu1 %v8647_v51, %s18941_s22 }
0x1a1f   :  { %8662 = vrot.lane.b32.xlu0 %v8648_v58, %s18942_s1  ;;  %v8494_v38 = vpop.f32.mrb[98].mxu1 }
0x1a20   :  { %v8649_v59 = vadd.f32 %v8494_v38, %v19942_v16  ;;  %v17506_v60 = vpop.f32.mrb[99].mxu1  ;;  %v8567_v62 = vpop.f32.mrb[94].mxu0 }
0x1a21   :  { %v8650_v13 = vadd.f32 %v8567_v62, %v19982_v24  ;;  %v17511_v4 = vpop.f32.mrb[95].mxu0  ;;  %v8644_v24 = vadd.f32 %v8129_v54, %v19897_v57  ;;  %v8864_v57 = vld [vmem:[#allocation6 + $0xa0] sm:$0xff] }
0x1a22   :  { %8664 = vrot.lane.b32.xlu1 %v8649_v59, %s18942_s1  ;;  %v18241_v20 = vpack.c.bf16 %v8865_v6, %v8864_v57 }
0x1a23   :  { %v8640_v46 = vpop.f32.mrb[100].mxu1  ;;  %8670 = vrot.lane.b32.xlu0 %v8650_v13, %s18948_s21 }
0x1a24   :  { %v8651_v14 = vadd.f32 %v8640_v46, %v19977_v17  ;;  %v17516_v30 = vpop.f32.mrb[101].mxu1  ;;  %18242 = vmatprep.subr.bf16.mxu0 %v18241_v20  ;;  %v16231_v46 = vld [vmem:[#allocation7 + $0x6] ss:$0 sm:$0xff] }
0x1a26   :  { %8672 = vrot.lane.b32.xlu1 %v8651_v14, %s18948_s21 }
0x1a2f   :  { %v17538_v54 = vpop.f32.mrb[102].mxu1 }
0x1a30   :  { %v20082_v0 = vadd.f32 %v17538_v54, %v16225_v28  ;;  %v8855_v36 = vpop.f32.mrb[103].mxu1 }
0x1a31   :  { %v20084_v35 = vadd.f32 %v16225_v28, %v8855_v36 }
0x1a32   :  { %9046 = vrot.lane.b32.xlu1 %v20082_v0, %s18952_s26 }
0x1a33   :  { %9044 = vrot.lane.b32.xlu0 %v20084_v35, %s18952_s26 }
0x1a36   :  { %9052 = vrot.lane.b32.xlu1 %v20082_v0, %s18953_s27 }
0x1a37   :  { %9050 = vrot.lane.b32.xlu0 %v20084_v35, %s18953_s27 }
0x1a8c   :  { %v8655_v16 = vpop.permute.xlu0 %8654 }
0x1a8d   :  { %v8676_v5 = vsel %vm444_vm2, %v8644_v24, %v8655_v16 }
0x1a90   :  { %v8657_v32 = vpop.permute.xlu1 %8656 }
0x1a91   :  { %v8663_v33 = vpop.permute.xlu0 %8662  ;;  %v8677_v43 = vsel %vm444_vm2, %v8645_v8, %v8657_v32 }
0x1a92   :  { %v8678_v34 = vsel %vm1751_vm3, %v8676_v5, %v8663_v33 }
0x1a94   :  { %v8665_v7 = vpop.permute.xlu1 %8664 }
0x1a95   :  { %v8671_v42 = vpop.permute.xlu0 %8670  ;;  %v8679_v29 = vsel %vm1751_vm3, %v8677_v43, %v8665_v7 }
0x1a96   :  { %v8680_v17 = vsel %vm1754_vm4, %v8678_v34, %v8671_v42 }
0x1a97   :  { %17525 = vmatprep.mubr.msk.f32.mxu0 %vm129_vm0, %v8680_v17 }
0x1a98   :  { %v8673_v18 = vpop.permute.xlu1 %8672 }
0x1a99   :  { %v8681_v19 = vsel %vm1754_vm4, %v8679_v29, %v8673_v18 }
0x1a9a   :  { %17526 = vmatmul.mubr.msk.f32.vlgmr.msra.gmra.mrb[96].mxu0 %vm129_vm0, %v8681_v19 }
0x1a9b   :  { %18244 = vmatpush3.bf16.msra.mxu0 %v18241_v20 }
0x1a9c   :  { %18246 = vmatprep.subr.bf16.mxu0 %v18245_v55 }
0x1a9f   :  { %18248 = vmatpush3.bf16.msra.mxu0 %v18245_v55 }
0x1aa0   :  { %17561 = vmatprep.subr.mxu0 %v18950_v15 }
0x1aa4   :  { %v20124_v56 = vpop.permute.xlu1 %9046 }
0x1aa5   :  { %v20126_v58 = vpop.permute.xlu0 %9044 }
0x1aa8   :  { %v20128_v23 = vpop.permute.xlu1 %9052 }
0x1aa9   :  { %v20130_v38 = vpop.permute.xlu0 %9050 }
0x1b6d   :  { %v17527_v9 = vpop.f32.mrb[96].mxu0 }
0x1b6e   :  { %v8771_v39 = vadd.f32 %v17527_v9, %v16222_v37  ;;  %v8765_v31 = vpop.f32.mrb[97].mxu0 }
0x1b6f   :  { %v8766_v12 = vadd.f32 %v16222_v37, %v8765_v31 }
0x1b70   :  { %v8775_v61 = vmax.f32 %v8771_v39, 0.0 }
0x1b71   :  { %v8774_v40 = vmax.f32 %v8766_v12, 0.0 }
0x1b72   :  { %v8777_v41 = vadd.f32 %v8775_v61, %v8681_v19 }
0x1b73   :  { %v8776_v1 = vadd.f32 %v8774_v40, %v8680_v17 }
0x1b75   :  { %17547 = vmatprep.mubr.msk.f32.mxu0 %vm129_vm0, %v8776_v1  ;;  %17558 = vmatprep.mubr.msk.f32.mxu1 %vm129_vm0, %v8776_v1 }
0x1b76   :  { %17548 = vmatmul.mubr.msk.f32.vlgmr.msra.gmra.mrb[98].mxu0 %vm129_vm0, %v8777_v41  ;;  %17559 = vmatmul.mubr.msk.f32.vlgmr.msra.gmra.mrb[104].mxu1 %vm129_vm0, %v8777_v41 }
0x1b77   :  { %17568 = vmatprep.mubr.msk.f32.mxu1 %vm18951_vm1, %v18950_v15  ;;  %17563 = vmatprep.mubr.msk.f32.mxu0 %vm18951_vm1, %v18950_v15 }
0x1c49   :  { %v17549_v10 = vpop.f32.mrb[98].mxu0  ;;  %v17560_v2 = vpop.f32.mrb[104].mxu1 }
0x1c4a   :  { %v8953_v50 = vadd.f32 %v17549_v10, %v16228_v45  ;;  %v8947_v51 = vpop.f32.mrb[99].mxu0  ;;  %v9033_v53 = vpop.f32.mrb[105].mxu1  ;;  %v20159_v30 = vadd.f32 %v17560_v2, %v16231_v46 }
0x1c4b   :  { %v8948_v48 = vadd.f32 %v16228_v45, %v8947_v51  ;;  %v20164_v32 = vadd.f32 %v16231_v46, %v9033_v53 }
0x1c4c   :  { %9066 = vrot.lane.b32.xlu1 %v8953_v50, %s18952_s26  ;;  %17567 = vmatpush3.xpose.msk.msra.mxu1 %vm444_vm2, %v8953_v50 }
0x1c4d   :  { %9064 = vrot.lane.b32.xlu0 %v8948_v48, %s18952_s26  ;;  %17562 = vmatpush3.xpose.msk.msra.mxu0 %vm444_vm2, %v8948_v48 }
0x1c4e   :  { %17576 = vmatprep.subr.mxu1 %v18950_v15  ;;  %17571 = vmatprep.subr.mxu0 %v18950_v15 }
0x1c4f   :  { %17569 = vmatmul.mubr.msk.f32.vlgmr.msra.gmra.mrb[106].mxu1 %vm444_vm2, %v20082_v0 }
0x1c50   :  { %9070 = vrot.lane.b32.xlu1 %v8953_v50, %s18953_s27  ;;  %17564 = vmatmul.mubr.msk.f32.vlgmr.msra.gmra.mrb[100].mxu0 %vm444_vm2, %v20084_v35 }
0x1c51   :  { %9068 = vrot.lane.b32.xlu0 %v8948_v48, %s18953_s27  ;;  %17578 = vmatprep.mubr.msk.f32.mxu1 %vm18951_vm1, %v18950_v15 }
0x1c52   :  { %17573 = vmatprep.mubr.msk.f32.mxu0 %vm18951_vm1, %v18950_v15 }
0x1c54   :  { %9074 = vrot.lane.b32.xlu1 %v8953_v50, %s18954_s28 }
0x1c55   :  { %9072 = vrot.lane.b32.xlu0 %v8948_v48, %s18954_s28 }
0x1c58   :  { %9058 = vrot.lane.b32.xlu1 %v20082_v0, %s18954_s28 }
0x1c59   :  { %9056 = vrot.lane.b32.xlu0 %v20084_v35, %s18954_s28 }
0x1cbe   :  { %v9067_v59 = vpop.permute.xlu1 %9066 }
0x1cbf   :  { %17577 = vmatpush3.xpose.msk.msra.mxu1 %vm444_vm2, %v9067_v59  ;;  %v9065_v60 = vpop.permute.xlu0 %9064 }
0x1cc0   :  { %17572 = vmatpush3.xpose.msk.msra.mxu0 %vm444_vm2, %v9065_v60  ;;  %17586 = vmatprep.subr.mxu1 %v18950_v15 }
0x1cc1   :  { %17581 = vmatprep.subr.mxu0 %v18950_v15 }
0x1cc2   :  { %v9071_v62 = vpop.permute.xlu1 %9070  ;;  %17579 = vmatmul.mubr.msk.f32.vlgmr.msra.gmra.mrb[108].mxu1 %vm444_vm2, %v20124_v56 }
0x1cc3   :  { %17587 = vmatpush3.xpose.msk.msra.mxu1 %vm444_vm2, %v9071_v62  ;;  %v9069_v13 = vpop.permute.xlu0 %9068  ;;  %17574 = vmatmul.mubr.msk.f32.vlgmr.msra.gmra.mrb[102].mxu0 %vm444_vm2, %v20126_v58 }
0x1cc4   :  { %17582 = vmatpush3.xpose.msk.msra.mxu0 %vm444_vm2, %v9069_v13  ;;  %17588 = vmatprep.mubr.msk.f32.mxu1 %vm18951_vm1, %v18950_v15 }
0x1cc5   :  { %17583 = vmatprep.mubr.msk.f32.mxu0 %vm18951_vm1, %v18950_v15  ;;  %17596 = vmatprep.subr.mxu1 %v18950_v15 }
0x1cc6   :  { %v9075_v4 = vpop.permute.xlu1 %9074  ;;  %17589 = vmatmul.mubr.msk.f32.vlgmr.msra.gmra.mrb[110].mxu1 %vm444_vm2, %v20128_v23  ;;  %17591 = vmatprep.subr.mxu0 %v18950_v15 }
0x1cc7   :  { %17597 = vmatpush3.xpose.msk.msra.mxu1 %vm444_vm2, %v9075_v4  ;;  %v9073_v14 = vpop.permute.xlu0 %9072  ;;  %17584 = vmatmul.mubr.msk.f32.vlgmr.msra.gmra.mrb[104].mxu0 %vm444_vm2, %v20130_v38 }
0x1cc8   :  { %17592 = vmatpush3.xpose.msk.msra.mxu0 %vm444_vm2, %v9073_v14  ;;  %17598 = vmatprep.mubr.msk.f32.mxu1 %vm18951_vm1, %v18950_v15 }
0x1cc9   :  { %17606 = vmatprep.subr.mxu1 %v18950_v15  ;;  %17593 = vmatprep.mubr.msk.f32.mxu0 %vm18951_vm1, %v18950_v15 }
0x1cca   :  { %v20161_v16 = vpop.permute.xlu1 %9058  ;;  %17601 = vmatprep.subr.mxu0 %v18950_v15 }
0x1ccb   :  { %17599 = vmatmul.mubr.msk.f32.vlgmr.msra.gmra.mrb[112].mxu1 %vm444_vm2, %v20161_v16  ;;  %v20168_v33 = vpop.permute.xlu0 %9056 }
0x1ccc   :  { %17607 = vmatpush3.msra.mxu1 %v20159_v30  ;;  %17594 = vmatmul.mubr.msk.f32.vlgmr.msra.gmra.mrb[106].mxu0 %vm444_vm2, %v20168_v33 }
0x1ccd   :  { %17602 = vmatpush3.msra.mxu0 %v20164_v32  ;;  %17608 = vmatprep.mubr.msk.f32.mxu1 %vm18951_vm1, %v18950_v15 }
0x1cce   :  { %17616 = vmatprep.subr.mxu1 %v18950_v15  ;;  %17603 = vmatprep.mubr.msk.f32.mxu0 %vm18951_vm1, %v18950_v15 }
0x1ccf   :  { %17611 = vmatprep.subr.mxu0 %v18950_v15 }
0x1d22   :  { %v9240_v24 = vpop.f32.mrb[106].mxu1 }
0x1d23   :  { %v9689_v5 = vmul.f32 0.17677669, %v9240_v24  ;;  %v9166_v7 = vpop.f32.mrb[100].mxu0  ;;  %v17570_v8 = vpop.f32.mrb[107].mxu1 }
0x1d24   :  { %v9688_v34 = vmul.f32 0.17677669, %v9166_v7  ;;  %v17565_v42 = vpop.f32.mrb[101].mxu0 }
0x1d25   :  { %v9699_v17 = vsel %vm444_vm2, %v9689_v5, -inf }
0x1d26   :  { %9700 = vmax.xlane.f32.xlu1 %v9699_v17  ;;  %v9696_v43 = vsel %vm444_vm2, %v9688_v34, -inf }
0x1d27   :  { %9697 = vmax.xlane.f32.xlu0 %v9696_v43 }
0x1d95   :  { %v9388_v29 = vpop.f32.mrb[108].mxu1 }
0x1d96   :  { %v9314_v18 = vpop.f32.mrb[102].mxu0  ;;  %v17580_v19 = vpop.f32.mrb[109].mxu1  ;;  %v9691_v20 = vmul.f32 0.17677669, %v9388_v29 }
0x1d97   :  { %v9690_v57 = vmul.f32 0.17677669, %v9314_v18  ;;  %v17575_v6 = vpop.f32.mrb[103].mxu0 }
0x1d98   :  { %v9705_v22 = vsel %vm444_vm2, %v9691_v20, -inf }
0x1d99   :  { %v9536_v44 = vpop.f32.mrb[110].mxu1  ;;  %v9702_v21 = vsel %vm444_vm2, %v9690_v57, -inf }
0x1d9a   :  { %v17590_v25 = vpop.f32.mrb[111].mxu1  ;;  %9703 = vmax.xlane.f32.xlu0 %v9702_v21  ;;  %v9462_v26 = vpop.f32.mrb[104].mxu0  ;;  %v9693_v55 = vmul.f32 0.17677669, %v9536_v44 }
0x1d9b   :  { %v9692_v47 = vmul.f32 0.17677669, %v9462_v26  ;;  %v17585_v11 = vpop.f32.mrb[105].mxu0 }
0x1d9c   :  { %v9711_v31 = vsel %vm444_vm2, %v9693_v55, -inf }
0x1d9d   :  { %v9708_v27 = vsel %vm444_vm2, %v9692_v47, -inf }
0x1d9e   :  { %v9684_v28 = vpop.f32.mrb[112].mxu1  ;;  %9706 = vmax.xlane.f32.xlu0 %v9705_v22  ;;  %9709 = vmax.xlane.f32.xlu1 %v9708_v27 }
0x1d9f   :  { %v9610_v54 = vpop.f32.mrb[106].mxu0  ;;  %v17600_v36 = vpop.f32.mrb[113].mxu1  ;;  %v9695_v39 = vmul.f32 0.17677669, %v9684_v28 }
0x1da0   :  { %v9694_v37 = vmul.f32 0.17677669, %v9610_v54  ;;  %v17595_v9 = vpop.f32.mrb[107].mxu0 }
0x1da1   :  { %v9717_v61 = vsel %vm444_vm2, %v9695_v39, -inf }
0x1da2   :  { %9712 = vmax.xlane.f32.xlu0 %v9711_v31  ;;  %v9714_v12 = vsel %vm444_vm2, %v9694_v37, -inf }
0x1da3   :  { %9715 = vmax.xlane.f32.xlu1 %v9714_v12 }
0x1da6   :  { %9718 = vmax.xlane.f32.xlu0 %v9717_v61 }
0x1db3   :  { %v9701_v40 = vpop.xlane.xlu1 %9700 }
0x1db4   :  { %9078 = vrot.lane.b32.xlu1 %v20164_v32, %s18952_s26  ;;  %v9721_v1 = vsub.f32 %v9689_v5, %v9701_v40  ;;  %v9698_v41 = vpop.xlane.xlu0 %9697 }
0x1db5   :  { %v9720_v10 = vsub.f32 %v9688_v34, %v9698_v41 }
0x1db6   :  { %v9730_v45 = vmul.f32 1.442695, %v9721_v1 }
0x1db7   :  { %v9728_v2 = vmul.f32 1.442695, %v9720_v10 }
0x1db8   :  { %9084 = vrot.lane.b32.xlu1 %v20164_v32, %s18953_s27  ;;  %18667 = vpow2.f32 %v9730_v45 }
0x1db9   :  { %18669 = vpow2.f32 %v9728_v2 }
0x1dbc   :  { %9080 = vrot.lane.b32.xlu0 %v20159_v30, %s18952_s26  ;;  %9086 = vrot.lane.b32.xlu1 %v20159_v30, %s18953_s27 }
0x1dc2   :  { %v18668_v50 = vpop.eup %18667 }
0x1dc3   :  { %v9747_v51 = vsel %vm444_vm2, %v18668_v50, 0.0  ;;  %v18670_v53 = vpop.eup %18669 }
0x1dc4   :  { %v9744_v48 = vsel %vm444_vm2, %v18670_v53, 0.0 }
0x1ddb   :  { %9748 = vadd.xlane.f32.xlu0 %v9747_v51 }
0x1de0   :  { %9745 = vadd.xlane.f32.xlu1 %v9744_v48 }
0x1e27   :  { %v9704_v59 = vpop.xlane.xlu0 %9703 }
0x1e28   :  { %v9722_v60 = vsub.f32 %v9690_v57, %v9704_v59 }
0x1e2a   :  { %v9732_v62 = vmul.f32 1.442695, %v9722_v60 }
0x1e2b   :  { %v9707_v13 = vpop.xlane.xlu0 %9706  ;;  %v9710_v4 = vpop.xlane.xlu1 %9709 }
0x1e2c   :  { %18671 = vpow2.f32 %v9732_v62  ;;  %v9723_v46 = vsub.f32 %v9691_v20, %v9707_v13  ;;  %v9724_v14 = vsub.f32 %v9692_v47, %v9710_v4 }
0x1e2e   :  { %v9734_v24 = vmul.f32 1.442695, %v9723_v46  ;;  %v9736_v5 = vmul.f32 1.442695, %v9724_v14 }
0x1e2f   :  { %v9713_v7 = vpop.xlane.xlu0 %9712 }
0x1e30   :  { %18673 = vpow2.f32 %v9734_v24  ;;  %v9725_v8 = vsub.f32 %v9693_v55, %v9713_v7  ;;  %v9716_v34 = vpop.xlane.xlu1 %9715  ;;  %v18796_v7 = vld [vmem:[%s20948_s3] sm:$0xff] }
0x1e31   :  { %18675 = vpow2.f32 %v9736_v5  ;;  %v9726_v42 = vsub.f32 %v9694_v37, %v9716_v34 }
0x1e32   :  { %v9738_v17 = vmul.f32 1.442695, %v9725_v8 }
0x1e33   :  { %v9740_v43 = vmul.f32 1.442695, %v9726_v42  ;;  %v9719_v29 = vpop.xlane.xlu0 %9718 }
0x1e34   :  { %18677 = vpow2.f32 %v9738_v17  ;;  %v9727_v18 = vsub.f32 %v9695_v39, %v9719_v29  ;;  %v9079_v28 = vpop.permute.xlu1 %9078  ;;  %v10407_v29 = vld [vmem:[#allocation6 + $0xe8] sm:$0xff] }
0x1e35   :  { %18679 = vpow2.f32 %v9740_v43  ;;  %v10406_v43 = vld [vmem:[#allocation6 + $0xe0] sm:$0xff] }
0x1e36   :  { %v18672_v19 = vpop.eup %18671  ;;  %v9742_v57 = vmul.f32 1.442695, %v9727_v18  ;;  %v18257_v18 = vpack.c.bf16 %v10407_v29, %v10406_v43 }
0x1e37   :  { %v9750_v6 = vsel %vm444_vm2, %v18672_v19, 0.0  ;;  %v9081_v36 = vpop.permute.xlu0 %9080 }
0x1e38   :  { %18681 = vpow2.f32 %v9742_v57  ;;  %9751 = vadd.xlane.f32.xlu1 %v9750_v6  ;;  %v9085_v54 = vpop.permute.xlu1 %9084  ;;  %v10409_v57 = vld [vmem:[#allocation6 + $0xf8] sm:$0xff] }
0x1e3a   :  { %v18674_v20 = vpop.eup %18673 }
0x1e3b   :  { %v18676_v44 = vpop.eup %18675  ;;  %v9753_v21 = vsel %vm444_vm2, %v18674_v20, 0.0 }
0x1e3c   :  { %9754 = vadd.xlane.f32.xlu0 %v9753_v21  ;;  %v9756_v25 = vsel %vm444_vm2, %v18676_v44, 0.0  ;;  %v9087_v9 = vpop.permute.xlu1 %9086 }
0x1e3d   :  { %9757 = vadd.xlane.f32.xlu1 %v9756_v25  ;;  %v10502_v25 = vld [vmem:[#allocation6 + $0x100] sm:$0xff] }
0x1e3e   :  { %v18678_v26 = vpop.eup %18677 }
0x1e3f   :  { %v20201_v47 = vpop.eup %18679  ;;  %v9759_v11 = vsel %vm444_vm2, %v18678_v26, 0.0 }
0x1e40   :  { %9760 = vadd.xlane.f32.xlu0 %v9759_v11  ;;  %v9762_v55 = vsel %vm444_vm2, %v20201_v47, 0.0 }
0x1e41   :  { %9763 = vadd.xlane.f32.xlu1 %v9762_v55 }
0x1e42   :  { %v20206_v22 = vpop.eup %18681 }
0x1e43   :  { %v9765_v27 = vsel %vm444_vm2, %v20206_v22, 0.0 }
0x1e44   :  { %9766 = vadd.xlane.f32.xlu0 %v9765_v27 }
0x1e52   :  { %9092 = vrot.lane.b32.xlu1 %v20159_v30, %s18954_s28 }
0x1e5a   :  { %9090 = vrot.lane.b32.xlu0 %v20164_v32, %s18954_s28 }
0x1e68   :  { %v9749_v37 = vpop.xlane.xlu0 %9748 }
0x1e69   :  { %18683 = vrcp.f32 %v9749_v37 }
0x1e6d   :  { %v9746_v39 = vpop.xlane.xlu1 %9745 }
0x1e6e   :  { %18685 = vrcp.f32 %v9746_v39 }
0x1e73   :  { %v18684_v31 = vpop.eup %18683 }
0x1e74   :  { %v9777_v12 = vmul.f32 %v18684_v31, %v18668_v50 }
0x1e76   :  { %17609 = vmatmul.mubr.msk.f32.vlgmr.msra.gmra.mrb[114].mxu1 %vm444_vm2, %v9777_v12 }
0x1e77   :  { %17617 = vmatpush3.msra.mxu1 %v9081_v36  ;;  %17618 = vmatprep.mubr.msk.f32.mxu1 %vm18951_vm1, %v18950_v15 }
0x1e78   :  { %v18686_v30 = vpop.eup %18685  ;;  %17626 = vmatprep.subr.mxu1 %v18950_v15 }
0x1e79   :  { %v9776_v32 = vmul.f32 %v18686_v30, %v18670_v53 }
0x1e7b   :  { %17604 = vmatmul.mubr.msk.f32.vlgmr.msra.gmra.mrb[108].mxu0 %vm444_vm2, %v9776_v32 }
0x1e7c   :  { %17612 = vmatpush3.msra.mxu0 %v9079_v28  ;;  %17613 = vmatprep.mubr.msk.f32.mxu0 %vm18951_vm1, %v18950_v15 }
0x1e7d   :  { %17621 = vmatprep.subr.mxu0 %v18950_v15 }
0x1ec5   :  { %v9752_v61 = vpop.xlane.xlu1 %9751 }
0x1ec6   :  { %18687 = vrcp.f32 %v9752_v61 }
0x1ec9   :  { %v9755_v40 = vpop.xlane.xlu0 %9754 }
0x1eca   :  { %18689 = vrcp.f32 %v9755_v40  ;;  %v9758_v1 = vpop.xlane.xlu1 %9757 }
0x1ecb   :  { %18691 = vrcp.f32 %v9758_v1 }
0x1ecd   :  { %v9761_v41 = vpop.xlane.xlu0 %9760 }
0x1ece   :  { %18693 = vrcp.f32 %v9761_v41  ;;  %v9764_v45 = vpop.xlane.xlu1 %9763 }
0x1ecf   :  { %18695 = vrcp.f32 %v9764_v45 }
0x1ed0   :  { %v18688_v10 = vpop.eup %18687 }
0x1ed1   :  { %v9767_v2 = vpop.xlane.xlu0 %9766  ;;  %v9778_v50 = vmul.f32 %v18688_v10, %v18672_v19  ;;  %v10408_v19 = vld [vmem:[#allocation6 + $0xf0] sm:$0xff] }
0x1ed2   :  { %18697 = vrcp.f32 %v9767_v2  ;;  %v9093_v14 = vpop.permute.xlu1 %9092  ;;  %v18261_v6 = vpack.c.bf16 %v10409_v57, %v10408_v19 }
0x1ed3   :  { %17614 = vmatmul.mubr.msk.f32.vlgmr.msra.gmra.mrb[110].mxu0 %vm444_vm2, %v9778_v50 }
0x1ed4   :  { %v18690_v51 = vpop.eup %18689  ;;  %17622 = vmatpush3.msra.mxu0 %v9085_v54  ;;  %17623 = vmatprep.mubr.msk.f32.mxu0 %vm18951_vm1, %v18950_v15 }
0x1ed5   :  { %v18692_v53 = vpop.eup %18691  ;;  %17631 = vmatprep.subr.mxu0 %v18950_v15  ;;  %v9779_v48 = vmul.f32 %v18690_v51, %v18674_v20  ;;  %v9091_v59 = vpop.permute.xlu0 %9090 }
0x1ed6   :  { %v9780_v60 = vmul.f32 %v18692_v53, %v18676_v44 }
0x1ed7   :  { %17619 = vmatmul.mubr.msk.f32.vlgmr.msra.gmra.mrb[116].mxu1 %vm444_vm2, %v9779_v48 }
0x1ed8   :  { %v18694_v62 = vpop.eup %18693  ;;  %17624 = vmatmul.mubr.msk.f32.vlgmr.msra.gmra.mrb[112].mxu0 %vm444_vm2, %v9780_v60  ;;  %17627 = vmatpush3.msra.mxu1 %v9087_v9  ;;  %v10589_v60 = vld [vmem:[#allocation6 + $0x128] sm:$0xff] }
0x1ed9   :  { %v18696_v13 = vpop.eup %18695  ;;  %17632 = vmatpush3.msra.mxu0 %v9091_v59  ;;  %17628 = vmatprep.mubr.msk.f32.mxu1 %vm18951_vm1, %v18950_v15  ;;  %v9781_v4 = vmul.f32 %v18694_v62, %v18678_v26  ;;  %v10503_v26 = vld [vmem:[#allocation6 + $0x108] sm:$0xff] }
0x1eda   :  { %17636 = vmatprep.subr.mxu1 %v18950_v15  ;;  %17633 = vmatprep.mubr.msk.f32.mxu0 %vm18951_vm1, %v18950_v15  ;;  %v9782_v46 = vmul.f32 %v18696_v13, %v20201_v47  ;;  %v10504_v47 = vld [vmem:[#allocation6 + $0x110] sm:$0xff]  ;;  %v18265_v55 = vpack.c.bf16 %v10503_v26, %v10502_v25  ;;  %v10681_v13 = vld [vmem:[#allocation6 + $0x148] sm:$0xff] }
0x1edb   :  { %17629 = vmatmul.mubr.msk.f32.vlgmr.msra.gmra.mrb[118].mxu1 %vm444_vm2, %v9781_v4  ;;  %18258 = vmatprep.subr.bf16.mxu0 %v18257_v18 }
0x1edc   :  { %v18698_v24 = vpop.eup %18697  ;;  %17637 = vmatpush3.msra.mxu1 %v9093_v14  ;;  %17634 = vmatmul.mubr.msk.f32.vlgmr.msra.gmra.mrb[114].mxu0 %vm444_vm2, %v9782_v46  ;;  %v10590_v46 = vld [vmem:[#allocation6 + $0x130] sm:$0xff]  ;;  %v10591_v14 = vld [vmem:[#allocation6 + $0x138] sm:$0xff] }
0x1edd   :  { %17638 = vmatprep.mubr.msk.f32.mxu1 %vm18951_vm1, %v18950_v15  ;;  %v9783_v5 = vmul.f32 %v18698_v24, %v20206_v22  ;;  %18260 = vmatpush3.bf16.msra.mxu0 %v18257_v18  ;;  %v10505_v22 = vld [vmem:[#allocation6 + $0x118] sm:$0xff]  ;;  %v10682_v24 = vld [vmem:[#allocation6 + $0x150] sm:$0xff]  ;;  %v16258_v18 = vld [vmem:[#allocation7 + $0x7] ss:$0 sm:$0xff] }
0x1ede   :  { %18262 = vmatprep.subr.bf16.mxu0 %v18261_v6  ;;  %v18269_v36 = vpack.c.bf16 %v10505_v22, %v10504_v47  ;;  %18266 = vmatprep.subr.bf16.mxu1 %v18265_v55  ;;  %v16264_v47 = vld [vmem:[#allocation7 + $0x9] ss:$0 sm:$0xff] }
0x1edf   :  { %17639 = vmatmul.mubr.msk.f32.vlgmr.msra.gmra.mrb[120].mxu1 %vm444_vm2, %v9783_v5  ;;  %v18277_v5 = vpack.c.bf16 %v10591_v14, %v10590_v46 }
0x1ee0   :  { %17660 = vmatprep.mubr.msk.f32.mxu1 %vm129_vm0, %v18796_v7  ;;  %18268 = vmatpush3.bf16.msra.mxu1 %v18265_v55 }
0x1ee1   :  { %18264 = vmatpush3.bf16.msra.mxu0 %v18261_v6  ;;  %18270 = vmatprep.subr.bf16.mxu1 %v18269_v36 }
0x1ee4   :  { %18272 = vmatpush3.bf16.msra.mxu1 %v18269_v36 }
0x1ee7   :  { %17661 = vmatmul.mubr.msk.f32.vlgmr.msra.gmra.mrb[122].mxu1 %vm129_vm0, %v18796_v7  ;;  %v10683_v7 = vld [vmem:[#allocation6 + $0x158] sm:$0xff] }
0x1f49   :  { %v9926_v8 = vpop.f32.mrb[114].mxu1 }
0x1f4a   :  { %v17610_v34 = vpop.f32.mrb[115].mxu1  ;;  %v10369_v10 = vadd.f32 %v9926_v8, %v20082_v0  ;;  %v10680_v0 = vld [vmem:[#allocation6 + $0x140] sm:$0xff]  ;;  %v18285_v8 = vpack.c.bf16 %v10683_v7, %v10682_v24 }
0x1f4b   :  { %v18281_v4 = vpack.c.bf16 %v10681_v13, %v10680_v0  ;;  %v16261_v34 = vld [vmem:[#allocation7 + $0x8] ss:$0 sm:$0xff] }
0x1f4d   :  { %18282 = vmatprep.subr.bf16.mxu1 %v18281_v4 }
0x1f4e   :  { %v9853_v42 = vpop.f32.mrb[108].mxu0  ;;  %18284 = vmatpush3.bf16.msra.mxu1 %v18281_v4 }
0x1f4f   :  { %v17605_v17 = vpop.f32.mrb[109].mxu0  ;;  %v10368_v41 = vadd.f32 %v9853_v42, %v20084_v35  ;;  %v10588_v35 = vld [vmem:[#allocation6 + $0x120] sm:$0xff]  ;;  %18286 = vmatprep.subr.bf16.mxu1 %v18285_v8 }
0x1f50   :  { %v18273_v62 = vpack.c.bf16 %v10589_v60, %v10588_v35 }
0x1f52   :  { %18274 = vmatprep.subr.bf16.mxu0 %v18273_v62  ;;  %18288 = vmatpush3.bf16.msra.mxu1 %v18285_v8 }
0x1f53   :  { %17690 = vmatprep.subr.mxu1 %v18950_v15 }
0x1fa6   :  { %v9999_v20 = vpop.f32.mrb[110].mxu0 }
0x1fa7   :  { %v10370_v44 = vadd.f32 %v9999_v20, %v20126_v58  ;;  %v17615_v21 = vpop.f32.mrb[111].mxu0 }
0x1fa9   :  { %10378 = vrot.lane.b32.xlu0 %v10370_v44, %s18941_s22 }
0x1faa   :  { %v10072_v11 = vpop.f32.mrb[116].mxu1 }
0x1fab   :  { %v10371_v27 = vadd.f32 %v10072_v11, %v20124_v56  ;;  %v10145_v28 = vpop.f32.mrb[112].mxu0  ;;  %v17620_v54 = vpop.f32.mrb[117].mxu1 }
0x1fac   :  { %v10372_v37 = vadd.f32 %v10145_v28, %v20130_v38  ;;  %v17625_v9 = vpop.f32.mrb[113].mxu0 }
0x1fad   :  { %10380 = vrot.lane.b32.xlu1 %v10371_v27, %s18941_s22 }
0x1fae   :  { %10386 = vrot.lane.b32.xlu0 %v10372_v37, %s18942_s1  ;;  %v10218_v58 = vpop.f32.mrb[118].mxu1 }
0x1faf   :  { %v10373_v39 = vadd.f32 %v10218_v58, %v20128_v23  ;;  %v17630_v31 = vpop.f32.mrb[119].mxu1  ;;  %v10291_v12 = vpop.f32.mrb[114].mxu0 }
0x1fb0   :  { %v10374_v56 = vadd.f32 %v10291_v12, %v20168_v33  ;;  %v17635_v30 = vpop.f32.mrb[115].mxu0 }
0x1fb1   :  { %10388 = vrot.lane.b32.xlu1 %v10373_v39, %s18942_s1 }
0x1fb2   :  { %v10364_v38 = vpop.f32.mrb[120].mxu1  ;;  %10394 = vrot.lane.b32.xlu0 %v10374_v56, %s18948_s21 }
0x1fb3   :  { %v10375_v32 = vadd.f32 %v10364_v38, %v20161_v16  ;;  %v17640_v61 = vpop.f32.mrb[121].mxu1  ;;  %v16267_v38 = vld [vmem:[#allocation7 + $0xa] ss:$0 sm:$0xff] }
0x1fb5   :  { %10396 = vrot.lane.b32.xlu1 %v10375_v32, %s18948_s21 }
0x1fba   :  { %v17662_v42 = vpop.f32.mrb[122].mxu1 }
0x1fbb   :  { %v20269_v17 = vadd.f32 %v17662_v42, %v16261_v34  ;;  %v10579_v43 = vpop.f32.mrb[123].mxu1 }
0x1fbc   :  { %v20271_v29 = vadd.f32 %v16261_v34, %v10579_v43 }
0x1fbd   :  { %10770 = vrot.lane.b32.xlu1 %v20269_v17, %s18952_s26 }
0x1fbe   :  { %10768 = vrot.lane.b32.xlu0 %v20271_v29, %s18952_s26 }
0x1fc1   :  { %10776 = vrot.lane.b32.xlu1 %v20269_v17, %s18953_s27 }
0x1fc2   :  { %10774 = vrot.lane.b32.xlu0 %v20271_v29, %s18953_s27 }
0x201b   :  { %v10379_v40 = vpop.permute.xlu0 %10378 }
0x201c   :  { %v10400_v33 = vsel %vm444_vm2, %v10368_v41, %v10379_v40 }
0x201f   :  { %v10381_v23 = vpop.permute.xlu1 %10380 }
0x2020   :  { %v10387_v1 = vpop.permute.xlu0 %10386  ;;  %v10401_v51 = vsel %vm444_vm2, %v10369_v10, %v10381_v23 }
0x2021   :  { %v10402_v2 = vsel %vm1751_vm3, %v10400_v33, %v10387_v1 }
0x2023   :  { %v10389_v45 = vpop.permute.xlu1 %10388 }
0x2024   :  { %v10395_v50 = vpop.permute.xlu0 %10394  ;;  %v10403_v53 = vsel %vm1751_vm3, %v10401_v51, %v10389_v45 }
0x2025   :  { %v10404_v16 = vsel %vm1754_vm4, %v10402_v2, %v10395_v50 }
0x2026   :  { %17649 = vmatprep.mubr.msk.f32.mxu0 %vm129_vm0, %v10404_v16 }
0x2027   :  { %v10397_v48 = vpop.permute.xlu1 %10396 }
0x2028   :  { %v10405_v59 = vsel %vm1754_vm4, %v10403_v53, %v10397_v48 }
0x2029   :  { %17650 = vmatmul.mubr.msk.f32.vlgmr.msra.gmra.mrb[116].mxu0 %vm129_vm0, %v10405_v59 }
0x202a   :  { %18276 = vmatpush3.bf16.msra.mxu0 %v18273_v62 }
0x202b   :  { %18278 = vmatprep.subr.bf16.mxu0 %v18277_v5 }
0x202e   :  { %18280 = vmatpush3.bf16.msra.mxu0 %v18277_v5 }
0x202f   :  { %17685 = vmatprep.subr.mxu0 %v18950_v15  ;;  %v20319_v36 = vpop.permute.xlu1 %10770 }
0x2030   :  { %v20321_v37 = vpop.permute.xlu0 %10768 }
0x2033   :  { %v20323_v9 = vpop.permute.xlu1 %10776 }
0x2034   :  { %v20325_v58 = vpop.permute.xlu0 %10774 }
0x20fc   :  { %v17651_v19 = vpop.f32.mrb[116].mxu0 }
0x20fd   :  { %v10495_v57 = vadd.f32 %v17651_v19, %v16258_v18  ;;  %v10489_v6 = vpop.f32.mrb[117].mxu0 }
0x20fe   :  { %v10490_v20 = vadd.f32 %v16258_v18, %v10489_v6 }
0x20ff   :  { %v10499_v44 = vmax.f32 %v10495_v57, 0.0 }
0x2100   :  { %v10498_v21 = vmax.f32 %v10490_v20, 0.0 }
0x2101   :  { %v20283_v26 = vadd.f32 %v10499_v44, %v10405_v59 }
0x2102   :  { %v20281_v25 = vadd.f32 %v10498_v21, %v10404_v16 }
0x2104   :  { %17671 = vmatprep.mubr.msk.f32.mxu0 %vm129_vm0, %v20281_v25  ;;  %17682 = vmatprep.mubr.msk.f32.mxu1 %vm129_vm0, %v20281_v25 }
0x2105   :  { %17672 = vmatmul.mubr.msk.f32.vlgmr.msra.gmra.mrb[118].mxu0 %vm129_vm0, %v20283_v26  ;;  %17683 = vmatmul.mubr.msk.f32.vlgmr.msra.gmra.mrb[124].mxu1 %vm129_vm0, %v20283_v26 }
0x2106   :  { %17692 = vmatprep.mubr.msk.f32.mxu1 %vm18951_vm1, %v18950_v15  ;;  %17687 = vmatprep.mubr.msk.f32.mxu0 %vm18951_vm1, %v18950_v15 }
0x21d8   :  { %v17673_v11 = vpop.f32.mrb[118].mxu0  ;;  %v17684_v55 = vpop.f32.mrb[124].mxu1 }
0x21d9   :  { %v10677_v22 = vadd.f32 %v17673_v11, %v16264_v47  ;;  %v10671_v27 = vpop.f32.mrb[119].mxu0  ;;  %v10757_v28 = vpop.f32.mrb[125].mxu1  ;;  %v20354_v61 = vadd.f32 %v17684_v55, %v16267_v38 }
0x21da   :  { %v10672_v54 = vadd.f32 %v16264_v47, %v10671_v27  ;;  %v20359_v23 = vadd.f32 %v16267_v38, %v10757_v28 }
0x21db   :  { %10790 = vrot.lane.b32.xlu1 %v10677_v22, %s18952_s26  ;;  %17691 = vmatpush3.xpose.msk.msra.mxu1 %vm444_vm2, %v10677_v22 }
0x21dc   :  { %10788 = vrot.lane.b32.xlu0 %v10672_v54, %s18952_s26  ;;  %17686 = vmatpush3.xpose.msk.msra.mxu0 %vm444_vm2, %v10672_v54 }
0x21dd   :  { %17700 = vmatprep.subr.mxu1 %v18950_v15  ;;  %17695 = vmatprep.subr.mxu0 %v18950_v15 }
0x21de   :  { %17693 = vmatmul.mubr.msk.f32.vlgmr.msra.gmra.mrb[126].mxu1 %vm444_vm2, %v20269_v17 }
0x21df   :  { %10794 = vrot.lane.b32.xlu1 %v10677_v22, %s18953_s27  ;;  %17688 = vmatmul.mubr.msk.f32.vlgmr.msra.gmra.mrb[120].mxu0 %vm444_vm2, %v20271_v29 }
0x21e0   :  { %10792 = vrot.lane.b32.xlu0 %v10672_v54, %s18953_s27  ;;  %17702 = vmatprep.mubr.msk.f32.mxu1 %vm18951_vm1, %v18950_v15 }
0x21e1   :  { %17697 = vmatprep.mubr.msk.f32.mxu0 %vm18951_vm1, %v18950_v15 }
0x21e3   :  { %10798 = vrot.lane.b32.xlu1 %v10677_v22, %s18954_s28 }
0x21e4   :  { %10796 = vrot.lane.b32.xlu0 %v10672_v54, %s18954_s28 }
0x21e7   :  { %10782 = vrot.lane.b32.xlu1 %v20269_v17, %s18954_s28 }
0x21e8   :  { %10780 = vrot.lane.b32.xlu0 %v20271_v29, %s18954_s28 }
0x224d   :  { %v10791_v39 = vpop.permute.xlu1 %10790 }
0x224e   :  { %17701 = vmatpush3.xpose.msk.msra.mxu1 %vm444_vm2, %v10791_v39  ;;  %v10789_v31 = vpop.permute.xlu0 %10788 }
0x224f   :  { %17696 = vmatpush3.xpose.msk.msra.mxu0 %vm444_vm2, %v10789_v31  ;;  %17710 = vmatprep.subr.mxu1 %v18950_v15 }
0x2250   :  { %17705 = vmatprep.subr.mxu0 %v18950_v15 }
0x2251   :  { %v10795_v12 = vpop.permute.xlu1 %10794  ;;  %17703 = vmatmul.mubr.msk.f32.vlgmr.msra.gmra.mrb[128].mxu1 %vm444_vm2, %v20319_v36 }
0x2252   :  { %17711 = vmatpush3.xpose.msk.msra.mxu1 %vm444_vm2, %v10795_v12  ;;  %v10793_v56 = vpop.permute.xlu0 %10792  ;;  %17698 = vmatmul.mubr.msk.f32.vlgmr.msra.gmra.mrb[122].mxu0 %vm444_vm2, %v20321_v37 }
0x2253   :  { %17706 = vmatpush3.xpose.msk.msra.mxu0 %vm444_vm2, %v10793_v56  ;;  %17712 = vmatprep.mubr.msk.f32.mxu1 %vm18951_vm1, %v18950_v15 }
0x2254   :  { %17707 = vmatprep.mubr.msk.f32.mxu0 %vm18951_vm1, %v18950_v15  ;;  %17720 = vmatprep.subr.mxu1 %v18950_v15 }
0x2255   :  { %v10799_v30 = vpop.permute.xlu1 %10798  ;;  %17713 = vmatmul.mubr.msk.f32.vlgmr.msra.gmra.mrb[130].mxu1 %vm444_vm2, %v20323_v9  ;;  %17715 = vmatprep.subr.mxu0 %v18950_v15 }
0x2256   :  { %17721 = vmatpush3.xpose.msk.msra.mxu1 %vm444_vm2, %v10799_v30  ;;  %v10797_v32 = vpop.permute.xlu0 %10796  ;;  %17708 = vmatmul.mubr.msk.f32.vlgmr.msra.gmra.mrb[124].mxu0 %vm444_vm2, %v20325_v58 }
0x2257   :  { %17716 = vmatpush3.xpose.msk.msra.mxu0 %vm444_vm2, %v10797_v32  ;;  %17722 = vmatprep.mubr.msk.f32.mxu1 %vm18951_vm1, %v18950_v15 }
0x2258   :  { %17730 = vmatprep.subr.mxu1 %v18950_v15  ;;  %17717 = vmatprep.mubr.msk.f32.mxu0 %vm18951_vm1, %v18950_v15 }
0x2259   :  { %v20356_v40 = vpop.permute.xlu1 %10782  ;;  %17725 = vmatprep.subr.mxu0 %v18950_v15 }
0x225a   :  { %17723 = vmatmul.mubr.msk.f32.vlgmr.msra.gmra.mrb[132].mxu1 %vm444_vm2, %v20356_v40  ;;  %v20363_v1 = vpop.permute.xlu0 %10780 }
0x225b   :  { %17731 = vmatpush3.msra.mxu1 %v20354_v61  ;;  %17718 = vmatmul.mubr.msk.f32.vlgmr.msra.gmra.mrb[126].mxu0 %vm444_vm2, %v20363_v1 }
0x225c   :  { %17726 = vmatpush3.msra.mxu0 %v20359_v23  ;;  %17732 = vmatprep.mubr.msk.f32.mxu1 %vm18951_vm1, %v18950_v15 }
0x225d   :  { %17740 = vmatprep.subr.mxu1 %v18950_v15  ;;  %17727 = vmatprep.mubr.msk.f32.mxu0 %vm18951_vm1, %v18950_v15 }
0x225e   :  { %17735 = vmatprep.subr.mxu0 %v18950_v15 }
0x22b1   :  { %v10964_v41 = vpop.f32.mrb[126].mxu1 }
0x22b2   :  { %v11413_v33 = vmul.f32 0.17677669, %v10964_v41  ;;  %v10890_v45 = vpop.f32.mrb[120].mxu0  ;;  %v17694_v10 = vpop.f32.mrb[127].mxu1 }
0x22b3   :  { %v11412_v2 = vmul.f32 0.17677669, %v10890_v45  ;;  %v17689_v50 = vpop.f32.mrb[121].mxu0 }
0x22b4   :  { %v11423_v16 = vsel %vm444_vm2, %v11413_v33, -inf }
0x22b5   :  { %11424 = vmax.xlane.f32.xlu1 %v11423_v16  ;;  %v11420_v51 = vsel %vm444_vm2, %v11412_v2, -inf }
0x22b6   :  { %11421 = vmax.xlane.f32.xlu0 %v11420_v51 }
0x2324   :  { %v11112_v53 = vpop.f32.mrb[128].mxu1 }
0x2325   :  { %v11038_v48 = vpop.f32.mrb[122].mxu0  ;;  %v17704_v59 = vpop.f32.mrb[129].mxu1  ;;  %v11415_v62 = vmul.f32 0.17677669, %v11112_v53 }
0x2326   :  { %v11414_v35 = vmul.f32 0.17677669, %v11038_v48  ;;  %v17699_v60 = vpop.f32.mrb[123].mxu0 }
0x2327   :  { %v11429_v7 = vsel %vm444_vm2, %v11415_v62, -inf }
0x2328   :  { %v11260_v0 = vpop.f32.mrb[130].mxu1  ;;  %v11426_v13 = vsel %vm444_vm2, %v11414_v35, -inf }
0x2329   :  { %v17714_v4 = vpop.f32.mrb[131].mxu1  ;;  %11427 = vmax.xlane.f32.xlu0 %v11426_v13  ;;  %v11186_v46 = vpop.f32.mrb[124].mxu0  ;;  %v11417_v5 = vmul.f32 0.17677669, %v11260_v0 }
0x232a   :  { %v11416_v14 = vmul.f32 0.17677669, %v11186_v46  ;;  %v17709_v24 = vpop.f32.mrb[125].mxu0 }
0x232b   :  { %v11435_v6 = vsel %vm444_vm2, %v11417_v5, -inf }
0x232c   :  { %v11432_v8 = vsel %vm444_vm2, %v11416_v14, -inf }
0x232d   :  { %v11408_v34 = vpop.f32.mrb[132].mxu1  ;;  %11430 = vmax.xlane.f32.xlu0 %v11429_v7  ;;  %11433 = vmax.xlane.f32.xlu1 %v11432_v8 }
0x232e   :  { %v11334_v42 = vpop.f32.mrb[126].mxu0  ;;  %v17724_v43 = vpop.f32.mrb[133].mxu1  ;;  %v11419_v57 = vmul.f32 0.17677669, %v11408_v34 }
0x232f   :  { %v11418_v18 = vmul.f32 0.17677669, %v11334_v42  ;;  %v17719_v19 = vpop.f32.mrb[127].mxu0 }
0x2330   :  { %v11441_v44 = vsel %vm444_vm2, %v11419_v57, -inf }
0x2331   :  { %11436 = vmax.xlane.f32.xlu0 %v11435_v6  ;;  %v11438_v20 = vsel %vm444_vm2, %v11418_v18, -inf }
0x2332   :  { %11439 = vmax.xlane.f32.xlu1 %v11438_v20 }
0x2335   :  { %11442 = vmax.xlane.f32.xlu0 %v11441_v44 }
0x2342   :  { %v11425_v21 = vpop.xlane.xlu1 %11424 }
0x2343   :  { %10802 = vrot.lane.b32.xlu1 %v20359_v23, %s18952_s26  ;;  %v11445_v47 = vsub.f32 %v11413_v33, %v11425_v21  ;;  %v11422_v11 = vpop.xlane.xlu0 %11421 }
0x2344   :  { %v11444_v22 = vsub.f32 %v11412_v2, %v11422_v11 }
0x2345   :  { %v11454_v55 = vmul.f32 1.442695, %v11445_v47 }
0x2346   :  { %v11452_v27 = vmul.f32 1.442695, %v11444_v22 }
0x2347   :  { %10808 = vrot.lane.b32.xlu1 %v20359_v23, %s18953_s27  ;;  %18699 = vpow2.f32 %v11454_v55 }
0x2348   :  { %18701 = vpow2.f32 %v11452_v27 }
0x234b   :  { %10804 = vrot.lane.b32.xlu0 %v20354_v61, %s18952_s26  ;;  %10810 = vrot.lane.b32.xlu1 %v20354_v61, %s18953_s27 }
0x2351   :  { %v18700_v28 = vpop.eup %18699 }
0x2352   :  { %v11471_v54 = vsel %vm444_vm2, %v18700_v28, 0.0  ;;  %v18702_v39 = vpop.eup %18701 }
0x2353   :  { %v11468_v31 = vsel %vm444_vm2, %v18702_v39, 0.0 }
0x236a   :  { %11472 = vadd.xlane.f32.xlu0 %v11471_v54 }
0x236f   :  { %11469 = vadd.xlane.f32.xlu1 %v11468_v31 }
0x23b6   :  { %v11428_v12 = vpop.xlane.xlu0 %11427 }
0x23b7   :  { %v11446_v56 = vsub.f32 %v11414_v35, %v11428_v12 }
0x23b9   :  { %v11456_v30 = vmul.f32 1.442695, %v11446_v56 }
0x23ba   :  { %v11431_v38 = vpop.xlane.xlu0 %11430  ;;  %v11434_v32 = vpop.xlane.xlu1 %11433 }
0x23bb   :  { %18703 = vpow2.f32 %v11456_v30  ;;  %v11447_v41 = vsub.f32 %v11415_v62, %v11431_v38  ;;  %v11448_v33 = vsub.f32 %v11416_v14, %v11434_v32  ;;  %v12226_v32 = vld [vmem:[#allocation6 + $0x180] sm:$0xff] }
0x23bd   :  { %v11458_v45 = vmul.f32 1.442695, %v11447_v41  ;;  %v11460_v10 = vmul.f32 1.442695, %v11448_v33  ;;  %v12227_v41 = vld [vmem:[#allocation6 + $0x188] sm:$0xff] }
0x23be   :  { %v11437_v2 = vpop.xlane.xlu0 %11436 }
0x23bf   :  { %18705 = vpow2.f32 %v11458_v45  ;;  %v11449_v50 = vsub.f32 %v11417_v5, %v11437_v2  ;;  %v11440_v16 = vpop.xlane.xlu1 %11439  ;;  %v18297_v2 = vpack.c.bf16 %v12227_v41, %v12226_v32 }
0x23c0   :  { %18707 = vpow2.f32 %v11460_v10  ;;  %v11450_v51 = vsub.f32 %v11418_v18, %v11440_v16  ;;  %v12228_v16 = vld [vmem:[#allocation6 + $0x190] sm:$0xff] }
0x23c1   :  { %v11462_v53 = vmul.f32 1.442695, %v11449_v50 }
0x23c2   :  { %v11464_v48 = vmul.f32 1.442695, %v11450_v51  ;;  %v11443_v59 = vpop.xlane.xlu0 %11442  ;;  %v12229_v51 = vld [vmem:[#allocation6 + $0x198] sm:$0xff] }
0x23c3   :  { %18709 = vpow2.f32 %v11462_v53  ;;  %v11451_v60 = vsub.f32 %v11419_v57, %v11443_v59  ;;  %v10803_v43 = vpop.permute.xlu1 %10802 }
0x23c4   :  { %18711 = vpow2.f32 %v11464_v48 }
0x23c5   :  { %v18704_v35 = vpop.eup %18703  ;;  %v11466_v0 = vmul.f32 1.442695, %v11451_v60  ;;  %v18301_v60 = vpack.c.bf16 %v12229_v51, %v12228_v16  ;;  %v12314_v16 = vld [vmem:[#allocation6 + $0x1b0] sm:$0xff]  ;;  %v12315_v51 = vld [vmem:[#allocation6 + $0x1b8] sm:$0xff] }
0x23c6   :  { %v11474_v13 = vsel %vm444_vm2, %v18704_v35, 0.0  ;;  %v10805_v19 = vpop.permute.xlu0 %10804 }
0x23c7   :  { %18713 = vpow2.f32 %v11466_v0  ;;  %11475 = vadd.xlane.f32.xlu1 %v11474_v13  ;;  %v10809_v18 = vpop.permute.xlu1 %10808 }
0x23c9   :  { %v18706_v62 = vpop.eup %18705 }
0x23ca   :  { %v18708_v4 = vpop.eup %18707  ;;  %v11477_v46 = vsel %vm444_vm2, %v18706_v62, 0.0 }
0x23cb   :  { %11478 = vadd.xlane.f32.xlu0 %v11477_v46  ;;  %v11480_v14 = vsel %vm444_vm2, %v18708_v4, 0.0  ;;  %v10811_v6 = vpop.permute.xlu1 %10810  ;;  %v12131_v46 = vld [vmem:[#allocation6 + $0x168] sm:$0xff] }
0x23cc   :  { %11481 = vadd.xlane.f32.xlu1 %v11480_v14 }
0x23cd   :  { %v18710_v24 = vpop.eup %18709 }
0x23ce   :  { %v20396_v5 = vpop.eup %18711  ;;  %v11483_v7 = vsel %vm444_vm2, %v18710_v24, 0.0 }
0x23cf   :  { %11484 = vadd.xlane.f32.xlu0 %v11483_v7  ;;  %v11486_v8 = vsel %vm444_vm2, %v20396_v5, 0.0 }
0x23d0   :  { %11487 = vadd.xlane.f32.xlu1 %v11486_v8 }
0x23d1   :  { %v20401_v34 = vpop.eup %18713 }
0x23d2   :  { %v11489_v42 = vsel %vm444_vm2, %v20401_v34, 0.0 }
0x23d3   :  { %11490 = vadd.xlane.f32.xlu0 %v11489_v42 }
0x23e1   :  { %10816 = vrot.lane.b32.xlu1 %v20354_v61, %s18954_s28 }
0x23e9   :  { %10814 = vrot.lane.b32.xlu0 %v20359_v23, %s18954_s28 }
0x23f7   :  { %v11473_v57 = vpop.xlane.xlu0 %11472 }
0x23f8   :  { %18715 = vrcp.f32 %v11473_v57 }
0x23fc   :  { %v11470_v20 = vpop.xlane.xlu1 %11469 }
0x23fd   :  { %18717 = vrcp.f32 %v11470_v20 }
0x2402   :  { %v18716_v44 = vpop.eup %18715 }
0x2403   :  { %v11501_v21 = vmul.f32 %v18716_v44, %v18700_v28 }
0x2405   :  { %17733 = vmatmul.mubr.msk.f32.vlgmr.msra.gmra.mrb[134].mxu1 %vm444_vm2, %v11501_v21 }
0x2406   :  { %17741 = vmatpush3.msra.mxu1 %v10805_v19  ;;  %17742 = vmatprep.mubr.msk.f32.mxu1 %vm18951_vm1, %v18950_v15 }
0x2407   :  { %v18718_v61 = vpop.eup %18717  ;;  %17750 = vmatprep.subr.mxu1 %v18950_v15 }
0x2408   :  { %v11500_v23 = vmul.f32 %v18718_v61, %v18702_v39 }
0x240a   :  { %17728 = vmatmul.mubr.msk.f32.vlgmr.msra.gmra.mrb[128].mxu0 %vm444_vm2, %v11500_v23 }
0x240b   :  { %17736 = vmatpush3.msra.mxu0 %v10803_v43  ;;  %17737 = vmatprep.mubr.msk.f32.mxu0 %vm18951_vm1, %v18950_v15 }
0x240c   :  { %17745 = vmatprep.subr.mxu0 %v18950_v15 }
0x2454   :  { %v11476_v47 = vpop.xlane.xlu1 %11475 }
0x2455   :  { %18719 = vrcp.f32 %v11476_v47  ;;  %v16297_v47 = vld [vmem:[#allocation7 + $0xc] ss:$0 sm:$0xff] }
0x2458   :  { %v11479_v11 = vpop.xlane.xlu0 %11478 }
0x2459   :  { %18721 = vrcp.f32 %v11479_v11  ;;  %v11482_v55 = vpop.xlane.xlu1 %11481 }
0x245a   :  { %18723 = vrcp.f32 %v11482_v55 }
0x245c   :  { %v11485_v22 = vpop.xlane.xlu0 %11484 }
0x245d   :  { %18725 = vrcp.f32 %v11485_v22  ;;  %v11488_v27 = vpop.xlane.xlu1 %11487 }
0x245e   :  { %18727 = vrcp.f32 %v11488_v27 }
0x245f   :  { %v18720_v28 = vpop.eup %18719 }
0x2460   :  { %v11502_v54 = vmul.f32 %v18720_v28, %v18704_v35  ;;  %v11491_v39 = vpop.xlane.xlu0 %11490 }
0x2461   :  { %18729 = vrcp.f32 %v11491_v39  ;;  %v10817_v53 = vpop.permute.xlu1 %10816 }
0x2462   :  { %17738 = vmatmul.mubr.msk.f32.vlgmr.msra.gmra.mrb[130].mxu0 %vm444_vm2, %v11502_v54 }
0x2463   :  { %v18722_v31 = vpop.eup %18721  ;;  %17746 = vmatpush3.msra.mxu0 %v10809_v18  ;;  %17747 = vmatprep.mubr.msk.f32.mxu0 %vm18951_vm1, %v18950_v15 }
0x2464   :  { %v18724_v12 = vpop.eup %18723  ;;  %v11503_v56 = vmul.f32 %v18722_v31, %v18706_v62  ;;  %17755 = vmatprep.subr.mxu0 %v18950_v15  ;;  %v10815_v38 = vpop.permute.xlu0 %10814 }
0x2465   :  { %v11504_v30 = vmul.f32 %v18724_v12, %v18708_v4  ;;  %v12130_v4 = vld [vmem:[#allocation6 + $0x160] sm:$0xff] }
0x2466   :  { %17743 = vmatmul.mubr.msk.f32.vlgmr.msra.gmra.mrb[136].mxu1 %vm444_vm2, %v11503_v56  ;;  %v18289_v14 = vpack.c.bf16 %v12131_v46, %v12130_v4 }
0x2467   :  { %v18726_v33 = vpop.eup %18725  ;;  %17748 = vmatmul.mubr.msk.f32.vlgmr.msra.gmra.mrb[132].mxu0 %vm444_vm2, %v11504_v30  ;;  %17751 = vmatpush3.msra.mxu1 %v10811_v6 }
0x2468   :  { %v18728_v45 = vpop.eup %18727  ;;  %v11505_v10 = vmul.f32 %v18726_v33, %v18710_v24  ;;  %17756 = vmatpush3.msra.mxu0 %v10815_v38  ;;  %17752 = vmatprep.mubr.msk.f32.mxu1 %vm18951_vm1, %v18950_v15  ;;  %v12132_v24 = vld [vmem:[#allocation6 + $0x170] sm:$0xff] }
0x2469   :  { %v11506_v50 = vmul.f32 %v18728_v45, %v20396_v5  ;;  %17760 = vmatprep.subr.mxu1 %v18950_v15  ;;  %17757 = vmatprep.mubr.msk.f32.mxu0 %vm18951_vm1, %v18950_v15  ;;  %v12133_v5 = vld [vmem:[#allocation6 + $0x178] sm:$0xff]  ;;  %v12313_v45 = vld [vmem:[#allocation6 + $0x1a8] sm:$0xff] }
0x246a   :  { %17753 = vmatmul.mubr.msk.f32.vlgmr.msra.gmra.mrb[138].mxu1 %vm444_vm2, %v11505_v10  ;;  %18290 = vmatprep.subr.bf16.mxu0 %v18289_v14  ;;  %v18293_v7 = vpack.c.bf16 %v12133_v5, %v12132_v24 }
0x246b   :  { %v18730_v48 = vpop.eup %18729  ;;  %17761 = vmatpush3.msra.mxu1 %v10817_v53  ;;  %17758 = vmatmul.mubr.msk.f32.vlgmr.msra.gmra.mrb[134].mxu0 %vm444_vm2, %v11506_v50  ;;  %v12406_v53 = vld [vmem:[#allocation6 + $0x1d0] sm:$0xff] }
0x246c   :  { %v11507_v59 = vmul.f32 %v18730_v48, %v20401_v34  ;;  %17762 = vmatprep.mubr.msk.f32.mxu1 %vm18951_vm1, %v18950_v15  ;;  %18298 = vmatprep.subr.bf16.mxu1 %v18297_v2  ;;  %v18309_v48 = vpack.c.bf16 %v12315_v51, %v12314_v16 }
0x246d   :  { %18292 = vmatpush3.bf16.msra.mxu0 %v18289_v14 }
0x246e   :  { %17763 = vmatmul.mubr.msk.f32.vlgmr.msra.gmra.mrb[140].mxu1 %vm444_vm2, %v11507_v59  ;;  %18294 = vmatprep.subr.bf16.mxu0 %v18293_v7  ;;  %v12407_v59 = vld [vmem:[#allocation6 + $0x1d8] sm:$0xff] }
0x246f   :  { %18300 = vmatpush3.bf16.msra.mxu1 %v18297_v2  ;;  %17784 = vmatprep.mubr.msk.f32.mxu1 %vm129_vm0, %v20281_v25  ;;  %v12405_v2 = vld [vmem:[#allocation6 + $0x1c8] sm:$0xff] }
0x2470   :  { %18302 = vmatprep.subr.bf16.mxu1 %v18301_v60 }
0x2471   :  { %18296 = vmatpush3.bf16.msra.mxu0 %v18293_v7  ;;  %v16300_v7 = vld [vmem:[#allocation7 + $0xd] ss:$0 sm:$0xff] }
0x2473   :  { %18304 = vmatpush3.bf16.msra.mxu1 %v18301_v60  ;;  %v18317_v60 = vpack.c.bf16 %v12407_v59, %v12406_v53 }
0x2476   :  { %17785 = vmatmul.mubr.msk.f32.vlgmr.msra.gmra.mrb[142].mxu1 %vm129_vm0, %v20283_v26 }
0x24d8   :  { %v11650_v35 = vpop.f32.mrb[134].mxu1 }
0x24d9   :  { %v17734_v0 = vpop.f32.mrb[135].mxu1  ;;  %v12093_v31 = vadd.f32 %v11650_v35, %v20269_v17  ;;  %v12404_v17 = vld [vmem:[#allocation6 + $0x1c0] sm:$0xff]  ;;  %v16294_v35 = vld [vmem:[#allocation7 + $0xb] ss:$0 sm:$0xff] }
0x24da   :  { %v18313_v50 = vpack.c.bf16 %v12405_v2, %v12404_v17 }
0x24dc   :  { %18314 = vmatprep.subr.bf16.mxu1 %v18313_v50 }
0x24dd   :  { %v11577_v13 = vpop.f32.mrb[128].mxu0  ;;  %18316 = vmatpush3.bf16.msra.mxu1 %v18313_v50 }
0x24de   :  { %v17729_v62 = vpop.f32.mrb[129].mxu0  ;;  %v12092_v28 = vadd.f32 %v11577_v13, %v20271_v29  ;;  %v12312_v29 = vld [vmem:[#allocation6 + $0x1a0] sm:$0xff]  ;;  %18318 = vmatprep.subr.bf16.mxu1 %v18317_v60 }
0x24df   :  { %v18305_v10 = vpack.c.bf16 %v12313_v45, %v12312_v29 }
0x24e1   :  { %18306 = vmatprep.subr.bf16.mxu0 %v18305_v10  ;;  %18320 = vmatpush3.bf16.msra.mxu1 %v18317_v60 }
0x24e2   :  { %17814 = vmatprep.subr.mxu1 %v18950_v15 }
0x2535   :  { %v11723_v8 = vpop.f32.mrb[130].mxu0 }
0x2536   :  { %v12094_v25 = vadd.f32 %v11723_v8, %v20321_v37  ;;  %v17739_v34 = vpop.f32.mrb[131].mxu0 }
0x2538   :  { %12102 = vrot.lane.b32.xlu0 %v12094_v25, %s18941_s22 }
0x2539   :  { %v11796_v26 = vpop.f32.mrb[136].mxu1 }
0x253a   :  { %v12095_v42 = vadd.f32 %v11796_v26, %v20319_v36  ;;  %v11869_v43 = vpop.f32.mrb[132].mxu0  ;;  %v17744_v18 = vpop.f32.mrb[137].mxu1 }
0x253b   :  { %v12096_v19 = vadd.f32 %v11869_v43, %v20325_v58  ;;  %v17749_v57 = vpop.f32.mrb[133].mxu0 }
0x253c   :  { %12104 = vrot.lane.b32.xlu1 %v12095_v42, %s18941_s22 }
0x253d   :  { %12110 = vrot.lane.b32.xlu0 %v12096_v19, %s18942_s1  ;;  %v11942_v6 = vpop.f32.mrb[138].mxu1 }
0x253e   :  { %v12097_v37 = vadd.f32 %v11942_v6, %v20323_v9  ;;  %v17754_v20 = vpop.f32.mrb[139].mxu1  ;;  %v12015_v44 = vpop.f32.mrb[134].mxu0 }
0x253f   :  { %v12098_v21 = vadd.f32 %v12015_v44, %v20363_v1  ;;  %v17759_v61 = vpop.f32.mrb[135].mxu0 }
0x2540   :  { %12112 = vrot.lane.b32.xlu1 %v12097_v37, %s18942_s1 }
0x2541   :  { %v12088_v36 = vpop.f32.mrb[140].mxu1  ;;  %12118 = vrot.lane.b32.xlu0 %v12098_v21, %s18948_s21 }
0x2542   :  { %v12099_v58 = vadd.f32 %v12088_v36, %v20356_v40  ;;  %v17764_v23 = vpop.f32.mrb[141].mxu1  ;;  %v16303_v36 = vld [vmem:[#allocation7 + $0xe] ss:$0 sm:$0xff] }
0x2544   :  { %12120 = vrot.lane.b32.xlu1 %v12099_v58, %s18948_s21 }
0x2549   :  { %v17786_v11 = vpop.f32.mrb[142].mxu1 }
0x254a   :  { %v20451_v55 = vadd.f32 %v17786_v11, %v16297_v47  ;;  %v12303_v9 = vpop.f32.mrb[143].mxu1 }
0x254b   :  { %v20453_v22 = vadd.f32 %v16297_v47, %v12303_v9 }
0x254c   :  { %12494 = vrot.lane.b32.xlu1 %v20451_v55, %s18952_s26 }
0x254d   :  { %12492 = vrot.lane.b32.xlu0 %v20453_v22, %s18952_s26 }
0x2550   :  { %12500 = vrot.lane.b32.xlu1 %v20451_v55, %s18953_s27 }
0x2551   :  { %12498 = vrot.lane.b32.xlu0 %v20453_v22, %s18953_s27 }
0x25aa   :  { %v12103_v40 = vpop.permute.xlu0 %12102 }
0x25ab   :  { %v12124_v54 = vsel %vm444_vm2, %v12092_v28, %v12103_v40 }
0x25ae   :  { %v12105_v1 = vpop.permute.xlu1 %12104 }
0x25af   :  { %v12111_v27 = vpop.permute.xlu0 %12110  ;;  %v12125_v38 = vsel %vm444_vm2, %v12093_v31, %v12105_v1 }
0x25b0   :  { %v12126_v12 = vsel %vm1751_vm3, %v12124_v54, %v12111_v27 }
0x25b2   :  { %v12113_v39 = vpop.permute.xlu1 %12112 }
0x25b3   :  { %v12119_v56 = vpop.permute.xlu0 %12118  ;;  %v12127_v32 = vsel %vm1751_vm3, %v12125_v38, %v12113_v39 }
0x25b4   :  { %v12128_v30 = vsel %vm1754_vm4, %v12126_v12, %v12119_v56 }
0x25b5   :  { %17773 = vmatprep.mubr.msk.f32.mxu0 %vm129_vm0, %v12128_v30 }
0x25b6   :  { %v12121_v41 = vpop.permute.xlu1 %12120 }
0x25b7   :  { %v12129_v33 = vsel %vm1754_vm4, %v12127_v32, %v12121_v41 }
0x25b8   :  { %17774 = vmatmul.mubr.msk.f32.vlgmr.msra.gmra.mrb[136].mxu0 %vm129_vm0, %v12129_v33 }
0x25b9   :  { %18308 = vmatpush3.bf16.msra.mxu0 %v18305_v10 }
0x25ba   :  { %18310 = vmatprep.subr.bf16.mxu0 %v18309_v48 }
0x25bd   :  { %18312 = vmatpush3.bf16.msra.mxu0 %v18309_v48 }
0x25be   :  { %17809 = vmatprep.subr.mxu0 %v18950_v15  ;;  %v20505_v18 = vpop.permute.xlu1 %12494 }
0x25bf   :  { %v20507_v19 = vpop.permute.xlu0 %12492 }
0x25c2   :  { %v20509_v57 = vpop.permute.xlu1 %12500 }
0x25c3   :  { %v20511_v6 = vpop.permute.xlu0 %12498 }
0x268b   :  { %v17775_v0 = vpop.f32.mrb[136].mxu0 }
0x268c   :  { %v12219_v13 = vadd.f32 %v17775_v0, %v16294_v35  ;;  %v12213_v62 = vpop.f32.mrb[137].mxu0 }
0x268d   :  { %v12214_v4 = vadd.f32 %v16294_v35, %v12213_v62 }
0x268e   :  { %v12223_v46 = vmax.f32 %v12219_v13, 0.0 }
0x268f   :  { %v12222_v14 = vmax.f32 %v12214_v4, 0.0 }
0x2690   :  { %v12225_v5 = vadd.f32 %v12223_v46, %v12129_v33 }
0x2691   :  { %v12224_v24 = vadd.f32 %v12222_v14, %v12128_v30 }
0x2693   :  { %17795 = vmatprep.mubr.msk.f32.mxu0 %vm129_vm0, %v12224_v24  ;;  %17806 = vmatprep.mubr.msk.f32.mxu1 %vm129_vm0, %v12224_v24 }
0x2694   :  { %17796 = vmatmul.mubr.msk.f32.vlgmr.msra.gmra.mrb[138].mxu0 %vm129_vm0, %v12225_v5  ;;  %17807 = vmatmul.mubr.msk.f32.vlgmr.msra.gmra.mrb[144].mxu1 %vm129_vm0, %v12225_v5 }
0x2695   :  { %17816 = vmatprep.mubr.msk.f32.mxu1 %vm18951_vm1, %v18950_v15  ;;  %17811 = vmatprep.mubr.msk.f32.mxu0 %vm18951_vm1, %v18950_v15 }
0x2767   :  { %v17797_v8 = vpop.f32.mrb[138].mxu0  ;;  %v17808_v25 = vpop.f32.mrb[144].mxu1 }
0x2768   :  { %v12401_v34 = vadd.f32 %v17797_v8, %v16300_v7  ;;  %v12395_v26 = vpop.f32.mrb[139].mxu0  ;;  %v12481_v42 = vpop.f32.mrb[145].mxu1  ;;  %v20540_v23 = vadd.f32 %v17808_v25, %v16303_v36 }
0x2769   :  { %v12396_v43 = vadd.f32 %v16300_v7, %v12395_v26  ;;  %v20545_v11 = vadd.f32 %v16303_v36, %v12481_v42 }
0x276a   :  { %12514 = vrot.lane.b32.xlu1 %v12401_v34, %s18952_s26  ;;  %17815 = vmatpush3.xpose.msk.msra.mxu1 %vm444_vm2, %v12401_v34 }
0x276b   :  { %12512 = vrot.lane.b32.xlu0 %v12396_v43, %s18952_s26  ;;  %17810 = vmatpush3.xpose.msk.msra.mxu0 %vm444_vm2, %v12396_v43 }
0x276c   :  { %17824 = vmatprep.subr.mxu1 %v18950_v15  ;;  %17819 = vmatprep.subr.mxu0 %v18950_v15 }
0x276d   :  { %17817 = vmatmul.mubr.msk.f32.vlgmr.msra.gmra.mrb[146].mxu1 %vm444_vm2, %v20451_v55 }
0x276e   :  { %12518 = vrot.lane.b32.xlu1 %v12401_v34, %s18953_s27  ;;  %17812 = vmatmul.mubr.msk.f32.vlgmr.msra.gmra.mrb[140].mxu0 %vm444_vm2, %v20453_v22 }
0x276f   :  { %12516 = vrot.lane.b32.xlu0 %v12396_v43, %s18953_s27  ;;  %17826 = vmatprep.mubr.msk.f32.mxu1 %vm18951_vm1, %v18950_v15 }
0x2770   :  { %17821 = vmatprep.mubr.msk.f32.mxu0 %vm18951_vm1, %v18950_v15 }
0x2772   :  { %12522 = vrot.lane.b32.xlu1 %v12401_v34, %s18954_s28 }
0x2773   :  { %12520 = vrot.lane.b32.xlu0 %v12396_v43, %s18954_s28 }
0x2776   :  { %12506 = vrot.lane.b32.xlu1 %v20451_v55, %s18954_s28 }
0x2777   :  { %12504 = vrot.lane.b32.xlu0 %v20453_v22, %s18954_s28 }
0x27dc   :  { %v12515_v37 = vpop.permute.xlu1 %12514 }
0x27dd   :  { %17825 = vmatpush3.xpose.msk.msra.mxu1 %vm444_vm2, %v12515_v37  ;;  %v12513_v20 = vpop.permute.xlu0 %12512 }
0x27de   :  { %17820 = vmatpush3.xpose.msk.msra.mxu0 %vm444_vm2, %v12513_v20  ;;  %17834 = vmatprep.subr.mxu1 %v18950_v15 }
0x27df   :  { %17829 = vmatprep.subr.mxu0 %v18950_v15 }
0x27e0   :  { %v12519_v44 = vpop.permute.xlu1 %12518  ;;  %17827 = vmatmul.mubr.msk.f32.vlgmr.msra.gmra.mrb[148].mxu1 %vm444_vm2, %v20505_v18 }
0x27e1   :  { %17835 = vmatpush3.xpose.msk.msra.mxu1 %vm444_vm2, %v12519_v44  ;;  %v12517_v21 = vpop.permute.xlu0 %12516  ;;  %17822 = vmatmul.mubr.msk.f32.vlgmr.msra.gmra.mrb[142].mxu0 %vm444_vm2, %v20507_v19 }
0x27e2   :  { %17830 = vmatpush3.xpose.msk.msra.mxu0 %vm444_vm2, %v12517_v21  ;;  %17836 = vmatprep.mubr.msk.f32.mxu1 %vm18951_vm1, %v18950_v15 }
0x27e3   :  { %17831 = vmatprep.mubr.msk.f32.mxu0 %vm18951_vm1, %v18950_v15  ;;  %17844 = vmatprep.subr.mxu1 %v18950_v15 }
0x27e4   :  { %v12523_v61 = vpop.permute.xlu1 %12522  ;;  %17837 = vmatmul.mubr.msk.f32.vlgmr.msra.gmra.mrb[150].mxu1 %vm444_vm2, %v20509_v57  ;;  %17839 = vmatprep.subr.mxu0 %v18950_v15 }
0x27e5   :  { %17845 = vmatpush3.xpose.msk.msra.mxu1 %vm444_vm2, %v12523_v61  ;;  %v12521_v58 = vpop.permute.xlu0 %12520  ;;  %17832 = vmatmul.mubr.msk.f32.vlgmr.msra.gmra.mrb[144].mxu0 %vm444_vm2, %v20511_v6 }
0x27e6   :  { %17840 = vmatpush3.xpose.msk.msra.mxu0 %vm444_vm2, %v12521_v58  ;;  %17846 = vmatprep.mubr.msk.f32.mxu1 %vm18951_vm1, %v18950_v15 }
0x27e7   :  { %17854 = vmatprep.subr.mxu1 %v18950_v15  ;;  %17841 = vmatprep.mubr.msk.f32.mxu0 %vm18951_vm1, %v18950_v15 }
0x27e8   :  { %v20542_v47 = vpop.permute.xlu1 %12506  ;;  %17849 = vmatprep.subr.mxu0 %v18950_v15 }
0x27e9   :  { %17847 = vmatmul.mubr.msk.f32.vlgmr.msra.gmra.mrb[152].mxu1 %vm444_vm2, %v20542_v47  ;;  %v20549_v9 = vpop.permute.xlu0 %12504 }
0x27ea   :  { %17855 = vmatpush3.msra.mxu1 %v20540_v23  ;;  %17842 = vmatmul.mubr.msk.f32.vlgmr.msra.gmra.mrb[146].mxu0 %vm444_vm2, %v20549_v9 }
0x27eb   :  { %17850 = vmatpush3.msra.mxu0 %v20545_v11  ;;  %17856 = vmatprep.mubr.msk.f32.mxu1 %vm18951_vm1, %v18950_v15 }
0x27ec   :  { %17864 = vmatprep.subr.mxu1 %v18950_v15  ;;  %17851 = vmatprep.mubr.msk.f32.mxu0 %vm18951_vm1, %v18950_v15 }
0x27ed   :  { %17859 = vmatprep.subr.mxu0 %v18950_v15 }
0x2840   :  { %v12688_v40 = vpop.f32.mrb[146].mxu1 }
0x2841   :  { %v13137_v1 = vmul.f32 0.17677669, %v12688_v40  ;;  %v12614_v27 = vpop.f32.mrb[140].mxu0  ;;  %v17818_v28 = vpop.f32.mrb[147].mxu1 }
0x2842   :  { %v13136_v54 = vmul.f32 0.17677669, %v12614_v27  ;;  %v17813_v39 = vpop.f32.mrb[141].mxu0 }
0x2843   :  { %v13147_v31 = vsel %vm444_vm2, %v13137_v1, -inf }
0x2844   :  { %13148 = vmax.xlane.f32.xlu1 %v13147_v31  ;;  %v13144_v12 = vsel %vm444_vm2, %v13136_v54, -inf }
0x2845   :  { %13145 = vmax.xlane.f32.xlu0 %v13144_v12 }
0x28b3   :  { %v12836_v56 = vpop.f32.mrb[148].mxu1 }
0x28b4   :  { %v12762_v30 = vpop.f32.mrb[142].mxu0  ;;  %v17828_v38 = vpop.f32.mrb[149].mxu1  ;;  %v13139_v33 = vmul.f32 0.17677669, %v12836_v56 }
0x28b5   :  { %v13138_v32 = vmul.f32 0.17677669, %v12762_v30  ;;  %v17823_v41 = vpop.f32.mrb[143].mxu0 }
0x28b6   :  { %v13153_v51 = vsel %vm444_vm2, %v13139_v33, -inf }
0x28b7   :  { %v12984_v29 = vpop.f32.mrb[150].mxu1  ;;  %v13150_v45 = vsel %vm444_vm2, %v13138_v32, -inf }
0x28b8   :  { %v17838_v10 = vpop.f32.mrb[151].mxu1  ;;  %13151 = vmax.xlane.f32.xlu0 %v13150_v45  ;;  %v12910_v17 = vpop.f32.mrb[144].mxu0  ;;  %v13141_v16 = vmul.f32 0.17677669, %v12984_v29 }
0x28b9   :  { %v13140_v2 = vmul.f32 0.17677669, %v12910_v17  ;;  %v17833_v50 = vpop.f32.mrb[145].mxu0 }
0x28ba   :  { %v13159_v62 = vsel %vm444_vm2, %v13141_v16, -inf }
0x28bb   :  { %v13156_v53 = vsel %vm444_vm2, %v13140_v2, -inf }
0x28bc   :  { %v13132_v48 = vpop.f32.mrb[152].mxu1  ;;  %13154 = vmax.xlane.f32.xlu0 %v13153_v51  ;;  %13157 = vmax.xlane.f32.xlu1 %v13156_v53 }
0x28bd   :  { %v13058_v59 = vpop.f32.mrb[146].mxu0  ;;  %v17848_v60 = vpop.f32.mrb[153].mxu1  ;;  %v13143_v13 = vmul.f32 0.17677669, %v13132_v48 }
0x28be   :  { %v13142_v35 = vmul.f32 0.17677669, %v13058_v59  ;;  %v17843_v0 = vpop.f32.mrb[147].mxu0 }
0x28bf   :  { %v13165_v46 = vsel %vm444_vm2, %v13143_v13, -inf }
0x28c0   :  { %13160 = vmax.xlane.f32.xlu0 %v13159_v62  ;;  %v13162_v4 = vsel %vm444_vm2, %v13142_v35, -inf }
0x28c1   :  { %13163 = vmax.xlane.f32.xlu1 %v13162_v4 }
0x28c4   :  { %13166 = vmax.xlane.f32.xlu0 %v13165_v46 }
0x28d1   :  { %v13149_v14 = vpop.xlane.xlu1 %13148 }
0x28d2   :  { %12526 = vrot.lane.b32.xlu1 %v20545_v11, %s18952_s26  ;;  %v13169_v24 = vsub.f32 %v13137_v1, %v13149_v14  ;;  %v13146_v5 = vpop.xlane.xlu0 %13145 }
0x28d3   :  { %v13168_v8 = vsub.f32 %v13136_v54, %v13146_v5 }
0x28d4   :  { %v13178_v7 = vmul.f32 1.442695, %v13169_v24 }
0x28d5   :  { %v13176_v25 = vmul.f32 1.442695, %v13168_v8 }
0x28d6   :  { %12532 = vrot.lane.b32.xlu1 %v20545_v11, %s18953_s27  ;;  %18731 = vpow2.f32 %v13178_v7 }
0x28d7   :  { %18733 = vpow2.f32 %v13176_v25 }
0x28da   :  { %12528 = vrot.lane.b32.xlu0 %v20540_v23, %s18952_s26  ;;  %12534 = vrot.lane.b32.xlu1 %v20540_v23, %s18953_s27 }
0x28e0   :  { %v18732_v34 = vpop.eup %18731 }
0x28e1   :  { %v13195_v26 = vsel %vm444_vm2, %v18732_v34, 0.0  ;;  %v18734_v42 = vpop.eup %18733 }
0x28e2   :  { %v13192_v43 = vsel %vm444_vm2, %v18734_v42, 0.0 }
0x28f9   :  { %13196 = vadd.xlane.f32.xlu0 %v13195_v26  ;;  %v18955_v26 = vmov 1966171168  }
0x28fe   :  { %13193 = vadd.xlane.f32.xlu1 %v13192_v43  ;;  %v13969_v43 = vlaneseq }
0x2900   :  { %vm16033_vm8 = vcmp.lt.s32.totalorder %v13969_v43, 384 }
0x2945   :  { %v13152_v37 = vpop.xlane.xlu0 %13151 }
0x2946   :  { %v13170_v20 = vsub.f32 %v13138_v32, %v13152_v37 }
0x2948   :  { %v13180_v44 = vmul.f32 1.442695, %v13170_v20 }
0x2949   :  { %v13155_v21 = vpop.xlane.xlu0 %13154  ;;  %v13158_v61 = vpop.xlane.xlu1 %13157 }
0x294a   :  { %18735 = vpow2.f32 %v13180_v44  ;;  %v13171_v36 = vsub.f32 %v13139_v33, %v13155_v21  ;;  %v13172_v58 = vsub.f32 %v13140_v2, %v13158_v61 }
0x294c   :  { %v13182_v40 = vmul.f32 1.442695, %v13171_v36  ;;  %v13184_v1 = vmul.f32 1.442695, %v13172_v58  ;;  %v20612_v58 = vshrl.u32 %v13969_v43, 7 }
0x294d   :  { %v13161_v27 = vpop.xlane.xlu0 %13160 }
0x294e   :  { %18737 = vpow2.f32 %v13182_v40  ;;  %v13173_v28 = vsub.f32 %v13141_v16, %v13161_v27  ;;  %v13164_v54 = vpop.xlane.xlu1 %13163 }
0x294f   :  { %18739 = vpow2.f32 %v13184_v1  ;;  %v13174_v39 = vsub.f32 %v13142_v35, %v13164_v54  ;;  %v13953_v54 = vld [vmem:[#allocation6 + $0x208] sm:$0xff] }
0x2950   :  { %v13186_v31 = vmul.f32 1.442695, %v13173_v28  ;;  %v13952_v28 = vld [vmem:[#allocation6 + $0x200] sm:$0xff] }
0x2951   :  { %v13188_v12 = vmul.f32 1.442695, %v13174_v39  ;;  %v13167_v56 = vpop.xlane.xlu0 %13166 }
0x2952   :  { %18741 = vpow2.f32 %v13186_v31  ;;  %v13175_v30 = vsub.f32 %v13143_v13, %v13167_v56  ;;  %v12527_v48 = vpop.permute.xlu1 %12526 }
0x2953   :  { %18743 = vpow2.f32 %v13188_v12  ;;  %v18506_v12 = vld [vmem:[%s20949_s4] ss:$0 sps:$4 sm:$0x11]  }
0x2954   :  { %v18736_v38 = vpop.eup %18735  ;;  %v13190_v32 = vmul.f32 1.442695, %v13175_v30 }
0x2955   :  { %v13198_v41 = vsel %vm444_vm2, %v18736_v38, 0.0  ;;  %v12529_v60 = vpop.permute.xlu0 %12528 }
0x2956   :  { %18745 = vpow2.f32 %v13190_v32  ;;  %13199 = vadd.xlane.f32.xlu1 %v13198_v41  ;;  %v12533_v59 = vpop.permute.xlu1 %12532  ;;  %v18956_v41 = vmov 0.0|0.0  }
0x2958   :  { %v18738_v33 = vpop.eup %18737 }
0x2959   :  { %v18740_v29 = vpop.eup %18739  ;;  %v13201_v45 = vsel %vm444_vm2, %v18738_v33, 0.0 }
0x295a   :  { %13202 = vadd.xlane.f32.xlu0 %v13201_v45  ;;  %v13204_v10 = vsel %vm444_vm2, %v18740_v29, 0.0  ;;  %v12535_v0 = vpop.permute.xlu1 %12534  ;;  %v18797_v45 = vld [vmem:[#allocation7 + $0xf] ss:$0 sm:$0xff] }
0x295b   :  { %13205 = vadd.xlane.f32.xlu1 %v13204_v10  ;;  %v7042_v10 = vadd.f32 %v18797_v45, %v19914_v3  ;;  %v14165_v45 = vld [vmem:[#allocation6 + $0x250] sm:$0xff] }
0x295c   :  { %v20582_v17 = vpop.eup %18741 }
0x295d   :  { %v20584_v2 = vpop.eup %18743  ;;  %v13207_v50 = vsel %vm444_vm2, %v20582_v17, 0.0 }
0x295e   :  { %13208 = vadd.xlane.f32.xlu0 %v13207_v50  ;;  %v13210_v16 = vsel %vm444_vm2, %v20584_v2, 0.0  ;;  %v7050_v50 = vmax.f32 %v7042_v10, 0.0 }
0x295f   :  { %13211 = vadd.xlane.f32.xlu1 %v13210_v16 }
0x2960   :  { %v20590_v51 = vpop.eup %18745 }
0x2961   :  { %v13213_v53 = vsel %vm444_vm2, %v20590_v51, 0.0 }
0x2962   :  { %13214 = vadd.xlane.f32.xlu0 %v13213_v53 }
0x2970   :  { %12540 = vrot.lane.b32.xlu1 %v20540_v23, %s18954_s28 }
0x2978   :  { %12538 = vrot.lane.b32.xlu0 %v20545_v11, %s18954_s28 }
0x2986   :  { %v13197_v35 = vpop.xlane.xlu0 %13196 }
0x2987   :  { %18747 = vrcp.f32 %v13197_v35  ;;  %v13855_v35 = vld [vmem:[#allocation6 + $0x1e8] sm:$0xff] }
0x298b   :  { %v13194_v13 = vpop.xlane.xlu1 %13193 }
0x298c   :  { %18749 = vrcp.f32 %v13194_v13  ;;  %v13856_v13 = vld [vmem:[#allocation6 + $0x1f0] sm:$0xff] }
0x2991   :  { %v18748_v62 = vpop.eup %18747 }
0x2992   :  { %v13225_v4 = vmul.f32 %v18748_v62, %v18732_v34  ;;  %v13857_v62 = vld [vmem:[#allocation6 + $0x1f8] sm:$0xff] }
0x2994   :  { %17857 = vmatmul.mubr.msk.f32.vlgmr.msra.gmra.mrb[154].mxu1 %vm444_vm2, %v13225_v4  ;;  %v18325_v4 = vpack.c.bf16 %v13857_v62, %v13856_v13 }
0x2995   :  { %17865 = vmatpush3.msra.mxu1 %v12529_v60  ;;  %17866 = vmatprep.mubr.msk.f32.mxu1 %vm18951_vm1, %v18950_v15  ;;  %v13854_v60 = vld [vmem:[#allocation6 + $0x1e0] sm:$0xff] }
0x2996   :  { %v18750_v23 = vpop.eup %18749  ;;  %17874 = vmatprep.subr.mxu1 %v18950_v15 }
0x2997   :  { %v13224_v11 = vmul.f32 %v18750_v23, %v18734_v42  ;;  %v13967_v42 = vunpack.c.l.s4 %v18955_v26 }
0x2999   :  { %17852 = vmatmul.mubr.msk.f32.vlgmr.msra.gmra.mrb[148].mxu0 %vm444_vm2, %v13224_v11  ;;  %v13968_v36 = vunpack.c.0.s8 %v13967_v42 }
0x299a   :  { %17860 = vmatpush3.msra.mxu0 %v12527_v48  ;;  %17861 = vmatprep.mubr.msk.f32.mxu0 %vm18951_vm1, %v18950_v15 }
0x299b   :  { %17869 = vmatprep.subr.mxu0 %v18950_v15  ;;  %v20627_v56 = vsub.s32 %v13968_v36, %v20612_v58 }
0x29e3   :  { %v13200_v46 = vpop.xlane.xlu1 %13199 }
0x29e4   :  { %18751 = vrcp.f32 %v13200_v46 }
0x29e7   :  { %v13203_v14 = vpop.xlane.xlu0 %13202 }
0x29e8   :  { %18753 = vrcp.f32 %v13203_v14  ;;  %v13206_v24 = vpop.xlane.xlu1 %13205 }
0x29e9   :  { %18755 = vrcp.f32 %v13206_v24 }
0x29eb   :  { %v13209_v5 = vpop.xlane.xlu0 %13208 }
0x29ec   :  { %18757 = vrcp.f32 %v13209_v5  ;;  %v13212_v7 = vpop.xlane.xlu1 %13211 }
0x29ed   :  { %18759 = vrcp.f32 %v13212_v7 }
0x29ee   :  { %v18752_v8 = vpop.eup %18751 }
0x29ef   :  { %v13226_v25 = vmul.f32 %v18752_v8, %v18736_v38  ;;  %v13215_v34 = vpop.xlane.xlu0 %13214  ;;  %v18330_v38 = vpack.c.bf16 %v13953_v54, %v13952_v28 }
0x29f0   :  { %18761 = vrcp.f32 %v13215_v34  ;;  %v12541_v31 = vpop.permute.xlu1 %12540 }
0x29f1   :  { %17862 = vmatmul.mubr.msk.f32.vlgmr.msra.gmra.mrb[150].mxu0 %vm444_vm2, %v13226_v25 }
0x29f2   :  { %v18754_v37 = vpop.eup %18753  ;;  %17870 = vmatpush3.msra.mxu0 %v12533_v59  ;;  %17871 = vmatprep.mubr.msk.f32.mxu0 %vm18951_vm1, %v18950_v15 }
0x29f3   :  { %v18756_v20 = vpop.eup %18755  ;;  %v13227_v44 = vmul.f32 %v18754_v37, %v18738_v33  ;;  %17879 = vmatprep.subr.mxu0 %v18950_v15  ;;  %v12539_v61 = vpop.permute.xlu0 %12538  ;;  %v13954_v33 = vld [vmem:[#allocation6 + $0x210] sm:$0xff] }
0x29f4   :  { %v13228_v21 = vmul.f32 %v18756_v20, %v18740_v29  ;;  %v13955_v29 = vld [vmem:[#allocation6 + $0x218] sm:$0xff] }
0x29f5   :  { %17867 = vmatmul.mubr.msk.f32.vlgmr.msra.gmra.mrb[156].mxu1 %vm444_vm2, %v13227_v44 }
0x29f6   :  { %v18758_v40 = vpop.eup %18757  ;;  %17872 = vmatmul.mubr.msk.f32.vlgmr.msra.gmra.mrb[152].mxu0 %vm444_vm2, %v13228_v21  ;;  %17875 = vmatpush3.msra.mxu1 %v12535_v0  ;;  %v18321_v0 = vpack.c.bf16 %v13855_v35, %v13854_v60  ;;  %v7051_v60 = vmax.f32 %v19912_v63, 0.0 }
0x29f7   :  { %v18760_v1 = vpop.eup %18759  ;;  %v13229_v27 = vmul.f32 %v18758_v40, %v20582_v17  ;;  %17880 = vmatpush3.msra.mxu0 %v12539_v61  ;;  %17876 = vmatprep.mubr.msk.f32.mxu1 %vm18951_vm1, %v18950_v15  ;;  %v13972_v17 = vrot.slane %v18506_v12, %v20627_v56  ;;  %v14163_v12 = vld [vmem:[#allocation6 + $0x240] sm:$0xff] }
0x29f8   :  { %v13230_v39 = vmul.f32 %v18760_v1, %v20584_v2  ;;  %17884 = vmatprep.subr.mxu1 %v18950_v15  ;;  %17881 = vmatprep.mubr.msk.f32.mxu0 %vm18951_vm1, %v18950_v15  ;;  %v18333_v2 = vpack.c.bf16 %v13955_v29, %v13954_v33  ;;  %v14055_v33 = vld [vmem:[#allocation6 + $0x230] sm:$0xff]  ;;  %v14056_v29 = vld [vmem:[#allocation6 + $0x238] sm:$0xff]  ;;  %v7053_v62 = vadd.f32 %v7051_v60, %v19882_v52 }
0x29f9   :  { %17877 = vmatmul.mubr.msk.f32.vlgmr.msra.gmra.mrb[158].mxu1 %vm444_vm2, %v13229_v27  ;;  %v13979_v16 = vrot.slane %v13972_v17, %v20627_v56  ;;  %18322 = vmatprep.subr.bf16.mxu0 %v18321_v0  ;;  %v18339_v10 = vpack.c.bf16 %v14056_v29, %v14055_v33  ;;  %v14166_v17 = vld [vmem:[#allocation6 + $0x258] sm:$0xff]  ;;  %v16333_v52 = vld [vmem:[#allocation7 + $0x10] ss:$0 sm:$0xff] }
0x29fa   :  { %v18762_v30 = vpop.eup %18761  ;;  %17885 = vmatpush3.msra.mxu1 %v12541_v31  ;;  %17882 = vmatmul.mubr.msk.f32.vlgmr.msra.gmra.mrb[154].mxu0 %vm444_vm2, %v13230_v39 }
0x29fb   :  { %v13231_v32 = vmul.f32 %v18762_v30, %v20590_v51  ;;  %17886 = vmatprep.mubr.msk.f32.mxu1 %vm18951_vm1, %v18950_v15  ;;  %18329 = vmatprep.subr.bf16.mxu1 %v18956_v41  ;;  %v7052_v51 = vadd.f32 %v7050_v50, %v19875_v49 }
0x29fc   :  { %18324 = vmatpush3.bf16.msra.mxu0 %v18321_v0 }
0x29fd   :  { %17887 = vmatmul.mubr.msk.f32.vlgmr.msra.gmra.mrb[160].mxu1 %vm444_vm2, %v13231_v32  ;;  %18326 = vmatprep.subr.bf16.mxu0 %v18325_v4 }
0x29fe   :  { %18331 = vmatpush3.bf16.msra.mxu1 %v18330_v38  ;;  %17908 = vmatprep.mubr.msk.f32.mxu1 %vm18951_vm1, %v18950_v15  ;;  %v14164_v38 = vld [vmem:[#allocation6 + $0x248] sm:$0xff] }
0x29ff   :  { %18332 = vmatprep.subr.bf16.mxu1 %v18956_v41  ;;  %v18343_v32 = vpack.c.bf16 %v14164_v38, %v14163_v12 }
0x2a00   :  { %18328 = vmatpush3.bf16.msra.mxu0 %v18325_v4 }
0x2a02   :  { %18334 = vmatpush3.bf16.msra.mxu1 %v18333_v2  ;;  %v18347_v2 = vpack.c.bf16 %v14166_v17, %v14165_v45 }
0x2a03   :  { %18344 = vmatprep.subr.bf16.mxu1 %v18343_v32 }
0x2a05   :  { %17909 = vmatmul.mubr.msk.f32.vlgmr.msra.gmra.mrb[162].mxu1 %vm129_vm0, %v13979_v16 }
0x2a06   :  { %17933 = vmatprep.mubr.msk.f32.mxu1 %vm129_vm0, %v7052_v51  ;;  %18346 = vmatpush3.bf16.msra.mxu1 %v18343_v32 }
0x2a07   :  { %18348 = vmatprep.subr.bf16.mxu1 %v18347_v2 }
0x2a0a   :  { %18350 = vmatpush3.bf16.msra.mxu1 %v18347_v2 }
0x2a0b   :  { %18355 = vmatprep.subr.bf16.mxu1 %v18956_v41 }
0x2a67   :  { %v13374_v3 = vpop.f32.mrb[154].mxu1 }
0x2a68   :  { %v17858_v53 = vpop.f32.mrb[155].mxu1 }
0x2a6c   :  { %v13301_v48 = vpop.f32.mrb[148].mxu0 }
0x2a6d   :  { %v17853_v59 = vpop.f32.mrb[149].mxu0 }
0x2ac4   :  { %v13447_v23 = vpop.f32.mrb[150].mxu0 }
0x2ac5   :  { %v13818_v11 = vadd.f32 %v13447_v23, %v20507_v19  ;;  %v17863_v49 = vpop.f32.mrb[151].mxu0  ;;  %v16335_v23 = vld [vmem:[#allocation7 + $0x11] ss:$0 sm:$0xff] }
0x2ac7   :  { %13826 = vrot.lane.b32.xlu0 %v13818_v11, %s18941_s22  ;;  %v16340_v11 = vld [vmem:[#allocation7 + $0x12] ss:$0 sm:$0xff] }
0x2ac8   :  { %v13520_v46 = vpop.f32.mrb[156].mxu1 }
0x2ac9   :  { %v13819_v14 = vadd.f32 %v13520_v46, %v20505_v18  ;;  %v13593_v24 = vpop.f32.mrb[152].mxu0  ;;  %v17868_v5 = vpop.f32.mrb[157].mxu1 }
0x2aca   :  { %v13820_v7 = vadd.f32 %v13593_v24, %v20511_v6  ;;  %v17873_v8 = vpop.f32.mrb[153].mxu0 }
0x2acb   :  { %13828 = vrot.lane.b32.xlu1 %v13819_v14, %s18941_s22 }
0x2acc   :  { %13834 = vrot.lane.b32.xlu0 %v13820_v7, %s18942_s1  ;;  %v13666_v25 = vpop.f32.mrb[158].mxu1 }
0x2acd   :  { %v13821_v19 = vadd.f32 %v13666_v25, %v20509_v57  ;;  %v17878_v34 = vpop.f32.mrb[159].mxu1  ;;  %v13739_v26 = vpop.f32.mrb[154].mxu0  ;;  %v13816_v57 = vadd.f32 %v13301_v48, %v20453_v22  ;;  %v14053_v22 = vld [vmem:[#allocation6 + $0x220] sm:$0xff] }
0x2ace   :  { %v13822_v42 = vadd.f32 %v13739_v26, %v20549_v9  ;;  %v17883_v37 = vpop.f32.mrb[155].mxu0  ;;  %v13817_v9 = vadd.f32 %v13374_v3, %v20451_v55  ;;  %v14054_v55 = vld [vmem:[#allocation6 + $0x228] sm:$0xff] }
0x2acf   :  { %13836 = vrot.lane.b32.xlu1 %v13821_v19, %s18942_s1  ;;  %v18335_v30 = vpack.c.bf16 %v14054_v55, %v14053_v22 }
0x2ad0   :  { %v13812_v18 = vpop.f32.mrb[160].mxu1  ;;  %13842 = vrot.lane.b32.xlu0 %v13822_v42, %s18948_s21 }
0x2ad1   :  { %v13823_v6 = vadd.f32 %v13812_v18, %v20542_v47  ;;  %v17888_v20 = vpop.f32.mrb[161].mxu1  ;;  %18336 = vmatprep.subr.bf16.mxu0 %v18335_v30 }
0x2ad3   :  { %13844 = vrot.lane.b32.xlu1 %v13823_v6, %s18948_s21 }
0x2ad8   :  { %v14048_v50 = vpop.f32.mrb[162].mxu1 }
0x2ad9   :  { %v17910_v16 = vpop.f32.mrb[163].mxu1  ;;  %v14049_v63 = vadd.f32 %v16333_v52, %v14048_v50 }
0x2adb   :  { %v14267_v49 = vrot.slane %v14049_v63, %v20627_v56 }
0x2add   :  { %v14268_v34 = vcombine.high %v14267_v49, %v14267_v49 }
0x2b39   :  { %v13827_v44 = vpop.permute.xlu0 %13826 }
0x2b3a   :  { %v13848_v36 = vsel %vm444_vm2, %v13816_v57, %v13827_v44 }
0x2b3d   :  { %v13829_v21 = vpop.permute.xlu1 %13828 }
0x2b3e   :  { %v13835_v61 = vpop.permute.xlu0 %13834  ;;  %v13849_v47 = vsel %vm444_vm2, %v13817_v9, %v13829_v21 }
0x2b3f   :  { %v13850_v1 = vsel %vm1751_vm3, %v13848_v36, %v13835_v61 }
0x2b41   :  { %v13837_v40 = vpop.permute.xlu1 %13836 }
0x2b42   :  { %v13843_v27 = vpop.permute.xlu0 %13842  ;;  %v13851_v54 = vsel %vm1751_vm3, %v13849_v47, %v13837_v40 }
0x2b43   :  { %v13852_v28 = vsel %vm1754_vm4, %v13850_v1, %v13843_v27  ;;  %v20706_v1 = vrot.slane %v14267_v49, %v20627_v56  ;;  %v20709_v27 = vrot.slane %v14268_v34, %v20627_v56 }
0x2b44   :  { %17897 = vmatprep.mubr.msk.f32.mxu0 %vm129_vm0, %v13852_v28 }
0x2b45   :  { %v13845_v39 = vpop.permute.xlu1 %13844 }
0x2b46   :  { %v13853_v31 = vsel %vm1754_vm4, %v13851_v54, %v13845_v39 }
0x2b47   :  { %17898 = vmatmul.mubr.msk.f32.vlgmr.msra.gmra.mrb[156].mxu0 %vm129_vm0, %v13853_v31 }
0x2b48   :  { %17919 = vmatprep.mubr.msk.f32.mxu0 %vm129_vm0, %v7052_v51  ;;  %18338 = vmatpush3.bf16.msra.mxu0 %v18335_v30  ;;  %v16330_v51 = vld [vmem:[#allocation7 + $0xf] ss:$0 sm:$0xff] }
0x2b49   :  { %18340 = vmatprep.subr.bf16.mxu0 %v18339_v10 }
0x2b4c   :  { %18342 = vmatpush3.bf16.msra.mxu0 %v18339_v10 }
0x2b4d   :  { %18351 = vmatprep.subr.bf16.mxu0 %v18956_v41 }
0x2c1a   :  { %v17899_v3 = vpop.f32.mrb[156].mxu0 }
0x2c1b   :  { %v13937_v53 = vpop.f32.mrb[157].mxu0  ;;  %v13943_v48 = vadd.f32 %v17899_v3, %v16330_v51 }
0x2c1c   :  { %v13938_v59 = vadd.f32 %v16330_v51, %v13937_v53 }
0x2c1d   :  { %v13947_v0 = vmax.f32 %v13943_v48, 0.0 }
0x2c1e   :  { %v13946_v35 = vmax.f32 %v13938_v59, 0.0 }
0x2c1f   :  { %v13949_v4 = vadd.f32 %v13947_v0, %v13853_v31 }
0x2c20   :  { %v13948_v13 = vadd.f32 %v13946_v35, %v13852_v28 }
0x2c22   :  { %17920 = vmatmul.mubr.msk.f32.vlgmr.msra.gmra.mrb[158].mxu0 %vm129_vm0, %v13948_v13  ;;  %17934 = vmatmul.mubr.msk.f32.vlgmr.msra.gmra.mrb[164].mxu1 %vm129_vm0, %v13948_v13 }
0x2c23   :  { %17922 = vmatprep.mubr.msk.f32.mxu0 %vm129_vm0, %v7053_v62  ;;  %17936 = vmatprep.mubr.msk.f32.mxu1 %vm129_vm0, %v7053_v62 }
0x2c26   :  { %17923 = vmatmul.mubr.msk.f32.gmra.mrb[160].mxu0 %vm129_vm0, %v13949_v4  ;;  %17937 = vmatmul.mubr.msk.f32.gmra.mrb[166].mxu1 %vm129_vm0, %v13949_v4 }
0x2c27   :  { %17943 = vmatprep.mubr.msk.f32.mxu0 %vm18951_vm1, %v18950_v15  ;;  %17950 = vmatprep.mubr.msk.f32.mxu1 %vm18951_vm1, %v18950_v15 }
0x2cf5   :  { %v17921_v46 = vpop.f32.mrb[158].mxu0  ;;  %v17935_v14 = vpop.f32.mrb[164].mxu1 }
0x2cf6   :  { %v14149_v24 = vadd.f32 %v17921_v46, %v16335_v23  ;;  %v20682_v5 = vadd.f32 %v17935_v14, %v16340_v11  ;;  %v14143_v7 = vpop.f32.mrb[159].mxu0  ;;  %v14241_v8 = vpop.f32.mrb[165].mxu1 }
0x2cf7   :  { %v14144_v25 = vadd.f32 %v16335_v23, %v14143_v7  ;;  %v20684_v19 = vadd.f32 %v16340_v11, %v14241_v8 }
0x2cf9   :  { %v18352_v42 = vpack.c.bf16 %v14149_v24, %v14144_v25  ;;  %v17924_v37 = vpop.f32.mrb[160].mxu0  ;;  %v17938_v18 = vpop.f32.mrb[166].mxu1  ;;  %v18451_v6 = vpack.i.bf16 %v14149_v24, %v14144_v25  ;;  %v18384_v57 = vpack.c.bf16 %v20682_v5, %v20684_v19  ;;  %v20698_v36 = vpack.i.bf16 %v20682_v5, %v20684_v19 }
0x2cfa   :  { %v14159_v20 = vadd.f32 %v17924_v37, %v16335_v23  ;;  %v20692_v44 = vadd.f32 %v17938_v18, %v16340_v11  ;;  %v14153_v21 = vpop.f32.mrb[161].mxu0  ;;  %v14251_v61 = vpop.f32.mrb[167].mxu1 }
0x2cfb   :  { %v14154_v40 = vadd.f32 %v16335_v23, %v14153_v21  ;;  %v20700_v9 = vadd.f32 %v16340_v11, %v14251_v61  ;;  %18452 = vrot.lane.b32.xlu1 %v18451_v6, %s18952_s26  ;;  %18354 = vmatpush3.bf16.xpose.msk.msra.mxu0 %vm20688_vm5, %v18352_v42 }
0x2cfc   :  { %18359 = vmatprep.subr.bf16.mxu0 %v18956_v41 }
0x2cfd   :  { %v18356_v28 = vpack.c.bf16 %v14159_v20, %v14154_v40  ;;  %v18446_v47 = vpack.i.bf16 %v14159_v20, %v14154_v40  ;;  %v18387_v54 = vpack.c.bf16 %v20692_v44, %v20700_v9  ;;  %v20716_v39 = vpack.i.bf16 %v20692_v44, %v20700_v9 }
0x2cff   :  { %18447 = vrot.lane.b32.xlu0 %v18446_v47, %s18952_s26  ;;  %18358 = vmatpush3.bf16.xpose.msk.msra.mxu1 %vm20688_vm5, %v18356_v28 }
0x2d00   :  { %14287 = vrot.lane.b32.xlu1 %v20709_v27, %s18952_s26  ;;  %18363 = vmatprep.subr.bf16.mxu1 %v18956_v41 }
0x2d02   :  { %17944 = vmatmul.mubr.msk.f32.vlgmr.msra.gmra.mrb[162].mxu0 %vm444_vm2, %v20706_v1 }
0x2d03   :  { %18457 = vrot.lane.b32.xlu0 %v18446_v47, %s18953_s27  ;;  %17957 = vmatprep.mubr.msk.f32.mxu0 %vm18951_vm1, %v18950_v15 }
0x2d04   :  { %14285 = vrot.lane.b32.xlu1 %v20706_v1, %s18952_s26 }
0x2d06   :  { %17951 = vmatmul.mubr.msk.f32.vlgmr.msra.gmra.mrb[168].mxu1 %vm444_vm2, %v20709_v27 }
0x2d07   :  { %18462 = vrot.lane.b32.xlu0 %v18451_v6, %s18953_s27  ;;  %17964 = vmatprep.mubr.msk.f32.mxu1 %vm18951_vm1, %v18950_v15 }
0x2d08   :  { %14293 = vrot.lane.b32.xlu1 %v20709_v27, %s18953_s27 }
0x2d0b   :  { %18467 = vrot.lane.b32.xlu0 %v18446_v47, %s18954_s28 }
0x2d0c   :  { %14291 = vrot.lane.b32.xlu1 %v20706_v1, %s18953_s27 }
0x2d0f   :  { %18472 = vrot.lane.b32.xlu0 %v18451_v6, %s18954_s28 }
0x2d10   :  { %14297 = vrot.lane.b32.xlu1 %v20706_v1, %s18954_s28 }
0x2d13   :  { %14299 = vrot.lane.b32.xlu0 %v20709_v27, %s18954_s28 }
0x2d6d   :  { %v18453_v31 = vpop.permute.xlu1 %18452 }
0x2d6e   :  { %v18455_v22 = vunpack.i.h.bf16 %v18453_v31  ;;  %v18454_v55 = vunpack.i.l.bf16 %v18453_v31 }
0x2d70   :  { %v18360_v12 = vpack.c.bf16 %v18455_v22, %v18454_v55 }
0x2d71   :  { %v18448_v30 = vpop.permute.xlu0 %18447 }
0x2d72   :  { %v18450_v38 = vunpack.i.h.bf16 %v18448_v30  ;;  %v18449_v32 = vunpack.i.l.bf16 %v18448_v30  ;;  %v20746_v33 = vpop.permute.xlu1 %14287  ;;  %18362 = vmatpush3.bf16.xpose.msk.msra.mxu0 %vm20688_vm5, %v18360_v12 }
0x2d73   :  { %18367 = vmatprep.subr.bf16.mxu0 %v18956_v41 }
0x2d74   :  { %v18364_v29 = vpack.c.bf16 %v18450_v38, %v18449_v32 }
0x2d75   :  { %v18458_v45 = vpop.permute.xlu0 %18457 }
0x2d76   :  { %18366 = vmatpush3.bf16.xpose.msk.msra.mxu1 %vm20688_vm5, %v18364_v29  ;;  %v18460_v10 = vunpack.i.h.bf16 %v18458_v45  ;;  %v18459_v17 = vunpack.i.l.bf16 %v18458_v45  ;;  %v20754_v2 = vpop.permute.xlu1 %14285 }
0x2d77   :  { %18371 = vmatprep.subr.bf16.mxu1 %v18956_v41 }
0x2d78   :  { %v18372_v3 = vpack.c.bf16 %v18460_v10, %v18459_v17 }
0x2d79   :  { %v18463_v50 = vpop.permute.xlu0 %18462  ;;  %17958 = vmatmul.mubr.msk.f32.vlgmr.msra.gmra.mrb[164].mxu0 %vm444_vm2, %v20754_v2 }
0x2d7a   :  { %v18465_v16 = vunpack.i.h.bf16 %v18463_v50  ;;  %v18464_v51 = vunpack.i.l.bf16 %v18463_v50  ;;  %17971 = vmatprep.mubr.msk.f32.mxu0 %vm18951_vm1, %v18950_v15  ;;  %v20762_v59 = vpop.permute.xlu1 %14293 }
0x2d7c   :  { %v18368_v53 = vpack.c.bf16 %v18465_v16, %v18464_v51 }
0x2d7d   :  { %v18468_v48 = vpop.permute.xlu0 %18467  ;;  %17965 = vmatmul.mubr.msk.f32.vlgmr.msra.gmra.mrb[170].mxu1 %vm444_vm2, %v20746_v33 }
0x2d7e   :  { %18370 = vmatpush3.bf16.xpose.msk.msra.mxu0 %vm20688_vm5, %v18368_v53  ;;  %18374 = vmatpush3.bf16.xpose.msk.msra.mxu1 %vm20688_vm5, %v18372_v3  ;;  %v18470_v60 = vunpack.i.h.bf16 %v18468_v48  ;;  %v18469_v35 = vunpack.i.l.bf16 %v18468_v48  ;;  %v20772_v52 = vpop.permute.xlu1 %14291 }
0x2d7f   :  { %17978 = vmatprep.mubr.msk.f32.mxu1 %vm18951_vm1, %v18950_v15  ;;  %18375 = vmatprep.subr.bf16.mxu0 %v18956_v41 }
0x2d80   :  { %18379 = vmatprep.subr.bf16.mxu1 %v18956_v41  ;;  %v18380_v4 = vpack.c.bf16 %v18470_v60, %v18469_v35 }
0x2d81   :  { %v18473_v0 = vpop.permute.xlu0 %18472 }
0x2d82   :  { %v18475_v13 = vunpack.i.h.bf16 %v18473_v0  ;;  %v18474_v62 = vunpack.i.l.bf16 %v18473_v0  ;;  %v20788_v23 = vpop.permute.xlu1 %14297 }
0x2d84   :  { %v18376_v63 = vpack.c.bf16 %v18475_v13, %v18474_v62 }
0x2d85   :  { %17972 = vmatmul.mubr.msk.f32.vlgmr.msra.gmra.mrb[166].mxu0 %vm444_vm2, %v20772_v52  ;;  %17979 = vmatmul.mubr.msk.f32.vlgmr.msra.gmra.mrb[172].mxu1 %vm444_vm2, %v20762_v59  ;;  %v20790_v11 = vpop.permute.xlu0 %14299 }
0x2d86   :  { %18378 = vmatpush3.bf16.xpose.msk.msra.mxu0 %vm20688_vm5, %v18376_v63  ;;  %18382 = vmatpush3.bf16.xpose.msk.msra.mxu1 %vm20688_vm5, %v18380_v4 }
0x2d87   :  { %17985 = vmatprep.mubr.msk.f32.mxu0 %vm18951_vm1, %v18950_v15  ;;  %17992 = vmatprep.mubr.msk.f32.mxu1 %vm18951_vm1, %v18950_v15 }
0x2d88   :  { %18383 = vmatprep.subr.bf16.mxu0 %v18956_v41  ;;  %18386 = vmatprep.subr.bf16.mxu1 %v18956_v41 }
0x2d8d   :  { %17986 = vmatmul.mubr.msk.f32.vlgmr.msra.gmra.mrb[168].mxu0 %vm444_vm2, %v20788_v23  ;;  %17993 = vmatmul.mubr.msk.f32.vlgmr.msra.gmra.mrb[174].mxu1 %vm444_vm2, %v20790_v11 }
0x2d8e   :  { %18385 = vmatpush3.bf16.msra.mxu0 %v18384_v57  ;;  %18388 = vmatpush3.bf16.msra.mxu1 %v18387_v54 }
0x2d8f   :  { %17999 = vmatprep.mubr.msk.f32.mxu0 %vm18951_vm1, %v18950_v15  ;;  %18389 = vmatprep.subr.bf16.mxu0 %v18956_v41 }
0x2d90   :  { %18006 = vmatprep.mubr.msk.f32.mxu1 %vm18951_vm1, %v18950_v15  ;;  %18392 = vmatprep.subr.bf16.mxu1 %v18956_v41 }
0x2dd5   :  { %v14443_v49 = vpop.f32.mrb[162].mxu0 }
0x2dd6   :  { %v14979_v46 = vmul.f32 0.17677669, %v14443_v49  ;;  %v17945_v14 = vpop.f32.mrb[163].mxu0 }
0x2dd8   :  { %v14988_v24 = vsel %vm14987_vm6, %v14979_v46, -inf }
0x2dd9   :  { %v14519_v5 = vpop.f32.mrb[168].mxu1  ;;  %14989 = vmax.xlane.f32.xlu1 %v14988_v24 }
0x2dda   :  { %v14980_v7 = vmul.f32 0.17677669, %v14519_v5  ;;  %v17952_v8 = vpop.f32.mrb[169].mxu1 }
0x2ddc   :  { %v14991_v25 = vsel %vm14987_vm6, %v14980_v7, -inf }
0x2ddd   :  { %14992 = vmax.xlane.f32.xlu0 %v14991_v25 }
0x2e4c   :  { %v14595_v19 = vpop.f32.mrb[164].mxu0 }
0x2e4d   :  { %v17959_v34 = vpop.f32.mrb[165].mxu0  ;;  %v14981_v18 = vmul.f32 0.17677669, %v14595_v19 }
0x2e4f   :  { %v14994_v20 = vsel %vm14987_vm6, %v14981_v18, -inf }
0x2e50   :  { %v14671_v26 = vpop.f32.mrb[170].mxu1 }
0x2e51   :  { %v14982_v42 = vmul.f32 0.17677669, %v14671_v26  ;;  %v17966_v37 = vpop.f32.mrb[171].mxu1 }
0x2e53   :  { %v14997_v6 = vsel %vm14987_vm6, %v14982_v42, -inf }
0x2e54   :  { %14998 = vmax.xlane.f32.xlu0 %v14997_v6 }
0x2e58   :  { %v14823_v44 = vpop.f32.mrb[172].mxu1  ;;  %14995 = vmax.xlane.f32.xlu0 %v14994_v20  ;;  %v14747_v21 = vpop.f32.mrb[166].mxu0 }
0x2e59   :  { %v14984_v61 = vmul.f32 0.17677669, %v14823_v44  ;;  %v14983_v57 = vmul.f32 0.17677669, %v14747_v21  ;;  %v17973_v40 = vpop.f32.mrb[167].mxu0  ;;  %v17980_v9 = vpop.f32.mrb[173].mxu1 }
0x2e5b   :  { %v15003_v28 = vsel %vm14987_vm6, %v14984_v61, -inf  ;;  %v15000_v47 = vsel %vm14987_vm6, %v14983_v57, -inf }
0x2e5c   :  { %15004 = vmax.xlane.f32.xlu1 %v15003_v28  ;;  %15001 = vmax.xlane.f32.xlu0 %v15000_v47 }
0x2e60   :  { %v14899_v54 = vpop.f32.mrb[168].mxu0  ;;  %v14975_v31 = vpop.f32.mrb[174].mxu1 }
0x2e61   :  { %v14985_v22 = vmul.f32 0.17677669, %v14899_v54  ;;  %v14986_v55 = vmul.f32 0.17677669, %v14975_v31  ;;  %v17987_v12 = vpop.f32.mrb[169].mxu0  ;;  %v17994_v30 = vpop.f32.mrb[175].mxu1 }
0x2e63   :  { %v15009_v38 = vsel %vm14987_vm6, %v14986_v55, -inf  ;;  %v15006_v32 = vsel %vm14987_vm6, %v14985_v22, -inf }
0x2e64   :  { %15010 = vmax.xlane.f32.xlu1 %v15009_v38  ;;  %15007 = vmax.xlane.f32.xlu0 %v15006_v32 }
0x2e66   :  { %v14990_v29 = vpop.xlane.xlu1 %14989 }
0x2e67   :  { %v15012_v45 = vsub.f32 %v14979_v46, %v14990_v29 }
0x2e69   :  { %v15020_v10 = vmul.f32 1.442695, %v15012_v45 }
0x2e6a   :  { %v14993_v17 = vpop.xlane.xlu0 %14992 }
0x2e6b   :  { %18763 = vpow2.f32 %v15020_v10  ;;  %v15013_v50 = vsub.f32 %v14980_v7, %v14993_v17 }
0x2e6d   :  { %v15022_v16 = vmul.f32 1.442695, %v15013_v50 }
0x2e6f   :  { %18765 = vpow2.f32 %v15022_v16 }
0x2e75   :  { %18477 = vrot.lane.b32.xlu1 %v20716_v39, %s18952_s26  ;;  %v18764_v51 = vpop.eup %18763 }
0x2e76   :  { %v15036_v3 = vsel %vm14987_vm6, %v18764_v51, 0.0 }
0x2e79   :  { %18487 = vrot.lane.b32.xlu1 %v20716_v39, %s18953_s27  ;;  %v20825_v53 = vpop.eup %18765 }
0x2e7a   :  { %18482 = vrot.lane.b32.xlu0 %v20698_v36, %s18952_s26  ;;  %v15039_v48 = vsel %vm14987_vm6, %v20825_v53, 0.0 }
0x2e7d   :  { %18492 = vrot.lane.b32.xlu1 %v20698_v36, %s18953_s27 }
0x2e99   :  { %15037 = vadd.xlane.f32.xlu0 %v15036_v3 }
0x2ea1   :  { %15040 = vadd.xlane.f32.xlu1 %v15039_v48 }
0x2ee1   :  { %v14999_v60 = vpop.xlane.xlu0 %14998 }
0x2ee2   :  { %v15015_v35 = vsub.f32 %v14982_v42, %v14999_v60 }
0x2ee4   :  { %v15026_v0 = vmul.f32 1.442695, %v15015_v35 }
0x2ee5   :  { %v14996_v13 = vpop.xlane.xlu0 %14995 }
0x2ee6   :  { %18767 = vpow2.f32 %v15026_v0  ;;  %v15014_v62 = vsub.f32 %v14981_v18, %v14996_v13 }
0x2ee8   :  { %v15024_v4 = vmul.f32 1.442695, %v15014_v62 }
0x2ee9   :  { %v15005_v63 = vpop.xlane.xlu1 %15004  ;;  %v15002_v49 = vpop.xlane.xlu0 %15001 }
0x2eea   :  { %18769 = vpow2.f32 %v15024_v4  ;;  %v15017_v46 = vsub.f32 %v14984_v61, %v15005_v63  ;;  %v15016_v14 = vsub.f32 %v14983_v57, %v15002_v49 }
0x2eec   :  { %v15030_v24 = vmul.f32 1.442695, %v15017_v46  ;;  %v15028_v5 = vmul.f32 1.442695, %v15016_v14 }
0x2eee   :  { %18771 = vpow2.f32 %v15030_v24 }
0x2eef   :  { %18773 = vpow2.f32 %v15028_v5 }
0x2ef0   :  { %v20829_v7 = vpop.eup %18767 }
0x2ef1   :  { %v15011_v8 = vpop.xlane.xlu1 %15010  ;;  %v15008_v25 = vpop.xlane.xlu0 %15007  ;;  %v15045_v19 = vsel %vm14987_vm6, %v20829_v7, 0.0 }
0x2ef2   :  { %v15019_v34 = vsub.f32 %v14986_v55, %v15011_v8  ;;  %v15018_v26 = vsub.f32 %v14985_v22, %v15008_v25  ;;  %15046 = vadd.xlane.f32.xlu1 %v15045_v19 }
0x2ef4   :  { %v20833_v42 = vpop.eup %18769  ;;  %v15034_v37 = vmul.f32 1.442695, %v15019_v34  ;;  %v15032_v18 = vmul.f32 1.442695, %v15018_v26 }
0x2ef5   :  { %v15042_v6 = vsel %vm14987_vm6, %v20833_v42, 0.0  ;;  %v18478_v47 = vpop.permute.xlu1 %18477  ;;  %v18483_v54 = vpop.permute.xlu0 %18482 }
0x2ef6   :  { %18775 = vpow2.f32 %v15034_v37  ;;  %15043 = vadd.xlane.f32.xlu0 %v15042_v6  ;;  %v18485_v30 = vunpack.i.h.bf16 %v18483_v54  ;;  %v18484_v38 = vunpack.i.l.bf16 %v18483_v54 }
0x2ef7   :  { %18777 = vpow2.f32 %v15032_v18 }
0x2ef8   :  { %v20837_v20 = vpop.eup %18771  ;;  %v18390_v45 = vpack.c.bf16 %v18485_v30, %v18484_v38 }
0x2ef9   :  { %v20839_v44 = vpop.eup %18773  ;;  %v15051_v21 = vsel %vm14987_vm6, %v20837_v20, 0.0  ;;  %v18488_v31 = vpop.permute.xlu1 %18487 }
0x2efa   :  { %15052 = vadd.xlane.f32.xlu1 %v15051_v21  ;;  %v15048_v61 = vsel %vm14987_vm6, %v20839_v44, 0.0  ;;  %v18490_v48 = vunpack.i.h.bf16 %v18488_v31  ;;  %v18489_v60 = vunpack.i.l.bf16 %v18488_v31 }
0x2efb   :  { %15049 = vadd.xlane.f32.xlu0 %v15048_v61 }
0x2efc   :  { %v18399_v13 = vpack.c.bf16 %v18490_v48, %v18489_v60 }
0x2efd   :  { %v18493_v55 = vpop.permute.xlu1 %18492 }
0x2efe   :  { %v18495_v62 = vunpack.i.h.bf16 %v18493_v55  ;;  %v18494_v4 = vunpack.i.l.bf16 %v18493_v55 }
0x2f00   :  { %v20845_v57 = vpop.eup %18775  ;;  %v18396_v14 = vpack.c.bf16 %v18495_v62, %v18494_v4 }
0x2f01   :  { %v20847_v40 = vpop.eup %18777  ;;  %v15057_v9 = vsel %vm14987_vm6, %v20845_v57, 0.0 }
0x2f02   :  { %15058 = vadd.xlane.f32.xlu1 %v15057_v9  ;;  %v15054_v28 = vsel %vm14987_vm6, %v20847_v40, 0.0 }
0x2f03   :  { %15055 = vadd.xlane.f32.xlu0 %v15054_v28 }
0x2f13   :  { %18502 = vrot.lane.b32.xlu1 %v20698_v36, %s18954_s28  ;;  %v18480_v36 = vunpack.i.h.bf16 %v18478_v47 }
0x2f19   :  { %18497 = vrot.lane.b32.xlu0 %v20716_v39, %s18954_s28  ;;  %v18479_v39 = vunpack.i.l.bf16 %v18478_v47 }
0x2f1b   :  { %v18393_v50 = vpack.c.bf16 %v18480_v36, %v18479_v39 }
0x2f26   :  { %v15038_v22 = vpop.xlane.xlu0 %15037 }
0x2f27   :  { %18779 = vrcp.f32 %v15038_v22 }
0x2f2e   :  { %v15041_v12 = vpop.xlane.xlu1 %15040 }
0x2f2f   :  { %18781 = vrcp.f32 %v15041_v12 }
0x2f31   :  { %v18780_v32 = vpop.eup %18779 }
0x2f32   :  { %v15068_v29 = vmul.f32 %v18780_v32, %v18764_v51 }
0x2f34   :  { %18000 = vmatmul.mubr.msk.f32.vlgmr.msra.gmra.mrb[170].mxu0 %vm1751_vm3, %v15068_v29  ;;  %v15723_v29 = vld [vmem:[#allocation6 + $0x260] sm:$0xff] }
0x2f35   :  { %18391 = vmatpush3.bf16.msra.mxu0 %v18390_v45  ;;  %18013 = vmatprep.mubr.msk.f32.mxu0 %vm18951_vm1, %v18950_v15  ;;  %v15724_v45 = vld [vmem:[#allocation6 + $0x268] sm:$0xff] }
0x2f36   :  { %18395 = vmatprep.subr.bf16.mxu0 %v18956_v41  ;;  %v18408_v39 = vpack.c.bf16 %v15724_v45, %v15723_v29 }
0x2f39   :  { %v18782_v10 = vpop.eup %18781 }
0x2f3a   :  { %v15069_v17 = vmul.f32 %v18782_v10, %v20825_v53 }
0x2f3c   :  { %18007 = vmatmul.mubr.msk.f32.vlgmr.msra.gmra.mrb[176].mxu1 %vm1751_vm3, %v15069_v17 }
0x2f3d   :  { %18394 = vmatpush3.bf16.msra.mxu1 %v18393_v50  ;;  %18020 = vmatprep.mubr.msk.f32.mxu1 %vm18951_vm1, %v18950_v15 }
0x2f3e   :  { %18398 = vmatprep.subr.bf16.mxu1 %v18956_v41 }
0x2f7f   :  { %v15047_v16 = vpop.xlane.xlu1 %15046 }
0x2f80   :  { %18783 = vrcp.f32 %v15047_v16  ;;  %v15725_v16 = vld [vmem:[#allocation6 + $0x270] sm:$0xff] }
0x2f83   :  { %v15044_v51 = vpop.xlane.xlu0 %15043 }
0x2f84   :  { %18785 = vrcp.f32 %v15044_v51  ;;  %v15726_v51 = vld [vmem:[#allocation6 + $0x278] sm:$0xff] }
0x2f87   :  { %v15053_v3 = vpop.xlane.xlu1 %15052 }
0x2f88   :  { %18787 = vrcp.f32 %v15053_v3  ;;  %v15050_v35 = vpop.xlane.xlu0 %15049 }
0x2f89   :  { %18789 = vrcp.f32 %v15050_v35 }
0x2f8a   :  { %v18784_v53 = vpop.eup %18783 }
0x2f8b   :  { %v15071_v0 = vmul.f32 %v18784_v53, %v20829_v7 }
0x2f8d   :  { %18021 = vmatmul.mubr.msk.f32.vlgmr.msra.gmra.mrb[178].mxu1 %vm1751_vm3, %v15071_v0 }
0x2f8e   :  { %v18786_v63 = vpop.eup %18785  ;;  %18400 = vmatpush3.bf16.msra.mxu1 %v18399_v13  ;;  %18034 = vmatprep.mubr.msk.f32.mxu1 %vm18951_vm1, %v18950_v15 }
0x2f8f   :  { %v15070_v49 = vmul.f32 %v18786_v63, %v20833_v42  ;;  %v15059_v46 = vpop.xlane.xlu1 %15058  ;;  %18404 = vmatprep.subr.bf16.mxu1 %v18956_v41 }
0x2f90   :  { %18791 = vrcp.f32 %v15059_v46  ;;  %v15056_v24 = vpop.xlane.xlu0 %15055 }
0x2f91   :  { %18793 = vrcp.f32 %v15056_v24  ;;  %18014 = vmatmul.mubr.msk.f32.vlgmr.msra.gmra.mrb[172].mxu0 %vm1751_vm3, %v15070_v49 }
0x2f92   :  { %v18788_v5 = vpop.eup %18787  ;;  %18397 = vmatpush3.bf16.msra.mxu0 %v18396_v14  ;;  %18027 = vmatprep.mubr.msk.f32.mxu0 %vm18951_vm1, %v18950_v15 }
0x2f93   :  { %v18790_v7 = vpop.eup %18789  ;;  %v15073_v8 = vmul.f32 %v18788_v5, %v20837_v20  ;;  %v18503_v25 = vpop.permute.xlu1 %18502  ;;  %18401 = vmatprep.subr.bf16.mxu0 %v18956_v41 }
0x2f94   :  { %v15072_v19 = vmul.f32 %v18790_v7, %v20839_v44  ;;  %v18505_v34 = vunpack.i.h.bf16 %v18503_v25  ;;  %v18504_v26 = vunpack.i.l.bf16 %v18503_v25  ;;  %v18498_v42 = vpop.permute.xlu0 %18497 }
0x2f95   :  { %v18500_v37 = vunpack.i.h.bf16 %v18498_v42  ;;  %v18499_v18 = vunpack.i.l.bf16 %v18498_v42  ;;  %18035 = vmatmul.mubr.msk.f32.vlgmr.msra.gmra.mrb[180].mxu1 %vm1751_vm3, %v15073_v8 }
0x2f96   :  { %v18402_v6 = vpack.c.bf16 %v18505_v34, %v18504_v26  ;;  %18028 = vmatmul.mubr.msk.f32.vlgmr.msra.gmra.mrb[174].mxu0 %vm1751_vm3, %v15072_v19  ;;  %18048 = vmatprep.mubr.msk.f32.mxu1 %vm18951_vm1, %v18950_v15 }
0x2f97   :  { %v18405_v21 = vpack.c.bf16 %v18500_v37, %v18499_v18  ;;  %18041 = vmatprep.mubr.msk.f32.mxu0 %vm18951_vm1, %v18950_v15  ;;  %v15823_v18 = vld [vmem:[#allocation9 + $0x20] sm:$0xff] }
0x2f98   :  { %18403 = vmatpush3.bf16.msra.mxu0 %v18402_v6 }
0x2f99   :  { %18406 = vmatpush3.bf16.msra.mxu1 %v18405_v21  ;;  %18407 = vmatprep.subr.bf16.mxu0 %v18956_v41  ;;  %v15819_v21 = vld [vmem:[#allocation9] sm:$0xff] }
0x2f9a   :  { %v18792_v20 = vpop.eup %18791 }
0x2f9b   :  { %v18794_v44 = vpop.eup %18793  ;;  %v15075_v61 = vmul.f32 %v18792_v20, %v20845_v57  ;;  %v20893_v57 = vsub.s32 0, %v20612_v58  ;;  %v15822_v20 = vld [vmem:[#allocation9 + $0x18] sm:$0xff] }
0x2f9c   :  { %v15074_v9 = vmul.f32 %v18794_v44, %v20847_v40  ;;  %v15821_v44 = vld [vmem:[#allocation9 + $0x10] sm:$0xff] }
0x2f9d   :  { %18049 = vmatmul.mubr.msk.f32.vlgmr.msra.gmra.mrb[182].mxu1 %vm1751_vm3, %v15075_v61  ;;  %v18415_v61 = vpack.c.bf16 %v15822_v20, %v15819_v21 }
0x2f9e   :  { %18042 = vmatmul.mubr.msk.f32.vlgmr.msra.gmra.mrb[176].mxu0 %vm1751_vm3, %v15074_v9  ;;  %15918 = vmatprep.mubr.f32.mxu1 %v18950_v15  ;;  %v15824_v9 = vld [vmem:[#allocation9 + $0x28] sm:$0xff] }
0x2f9f   :  { %18059 = vmatprep.mubr.msk.f32.mxu0 %vm18951_vm1, %v18950_v15  ;;  %18409 = vmatpush3.bf16.msra.mxu0 %v18408_v39 }
0x2fa0   :  { %18410 = vmatprep.subr.bf16.mxu0 %v18956_v41 }
0x3007   :  { %v15145_v28 = vpop.f32.mrb[170].mxu0 }
0x3008   :  { %v18001_v47 = vpop.f32.mrb[171].mxu0 }
0x3009   :  { %v15826_v47 = vld [vmem:[#allocation9 + $0x38] sm:$0xff] }
0x300f   :  { %v15218_v54 = vpop.f32.mrb[176].mxu1 }
0x3010   :  { %v18008_v31 = vpop.f32.mrb[177].mxu1  ;;  %v15661_v14 = vadd.f32 %v15218_v54, %v20709_v27  ;;  %v15829_v54 = vld [vmem:[#allocation9 + $0x50] sm:$0xff] }
0x3011   :  { %v18417_v31 = vpack.c.bf16 %v15829_v54, %v15826_v47 }
0x3060   :  { %v15364_v22 = vpop.f32.mrb[178].mxu1 }
0x3061   :  { %v18022_v55 = vpop.f32.mrb[179].mxu1  ;;  %v15663_v38 = vadd.f32 %v15364_v22, %v20746_v33  ;;  %v15825_v22 = vld [vmem:[#allocation9 + $0x30] sm:$0xff] }
0x3062   :  { %v15828_v55 = vld [vmem:[#allocation9 + $0x48] sm:$0xff] }
0x3063   :  { %v15677_v48 = vrot.slane %v15663_v38, %v20893_v57  ;;  %v16377_v38 = vld [vmem:[#allocation7 + $0x13] ss:$0 sm:$0xff] }
0x3064   :  { %v15291_v12 = vpop.f32.mrb[172].mxu0 }
0x3065   :  { %v15662_v40 = vadd.f32 %v15291_v12, %v20754_v2  ;;  %v18015_v30 = vpop.f32.mrb[173].mxu0  ;;  %v18411_v2 = vpack.c.bf16 %v15726_v51, %v15725_v16  ;;  %v15827_v12 = vld [vmem:[#allocation9 + $0x40] sm:$0xff]  ;;  %v15843_v51 = vsub.s32 2, %v20612_v58 }
0x3067   :  { %v15673_v32 = vrot.slane %v15662_v40, %v20893_v57  ;;  %18412 = vmatpush3.bf16.msra.mxu0 %v18411_v2  ;;  %v15830_v40 = vld [vmem:[#allocation9 + $0x58] sm:$0xff] }
0x3068   :  { %v15510_v36 = vpop.f32.mrb[180].mxu1  ;;  %18421 = vmatprep.subr.bf16.mxu0 %v18956_v41  ;;  %v18425_v30 = vpack.c.bf16 %v15830_v40, %v15827_v12 }
0x3069   :  { %v15437_v10 = vpop.f32.mrb[174].mxu0  ;;  %v15665_v17 = vadd.f32 %v15510_v36, %v20762_v59  ;;  %v18036_v50 = vpop.f32.mrb[181].mxu1  ;;  %15678 = vrot.lane.b32.xlu0 %v15673_v32, %s18941_s22 }
0x306a   :  { %v18029_v3 = vpop.f32.mrb[175].mxu0  ;;  %v15664_v33 = vadd.f32 %v15437_v10, %v20772_v52 }
0x306b   :  { %v15693_v60 = vrot.slane %v15665_v17, %v20893_v57  ;;  %v15839_v3 = vsub.s32 1, %v20612_v58 }
0x306c   :  { %v15689_v59 = vrot.slane %v15664_v33, %v20893_v57 }
0x306d   :  { %15696 = vrot.lane.b32.xlu1 %v15693_v60, %s18942_s1  ;;  %15680 = vrot.lane.b32.xlu0 %v15677_v48, %s18941_s22 }
0x3070   :  { %v15656_v35 = vpop.f32.mrb[182].mxu1 }
0x3071   :  { %v15583_v53 = vpop.f32.mrb[176].mxu0  ;;  %v15667_v0 = vadd.f32 %v15656_v35, %v20790_v11  ;;  %v18050_v13 = vpop.f32.mrb[183].mxu1  ;;  %15694 = vrot.lane.b32.xlu0 %v15689_v59, %s18942_s1 }
0x3072   :  { %v18043_v52 = vpop.f32.mrb[177].mxu0  ;;  %v15666_v62 = vadd.f32 %v15583_v53, %v20788_v23  ;;  %v15660_v23 = vadd.f32 %v15145_v28, %v20706_v1  ;;  %v15820_v1 = vld [vmem:[#allocation9 + $0x8] sm:$0xff]  ;;  %v18422_v28 = vpack.c.bf16 %v15824_v9, %v15821_v44 }
0x3073   :  { %v15709_v4 = vrot.slane %v15667_v0, %v20893_v57  ;;  %v18413_v6 = vpack.c.bf16 %v15823_v18, %v15820_v1 }
0x3074   :  { %v15705_v63 = vrot.slane %v15666_v62, %v20893_v57 }
0x3075   :  { %15712 = vrot.lane.b32.xlu1 %v15709_v4, %s18948_s21  ;;  %18414 = vmatprep.subr.bf16.mxu1 %v18413_v6 }
0x3076   :  { %18416 = vmatpush1.bf16.msra.mxu1 %v18415_v61 }
0x3077   :  { %18418 = vmatprep.subr.bf16.mxu1 %v18417_v31 }
0x3079   :  { %15710 = vrot.lane.b32.xlu1 %v15705_v63, %s18948_s21 }
0x30db   :  { %v15679_v49 = vpop.permute.xlu0 %15678 }
0x30dc   :  { %v15716_v19 = vsel %vm444_vm2, %v15660_v23, %v15679_v49 }
0x30df   :  { %v15681_v46 = vpop.permute.xlu0 %15680  ;;  %v15697_v24 = vpop.permute.xlu1 %15696 }
0x30e0   :  { %v15717_v11 = vsel %vm444_vm2, %v15661_v14, %v15681_v46 }
0x30e1   :  { %v15719_v7 = vsel %vm1751_vm3, %v15717_v11, %v15697_v24 }
0x30e3   :  { %v15695_v8 = vpop.permute.xlu0 %15694 }
0x30e4   :  { %v15718_v34 = vsel %vm1751_vm3, %v15716_v19, %v15695_v8 }
0x30e7   :  { %v15713_v5 = vpop.permute.xlu1 %15712 }
0x30e8   :  { %v15721_v25 = vsel %vm1754_vm4, %v15719_v7, %v15713_v5 }
0x30e9   :  { %v15737_v26 = vrot.slane %v15721_v25, 7 }
0x30eb   :  { %v15711_v42 = vpop.permute.xlu1 %15710 }
0x30ec   :  { %v15720_v27 = vsel %vm1754_vm4, %v15718_v34, %v15711_v42 }
0x30ed   :  { %v15739_v37 = vsel %vm15738_vm7, %v15737_v26, %v15720_v27 }
0x30ee   :  { %18060 = vmatmul.mubr.msk.f32.vlgmr.msra.gmra.mrb[178].mxu0 %vm129_vm0, %v15739_v37 }
0x30ef   :  { %18070 = vmatprep.mubr.msk.f32.mxu0 %vm18951_vm1, %v18950_v15  ;;  %18423 = vmatpush3.bf16.msra.mxu0 %v18422_v28  ;;  %v18419_v15 = vpack.c.bf16 %v15828_v55, %v15825_v22 }
0x30f0   :  { %18424 = vmatprep.subr.bf16.mxu0 %v18956_v41  ;;  %v15831_v41 = vld [vmem:[#allocation10] sm:$0x7] }
0x30f1   :  { %18420 = vmatpush1.bf16.msra.mxu1 %v18419_v15  ;;  %v15836_v2 = vrot.slane %v15831_v41, %v20893_v57  ;;  %v15844_v48 = vrot.slane %v15831_v41, %v15843_v51  ;;  %v15840_v33 = vrot.slane %v15831_v41, %v15839_v3 }
0x30f3   :  { %18426 = vmatpush3.bf16.msra.mxu0 %v18425_v30 }
0x31c1   :  { %v15808_v32 = vpop.f32.mrb[178].mxu0 }
0x31c2   :  { %v15809_v29 = vadd.f32 %v16377_v38, %v15808_v32  ;;  %v18061_v45 = vpop.f32.mrb[179].mxu0 }
0x31c4   :  { %v15812_v36 = vmax.f32 %v15809_v29, 0.0 }
0x31c6   :  { %v15814_v39 = vrot.slane %v15812_v36, 1  ;;  %v15817_v17 = vadd.f32 %v15812_v36, %v15720_v27 }
0x31c8   :  { %v15818_v10 = vadd.f32 %v15814_v39, %v15721_v25 }
0x31ca   :  { %v15850_v50 = vrot.slane %v15818_v10, 7 }
0x31cc   :  { %v15851_v16 = vsel %vm15738_vm7, %v15850_v50, %v15817_v17 }
0x31cd   :  { %16379 = vmatmul.mubr.msk.f32.vlgmr.msra.gmra.mrb[184].mxu1 %vm129_vm0, %v15851_v16  ;;  %18071 = vmatmul.mubr.msk.f32.vlgmr.msra.gmra.mrb[180].mxu0 %vm129_vm0, %v15851_v16 }
0x32a0   :  { %v15920_v60 = vpop.f32.mrb[184].mxu1  ;;  %v15991_v59 = vpop.f32.mrb[180].mxu0 }
0x32a1   :  { %v15921_v35 = vadd.f32 %v15920_v60, %v15836_v2  ;;  %v15922_v53 = vpop.f32.mrb[185].mxu1  ;;  %v18072_v0 = vpop.f32.mrb[181].mxu0  ;;  %v15992_v13 = vadd.f32 %v15991_v59, %v15844_v48 }
0x32a2   :  { %v15923_v52 = vadd.f32 %v15922_v53, %v15840_v33 }
0x32a3   :  { %v16012_v4 = vrot.slane %v15992_v13, %v20627_v56 }
0x32a4   :  { %v15998_v62 = vcombine.low %v15921_v35, %v15923_v52 }
0x32a6   :  { %v16005_v63 = vrot.slane %v15998_v62, %v20627_v56 }
0x32a8   :  { %v16013_v49 = vcombine.low %v16005_v63, %v16012_v4  ;;  %v16014_v46 = vcombine.high %v16005_v63, %v16012_v4 }
0x32aa   :  { %v16021_v58 = vrot.slane %v16013_v49, %v20627_v56  ;;  %v16028_v57 = vrot.slane %v16014_v46, %v20627_v56 }
0x32ac   :  { %16035 = vst.msk [vmem:[%s20954_s9] sm:$0x7] %vm16033_vm8, %v16021_v58  ;;  %16036 = vst.msk [vmem:[%s20954_s9 + $0x3] sm:$0x7] %vm16033_vm8, %v16028_v57 }
0x32ad   :  { %16041 = vsyncpa [#allocation3], 1 }
0x32ae   :  { %16042 = vsyncpa [#allocation5], 1 }
0x32af   :  { %16043 = vsyncpa [#allocation8], 1 }
0x32b0   :  { %16044 = vsyncpa [#allocation11], 1 }

</bundles_post_ra>
